<compile_context>
chip_gen: v7x
topology: tpu7x:2x2x1
jax: 0.10.0
libtpu: 0.0.40
codegen_flags: <defaults>
</compile_context>

<pallas_src>
import functools

import jax
import jax.numpy as jnp
from jax.experimental import pallas as pl
from jax.experimental.pallas import tpu as pltpu

BN_EPS = 1e-5
LANE = 128

_COMPILER_PARAMS = pltpu.CompilerParams(
    dimension_semantics=("parallel",),      # one image per grid step
    vmem_limit_bytes=64 * 1024 * 1024,      # sized for the v7x 64 MiB budget
)


# ----------------------------- Pallas kernels ------------------------------

def _conv_s1_kernel(x_ref, w_ref, m_ref, y_ref, s_ref, *, wp, L, cop):
    """3x3 stride-1 conv on one image, flat padded layout, + BN partial stats.

    x_ref: (1, Hp*Wp, CinP) bf16  - zero-padded image, flattened spatially
    w_ref: (9, CinP, CoutP) bf16  - one weight slab per 3x3 tap
    m_ref: (L, 1) f32             - 1.0 on valid output rows, 0.0 on garbage
    y_ref: (1, L, CoutP) f32      - raw conv output (flat "L layout")
    s_ref: (1, 2, CoutP) f32      - per-image [sum, sumsq] over valid rows
    """
    acc = jnp.zeros((L, cop), jnp.float32)
    for t in range(9):
        dy, dx = divmod(t, 3)
        off = dy * wp + dx
        win = x_ref[0, off:off + L, :]                       # (L, CinP) bf16
        acc = acc + jnp.dot(win, w_ref[t],
                            preferred_element_type=jnp.float32)
    y_ref[0, :, :] = acc
    mask = m_ref[...]                                        # (L, 1)
    accm = acc * mask
    s_ref[0, 0:1, :] = jnp.sum(accm, axis=0, keepdims=True)
    s_ref[0, 1:2, :] = jnp.sum(accm * acc, axis=0, keepdims=True)


def _bn_apply_kernel(y_ref, s_ref, g_ref, b_ref, m_ref, *rest,
                     wp, L, count, use_res):
    """BatchNorm(batch stats) [+ residual] + ReLU; writes padded activation.

    y_ref: (1, L, C) f32          - raw conv output for this image
    s_ref: (N, 2, C) f32          - partial stats from all images (resident)
    g_ref, b_ref: (1, C) f32      - gamma / beta
    m_ref: (L, 1) f32             - valid-row mask
    rest : ([res_ref (1, Hp*Wp, C) bf16,]  out_ref (1, Hp*Wp, C) bf16)
    """
    if use_res:
        r_ref, o_ref = rest
    else:
        (o_ref,) = rest
    tot = jnp.sum(s_ref[...], axis=0)                        # (2, C)
    mean = tot[0:1, :] * (1.0 / count)
    var = tot[1:2, :] * (1.0 / count) - mean * mean
    scale = g_ref[...] * jax.lax.rsqrt(var + BN_EPS)         # (1, C)
    shift = b_ref[...] - mean * scale
    out = y_ref[0, :, :] * scale + shift                     # (L, C) f32
    if use_res:
        out = out + r_ref[0, wp + 1: wp + 1 + L, :].astype(jnp.float32)
    out = jnp.maximum(out, 0.0) * m_ref[...]                 # zero pad columns
    o_ref[...] = jnp.zeros(o_ref.shape, o_ref.dtype)
    o_ref[0, wp + 1: wp + 1 + L, :] = out.astype(o_ref.dtype)


def _taps_matmul_kernel(t_ref, w_ref, o_ref, *, m, cop):
    """Stride-2 3x3 conv (no BN/bias): 9 decimated taps x weight slabs."""
    acc = jnp.zeros((m, cop), jnp.float32)
    for t in range(9):
        acc = acc + jnp.dot(t_ref[t, 0, :, :], w_ref[t],
                            preferred_element_type=jnp.float32)
    o_ref[0, :, :] = acc.astype(o_ref.dtype)


def _pool_kernel(t_ref, o_ref):
    """AvgPool2d(3, stride=2, pad=1, count_include_pad): mean of 9 taps."""
    acc = t_ref[0, 0, :, :].astype(jnp.float32)
    for t in range(1, 9):
        acc = acc + t_ref[t, 0, :, :].astype(jnp.float32)
    o_ref[0, :, :] = (acc * (1.0 / 9.0)).astype(o_ref.dtype)


# ------------------------------ host-side glue ------------------------------

def _round_up_lane(c):
    return max(LANE, ((c + LANE - 1) // LANE) * LANE)


def _flat(a4):
    n, hp, wp, c = a4.shape
    return a4.reshape(n, hp * wp, c)


def _row_mask(hh, ww):
    wp = ww + 2
    length = (hh - 1) * wp + ww
    col = jnp.arange(length, dtype=jnp.int32) % wp
    return (col < ww).astype(jnp.float32).reshape(length, 1)


def _extract_taps(ap4, stride, ho, wo):
    """9 (dy,dx)-shifted, stride-decimated views of a padded NHWC map."""
    taps = []
    for dy in range(3):
        for dx in range(3):
            taps.append(ap4[:, dy:dy + stride * (ho - 1) + 1:stride,
                               dx:dx + stride * (wo - 1) + 1:stride, :])
    return jnp.stack(taps, axis=0)


def _conv_bn_stats(act_p4, w9, mask):
    """Stride-1 conv over a padded bf16 activation; returns (y, partial stats)."""
    n, hp, wp, cp = act_p4.shape
    hh, ww = hp - 2, wp - 2
    L = (hh - 1) * wp + ww
    cop = w9.shape[-1]
    kern = functools.partial(_conv_s1_kernel, wp=wp, L=L, cop=cop)
    y, stats = pl.pallas_call(
        kern,
        grid=(n,),
        in_specs=[
            pl.BlockSpec((1, hp * wp, cp), lambda i: (i, 0, 0)),
            pl.BlockSpec((9, cp, cop), lambda i: (0, 0, 0)),
            pl.BlockSpec((L, 1), lambda i: (0, 0)),
        ],
        out_specs=(
            pl.BlockSpec((1, L, cop), lambda i: (i, 0, 0)),
            pl.BlockSpec((1, 2, cop), lambda i: (i, 0, 0)),
        ),
        out_shape=(
            jax.ShapeDtypeStruct((n, L, cop), jnp.float32),
            jax.ShapeDtypeStruct((n, 2, cop), jnp.float32),
        ),
        compiler_params=_COMPILER_PARAMS,
    )(_flat(act_p4), w9, mask)
    return y, stats


def _bn_relu_next(y, stats, gamma, beta, mask, hh, ww, resid_p4=None):
    """BN(batch stats) [+res] +ReLU; returns the padded bf16 next activation."""
    n, L, cop = y.shape
    wp, hp = ww + 2, hh + 2
    use_res = resid_p4 is not None
    kern = functools.partial(_bn_apply_kernel, wp=wp, L=L,
                             count=float(n * hh * ww), use_res=use_res)
    in_specs = [
        pl.BlockSpec((1, L, cop), lambda i: (i, 0, 0)),
        pl.BlockSpec((n, 2, cop), lambda i: (0, 0, 0)),
        pl.BlockSpec((1, cop), lambda i: (0, 0)),
        pl.BlockSpec((1, cop), lambda i: (0, 0)),
        pl.BlockSpec((L, 1), lambda i: (0, 0)),
    ]
    args = [y, stats, gamma, beta, mask]
    if use_res:
        in_specs.append(pl.BlockSpec((1, hp * wp, cop), lambda i: (i, 0, 0)))
        args.append(_flat(resid_p4))
    out = pl.pallas_call(
        kern,
        grid=(n,),
        in_specs=in_specs,
        out_specs=pl.BlockSpec((1, hp * wp, cop), lambda i: (i, 0, 0)),
        out_shape=jax.ShapeDtypeStruct((n, hp * wp, cop), jnp.bfloat16),
        compiler_params=_COMPILER_PARAMS,
    )(*args)
    return out.reshape(n, hp, wp, cop)


def _conv_strided(act_p4, w9):
    """3x3 stride-2 conv (no BN/bias); returns padded bf16 activation."""
    n, hp, wp, cp = act_p4.shape
    ho = (hp - 3) // 2 + 1
    wo = (wp - 3) // 2 + 1
    cop = w9.shape[-1]
    taps = _extract_taps(act_p4, 2, ho, wo).reshape(9, n, ho * wo, cp)
    kern = functools.partial(_taps_matmul_kernel, m=ho * wo, cop=cop)
    out = pl.pallas_call(
        kern,
        grid=(n,),
        in_specs=[
            pl.BlockSpec((9, 1, ho * wo, cp), lambda i: (0, i, 0, 0)),
            pl.BlockSpec((9, cp, cop), lambda i: (0, 0, 0)),
        ],
        out_specs=pl.BlockSpec((1, ho * wo, cop), lambda i: (i, 0, 0)),
        out_shape=jax.ShapeDtypeStruct((n, ho * wo, cop), jnp.bfloat16),
        compiler_params=_COMPILER_PARAMS,
    )(taps, w9)
    out = out.reshape(n, ho, wo, cop)
    return jnp.pad(out, ((0, 0), (1, 1), (1, 1), (0, 0)))


def _avgpool_3x3_s2(act_p4):
    """AvgPool2d(3, 2, 1); returns padded bf16 activation."""
    n, hp, wp, cp = act_p4.shape
    ho = (hp - 3) // 2 + 1
    wo = (wp - 3) // 2 + 1
    taps = _extract_taps(act_p4, 2, ho, wo).reshape(9, n, ho * wo, cp)
    out = pl.pallas_call(
        _pool_kernel,
        grid=(n,),
        in_specs=[pl.BlockSpec((9, 1, ho * wo, cp), lambda i: (0, i, 0, 0))],
        out_specs=pl.BlockSpec((1, ho * wo, cp), lambda i: (i, 0, 0)),
        out_shape=jax.ShapeDtypeStruct((n, ho * wo, cp), jnp.bfloat16),
        compiler_params=_COMPILER_PARAMS,
    )(taps)
    out = out.reshape(n, ho, wo, cp)
    return jnp.pad(out, ((0, 0), (1, 1), (1, 1), (0, 0)))


def _residual_block(act_p4, p, mask):
    n, hp, wp, _ = act_p4.shape
    hh, ww = hp - 2, wp - 2
    y1, s1 = _conv_bn_stats(act_p4, p["w1"], mask)
    a1 = _bn_relu_next(y1, s1, p["g1"], p["b1"], mask, hh, ww)
    y2, s2 = _conv_bn_stats(a1, p["w2"], mask)
    return _bn_relu_next(y2, s2, p["g2"], p["b2"], mask, hh, ww,
                         resid_p4=act_p4)


# ------------------------------ parameter init ------------------------------

def _prep_conv_w(w_hwio, cp_in, cp_out):
    kh, kw, cin, cout = w_hwio.shape
    wpad = jnp.pad(w_hwio, ((0, 0), (0, 0),
                            (0, cp_in - cin), (0, cp_out - cout)))
    return wpad.reshape(kh * kw, cp_in, cp_out).astype(jnp.bfloat16)


def _pad_vec(v, cp, fill):
    return jnp.pad(v, (0, cp - v.shape[0]),
                   constant_values=fill).reshape(1, cp).astype(jnp.float32)


def _init_resblock(key, c, cp):
    k1, k2, k3, k4, k5, k6 = jax.random.split(key, 6)
    return {
        "w1": _prep_conv_w(0.1 * jax.random.normal(k1, (3, 3, c, c), jnp.float32), cp, cp),
        "w2": _prep_conv_w(0.1 * jax.random.normal(k2, (3, 3, c, c), jnp.float32), cp, cp),
        "g1": _pad_vec(1.0 + 0.1 * jax.random.normal(k3, (c,), jnp.float32), cp, 1.0),
        "b1": _pad_vec(0.1 * jax.random.normal(k4, (c,), jnp.float32), cp, 0.0),
        "g2": _pad_vec(1.0 + 0.1 * jax.random.normal(k5, (c,), jnp.float32), cp, 1.0),
        "b2": _pad_vec(0.1 * jax.random.normal(k6, (c,), jnp.float32), cp, 0.0),
    }


def init_downsample_params(key, in_channels, out_channels):
    c_half = out_channels // 2
    cp_in = _round_up_lane(in_channels)
    cp_half = _round_up_lane(c_half)
    cp_out = _round_up_lane(out_channels)
    keys = jax.random.split(key, 12)
    return {
        "conv1_w": _prep_conv_w(
            0.1 * jax.random.normal(keys[0], (3, 3, in_channels, c_half), jnp.float32),
            cp_in, cp_half),
        "resblocks1": [_init_resblock(keys[1 + i], c_half, cp_half) for i in range(2)],
        "conv2_w": _prep_conv_w(
            0.1 * jax.random.normal(keys[3], (3, 3, c_half, out_channels), jnp.float32),
            cp_half, cp_out),
        "resblocks2": [_init_resblock(keys[4 + i], out_channels, cp_out) for i in range(3)],
        "resblocks3": [_init_resblock(keys[7 + i], out_channels, cp_out) for i in range(3)],
    }


# ------------------------------ forward pass --------------------------------

@functools.partial(jax.jit, static_argnames=("out_channels",))
def downsample_forward(x_nchw, params, *, out_channels):
    """DownSample.forward: NCHW input -> NCHW output (train-mode BN)."""
    cin = x_nchw.shape[1]
    cp_in = params["conv1_w"].shape[1]
    x = jnp.transpose(x_nchw.astype(jnp.float32), (0, 2, 3, 1))      # NHWC
    x = jnp.pad(x, ((0, 0), (0, 0), (0, 0), (0, cp_in - cin)))       # lane pad
    act = jnp.pad(x.astype(jnp.bfloat16), ((0, 0), (1, 1), (1, 1), (0, 0)))

    act = _conv_strided(act, params["conv1_w"])                      # conv1 (s=2)
    mask = _row_mask(act.shape[1] - 2, act.shape[2] - 2)
    for p in params["resblocks1"]:
        act = _residual_block(act, p, mask)

    act = _conv_strided(act, params["conv2_w"])                      # conv2 (s=2)
    mask = _row_mask(act.shape[1] - 2, act.shape[2] - 2)
    for p in params["resblocks2"]:
        act = _residual_block(act, p, mask)

    act = _avgpool_3x3_s2(act)                                       # pooling1
    mask = _row_mask(act.shape[1] - 2, act.shape[2] - 2)
    for p in params["resblocks3"]:
        act = _residual_block(act, p, mask)

    act = _avgpool_3x3_s2(act)                                       # pooling2

    out = act[:, 1:-1, 1:-1, :out_channels].astype(jnp.float32)
    return jnp.transpose(out, (0, 3, 1, 2))                          # NCHW


# ---------------------------------- main -------------------------------------

if __name__ == "__main__":
    key = jax.random.PRNGKey(0)
    k_x, k_p = jax.random.split(key)

    N, IN_CH, OUT_CH, H, W = 2, 4, 16, 16, 16
    x = jax.random.normal(k_x, (N, IN_CH, H, W), jnp.float32)        # NCHW
    params = init_downsample_params(k_p, IN_CH, OUT_CH)

    out = downsample_forward(x, params, out_channels=OUT_CH)
    out = jax.block_until_ready(out)

    assert out.shape == (N, OUT_CH, H // 16, W // 16), out.shape      # (2,16,1,1)
    assert bool(jnp.all(jnp.isfinite(out)))
    print("KERNEL_OK")
</pallas_src>

<mosaic_0001>
module attributes {stable_mosaic.version = 11 : i64} {
  func.func @_taps_matmul_kernel(%arg0: i32, %arg1: memref<9x1x64x128xbf16, #tpu.memory_space<vmem>>, %arg2: memref<9x128x128xbf16, #tpu.memory_space<vmem>>, %arg3: memref<1x64x128xbf16, #tpu.memory_space<vmem>>) attributes {dimension_semantics = [#tpu.dimension_semantics<parallel>], iteration_bounds = array<i64: 2>, scalar_prefetch = 0 : i64, scratch_operands = 0 : i64, tpu.core_type = #tpu.core_type<tc>, window_params = [{transform_indices = @transform_0, window_bounds = array<i64: 9, 1, 64, 128>}, {pipeline_mode = #tpu.pipeline_mode<synchronous>, transform_indices = @transform_1, window_bounds = array<i64: 9, 128, 128>}, {transform_indices = @transform_2, window_bounds = array<i64: 1, 64, 128>}]} {
    %cst = arith.constant 0.000000e+00 : f32
    %0 = vector.broadcast %cst : f32 to vector<64x128xf32>
    %c0 = arith.constant 0 : index
    %c0_0 = arith.constant 0 : index
    %c0_1 = arith.constant 0 : index
    %c0_2 = arith.constant 0 : index
    %1 = vector.load %arg1[%c0, %c0_0, %c0_1, %c0_2] : memref<9x1x64x128xbf16, #tpu.memory_space<vmem>>, vector<1x1x64x128xbf16>
    %2 = vector.shape_cast %1 : vector<1x1x64x128xbf16> to vector<64x128xbf16>
    %c0_3 = arith.constant 0 : index
    %c0_4 = arith.constant 0 : index
    %c0_5 = arith.constant 0 : index
    %3 = vector.load %arg2[%c0_3, %c0_4, %c0_5] : memref<9x128x128xbf16, #tpu.memory_space<vmem>>, vector<1x128x128xbf16>
    %4 = vector.shape_cast %3 : vector<1x128x128xbf16> to vector<128x128xbf16>
    %cst_6 = arith.constant dense<0.000000e+00> : vector<64x128xf32>
    %5 = tpu.matmul %2, %4, %cst_6 {dimension_numbers = #tpu.dot_dimension_numbers<[1], [0], [0], [1], [0, 0, 1, 1], [], []>} : vector<64x128xbf16>, vector<128x128xbf16>, vector<64x128xf32> -> vector<64x128xf32>
    %6 = arith.addf %0, %5 : vector<64x128xf32>
    %c1 = arith.constant 1 : index
    %c0_7 = arith.constant 0 : index
    %c0_8 = arith.constant 0 : index
    %c0_9 = arith.constant 0 : index
    %7 = vector.load %arg1[%c1, %c0_7, %c0_8, %c0_9] : memref<9x1x64x128xbf16, #tpu.memory_space<vmem>>, vector<1x1x64x128xbf16>
    %8 = vector.shape_cast %7 : vector<1x1x64x128xbf16> to vector<64x128xbf16>
    %c1_10 = arith.constant 1 : index
    %c0_11 = arith.constant 0 : index
    %c0_12 = arith.constant 0 : index
    %9 = vector.load %arg2[%c1_10, %c0_11, %c0_12] : memref<9x128x128xbf16, #tpu.memory_space<vmem>>, vector<1x128x128xbf16>
    %10 = vector.shape_cast %9 : vector<1x128x128xbf16> to vector<128x128xbf16>
    %cst_13 = arith.constant dense<0.000000e+00> : vector<64x128xf32>
    %11 = tpu.matmul %8, %10, %cst_13 {dimension_numbers = #tpu.dot_dimension_numbers<[1], [0], [0], [1], [0, 0, 1, 1], [], []>} : vector<64x128xbf16>, vector<128x128xbf16>, vector<64x128xf32> -> vector<64x128xf32>
    %12 = arith.addf %6, %11 : vector<64x128xf32>
    %c2 = arith.constant 2 : index
    %c0_14 = arith.constant 0 : index
    %c0_15 = arith.constant 0 : index
    %c0_16 = arith.constant 0 : index
    %13 = vector.load %arg1[%c2, %c0_14, %c0_15, %c0_16] : memref<9x1x64x128xbf16, #tpu.memory_space<vmem>>, vector<1x1x64x128xbf16>
    %14 = vector.shape_cast %13 : vector<1x1x64x128xbf16> to vector<64x128xbf16>
    %c2_17 = arith.constant 2 : index
    %c0_18 = arith.constant 0 : index
    %c0_19 = arith.constant 0 : index
    %15 = vector.load %arg2[%c2_17, %c0_18, %c0_19] : memref<9x128x128xbf16, #tpu.memory_space<vmem>>, vector<1x128x128xbf16>
    %16 = vector.shape_cast %15 : vector<1x128x128xbf16> to vector<128x128xbf16>
    %cst_20 = arith.constant dense<0.000000e+00> : vector<64x128xf32>
    %17 = tpu.matmul %14, %16, %cst_20 {dimension_numbers = #tpu.dot_dimension_numbers<[1], [0], [0], [1], [0, 0, 1, 1], [], []>} : vector<64x128xbf16>, vector<128x128xbf16>, vector<64x128xf32> -> vector<64x128xf32>
    %18 = arith.addf %12, %17 : vector<64x128xf32>
    %c3 = arith.constant 3 : index
    %c0_21 = arith.constant 0 : index
    %c0_22 = arith.constant 0 : index
    %c0_23 = arith.constant 0 : index
    %19 = vector.load %arg1[%c3, %c0_21, %c0_22, %c0_23] : memref<9x1x64x128xbf16, #tpu.memory_space<vmem>>, vector<1x1x64x128xbf16>
    %20 = vector.shape_cast %19 : vector<1x1x64x128xbf16> to vector<64x128xbf16>
    %c3_24 = arith.constant 3 : index
    %c0_25 = arith.constant 0 : index
    %c0_26 = arith.constant 0 : index
    %21 = vector.load %arg2[%c3_24, %c0_25, %c0_26] : memref<9x128x128xbf16, #tpu.memory_space<vmem>>, vector<1x128x128xbf16>
    %22 = vector.shape_cast %21 : vector<1x128x128xbf16> to vector<128x128xbf16>
    %cst_27 = arith.constant dense<0.000000e+00> : vector<64x128xf32>
    %23 = tpu.matmul %20, %22, %cst_27 {dimension_numbers = #tpu.dot_dimension_numbers<[1], [0], [0], [1], [0, 0, 1, 1], [], []>} : vector<64x128xbf16>, vector<128x128xbf16>, vector<64x128xf32> -> vector<64x128xf32>
    %24 = arith.addf %18, %23 : vector<64x128xf32>
    %c4 = arith.constant 4 : index
    %c0_28 = arith.constant 0 : index
    %c0_29 = arith.constant 0 : index
    %c0_30 = arith.constant 0 : index
    %25 = vector.load %arg1[%c4, %c0_28, %c0_29, %c0_30] : memref<9x1x64x128xbf16, #tpu.memory_space<vmem>>, vector<1x1x64x128xbf16>
    %26 = vector.shape_cast %25 : vector<1x1x64x128xbf16> to vector<64x128xbf16>
    %c4_31 = arith.constant 4 : index
    %c0_32 = arith.constant 0 : index
    %c0_33 = arith.constant 0 : index
    %27 = vector.load %arg2[%c4_31, %c0_32, %c0_33] : memref<9x128x128xbf16, #tpu.memory_space<vmem>>, vector<1x128x128xbf16>
    %28 = vector.shape_cast %27 : vector<1x128x128xbf16> to vector<128x128xbf16>
    %cst_34 = arith.constant dense<0.000000e+00> : vector<64x128xf32>
    %29 = tpu.matmul %26, %28, %cst_34 {dimension_numbers = #tpu.dot_dimension_numbers<[1], [0], [0], [1], [0, 0, 1, 1], [], []>} : vector<64x128xbf16>, vector<128x128xbf16>, vector<64x128xf32> -> vector<64x128xf32>
    %30 = arith.addf %24, %29 : vector<64x128xf32>
    %c5 = arith.constant 5 : index
    %c0_35 = arith.constant 0 : index
    %c0_36 = arith.constant 0 : index
    %c0_37 = arith.constant 0 : index
    %31 = vector.load %arg1[%c5, %c0_35, %c0_36, %c0_37] : memref<9x1x64x128xbf16, #tpu.memory_space<vmem>>, vector<1x1x64x128xbf16>
    %32 = vector.shape_cast %31 : vector<1x1x64x128xbf16> to vector<64x128xbf16>
    %c5_38 = arith.constant 5 : index
    %c0_39 = arith.constant 0 : index
    %c0_40 = arith.constant 0 : index
    %33 = vector.load %arg2[%c5_38, %c0_39, %c0_40] : memref<9x128x128xbf16, #tpu.memory_space<vmem>>, vector<1x128x128xbf16>
    %34 = vector.shape_cast %33 : vector<1x128x128xbf16> to vector<128x128xbf16>
    %cst_41 = arith.constant dense<0.000000e+00> : vector<64x128xf32>
    %35 = tpu.matmul %32, %34, %cst_41 {dimension_numbers = #tpu.dot_dimension_numbers<[1], [0], [0], [1], [0, 0, 1, 1], [], []>} : vector<64x128xbf16>, vector<128x128xbf16>, vector<64x128xf32> -> vector<64x128xf32>
    %36 = arith.addf %30, %35 : vector<64x128xf32>
    %c6 = arith.constant 6 : index
    %c0_42 = arith.constant 0 : index
    %c0_43 = arith.constant 0 : index
    %c0_44 = arith.constant 0 : index
    %37 = vector.load %arg1[%c6, %c0_42, %c0_43, %c0_44] : memref<9x1x64x128xbf16, #tpu.memory_space<vmem>>, vector<1x1x64x128xbf16>
    %38 = vector.shape_cast %37 : vector<1x1x64x128xbf16> to vector<64x128xbf16>
    %c6_45 = arith.constant 6 : index
    %c0_46 = arith.constant 0 : index
    %c0_47 = arith.constant 0 : index
    %39 = vector.load %arg2[%c6_45, %c0_46, %c0_47] : memref<9x128x128xbf16, #tpu.memory_space<vmem>>, vector<1x128x128xbf16>
    %40 = vector.shape_cast %39 : vector<1x128x128xbf16> to vector<128x128xbf16>
    %cst_48 = arith.constant dense<0.000000e+00> : vector<64x128xf32>
    %41 = tpu.matmul %38, %40, %cst_48 {dimension_numbers = #tpu.dot_dimension_numbers<[1], [0], [0], [1], [0, 0, 1, 1], [], []>} : vector<64x128xbf16>, vector<128x128xbf16>, vector<64x128xf32> -> vector<64x128xf32>
    %42 = arith.addf %36, %41 : vector<64x128xf32>
    %c7 = arith.constant 7 : index
    %c0_49 = arith.constant 0 : index
    %c0_50 = arith.constant 0 : index
    %c0_51 = arith.constant 0 : index
    %43 = vector.load %arg1[%c7, %c0_49, %c0_50, %c0_51] : memref<9x1x64x128xbf16, #tpu.memory_space<vmem>>, vector<1x1x64x128xbf16>
    %44 = vector.shape_cast %43 : vector<1x1x64x128xbf16> to vector<64x128xbf16>
    %c7_52 = arith.constant 7 : index
    %c0_53 = arith.constant 0 : index
    %c0_54 = arith.constant 0 : index
    %45 = vector.load %arg2[%c7_52, %c0_53, %c0_54] : memref<9x128x128xbf16, #tpu.memory_space<vmem>>, vector<1x128x128xbf16>
    %46 = vector.shape_cast %45 : vector<1x128x128xbf16> to vector<128x128xbf16>
    %cst_55 = arith.constant dense<0.000000e+00> : vector<64x128xf32>
    %47 = tpu.matmul %44, %46, %cst_55 {dimension_numbers = #tpu.dot_dimension_numbers<[1], [0], [0], [1], [0, 0, 1, 1], [], []>} : vector<64x128xbf16>, vector<128x128xbf16>, vector<64x128xf32> -> vector<64x128xf32>
    %48 = arith.addf %42, %47 : vector<64x128xf32>
    %c8 = arith.constant 8 : index
    %c0_56 = arith.constant 0 : index
    %c0_57 = arith.constant 0 : index
    %c0_58 = arith.constant 0 : index
    %49 = vector.load %arg1[%c8, %c0_56, %c0_57, %c0_58] : memref<9x1x64x128xbf16, #tpu.memory_space<vmem>>, vector<1x1x64x128xbf16>
    %50 = vector.shape_cast %49 : vector<1x1x64x128xbf16> to vector<64x128xbf16>
    %c8_59 = arith.constant 8 : index
    %c0_60 = arith.constant 0 : index
    %c0_61 = arith.constant 0 : index
    %51 = vector.load %arg2[%c8_59, %c0_60, %c0_61] : memref<9x128x128xbf16, #tpu.memory_space<vmem>>, vector<1x128x128xbf16>
    %52 = vector.shape_cast %51 : vector<1x128x128xbf16> to vector<128x128xbf16>
    %cst_62 = arith.constant dense<0.000000e+00> : vector<64x128xf32>
    %53 = tpu.matmul %50, %52, %cst_62 {dimension_numbers = #tpu.dot_dimension_numbers<[1], [0], [0], [1], [0, 0, 1, 1], [], []>} : vector<64x128xbf16>, vector<128x128xbf16>, vector<64x128xf32> -> vector<64x128xf32>
    %54 = arith.addf %48, %53 : vector<64x128xf32>
    %55 = arith.truncf %54 : vector<64x128xf32> to vector<64x128xbf16>
    %c0_63 = arith.constant 0 : index
    %c0_64 = arith.constant 0 : index
    %c0_65 = arith.constant 0 : index
    %56 = vector.load %arg3[%c0_63, %c0_64, %c0_65] : memref<1x64x128xbf16, #tpu.memory_space<vmem>>, vector<1x64x128xbf16>
    %57 = vector.shape_cast %56 : vector<1x64x128xbf16> to vector<64x128xbf16>
    %58 = vector.shape_cast %55 : vector<64x128xbf16> to vector<1x64x128xbf16>
    tpu.vector_store %arg3[%c0_63, %c0_64, %c0_65], %58 {strides = array<i32>} : memref<1x64x128xbf16, #tpu.memory_space<vmem>>, vector<1x64x128xbf16>,
    return
  }
  func.func @transform_0(%arg0: i32) -> (i32, i32, i32, i32) {
    %c0_i32 = arith.constant 0 : i32
    %c0_i32_0 = arith.constant 0 : i32
    %c0_i32_1 = arith.constant 0 : i32
    %c0_i32_2 = arith.constant 0 : i32
    return %c0_i32, %arg0, %c0_i32_0, %c0_i32_1 : i32, i32, i32, i32
  }
  func.func @transform_1(%arg0: i32) -> (i32, i32, i32) {
    %c0_i32 = arith.constant 0 : i32
    %c0_i32_0 = arith.constant 0 : i32
    %c0_i32_1 = arith.constant 0 : i32
    %c0_i32_2 = arith.constant 0 : i32
    return %c0_i32, %c0_i32_0, %c0_i32_1 : i32, i32, i32
  }
  func.func @transform_2(%arg0: i32) -> (i32, i32, i32) {
    %c0_i32 = arith.constant 0 : i32
    %c0_i32_0 = arith.constant 0 : i32
    %c0_i32_1 = arith.constant 0 : i32
    return %arg0, %c0_i32, %c0_i32_0 : i32, i32, i32
  }
}

module attributes {stable_mosaic.version = 11 : i64} {
  func.func @_conv_s1_kernel(%arg0: i32, %arg1: memref<1x100x128xbf16, #tpu.memory_space<vmem>>, %arg2: memref<9x128x128xbf16, #tpu.memory_space<vmem>>, %arg3: memref<78x1xf32, #tpu.memory_space<vmem>>, %arg4: memref<1x78x128xf32, #tpu.memory_space<vmem>>, %arg5: memref<1x2x128xf32, #tpu.memory_space<vmem>>) attributes {dimension_semantics = [#tpu.dimension_semantics<parallel>], iteration_bounds = array<i64: 2>, scalar_prefetch = 0 : i64, scratch_operands = 0 : i64, tpu.core_type = #tpu.core_type<tc>, window_params = [{transform_indices = @transform_0, window_bounds = array<i64: 1, 100, 128>}, {pipeline_mode = #tpu.pipeline_mode<synchronous>, transform_indices = @transform_1, window_bounds = array<i64: 9, 128, 128>}, {pipeline_mode = #tpu.pipeline_mode<synchronous>, transform_indices = @transform_2, window_bounds = array<i64: 78, 1>}, {transform_indices = @transform_3, window_bounds = array<i64: 1, 78, 128>}, {transform_indices = @transform_4, window_bounds = array<i64: 1, 2, 128>}]} {
    %cst = arith.constant 0.000000e+00 : f32
    %0 = vector.broadcast %cst : f32 to vector<78x128xf32>
    %c0 = arith.constant 0 : index
    %c0_0 = arith.constant 0 : index
    %c0_1 = arith.constant 0 : index
    %1 = vector.load %arg1[%c0, %c0_0, %c0_1] : memref<1x100x128xbf16, #tpu.memory_space<vmem>>, vector<1x78x128xbf16>
    %2 = vector.shape_cast %1 : vector<1x78x128xbf16> to vector<78x128xbf16>
    %c0_2 = arith.constant 0 : index
    %c0_3 = arith.constant 0 : index
    %c0_4 = arith.constant 0 : index
    %3 = vector.load %arg2[%c0_2, %c0_3, %c0_4] : memref<9x128x128xbf16, #tpu.memory_space<vmem>>, vector<1x128x128xbf16>
    %4 = vector.shape_cast %3 : vector<1x128x128xbf16> to vector<128x128xbf16>
    %cst_5 = arith.constant dense<0.000000e+00> : vector<78x128xf32>
    %5 = tpu.matmul %2, %4, %cst_5 {dimension_numbers = #tpu.dot_dimension_numbers<[1], [0], [0], [1], [0, 0, 1, 1], [], []>} : vector<78x128xbf16>, vector<128x128xbf16>, vector<78x128xf32> -> vector<78x128xf32>
    %6 = arith.addf %0, %5 : vector<78x128xf32>
    %c0_6 = arith.constant 0 : index
    %c1 = arith.constant 1 : index
    %c0_7 = arith.constant 0 : index
    %7 = vector.load %arg1[%c0_6, %c1, %c0_7] : memref<1x100x128xbf16, #tpu.memory_space<vmem>>, vector<1x78x128xbf16>
    %8 = vector.shape_cast %7 : vector<1x78x128xbf16> to vector<78x128xbf16>
    %c1_8 = arith.constant 1 : index
    %c0_9 = arith.constant 0 : index
    %c0_10 = arith.constant 0 : index
    %9 = vector.load %arg2[%c1_8, %c0_9, %c0_10] : memref<9x128x128xbf16, #tpu.memory_space<vmem>>, vector<1x128x128xbf16>
    %10 = vector.shape_cast %9 : vector<1x128x128xbf16> to vector<128x128xbf16>
    %cst_11 = arith.constant dense<0.000000e+00> : vector<78x128xf32>
    %11 = tpu.matmul %8, %10, %cst_11 {dimension_numbers = #tpu.dot_dimension_numbers<[1], [0], [0], [1], [0, 0, 1, 1], [], []>} : vector<78x128xbf16>, vector<128x128xbf16>, vector<78x128xf32> -> vector<78x128xf32>
    %12 = arith.addf %6, %11 : vector<78x128xf32>
    %c0_12 = arith.constant 0 : index
    %c2 = arith.constant 2 : index
    %c0_13 = arith.constant 0 : index
    %13 = vector.load %arg1[%c0_12, %c2, %c0_13] : memref<1x100x128xbf16, #tpu.memory_space<vmem>>, vector<1x78x128xbf16>
    %14 = vector.shape_cast %13 : vector<1x78x128xbf16> to vector<78x128xbf16>
    %c2_14 = arith.constant 2 : index
    %c0_15 = arith.constant 0 : index
    %c0_16 = arith.constant 0 : index
    %15 = vector.load %arg2[%c2_14, %c0_15, %c0_16] : memref<9x128x128xbf16, #tpu.memory_space<vmem>>, vector<1x128x128xbf16>
    %16 = vector.shape_cast %15 : vector<1x128x128xbf16> to vector<128x128xbf16>
    %cst_17 = arith.constant dense<0.000000e+00> : vector<78x128xf32>
    %17 = tpu.matmul %14, %16, %cst_17 {dimension_numbers = #tpu.dot_dimension_numbers<[1], [0], [0], [1], [0, 0, 1, 1], [], []>} : vector<78x128xbf16>, vector<128x128xbf16>, vector<78x128xf32> -> vector<78x128xf32>
    %18 = arith.addf %12, %17 : vector<78x128xf32>
    %c0_18 = arith.constant 0 : index
    %c10 = arith.constant 10 : index
    %c0_19 = arith.constant 0 : index
    %19 = vector.load %arg1[%c0_18, %c10, %c0_19] : memref<1x100x128xbf16, #tpu.memory_space<vmem>>, vector<1x78x128xbf16>
    %20 = vector.shape_cast %19 : vector<1x78x128xbf16> to vector<78x128xbf16>
    %c3 = arith.constant 3 : index
    %c0_20 = arith.constant 0 : index
    %c0_21 = arith.constant 0 : index
    %21 = vector.load %arg2[%c3, %c0_20, %c0_21] : memref<9x128x128xbf16, #tpu.memory_space<vmem>>, vector<1x128x128xbf16>
    %22 = vector.shape_cast %21 : vector<1x128x128xbf16> to vector<128x128xbf16>
    %cst_22 = arith.constant dense<0.000000e+00> : vector<78x128xf32>
    %23 = tpu.matmul %20, %22, %cst_22 {dimension_numbers = #tpu.dot_dimension_numbers<[1], [0], [0], [1], [0, 0, 1, 1], [], []>} : vector<78x128xbf16>, vector<128x128xbf16>, vector<78x128xf32> -> vector<78x128xf32>
    %24 = arith.addf %18, %23 : vector<78x128xf32>
    %c0_23 = arith.constant 0 : index
    %c11 = arith.constant 11 : index
    %c0_24 = arith.constant 0 : index
    %25 = vector.load %arg1[%c0_23, %c11, %c0_24] : memref<1x100x128xbf16, #tpu.memory_space<vmem>>, vector<1x78x128xbf16>
    %26 = vector.shape_cast %25 : vector<1x78x128xbf16> to vector<78x128xbf16>
    %c4 = arith.constant 4 : index
    %c0_25 = arith.constant 0 : index
    %c0_26 = arith.constant 0 : index
    %27 = vector.load %arg2[%c4, %c0_25, %c0_26] : memref<9x128x128xbf16, #tpu.memory_space<vmem>>, vector<1x128x128xbf16>
    %28 = vector.shape_cast %27 : vector<1x128x128xbf16> to vector<128x128xbf16>
    %cst_27 = arith.constant dense<0.000000e+00> : vector<78x128xf32>
    %29 = tpu.matmul %26, %28, %cst_27 {dimension_numbers = #tpu.dot_dimension_numbers<[1], [0], [0], [1], [0, 0, 1, 1], [], []>} : vector<78x128xbf16>, vector<128x128xbf16>, vector<78x128xf32> -> vector<78x128xf32>
    %30 = arith.addf %24, %29 : vector<78x128xf32>
    %c0_28 = arith.constant 0 : index
    %c12 = arith.constant 12 : index
    %c0_29 = arith.constant 0 : index
    %31 = vector.load %arg1[%c0_28, %c12, %c0_29] : memref<1x100x128xbf16, #tpu.memory_space<vmem>>, vector<1x78x128xbf16>
    %32 = vector.shape_cast %31 : vector<1x78x128xbf16> to vector<78x128xbf16>
    %c5 = arith.constant 5 : index
    %c0_30 = arith.constant 0 : index
    %c0_31 = arith.constant 0 : index
    %33 = vector.load %arg2[%c5, %c0_30, %c0_31] : memref<9x128x128xbf16, #tpu.memory_space<vmem>>, vector<1x128x128xbf16>
    %34 = vector.shape_cast %33 : vector<1x128x128xbf16> to vector<128x128xbf16>
    %cst_32 = arith.constant dense<0.000000e+00> : vector<78x128xf32>
    %35 = tpu.matmul %32, %34, %cst_32 {dimension_numbers = #tpu.dot_dimension_numbers<[1], [0], [0], [1], [0, 0, 1, 1], [], []>} : vector<78x128xbf16>, vector<128x128xbf16>, vector<78x128xf32> -> vector<78x128xf32>
    %36 = arith.addf %30, %35 : vector<78x128xf32>
    %c0_33 = arith.constant 0 : index
    %c20 = arith.constant 20 : index
    %c0_34 = arith.constant 0 : index
    %37 = vector.load %arg1[%c0_33, %c20, %c0_34] : memref<1x100x128xbf16, #tpu.memory_space<vmem>>, vector<1x78x128xbf16>
    %38 = vector.shape_cast %37 : vector<1x78x128xbf16> to vector<78x128xbf16>
    %c6 = arith.constant 6 : index
    %c0_35 = arith.constant 0 : index
    %c0_36 = arith.constant 0 : index
    %39 = vector.load %arg2[%c6, %c0_35, %c0_36] : memref<9x128x128xbf16, #tpu.memory_space<vmem>>, vector<1x128x128xbf16>
    %40 = vector.shape_cast %39 : vector<1x128x128xbf16> to vector<128x128xbf16>
    %cst_37 = arith.constant dense<0.000000e+00> : vector<78x128xf32>
    %41 = tpu.matmul %38, %40, %cst_37 {dimension_numbers = #tpu.dot_dimension_numbers<[1], [0], [0], [1], [0, 0, 1, 1], [], []>} : vector<78x128xbf16>, vector<128x128xbf16>, vector<78x128xf32> -> vector<78x128xf32>
    %42 = arith.addf %36, %41 : vector<78x128xf32>
    %c0_38 = arith.constant 0 : index
    %c21 = arith.constant 21 : index
    %c0_39 = arith.constant 0 : index
    %43 = vector.load %arg1[%c0_38, %c21, %c0_39] : memref<1x100x128xbf16, #tpu.memory_space<vmem>>, vector<1x78x128xbf16>
    %44 = vector.shape_cast %43 : vector<1x78x128xbf16> to vector<78x128xbf16>
    %c7 = arith.constant 7 : index
    %c0_40 = arith.constant 0 : index
    %c0_41 = arith.constant 0 : index
    %45 = vector.load %arg2[%c7, %c0_40, %c0_41] : memref<9x128x128xbf16, #tpu.memory_space<vmem>>, vector<1x128x128xbf16>
    %46 = vector.shape_cast %45 : vector<1x128x128xbf16> to vector<128x128xbf16>
    %cst_42 = arith.constant dense<0.000000e+00> : vector<78x128xf32>
    %47 = tpu.matmul %44, %46, %cst_42 {dimension_numbers = #tpu.dot_dimension_numbers<[1], [0], [0], [1], [0, 0, 1, 1], [], []>} : vector<78x128xbf16>, vector<128x128xbf16>, vector<78x128xf32> -> vector<78x128xf32>
    %48 = arith.addf %42, %47 : vector<78x128xf32>
    %c0_43 = arith.constant 0 : index
    %c22 = arith.constant 22 : index
    %c0_44 = arith.constant 0 : index
    %49 = vector.load %arg1[%c0_43, %c22, %c0_44] : memref<1x100x128xbf16, #tpu.memory_space<vmem>>, vector<1x78x128xbf16>
    %50 = vector.shape_cast %49 : vector<1x78x128xbf16> to vector<78x128xbf16>
    %c8 = arith.constant 8 : index
    %c0_45 = arith.constant 0 : index
    %c0_46 = arith.constant 0 : index
    %51 = vector.load %arg2[%c8, %c0_45, %c0_46] : memref<9x128x128xbf16, #tpu.memory_space<vmem>>, vector<1x128x128xbf16>
    %52 = vector.shape_cast %51 : vector<1x128x128xbf16> to vector<128x128xbf16>
    %cst_47 = arith.constant dense<0.000000e+00> : vector<78x128xf32>
    %53 = tpu.matmul %50, %52, %cst_47 {dimension_numbers = #tpu.dot_dimension_numbers<[1], [0], [0], [1], [0, 0, 1, 1], [], []>} : vector<78x128xbf16>, vector<128x128xbf16>, vector<78x128xf32> -> vector<78x128xf32>
    %54 = arith.addf %48, %53 : vector<78x128xf32>
    %c0_48 = arith.constant 0 : index
    %c0_49 = arith.constant 0 : index
    %c0_50 = arith.constant 0 : index
    %55 = vector.load %arg4[%c0_48, %c0_49, %c0_50] : memref<1x78x128xf32, #tpu.memory_space<vmem>>, vector<1x78x128xf32>
    %56 = vector.shape_cast %55 : vector<1x78x128xf32> to vector<78x128xf32>
    %57 = vector.shape_cast %54 : vector<78x128xf32> to vector<1x78x128xf32>
    tpu.vector_store %arg4[%c0_48, %c0_49, %c0_50], %57 {strides = array<i32>} : memref<1x78x128xf32, #tpu.memory_space<vmem>>, vector<1x78x128xf32>,
    %c0_51 = arith.constant 0 : index
    %c0_52 = arith.constant 0 : index
    %58 = vector.load %arg3[%c0_51, %c0_52] : memref<78x1xf32, #tpu.memory_space<vmem>>, vector<78x1xf32>
    %59 = vector.broadcast %58 : vector<78x1xf32> to vector<78x128xf32>
    %60 = arith.mulf %54, %59 : vector<78x128xf32>
    %cst_53 = arith.constant dense<0.000000e+00> : vector<128xf32>
    %61 = vector.multi_reduction <add>, %60, %cst_53 [0] : vector<78x128xf32> to vector<128xf32>
    %62 = vector.shape_cast %61 : vector<128xf32> to vector<1x128xf32>
    %c0_54 = arith.constant 0 : index
    %c0_55 = arith.constant 0 : index
    %c0_56 = arith.constant 0 : index
    %63 = vector.load %arg5[%c0_54, %c0_55, %c0_56] : memref<1x2x128xf32, #tpu.memory_space<vmem>>, vector<1x1x128xf32>
    %64 = vector.shape_cast %63 : vector<1x1x128xf32> to vector<1x128xf32>
    %65 = vector.shape_cast %62 : vector<1x128xf32> to vector<1x1x128xf32>
    tpu.vector_store %arg5[%c0_54, %c0_55, %c0_56], %65 {strides = array<i32>} : memref<1x2x128xf32, #tpu.memory_space<vmem>>, vector<1x1x128xf32>,
    %66 = arith.mulf %60, %54 : vector<78x128xf32>
    %cst_57 = arith.constant dense<0.000000e+00> : vector<128xf32>
    %67 = vector.multi_reduction <add>, %66, %cst_57 [0] : vector<78x128xf32> to vector<128xf32>
    %68 = vector.shape_cast %67 : vector<128xf32> to vector<1x128xf32>
    %c0_58 = arith.constant 0 : index
    %c1_59 = arith.constant 1 : index
    %c0_60 = arith.constant 0 : index
    %69 = vector.load %arg5[%c0_58, %c1_59, %c0_60] : memref<1x2x128xf32, #tpu.memory_space<vmem>>, vector<1x1x128xf32>
    %70 = vector.shape_cast %69 : vector<1x1x128xf32> to vector<1x128xf32>
    %71 = vector.shape_cast %68 : vector<1x128xf32> to vector<1x1x128xf32>
    tpu.vector_store %arg5[%c0_58, %c1_59, %c0_60], %71 {strides = array<i32>} : memref<1x2x128xf32, #tpu.memory_space<vmem>>, vector<1x1x128xf32>,
    return
  }
  func.func @transform_0(%arg0: i32) -> (i32, i32, i32) {
    %c0_i32 = arith.constant 0 : i32
    %c0_i32_0 = arith.constant 0 : i32
    %c0_i32_1 = arith.constant 0 : i32
    return %arg0, %c0_i32, %c0_i32_0 : i32, i32, i32
  }
  func.func @transform_1(%arg0: i32) -> (i32, i32, i32) {
    %c0_i32 = arith.constant 0 : i32
    %c0_i32_0 = arith.constant 0 : i32
    %c0_i32_1 = arith.constant 0 : i32
    %c0_i32_2 = arith.constant 0 : i32
    return %c0_i32, %c0_i32_0, %c0_i32_1 : i32, i32, i32
  }
  func.func @transform_2(%arg0: i32) -> (i32, i32) {
    %c0_i32 = arith.constant 0 : i32
    %c0_i32_0 = arith.constant 0 : i32
    %c0_i32_1 = arith.constant 0 : i32
    return %c0_i32, %c0_i32_0 : i32, i32
  }
  func.func @transform_3(%arg0: i32) -> (i32, i32, i32) {
    %c0_i32 = arith.constant 0 : i32
    %c0_i32_0 = arith.constant 0 : i32
    %c0_i32_1 = arith.constant 0 : i32
    return %arg0, %c0_i32, %c0_i32_0 : i32, i32, i32
  }
  func.func @transform_4(%arg0: i32) -> (i32, i32, i32) {
    %c0_i32 = arith.constant 0 : i32
    %c0_i32_0 = arith.constant 0 : i32
    %c0_i32_1 = arith.constant 0 : i32
    return %arg0, %c0_i32, %c0_i32_0 : i32, i32, i32
  }
}

module attributes {stable_mosaic.version = 11 : i64} {
  func.func @_bn_apply_kernel(%arg0: i32, %arg1: memref<1x78x128xf32, #tpu.memory_space<vmem>>, %arg2: memref<2x2x128xf32, #tpu.memory_space<vmem>>, %arg3: memref<1x128xf32, #tpu.memory_space<vmem>>, %arg4: memref<1x128xf32, #tpu.memory_space<vmem>>, %arg5: memref<78x1xf32, #tpu.memory_space<vmem>>, %arg6: memref<1x100x128xbf16, #tpu.memory_space<vmem>>) attributes {dimension_semantics = [#tpu.dimension_semantics<parallel>], iteration_bounds = array<i64: 2>, scalar_prefetch = 0 : i64, scratch_operands = 0 : i64, tpu.core_type = #tpu.core_type<tc>, window_params = [{transform_indices = @transform_0, window_bounds = array<i64: 1, 78, 128>}, {pipeline_mode = #tpu.pipeline_mode<synchronous>, transform_indices = @transform_1, window_bounds = array<i64: 2, 2, 128>}, {pipeline_mode = #tpu.pipeline_mode<synchronous>, transform_indices = @transform_2, window_bounds = array<i64: 1, 128>}, {pipeline_mode = #tpu.pipeline_mode<synchronous>, transform_indices = @transform_3, window_bounds = array<i64: 1, 128>}, {pipeline_mode = #tpu.pipeline_mode<synchronous>, transform_indices = @transform_4, window_bounds = array<i64: 78, 1>}, {transform_indices = @transform_5, window_bounds = array<i64: 1, 100, 128>}]} {
    %c0 = arith.constant 0 : index
    %c0_0 = arith.constant 0 : index
    %c0_1 = arith.constant 0 : index
    %0 = vector.load %arg2[%c0, %c0_0, %c0_1] : memref<2x2x128xf32, #tpu.memory_space<vmem>>, vector<2x2x128xf32>
    %cst = arith.constant dense<0.000000e+00> : vector<2x128xf32>
    %1 = vector.multi_reduction <add>, %0, %cst [0] : vector<2x2x128xf32> to vector<2x128xf32>
    %2 = vector.extract_strided_slice %1 {offsets = [0, 0], sizes = [1, 128], strides = [1, 1]} : vector<2x128xf32> to vector<1x128xf32>
    %cst_2 = arith.constant 7.812500e-03 : f32
    %3 = vector.broadcast %cst_2 : f32 to vector<1x128xf32>
    %4 = arith.mulf %2, %3 : vector<1x128xf32>
    %5 = vector.extract_strided_slice %1 {offsets = [1, 0], sizes = [1, 128], strides = [1, 1]} : vector<2x128xf32> to vector<1x128xf32>
    %cst_3 = arith.constant 7.812500e-03 : f32
    %6 = vector.broadcast %cst_3 : f32 to vector<1x128xf32>
    %7 = arith.mulf %5, %6 : vector<1x128xf32>
    %8 = arith.mulf %4, %4 : vector<1x128xf32>
    %9 = arith.subf %7, %8 : vector<1x128xf32>
    %c0_4 = arith.constant 0 : index
    %c0_5 = arith.constant 0 : index
    %10 = vector.load %arg3[%c0_4, %c0_5] : memref<1x128xf32, #tpu.memory_space<vmem>>, vector<1x128xf32>
    %cst_6 = arith.constant 9.99999974E-6 : f32
    %11 = vector.broadcast %cst_6 : f32 to vector<1x128xf32>
    %12 = arith.addf %9, %11 : vector<1x128xf32>
    %13 = math.rsqrt %12 : vector<1x128xf32>
    %14 = arith.mulf %10, %13 : vector<1x128xf32>
    %c0_7 = arith.constant 0 : index
    %c0_8 = arith.constant 0 : index
    %15 = vector.load %arg4[%c0_7, %c0_8] : memref<1x128xf32, #tpu.memory_space<vmem>>, vector<1x128xf32>
    %16 = arith.mulf %4, %14 : vector<1x128xf32>
    %17 = arith.subf %15, %16 : vector<1x128xf32>
    %c0_9 = arith.constant 0 : index
    %c0_10 = arith.constant 0 : index
    %c0_11 = arith.constant 0 : index
    %18 = vector.load %arg1[%c0_9, %c0_10, %c0_11] : memref<1x78x128xf32, #tpu.memory_space<vmem>>, vector<1x78x128xf32>
    %19 = vector.shape_cast %18 : vector<1x78x128xf32> to vector<78x128xf32>
    %20 = vector.broadcast %14 : vector<1x128xf32> to vector<78x128xf32>
    %21 = arith.mulf %19, %20 : vector<78x128xf32>
    %22 = vector.broadcast %17 : vector<1x128xf32> to vector<78x128xf32>
    %23 = arith.addf %21, %22 : vector<78x128xf32>
    %cst_12 = arith.constant 0.000000e+00 : f32
    %24 = vector.broadcast %cst_12 : f32 to vector<78x128xf32>
    %25 = arith.maximumf %23, %24 : vector<78x128xf32>
    %c0_13 = arith.constant 0 : index
    %c0_14 = arith.constant 0 : index
    %26 = vector.load %arg5[%c0_13, %c0_14] : memref<78x1xf32, #tpu.memory_space<vmem>>, vector<78x1xf32>
    %27 = vector.broadcast %26 : vector<78x1xf32> to vector<78x128xf32>
    %28 = arith.mulf %25, %27 : vector<78x128xf32>
    %cst_15 = arith.constant 0.000000e+00 : bf16
    %29 = vector.broadcast %cst_15 : bf16 to vector<1x100x128xbf16>
    %c0_16 = arith.constant 0 : index
    %c0_17 = arith.constant 0 : index
    %c0_18 = arith.constant 0 : index
    %30 = vector.load %arg6[%c0_16, %c0_17, %c0_18] : memref<1x100x128xbf16, #tpu.memory_space<vmem>>, vector<1x100x128xbf16>
    tpu.vector_store %arg6[%c0_16, %c0_17, %c0_18], %29 {strides = array<i32>} : memref<1x100x128xbf16, #tpu.memory_space<vmem>>, vector<1x100x128xbf16>,
    %31 = arith.truncf %28 : vector<78x128xf32> to vector<78x128xbf16>
    %c0_19 = arith.constant 0 : index
    %c11 = arith.constant 11 : index
    %c0_20 = arith.constant 0 : index
    %32 = vector.load %arg6[%c0_19, %c11, %c0_20] : memref<1x100x128xbf16, #tpu.memory_space<vmem>>, vector<1x78x128xbf16>
    %33 = vector.shape_cast %32 : vector<1x78x128xbf16> to vector<78x128xbf16>
    %34 = vector.shape_cast %31 : vector<78x128xbf16> to vector<1x78x128xbf16>
    tpu.vector_store %arg6[%c0_19, %c11, %c0_20], %34 {strides = array<i32>} : memref<1x100x128xbf16, #tpu.memory_space<vmem>>, vector<1x78x128xbf16>,
    return
  }
  func.func @transform_0(%arg0: i32) -> (i32, i32, i32) {
    %c0_i32 = arith.constant 0 : i32
    %c0_i32_0 = arith.constant 0 : i32
    %c0_i32_1 = arith.constant 0 : i32
    return %arg0, %c0_i32, %c0_i32_0 : i32, i32, i32
  }
  func.func @transform_1(%arg0: i32) -> (i32, i32, i32) {
    %c0_i32 = arith.constant 0 : i32
    %c0_i32_0 = arith.constant 0 : i32
    %c0_i32_1 = arith.constant 0 : i32
    %c0_i32_2 = arith.constant 0 : i32
    return %c0_i32, %c0_i32_0, %c0_i32_1 : i32, i32, i32
  }
  func.func @transform_2(%arg0: i32) -> (i32, i32) {
    %c0_i32 = arith.constant 0 : i32
    %c0_i32_0 = arith.constant 0 : i32
    %c0_i32_1 = arith.constant 0 : i32
    return %c0_i32, %c0_i32_0 : i32, i32
  }
  func.func @transform_3(%arg0: i32) -> (i32, i32) {
    %c0_i32 = arith.constant 0 : i32
    %c0_i32_0 = arith.constant 0 : i32
    %c0_i32_1 = arith.constant 0 : i32
    return %c0_i32, %c0_i32_0 : i32, i32
  }
  func.func @transform_4(%arg0: i32) -> (i32, i32) {
    %c0_i32 = arith.constant 0 : i32
    %c0_i32_0 = arith.constant 0 : i32
    %c0_i32_1 = arith.constant 0 : i32
    return %c0_i32, %c0_i32_0 : i32, i32
  }
  func.func @transform_5(%arg0: i32) -> (i32, i32, i32) {
    %c0_i32 = arith.constant 0 : i32
    %c0_i32_0 = arith.constant 0 : i32
    %c0_i32_1 = arith.constant 0 : i32
    return %arg0, %c0_i32, %c0_i32_0 : i32, i32, i32
  }
}

module attributes {stable_mosaic.version = 11 : i64} {
  func.func @_bn_apply_kernel(%arg0: i32, %arg1: memref<1x78x128xf32, #tpu.memory_space<vmem>>, %arg2: memref<2x2x128xf32, #tpu.memory_space<vmem>>, %arg3: memref<1x128xf32, #tpu.memory_space<vmem>>, %arg4: memref<1x128xf32, #tpu.memory_space<vmem>>, %arg5: memref<78x1xf32, #tpu.memory_space<vmem>>, %arg6: memref<1x100x128xbf16, #tpu.memory_space<vmem>>, %arg7: memref<1x100x128xbf16, #tpu.memory_space<vmem>>) attributes {dimension_semantics = [#tpu.dimension_semantics<parallel>], iteration_bounds = array<i64: 2>, scalar_prefetch = 0 : i64, scratch_operands = 0 : i64, tpu.core_type = #tpu.core_type<tc>, window_params = [{transform_indices = @transform_0, window_bounds = array<i64: 1, 78, 128>}, {pipeline_mode = #tpu.pipeline_mode<synchronous>, transform_indices = @transform_1, window_bounds = array<i64: 2, 2, 128>}, {pipeline_mode = #tpu.pipeline_mode<synchronous>, transform_indices = @transform_2, window_bounds = array<i64: 1, 128>}, {pipeline_mode = #tpu.pipeline_mode<synchronous>, transform_indices = @transform_3, window_bounds = array<i64: 1, 128>}, {pipeline_mode = #tpu.pipeline_mode<synchronous>, transform_indices = @transform_4, window_bounds = array<i64: 78, 1>}, {transform_indices = @transform_5, window_bounds = array<i64: 1, 100, 128>}, {transform_indices = @transform_6, window_bounds = array<i64: 1, 100, 128>}]} {
    %c0 = arith.constant 0 : index
    %c0_0 = arith.constant 0 : index
    %c0_1 = arith.constant 0 : index
    %0 = vector.load %arg2[%c0, %c0_0, %c0_1] : memref<2x2x128xf32, #tpu.memory_space<vmem>>, vector<2x2x128xf32>
    %cst = arith.constant dense<0.000000e+00> : vector<2x128xf32>
    %1 = vector.multi_reduction <add>, %0, %cst [0] : vector<2x2x128xf32> to vector<2x128xf32>
    %2 = vector.extract_strided_slice %1 {offsets = [0, 0], sizes = [1, 128], strides = [1, 1]} : vector<2x128xf32> to vector<1x128xf32>
    %cst_2 = arith.constant 7.812500e-03 : f32
    %3 = vector.broadcast %cst_2 : f32 to vector<1x128xf32>
    %4 = arith.mulf %2, %3 : vector<1x128xf32>
    %5 = vector.extract_strided_slice %1 {offsets = [1, 0], sizes = [1, 128], strides = [1, 1]} : vector<2x128xf32> to vector<1x128xf32>
    %cst_3 = arith.constant 7.812500e-03 : f32
    %6 = vector.broadcast %cst_3 : f32 to vector<1x128xf32>
    %7 = arith.mulf %5, %6 : vector<1x128xf32>
    %8 = arith.mulf %4, %4 : vector<1x128xf32>
    %9 = arith.subf %7, %8 : vector<1x128xf32>
    %c0_4 = arith.constant 0 : index
    %c0_5 = arith.constant 0 : index
    %10 = vector.load %arg3[%c0_4, %c0_5] : memref<1x128xf32, #tpu.memory_space<vmem>>, vector<1x128xf32>
    %cst_6 = arith.constant 9.99999974E-6 : f32
    %11 = vector.broadcast %cst_6 : f32 to vector<1x128xf32>
    %12 = arith.addf %9, %11 : vector<1x128xf32>
    %13 = math.rsqrt %12 : vector<1x128xf32>
    %14 = arith.mulf %10, %13 : vector<1x128xf32>
    %c0_7 = arith.constant 0 : index
    %c0_8 = arith.constant 0 : index
    %15 = vector.load %arg4[%c0_7, %c0_8] : memref<1x128xf32, #tpu.memory_space<vmem>>, vector<1x128xf32>
    %16 = arith.mulf %4, %14 : vector<1x128xf32>
    %17 = arith.subf %15, %16 : vector<1x128xf32>
    %c0_9 = arith.constant 0 : index
    %c0_10 = arith.constant 0 : index
    %c0_11 = arith.constant 0 : index
    %18 = vector.load %arg1[%c0_9, %c0_10, %c0_11] : memref<1x78x128xf32, #tpu.memory_space<vmem>>, vector<1x78x128xf32>
    %19 = vector.shape_cast %18 : vector<1x78x128xf32> to vector<78x128xf32>
    %20 = vector.broadcast %14 : vector<1x128xf32> to vector<78x128xf32>
    %21 = arith.mulf %19, %20 : vector<78x128xf32>
    %22 = vector.broadcast %17 : vector<1x128xf32> to vector<78x128xf32>
    %23 = arith.addf %21, %22 : vector<78x128xf32>
    %c0_12 = arith.constant 0 : index
    %c11 = arith.constant 11 : index
    %c0_13 = arith.constant 0 : index
    %24 = vector.load %arg6[%c0_12, %c11, %c0_13] : memref<1x100x128xbf16, #tpu.memory_space<vmem>>, vector<1x78x128xbf16>
    %25 = vector.shape_cast %24 : vector<1x78x128xbf16> to vector<78x128xbf16>
    %26 = arith.extf %25 : vector<78x128xbf16> to vector<78x128xf32>
    %27 = arith.addf %23, %26 : vector<78x128xf32>
    %cst_14 = arith.constant 0.000000e+00 : f32
    %28 = vector.broadcast %cst_14 : f32 to vector<78x128xf32>
    %29 = arith.maximumf %27, %28 : vector<78x128xf32>
    %c0_15 = arith.constant 0 : index
    %c0_16 = arith.constant 0 : index
    %30 = vector.load %arg5[%c0_15, %c0_16] : memref<78x1xf32, #tpu.memory_space<vmem>>, vector<78x1xf32>
    %31 = vector.broadcast %30 : vector<78x1xf32> to vector<78x128xf32>
    %32 = arith.mulf %29, %31 : vector<78x128xf32>
    %cst_17 = arith.constant 0.000000e+00 : bf16
    %33 = vector.broadcast %cst_17 : bf16 to vector<1x100x128xbf16>
    %c0_18 = arith.constant 0 : index
    %c0_19 = arith.constant 0 : index
    %c0_20 = arith.constant 0 : index
    %34 = vector.load %arg7[%c0_18, %c0_19, %c0_20] : memref<1x100x128xbf16, #tpu.memory_space<vmem>>, vector<1x100x128xbf16>
    tpu.vector_store %arg7[%c0_18, %c0_19, %c0_20], %33 {strides = array<i32>} : memref<1x100x128xbf16, #tpu.memory_space<vmem>>, vector<1x100x128xbf16>,
    %35 = arith.truncf %32 : vector<78x128xf32> to vector<78x128xbf16>
    %c0_21 = arith.constant 0 : index
    %c11_22 = arith.constant 11 : index
    %c0_23 = arith.constant 0 : index
    %36 = vector.load %arg7[%c0_21, %c11_22, %c0_23] : memref<1x100x128xbf16, #tpu.memory_space<vmem>>, vector<1x78x128xbf16>
    %37 = vector.shape_cast %36 : vector<1x78x128xbf16> to vector<78x128xbf16>
    %38 = vector.shape_cast %35 : vector<78x128xbf16> to vector<1x78x128xbf16>
    tpu.vector_store %arg7[%c0_21, %c11_22, %c0_23], %38 {strides = array<i32>} : memref<1x100x128xbf16, #tpu.memory_space<vmem>>, vector<1x78x128xbf16>,
    return
  }
  func.func @transform_0(%arg0: i32) -> (i32, i32, i32) {
    %c0_i32 = arith.constant 0 : i32
    %c0_i32_0 = arith.constant 0 : i32
    %c0_i32_1 = arith.constant 0 : i32
    return %arg0, %c0_i32, %c0_i32_0 : i32, i32, i32
  }
  func.func @transform_1(%arg0: i32) -> (i32, i32, i32) {
    %c0_i32 = arith.constant 0 : i32
    %c0_i32_0 = arith.constant 0 : i32
    %c0_i32_1 = arith.constant 0 : i32
    %c0_i32_2 = arith.constant 0 : i32
    return %c0_i32, %c0_i32_0, %c0_i32_1 : i32, i32, i32
  }
  func.func @transform_2(%arg0: i32) -> (i32, i32) {
    %c0_i32 = arith.constant 0 : i32
    %c0_i32_0 = arith.constant 0 : i32
    %c0_i32_1 = arith.constant 0 : i32
    return %c0_i32, %c0_i32_0 : i32, i32
  }
  func.func @transform_3(%arg0: i32) -> (i32, i32) {
    %c0_i32 = arith.constant 0 : i32
    %c0_i32_0 = arith.constant 0 : i32
    %c0_i32_1 = arith.constant 0 : i32
    return %c0_i32, %c0_i32_0 : i32, i32
  }
  func.func @transform_4(%arg0: i32) -> (i32, i32) {
    %c0_i32 = arith.constant 0 : i32
    %c0_i32_0 = arith.constant 0 : i32
    %c0_i32_1 = arith.constant 0 : i32
    return %c0_i32, %c0_i32_0 : i32, i32
  }
  func.func @transform_5(%arg0: i32) -> (i32, i32, i32) {
    %c0_i32 = arith.constant 0 : i32
    %c0_i32_0 = arith.constant 0 : i32
    %c0_i32_1 = arith.constant 0 : i32
    return %arg0, %c0_i32, %c0_i32_0 : i32, i32, i32
  }
  func.func @transform_6(%arg0: i32) -> (i32, i32, i32) {
    %c0_i32 = arith.constant 0 : i32
    %c0_i32_0 = arith.constant 0 : i32
    %c0_i32_1 = arith.constant 0 : i32
    return %arg0, %c0_i32, %c0_i32_0 : i32, i32, i32
  }
}

module attributes {stable_mosaic.version = 11 : i64} {
  func.func @_taps_matmul_kernel(%arg0: i32, %arg1: memref<9x1x16x128xbf16, #tpu.memory_space<vmem>>, %arg2: memref<9x128x128xbf16, #tpu.memory_space<vmem>>, %arg3: memref<1x16x128xbf16, #tpu.memory_space<vmem>>) attributes {dimension_semantics = [#tpu.dimension_semantics<parallel>], iteration_bounds = array<i64: 2>, scalar_prefetch = 0 : i64, scratch_operands = 0 : i64, tpu.core_type = #tpu.core_type<tc>, window_params = [{transform_indices = @transform_0, window_bounds = array<i64: 9, 1, 16, 128>}, {pipeline_mode = #tpu.pipeline_mode<synchronous>, transform_indices = @transform_1, window_bounds = array<i64: 9, 128, 128>}, {transform_indices = @transform_2, window_bounds = array<i64: 1, 16, 128>}]} {
    %cst = arith.constant 0.000000e+00 : f32
    %0 = vector.broadcast %cst : f32 to vector<16x128xf32>
    %c0 = arith.constant 0 : index
    %c0_0 = arith.constant 0 : index
    %c0_1 = arith.constant 0 : index
    %c0_2 = arith.constant 0 : index
    %1 = vector.load %arg1[%c0, %c0_0, %c0_1, %c0_2] : memref<9x1x16x128xbf16, #tpu.memory_space<vmem>>, vector<1x1x16x128xbf16>
    %2 = vector.shape_cast %1 : vector<1x1x16x128xbf16> to vector<16x128xbf16>
    %c0_3 = arith.constant 0 : index
    %c0_4 = arith.constant 0 : index
    %c0_5 = arith.constant 0 : index
    %3 = vector.load %arg2[%c0_3, %c0_4, %c0_5] : memref<9x128x128xbf16, #tpu.memory_space<vmem>>, vector<1x128x128xbf16>
    %4 = vector.shape_cast %3 : vector<1x128x128xbf16> to vector<128x128xbf16>
    %cst_6 = arith.constant dense<0.000000e+00> : vector<16x128xf32>
    %5 = tpu.matmul %2, %4, %cst_6 {dimension_numbers = #tpu.dot_dimension_numbers<[1], [0], [0], [1], [0, 0, 1, 1], [], []>} : vector<16x128xbf16>, vector<128x128xbf16>, vector<16x128xf32> -> vector<16x128xf32>
    %6 = arith.addf %0, %5 : vector<16x128xf32>
    %c1 = arith.constant 1 : index
    %c0_7 = arith.constant 0 : index
    %c0_8 = arith.constant 0 : index
    %c0_9 = arith.constant 0 : index
    %7 = vector.load %arg1[%c1, %c0_7, %c0_8, %c0_9] : memref<9x1x16x128xbf16, #tpu.memory_space<vmem>>, vector<1x1x16x128xbf16>
    %8 = vector.shape_cast %7 : vector<1x1x16x128xbf16> to vector<16x128xbf16>
    %c1_10 = arith.constant 1 : index
    %c0_11 = arith.constant 0 : index
    %c0_12 = arith.constant 0 : index
    %9 = vector.load %arg2[%c1_10, %c0_11, %c0_12] : memref<9x128x128xbf16, #tpu.memory_space<vmem>>, vector<1x128x128xbf16>
    %10 = vector.shape_cast %9 : vector<1x128x128xbf16> to vector<128x128xbf16>
    %cst_13 = arith.constant dense<0.000000e+00> : vector<16x128xf32>
    %11 = tpu.matmul %8, %10, %cst_13 {dimension_numbers = #tpu.dot_dimension_numbers<[1], [0], [0], [1], [0, 0, 1, 1], [], []>} : vector<16x128xbf16>, vector<128x128xbf16>, vector<16x128xf32> -> vector<16x128xf32>
    %12 = arith.addf %6, %11 : vector<16x128xf32>
    %c2 = arith.constant 2 : index
    %c0_14 = arith.constant 0 : index
    %c0_15 = arith.constant 0 : index
    %c0_16 = arith.constant 0 : index
    %13 = vector.load %arg1[%c2, %c0_14, %c0_15, %c0_16] : memref<9x1x16x128xbf16, #tpu.memory_space<vmem>>, vector<1x1x16x128xbf16>
    %14 = vector.shape_cast %13 : vector<1x1x16x128xbf16> to vector<16x128xbf16>
    %c2_17 = arith.constant 2 : index
    %c0_18 = arith.constant 0 : index
    %c0_19 = arith.constant 0 : index
    %15 = vector.load %arg2[%c2_17, %c0_18, %c0_19] : memref<9x128x128xbf16, #tpu.memory_space<vmem>>, vector<1x128x128xbf16>
    %16 = vector.shape_cast %15 : vector<1x128x128xbf16> to vector<128x128xbf16>
    %cst_20 = arith.constant dense<0.000000e+00> : vector<16x128xf32>
    %17 = tpu.matmul %14, %16, %cst_20 {dimension_numbers = #tpu.dot_dimension_numbers<[1], [0], [0], [1], [0, 0, 1, 1], [], []>} : vector<16x128xbf16>, vector<128x128xbf16>, vector<16x128xf32> -> vector<16x128xf32>
    %18 = arith.addf %12, %17 : vector<16x128xf32>
    %c3 = arith.constant 3 : index
    %c0_21 = arith.constant 0 : index
    %c0_22 = arith.constant 0 : index
    %c0_23 = arith.constant 0 : index
    %19 = vector.load %arg1[%c3, %c0_21, %c0_22, %c0_23] : memref<9x1x16x128xbf16, #tpu.memory_space<vmem>>, vector<1x1x16x128xbf16>
    %20 = vector.shape_cast %19 : vector<1x1x16x128xbf16> to vector<16x128xbf16>
    %c3_24 = arith.constant 3 : index
    %c0_25 = arith.constant 0 : index
    %c0_26 = arith.constant 0 : index
    %21 = vector.load %arg2[%c3_24, %c0_25, %c0_26] : memref<9x128x128xbf16, #tpu.memory_space<vmem>>, vector<1x128x128xbf16>
    %22 = vector.shape_cast %21 : vector<1x128x128xbf16> to vector<128x128xbf16>
    %cst_27 = arith.constant dense<0.000000e+00> : vector<16x128xf32>
    %23 = tpu.matmul %20, %22, %cst_27 {dimension_numbers = #tpu.dot_dimension_numbers<[1], [0], [0], [1], [0, 0, 1, 1], [], []>} : vector<16x128xbf16>, vector<128x128xbf16>, vector<16x128xf32> -> vector<16x128xf32>
    %24 = arith.addf %18, %23 : vector<16x128xf32>
    %c4 = arith.constant 4 : index
    %c0_28 = arith.constant 0 : index
    %c0_29 = arith.constant 0 : index
    %c0_30 = arith.constant 0 : index
    %25 = vector.load %arg1[%c4, %c0_28, %c0_29, %c0_30] : memref<9x1x16x128xbf16, #tpu.memory_space<vmem>>, vector<1x1x16x128xbf16>
    %26 = vector.shape_cast %25 : vector<1x1x16x128xbf16> to vector<16x128xbf16>
    %c4_31 = arith.constant 4 : index
    %c0_32 = arith.constant 0 : index
    %c0_33 = arith.constant 0 : index
    %27 = vector.load %arg2[%c4_31, %c0_32, %c0_33] : memref<9x128x128xbf16, #tpu.memory_space<vmem>>, vector<1x128x128xbf16>
    %28 = vector.shape_cast %27 : vector<1x128x128xbf16> to vector<128x128xbf16>
    %cst_34 = arith.constant dense<0.000000e+00> : vector<16x128xf32>
    %29 = tpu.matmul %26, %28, %cst_34 {dimension_numbers = #tpu.dot_dimension_numbers<[1], [0], [0], [1], [0, 0, 1, 1], [], []>} : vector<16x128xbf16>, vector<128x128xbf16>, vector<16x128xf32> -> vector<16x128xf32>
    %30 = arith.addf %24, %29 : vector<16x128xf32>
    %c5 = arith.constant 5 : index
    %c0_35 = arith.constant 0 : index
    %c0_36 = arith.constant 0 : index
    %c0_37 = arith.constant 0 : index
    %31 = vector.load %arg1[%c5, %c0_35, %c0_36, %c0_37] : memref<9x1x16x128xbf16, #tpu.memory_space<vmem>>, vector<1x1x16x128xbf16>
    %32 = vector.shape_cast %31 : vector<1x1x16x128xbf16> to vector<16x128xbf16>
    %c5_38 = arith.constant 5 : index
    %c0_39 = arith.constant 0 : index
    %c0_40 = arith.constant 0 : index
    %33 = vector.load %arg2[%c5_38, %c0_39, %c0_40] : memref<9x128x128xbf16, #tpu.memory_space<vmem>>, vector<1x128x128xbf16>
    %34 = vector.shape_cast %33 : vector<1x128x128xbf16> to vector<128x128xbf16>
    %cst_41 = arith.constant dense<0.000000e+00> : vector<16x128xf32>
    %35 = tpu.matmul %32, %34, %cst_41 {dimension_numbers = #tpu.dot_dimension_numbers<[1], [0], [0], [1], [0, 0, 1, 1], [], []>} : vector<16x128xbf16>, vector<128x128xbf16>, vector<16x128xf32> -> vector<16x128xf32>
    %36 = arith.addf %30, %35 : vector<16x128xf32>
    %c6 = arith.constant 6 : index
    %c0_42 = arith.constant 0 : index
    %c0_43 = arith.constant 0 : index
    %c0_44 = arith.constant 0 : index
    %37 = vector.load %arg1[%c6, %c0_42, %c0_43, %c0_44] : memref<9x1x16x128xbf16, #tpu.memory_space<vmem>>, vector<1x1x16x128xbf16>
    %38 = vector.shape_cast %37 : vector<1x1x16x128xbf16> to vector<16x128xbf16>
    %c6_45 = arith.constant 6 : index
    %c0_46 = arith.constant 0 : index
    %c0_47 = arith.constant 0 : index
    %39 = vector.load %arg2[%c6_45, %c0_46, %c0_47] : memref<9x128x128xbf16, #tpu.memory_space<vmem>>, vector<1x128x128xbf16>
    %40 = vector.shape_cast %39 : vector<1x128x128xbf16> to vector<128x128xbf16>
    %cst_48 = arith.constant dense<0.000000e+00> : vector<16x128xf32>
    %41 = tpu.matmul %38, %40, %cst_48 {dimension_numbers = #tpu.dot_dimension_numbers<[1], [0], [0], [1], [0, 0, 1, 1], [], []>} : vector<16x128xbf16>, vector<128x128xbf16>, vector<16x128xf32> -> vector<16x128xf32>
    %42 = arith.addf %36, %41 : vector<16x128xf32>
    %c7 = arith.constant 7 : index
    %c0_49 = arith.constant 0 : index
    %c0_50 = arith.constant 0 : index
    %c0_51 = arith.constant 0 : index
    %43 = vector.load %arg1[%c7, %c0_49, %c0_50, %c0_51] : memref<9x1x16x128xbf16, #tpu.memory_space<vmem>>, vector<1x1x16x128xbf16>
    %44 = vector.shape_cast %43 : vector<1x1x16x128xbf16> to vector<16x128xbf16>
    %c7_52 = arith.constant 7 : index
    %c0_53 = arith.constant 0 : index
    %c0_54 = arith.constant 0 : index
    %45 = vector.load %arg2[%c7_52, %c0_53, %c0_54] : memref<9x128x128xbf16, #tpu.memory_space<vmem>>, vector<1x128x128xbf16>
    %46 = vector.shape_cast %45 : vector<1x128x128xbf16> to vector<128x128xbf16>
    %cst_55 = arith.constant dense<0.000000e+00> : vector<16x128xf32>
    %47 = tpu.matmul %44, %46, %cst_55 {dimension_numbers = #tpu.dot_dimension_numbers<[1], [0], [0], [1], [0, 0, 1, 1], [], []>} : vector<16x128xbf16>, vector<128x128xbf16>, vector<16x128xf32> -> vector<16x128xf32>
    %48 = arith.addf %42, %47 : vector<16x128xf32>
    %c8 = arith.constant 8 : index
    %c0_56 = arith.constant 0 : index
    %c0_57 = arith.constant 0 : index
    %c0_58 = arith.constant 0 : index
    %49 = vector.load %arg1[%c8, %c0_56, %c0_57, %c0_58] : memref<9x1x16x128xbf16, #tpu.memory_space<vmem>>, vector<1x1x16x128xbf16>
    %50 = vector.shape_cast %49 : vector<1x1x16x128xbf16> to vector<16x128xbf16>
    %c8_59 = arith.constant 8 : index
    %c0_60 = arith.constant 0 : index
    %c0_61 = arith.constant 0 : index
    %51 = vector.load %arg2[%c8_59, %c0_60, %c0_61] : memref<9x128x128xbf16, #tpu.memory_space<vmem>>, vector<1x128x128xbf16>
    %52 = vector.shape_cast %51 : vector<1x128x128xbf16> to vector<128x128xbf16>
    %cst_62 = arith.constant dense<0.000000e+00> : vector<16x128xf32>
    %53 = tpu.matmul %50, %52, %cst_62 {dimension_numbers = #tpu.dot_dimension_numbers<[1], [0], [0], [1], [0, 0, 1, 1], [], []>} : vector<16x128xbf16>, vector<128x128xbf16>, vector<16x128xf32> -> vector<16x128xf32>
    %54 = arith.addf %48, %53 : vector<16x128xf32>
    %55 = arith.truncf %54 : vector<16x128xf32> to vector<16x128xbf16>
    %c0_63 = arith.constant 0 : index
    %c0_64 = arith.constant 0 : index
    %c0_65 = arith.constant 0 : index
    %56 = vector.load %arg3[%c0_63, %c0_64, %c0_65] : memref<1x16x128xbf16, #tpu.memory_space<vmem>>, vector<1x16x128xbf16>
    %57 = vector.shape_cast %56 : vector<1x16x128xbf16> to vector<16x128xbf16>
    %58 = vector.shape_cast %55 : vector<16x128xbf16> to vector<1x16x128xbf16>
    tpu.vector_store %arg3[%c0_63, %c0_64, %c0_65], %58 {strides = array<i32>} : memref<1x16x128xbf16, #tpu.memory_space<vmem>>, vector<1x16x128xbf16>,
    return
  }
  func.func @transform_0(%arg0: i32) -> (i32, i32, i32, i32) {
    %c0_i32 = arith.constant 0 : i32
    %c0_i32_0 = arith.constant 0 : i32
    %c0_i32_1 = arith.constant 0 : i32
    %c0_i32_2 = arith.constant 0 : i32
    return %c0_i32, %arg0, %c0_i32_0, %c0_i32_1 : i32, i32, i32, i32
  }
  func.func @transform_1(%arg0: i32) -> (i32, i32, i32) {
    %c0_i32 = arith.constant 0 : i32
    %c0_i32_0 = arith.constant 0 : i32
    %c0_i32_1 = arith.constant 0 : i32
    %c0_i32_2 = arith.constant 0 : i32
    return %c0_i32, %c0_i32_0, %c0_i32_1 : i32, i32, i32
  }
  func.func @transform_2(%arg0: i32) -> (i32, i32, i32) {
    %c0_i32 = arith.constant 0 : i32
    %c0_i32_0 = arith.constant 0 : i32
    %c0_i32_1 = arith.constant 0 : i32
    return %arg0, %c0_i32, %c0_i32_0 : i32, i32, i32
  }
}

module attributes {stable_mosaic.version = 11 : i64} {
  func.func @_conv_s1_kernel(%arg0: i32, %arg1: memref<1x36x128xbf16, #tpu.memory_space<vmem>>, %arg2: memref<9x128x128xbf16, #tpu.memory_space<vmem>>, %arg3: memref<22x1xf32, #tpu.memory_space<vmem>>, %arg4: memref<1x22x128xf32, #tpu.memory_space<vmem>>, %arg5: memref<1x2x128xf32, #tpu.memory_space<vmem>>) attributes {dimension_semantics = [#tpu.dimension_semantics<parallel>], iteration_bounds = array<i64: 2>, scalar_prefetch = 0 : i64, scratch_operands = 0 : i64, tpu.core_type = #tpu.core_type<tc>, window_params = [{transform_indices = @transform_0, window_bounds = array<i64: 1, 36, 128>}, {pipeline_mode = #tpu.pipeline_mode<synchronous>, transform_indices = @transform_1, window_bounds = array<i64: 9, 128, 128>}, {pipeline_mode = #tpu.pipeline_mode<synchronous>, transform_indices = @transform_2, window_bounds = array<i64: 22, 1>}, {transform_indices = @transform_3, window_bounds = array<i64: 1, 22, 128>}, {transform_indices = @transform_4, window_bounds = array<i64: 1, 2, 128>}]} {
    %cst = arith.constant 0.000000e+00 : f32
    %0 = vector.broadcast %cst : f32 to vector<22x128xf32>
    %c0 = arith.constant 0 : index
    %c0_0 = arith.constant 0 : index
    %c0_1 = arith.constant 0 : index
    %1 = vector.load %arg1[%c0, %c0_0, %c0_1] : memref<1x36x128xbf16, #tpu.memory_space<vmem>>, vector<1x22x128xbf16>
    %2 = vector.shape_cast %1 : vector<1x22x128xbf16> to vector<22x128xbf16>
    %c0_2 = arith.constant 0 : index
    %c0_3 = arith.constant 0 : index
    %c0_4 = arith.constant 0 : index
    %3 = vector.load %arg2[%c0_2, %c0_3, %c0_4] : memref<9x128x128xbf16, #tpu.memory_space<vmem>>, vector<1x128x128xbf16>
    %4 = vector.shape_cast %3 : vector<1x128x128xbf16> to vector<128x128xbf16>
    %cst_5 = arith.constant dense<0.000000e+00> : vector<22x128xf32>
    %5 = tpu.matmul %2, %4, %cst_5 {dimension_numbers = #tpu.dot_dimension_numbers<[1], [0], [0], [1], [0, 0, 1, 1], [], []>} : vector<22x128xbf16>, vector<128x128xbf16>, vector<22x128xf32> -> vector<22x128xf32>
    %6 = arith.addf %0, %5 : vector<22x128xf32>
    %c0_6 = arith.constant 0 : index
    %c1 = arith.constant 1 : index
    %c0_7 = arith.constant 0 : index
    %7 = vector.load %arg1[%c0_6, %c1, %c0_7] : memref<1x36x128xbf16, #tpu.memory_space<vmem>>, vector<1x22x128xbf16>
    %8 = vector.shape_cast %7 : vector<1x22x128xbf16> to vector<22x128xbf16>
    %c1_8 = arith.constant 1 : index
    %c0_9 = arith.constant 0 : index
    %c0_10 = arith.constant 0 : index
    %9 = vector.load %arg2[%c1_8, %c0_9, %c0_10] : memref<9x128x128xbf16, #tpu.memory_space<vmem>>, vector<1x128x128xbf16>
    %10 = vector.shape_cast %9 : vector<1x128x128xbf16> to vector<128x128xbf16>
    %cst_11 = arith.constant dense<0.000000e+00> : vector<22x128xf32>
    %11 = tpu.matmul %8, %10, %cst_11 {dimension_numbers = #tpu.dot_dimension_numbers<[1], [0], [0], [1], [0, 0, 1, 1], [], []>} : vector<22x128xbf16>, vector<128x128xbf16>, vector<22x128xf32> -> vector<22x128xf32>
    %12 = arith.addf %6, %11 : vector<22x128xf32>
    %c0_12 = arith.constant 0 : index
    %c2 = arith.constant 2 : index
    %c0_13 = arith.constant 0 : index
    %13 = vector.load %arg1[%c0_12, %c2, %c0_13] : memref<1x36x128xbf16, #tpu.memory_space<vmem>>, vector<1x22x128xbf16>
    %14 = vector.shape_cast %13 : vector<1x22x128xbf16> to vector<22x128xbf16>
    %c2_14 = arith.constant 2 : index
    %c0_15 = arith.constant 0 : index
    %c0_16 = arith.constant 0 : index
    %15 = vector.load %arg2[%c2_14, %c0_15, %c0_16] : memref<9x128x128xbf16, #tpu.memory_space<vmem>>, vector<1x128x128xbf16>
    %16 = vector.shape_cast %15 : vector<1x128x128xbf16> to vector<128x128xbf16>
    %cst_17 = arith.constant dense<0.000000e+00> : vector<22x128xf32>
    %17 = tpu.matmul %14, %16, %cst_17 {dimension_numbers = #tpu.dot_dimension_numbers<[1], [0], [0], [1], [0, 0, 1, 1], [], []>} : vector<22x128xbf16>, vector<128x128xbf16>, vector<22x128xf32> -> vector<22x128xf32>
    %18 = arith.addf %12, %17 : vector<22x128xf32>
    %c0_18 = arith.constant 0 : index
    %c6 = arith.constant 6 : index
    %c0_19 = arith.constant 0 : index
    %19 = vector.load %arg1[%c0_18, %c6, %c0_19] : memref<1x36x128xbf16, #tpu.memory_space<vmem>>, vector<1x22x128xbf16>
    %20 = vector.shape_cast %19 : vector<1x22x128xbf16> to vector<22x128xbf16>
    %c3 = arith.constant 3 : index
    %c0_20 = arith.constant 0 : index
    %c0_21 = arith.constant 0 : index
    %21 = vector.load %arg2[%c3, %c0_20, %c0_21] : memref<9x128x128xbf16, #tpu.memory_space<vmem>>, vector<1x128x128xbf16>
    %22 = vector.shape_cast %21 : vector<1x128x128xbf16> to vector<128x128xbf16>
    %cst_22 = arith.constant dense<0.000000e+00> : vector<22x128xf32>
    %23 = tpu.matmul %20, %22, %cst_22 {dimension_numbers = #tpu.dot_dimension_numbers<[1], [0], [0], [1], [0, 0, 1, 1], [], []>} : vector<22x128xbf16>, vector<128x128xbf16>, vector<22x128xf32> -> vector<22x128xf32>
    %24 = arith.addf %18, %23 : vector<22x128xf32>
    %c0_23 = arith.constant 0 : index
    %c7 = arith.constant 7 : index
    %c0_24 = arith.constant 0 : index
    %25 = vector.load %arg1[%c0_23, %c7, %c0_24] : memref<1x36x128xbf16, #tpu.memory_space<vmem>>, vector<1x22x128xbf16>
    %26 = vector.shape_cast %25 : vector<1x22x128xbf16> to vector<22x128xbf16>
    %c4 = arith.constant 4 : index
    %c0_25 = arith.constant 0 : index
    %c0_26 = arith.constant 0 : index
    %27 = vector.load %arg2[%c4, %c0_25, %c0_26] : memref<9x128x128xbf16, #tpu.memory_space<vmem>>, vector<1x128x128xbf16>
    %28 = vector.shape_cast %27 : vector<1x128x128xbf16> to vector<128x128xbf16>
    %cst_27 = arith.constant dense<0.000000e+00> : vector<22x128xf32>
    %29 = tpu.matmul %26, %28, %cst_27 {dimension_numbers = #tpu.dot_dimension_numbers<[1], [0], [0], [1], [0, 0, 1, 1], [], []>} : vector<22x128xbf16>, vector<128x128xbf16>, vector<22x128xf32> -> vector<22x128xf32>
    %30 = arith.addf %24, %29 : vector<22x128xf32>
    %c0_28 = arith.constant 0 : index
    %c8 = arith.constant 8 : index
    %c0_29 = arith.constant 0 : index
    %31 = vector.load %arg1[%c0_28, %c8, %c0_29] : memref<1x36x128xbf16, #tpu.memory_space<vmem>>, vector<1x22x128xbf16>
    %32 = vector.shape_cast %31 : vector<1x22x128xbf16> to vector<22x128xbf16>
    %c5 = arith.constant 5 : index
    %c0_30 = arith.constant 0 : index
    %c0_31 = arith.constant 0 : index
    %33 = vector.load %arg2[%c5, %c0_30, %c0_31] : memref<9x128x128xbf16, #tpu.memory_space<vmem>>, vector<1x128x128xbf16>
    %34 = vector.shape_cast %33 : vector<1x128x128xbf16> to vector<128x128xbf16>
    %cst_32 = arith.constant dense<0.000000e+00> : vector<22x128xf32>
    %35 = tpu.matmul %32, %34, %cst_32 {dimension_numbers = #tpu.dot_dimension_numbers<[1], [0], [0], [1], [0, 0, 1, 1], [], []>} : vector<22x128xbf16>, vector<128x128xbf16>, vector<22x128xf32> -> vector<22x128xf32>
    %36 = arith.addf %30, %35 : vector<22x128xf32>
    %c0_33 = arith.constant 0 : index
    %c12 = arith.constant 12 : index
    %c0_34 = arith.constant 0 : index
    %37 = vector.load %arg1[%c0_33, %c12, %c0_34] : memref<1x36x128xbf16, #tpu.memory_space<vmem>>, vector<1x22x128xbf16>
    %38 = vector.shape_cast %37 : vector<1x22x128xbf16> to vector<22x128xbf16>
    %c6_35 = arith.constant 6 : index
    %c0_36 = arith.constant 0 : index
    %c0_37 = arith.constant 0 : index
    %39 = vector.load %arg2[%c6_35, %c0_36, %c0_37] : memref<9x128x128xbf16, #tpu.memory_space<vmem>>, vector<1x128x128xbf16>
    %40 = vector.shape_cast %39 : vector<1x128x128xbf16> to vector<128x128xbf16>
    %cst_38 = arith.constant dense<0.000000e+00> : vector<22x128xf32>
    %41 = tpu.matmul %38, %40, %cst_38 {dimension_numbers = #tpu.dot_dimension_numbers<[1], [0], [0], [1], [0, 0, 1, 1], [], []>} : vector<22x128xbf16>, vector<128x128xbf16>, vector<22x128xf32> -> vector<22x128xf32>
    %42 = arith.addf %36, %41 : vector<22x128xf32>
    %c0_39 = arith.constant 0 : index
    %c13 = arith.constant 13 : index
    %c0_40 = arith.constant 0 : index
    %43 = vector.load %arg1[%c0_39, %c13, %c0_40] : memref<1x36x128xbf16, #tpu.memory_space<vmem>>, vector<1x22x128xbf16>
    %44 = vector.shape_cast %43 : vector<1x22x128xbf16> to vector<22x128xbf16>
    %c7_41 = arith.constant 7 : index
    %c0_42 = arith.constant 0 : index
    %c0_43 = arith.constant 0 : index
    %45 = vector.load %arg2[%c7_41, %c0_42, %c0_43] : memref<9x128x128xbf16, #tpu.memory_space<vmem>>, vector<1x128x128xbf16>
    %46 = vector.shape_cast %45 : vector<1x128x128xbf16> to vector<128x128xbf16>
    %cst_44 = arith.constant dense<0.000000e+00> : vector<22x128xf32>
    %47 = tpu.matmul %44, %46, %cst_44 {dimension_numbers = #tpu.dot_dimension_numbers<[1], [0], [0], [1], [0, 0, 1, 1], [], []>} : vector<22x128xbf16>, vector<128x128xbf16>, vector<22x128xf32> -> vector<22x128xf32>
    %48 = arith.addf %42, %47 : vector<22x128xf32>
    %c0_45 = arith.constant 0 : index
    %c14 = arith.constant 14 : index
    %c0_46 = arith.constant 0 : index
    %49 = vector.load %arg1[%c0_45, %c14, %c0_46] : memref<1x36x128xbf16, #tpu.memory_space<vmem>>, vector<1x22x128xbf16>
    %50 = vector.shape_cast %49 : vector<1x22x128xbf16> to vector<22x128xbf16>
    %c8_47 = arith.constant 8 : index
    %c0_48 = arith.constant 0 : index
    %c0_49 = arith.constant 0 : index
    %51 = vector.load %arg2[%c8_47, %c0_48, %c0_49] : memref<9x128x128xbf16, #tpu.memory_space<vmem>>, vector<1x128x128xbf16>
    %52 = vector.shape_cast %51 : vector<1x128x128xbf16> to vector<128x128xbf16>
    %cst_50 = arith.constant dense<0.000000e+00> : vector<22x128xf32>
    %53 = tpu.matmul %50, %52, %cst_50 {dimension_numbers = #tpu.dot_dimension_numbers<[1], [0], [0], [1], [0, 0, 1, 1], [], []>} : vector<22x128xbf16>, vector<128x128xbf16>, vector<22x128xf32> -> vector<22x128xf32>
    %54 = arith.addf %48, %53 : vector<22x128xf32>
    %c0_51 = arith.constant 0 : index
    %c0_52 = arith.constant 0 : index
    %c0_53 = arith.constant 0 : index
    %55 = vector.load %arg4[%c0_51, %c0_52, %c0_53] : memref<1x22x128xf32, #tpu.memory_space<vmem>>, vector<1x22x128xf32>
    %56 = vector.shape_cast %55 : vector<1x22x128xf32> to vector<22x128xf32>
    %57 = vector.shape_cast %54 : vector<22x128xf32> to vector<1x22x128xf32>
    tpu.vector_store %arg4[%c0_51, %c0_52, %c0_53], %57 {strides = array<i32>} : memref<1x22x128xf32, #tpu.memory_space<vmem>>, vector<1x22x128xf32>,
    %c0_54 = arith.constant 0 : index
    %c0_55 = arith.constant 0 : index
    %58 = vector.load %arg3[%c0_54, %c0_55] : memref<22x1xf32, #tpu.memory_space<vmem>>, vector<22x1xf32>
    %59 = vector.broadcast %58 : vector<22x1xf32> to vector<22x128xf32>
    %60 = arith.mulf %54, %59 : vector<22x128xf32>
    %cst_56 = arith.constant dense<0.000000e+00> : vector<128xf32>
    %61 = vector.multi_reduction <add>, %60, %cst_56 [0] : vector<22x128xf32> to vector<128xf32>
    %62 = vector.shape_cast %61 : vector<128xf32> to vector<1x128xf32>
    %c0_57 = arith.constant 0 : index
    %c0_58 = arith.constant 0 : index
    %c0_59 = arith.constant 0 : index
    %63 = vector.load %arg5[%c0_57, %c0_58, %c0_59] : memref<1x2x128xf32, #tpu.memory_space<vmem>>, vector<1x1x128xf32>
    %64 = vector.shape_cast %63 : vector<1x1x128xf32> to vector<1x128xf32>
    %65 = vector.shape_cast %62 : vector<1x128xf32> to vector<1x1x128xf32>
    tpu.vector_store %arg5[%c0_57, %c0_58, %c0_59], %65 {strides = array<i32>} : memref<1x2x128xf32, #tpu.memory_space<vmem>>, vector<1x1x128xf32>,
    %66 = arith.mulf %60, %54 : vector<22x128xf32>
    %cst_60 = arith.constant dense<0.000000e+00> : vector<128xf32>
    %67 = vector.multi_reduction <add>, %66, %cst_60 [0] : vector<22x128xf32> to vector<128xf32>
    %68 = vector.shape_cast %67 : vector<128xf32> to vector<1x128xf32>
    %c0_61 = arith.constant 0 : index
    %c1_62 = arith.constant 1 : index
    %c0_63 = arith.constant 0 : index
    %69 = vector.load %arg5[%c0_61, %c1_62, %c0_63] : memref<1x2x128xf32, #tpu.memory_space<vmem>>, vector<1x1x128xf32>
    %70 = vector.shape_cast %69 : vector<1x1x128xf32> to vector<1x128xf32>
    %71 = vector.shape_cast %68 : vector<1x128xf32> to vector<1x1x128xf32>
    tpu.vector_store %arg5[%c0_61, %c1_62, %c0_63], %71 {strides = array<i32>} : memref<1x2x128xf32, #tpu.memory_space<vmem>>, vector<1x1x128xf32>,
    return
  }
  func.func @transform_0(%arg0: i32) -> (i32, i32, i32) {
    %c0_i32 = arith.constant 0 : i32
    %c0_i32_0 = arith.constant 0 : i32
    %c0_i32_1 = arith.constant 0 : i32
    return %arg0, %c0_i32, %c0_i32_0 : i32, i32, i32
  }
  func.func @transform_1(%arg0: i32) -> (i32, i32, i32) {
    %c0_i32 = arith.constant 0 : i32
    %c0_i32_0 = arith.constant 0 : i32
    %c0_i32_1 = arith.constant 0 : i32
    %c0_i32_2 = arith.constant 0 : i32
    return %c0_i32, %c0_i32_0, %c0_i32_1 : i32, i32, i32
  }
  func.func @transform_2(%arg0: i32) -> (i32, i32) {
    %c0_i32 = arith.constant 0 : i32
    %c0_i32_0 = arith.constant 0 : i32
    %c0_i32_1 = arith.constant 0 : i32
    return %c0_i32, %c0_i32_0 : i32, i32
  }
  func.func @transform_3(%arg0: i32) -> (i32, i32, i32) {
    %c0_i32 = arith.constant 0 : i32
    %c0_i32_0 = arith.constant 0 : i32
    %c0_i32_1 = arith.constant 0 : i32
    return %arg0, %c0_i32, %c0_i32_0 : i32, i32, i32
  }
  func.func @transform_4(%arg0: i32) -> (i32, i32, i32) {
    %c0_i32 = arith.constant 0 : i32
    %c0_i32_0 = arith.constant 0 : i32
    %c0_i32_1 = arith.constant 0 : i32
    return %arg0, %c0_i32, %c0_i32_0 : i32, i32, i32
  }
}

module attributes {stable_mosaic.version = 11 : i64} {
  func.func @_bn_apply_kernel(%arg0: i32, %arg1: memref<1x22x128xf32, #tpu.memory_space<vmem>>, %arg2: memref<2x2x128xf32, #tpu.memory_space<vmem>>, %arg3: memref<1x128xf32, #tpu.memory_space<vmem>>, %arg4: memref<1x128xf32, #tpu.memory_space<vmem>>, %arg5: memref<22x1xf32, #tpu.memory_space<vmem>>, %arg6: memref<1x36x128xbf16, #tpu.memory_space<vmem>>) attributes {dimension_semantics = [#tpu.dimension_semantics<parallel>], iteration_bounds = array<i64: 2>, scalar_prefetch = 0 : i64, scratch_operands = 0 : i64, tpu.core_type = #tpu.core_type<tc>, window_params = [{transform_indices = @transform_0, window_bounds = array<i64: 1, 22, 128>}, {pipeline_mode = #tpu.pipeline_mode<synchronous>, transform_indices = @transform_1, window_bounds = array<i64: 2, 2, 128>}, {pipeline_mode = #tpu.pipeline_mode<synchronous>, transform_indices = @transform_2, window_bounds = array<i64: 1, 128>}, {pipeline_mode = #tpu.pipeline_mode<synchronous>, transform_indices = @transform_3, window_bounds = array<i64: 1, 128>}, {pipeline_mode = #tpu.pipeline_mode<synchronous>, transform_indices = @transform_4, window_bounds = array<i64: 22, 1>}, {transform_indices = @transform_5, window_bounds = array<i64: 1, 36, 128>}]} {
    %c0 = arith.constant 0 : index
    %c0_0 = arith.constant 0 : index
    %c0_1 = arith.constant 0 : index
    %0 = vector.load %arg2[%c0, %c0_0, %c0_1] : memref<2x2x128xf32, #tpu.memory_space<vmem>>, vector<2x2x128xf32>
    %cst = arith.constant dense<0.000000e+00> : vector<2x128xf32>
    %1 = vector.multi_reduction <add>, %0, %cst [0] : vector<2x2x128xf32> to vector<2x128xf32>
    %2 = vector.extract_strided_slice %1 {offsets = [0, 0], sizes = [1, 128], strides = [1, 1]} : vector<2x128xf32> to vector<1x128xf32>
    %cst_2 = arith.constant 3.125000e-02 : f32
    %3 = vector.broadcast %cst_2 : f32 to vector<1x128xf32>
    %4 = arith.mulf %2, %3 : vector<1x128xf32>
    %5 = vector.extract_strided_slice %1 {offsets = [1, 0], sizes = [1, 128], strides = [1, 1]} : vector<2x128xf32> to vector<1x128xf32>
    %cst_3 = arith.constant 3.125000e-02 : f32
    %6 = vector.broadcast %cst_3 : f32 to vector<1x128xf32>
    %7 = arith.mulf %5, %6 : vector<1x128xf32>
    %8 = arith.mulf %4, %4 : vector<1x128xf32>
    %9 = arith.subf %7, %8 : vector<1x128xf32>
    %c0_4 = arith.constant 0 : index
    %c0_5 = arith.constant 0 : index
    %10 = vector.load %arg3[%c0_4, %c0_5] : memref<1x128xf32, #tpu.memory_space<vmem>>, vector<1x128xf32>
    %cst_6 = arith.constant 9.99999974E-6 : f32
    %11 = vector.broadcast %cst_6 : f32 to vector<1x128xf32>
    %12 = arith.addf %9, %11 : vector<1x128xf32>
    %13 = math.rsqrt %12 : vector<1x128xf32>
    %14 = arith.mulf %10, %13 : vector<1x128xf32>
    %c0_7 = arith.constant 0 : index
    %c0_8 = arith.constant 0 : index
    %15 = vector.load %arg4[%c0_7, %c0_8] : memref<1x128xf32, #tpu.memory_space<vmem>>, vector<1x128xf32>
    %16 = arith.mulf %4, %14 : vector<1x128xf32>
    %17 = arith.subf %15, %16 : vector<1x128xf32>
    %c0_9 = arith.constant 0 : index
    %c0_10 = arith.constant 0 : index
    %c0_11 = arith.constant 0 : index
    %18 = vector.load %arg1[%c0_9, %c0_10, %c0_11] : memref<1x22x128xf32, #tpu.memory_space<vmem>>, vector<1x22x128xf32>
    %19 = vector.shape_cast %18 : vector<1x22x128xf32> to vector<22x128xf32>
    %20 = vector.broadcast %14 : vector<1x128xf32> to vector<22x128xf32>
    %21 = arith.mulf %19, %20 : vector<22x128xf32>
    %22 = vector.broadcast %17 : vector<1x128xf32> to vector<22x128xf32>
    %23 = arith.addf %21, %22 : vector<22x128xf32>
    %cst_12 = arith.constant 0.000000e+00 : f32
    %24 = vector.broadcast %cst_12 : f32 to vector<22x128xf32>
    %25 = arith.maximumf %23, %24 : vector<22x128xf32>
    %c0_13 = arith.constant 0 : index
    %c0_14 = arith.constant 0 : index
    %26 = vector.load %arg5[%c0_13, %c0_14] : memref<22x1xf32, #tpu.memory_space<vmem>>, vector<22x1xf32>
    %27 = vector.broadcast %26 : vector<22x1xf32> to vector<22x128xf32>
    %28 = arith.mulf %25, %27 : vector<22x128xf32>
    %cst_15 = arith.constant 0.000000e+00 : bf16
    %29 = vector.broadcast %cst_15 : bf16 to vector<1x36x128xbf16>
    %c0_16 = arith.constant 0 : index
    %c0_17 = arith.constant 0 : index
    %c0_18 = arith.constant 0 : index
    %30 = vector.load %arg6[%c0_16, %c0_17, %c0_18] : memref<1x36x128xbf16, #tpu.memory_space<vmem>>, vector<1x36x128xbf16>
    tpu.vector_store %arg6[%c0_16, %c0_17, %c0_18], %29 {strides = array<i32>} : memref<1x36x128xbf16, #tpu.memory_space<vmem>>, vector<1x36x128xbf16>,
    %31 = arith.truncf %28 : vector<22x128xf32> to vector<22x128xbf16>
    %c0_19 = arith.constant 0 : index
    %c7 = arith.constant 7 : index
    %c0_20 = arith.constant 0 : index
    %32 = vector.load %arg6[%c0_19, %c7, %c0_20] : memref<1x36x128xbf16, #tpu.memory_space<vmem>>, vector<1x22x128xbf16>
    %33 = vector.shape_cast %32 : vector<1x22x128xbf16> to vector<22x128xbf16>
    %34 = vector.shape_cast %31 : vector<22x128xbf16> to vector<1x22x128xbf16>
    tpu.vector_store %arg6[%c0_19, %c7, %c0_20], %34 {strides = array<i32>} : memref<1x36x128xbf16, #tpu.memory_space<vmem>>, vector<1x22x128xbf16>,
    return
  }
  func.func @transform_0(%arg0: i32) -> (i32, i32, i32) {
    %c0_i32 = arith.constant 0 : i32
    %c0_i32_0 = arith.constant 0 : i32
    %c0_i32_1 = arith.constant 0 : i32
    return %arg0, %c0_i32, %c0_i32_0 : i32, i32, i32
  }
  func.func @transform_1(%arg0: i32) -> (i32, i32, i32) {
    %c0_i32 = arith.constant 0 : i32
    %c0_i32_0 = arith.constant 0 : i32
    %c0_i32_1 = arith.constant 0 : i32
    %c0_i32_2 = arith.constant 0 : i32
    return %c0_i32, %c0_i32_0, %c0_i32_1 : i32, i32, i32
  }
  func.func @transform_2(%arg0: i32) -> (i32, i32) {
    %c0_i32 = arith.constant 0 : i32
    %c0_i32_0 = arith.constant 0 : i32
    %c0_i32_1 = arith.constant 0 : i32
    return %c0_i32, %c0_i32_0 : i32, i32
  }
  func.func @transform_3(%arg0: i32) -> (i32, i32) {
    %c0_i32 = arith.constant 0 : i32
    %c0_i32_0 = arith.constant 0 : i32
    %c0_i32_1 = arith.constant 0 : i32
    return %c0_i32, %c0_i32_0 : i32, i32
  }
  func.func @transform_4(%arg0: i32) -> (i32, i32) {
    %c0_i32 = arith.constant 0 : i32
    %c0_i32_0 = arith.constant 0 : i32
    %c0_i32_1 = arith.constant 0 : i32
    return %c0_i32, %c0_i32_0 : i32, i32
  }
  func.func @transform_5(%arg0: i32) -> (i32, i32, i32) {
    %c0_i32 = arith.constant 0 : i32
    %c0_i32_0 = arith.constant 0 : i32
    %c0_i32_1 = arith.constant 0 : i32
    return %arg0, %c0_i32, %c0_i32_0 : i32, i32, i32
  }
}

module attributes {stable_mosaic.version = 11 : i64} {
  func.func @_bn_apply_kernel(%arg0: i32, %arg1: memref<1x22x128xf32, #tpu.memory_space<vmem>>, %arg2: memref<2x2x128xf32, #tpu.memory_space<vmem>>, %arg3: memref<1x128xf32, #tpu.memory_space<vmem>>, %arg4: memref<1x128xf32, #tpu.memory_space<vmem>>, %arg5: memref<22x1xf32, #tpu.memory_space<vmem>>, %arg6: memref<1x36x128xbf16, #tpu.memory_space<vmem>>, %arg7: memref<1x36x128xbf16, #tpu.memory_space<vmem>>) attributes {dimension_semantics = [#tpu.dimension_semantics<parallel>], iteration_bounds = array<i64: 2>, scalar_prefetch = 0 : i64, scratch_operands = 0 : i64, tpu.core_type = #tpu.core_type<tc>, window_params = [{transform_indices = @transform_0, window_bounds = array<i64: 1, 22, 128>}, {pipeline_mode = #tpu.pipeline_mode<synchronous>, transform_indices = @transform_1, window_bounds = array<i64: 2, 2, 128>}, {pipeline_mode = #tpu.pipeline_mode<synchronous>, transform_indices = @transform_2, window_bounds = array<i64: 1, 128>}, {pipeline_mode = #tpu.pipeline_mode<synchronous>, transform_indices = @transform_3, window_bounds = array<i64: 1, 128>}, {pipeline_mode = #tpu.pipeline_mode<synchronous>, transform_indices = @transform_4, window_bounds = array<i64: 22, 1>}, {transform_indices = @transform_5, window_bounds = array<i64: 1, 36, 128>}, {transform_indices = @transform_6, window_bounds = array<i64: 1, 36, 128>}]} {
    %c0 = arith.constant 0 : index
    %c0_0 = arith.constant 0 : index
    %c0_1 = arith.constant 0 : index
    %0 = vector.load %arg2[%c0, %c0_0, %c0_1] : memref<2x2x128xf32, #tpu.memory_space<vmem>>, vector<2x2x128xf32>
    %cst = arith.constant dense<0.000000e+00> : vector<2x128xf32>
    %1 = vector.multi_reduction <add>, %0, %cst [0] : vector<2x2x128xf32> to vector<2x128xf32>
    %2 = vector.extract_strided_slice %1 {offsets = [0, 0], sizes = [1, 128], strides = [1, 1]} : vector<2x128xf32> to vector<1x128xf32>
    %cst_2 = arith.constant 3.125000e-02 : f32
    %3 = vector.broadcast %cst_2 : f32 to vector<1x128xf32>
    %4 = arith.mulf %2, %3 : vector<1x128xf32>
    %5 = vector.extract_strided_slice %1 {offsets = [1, 0], sizes = [1, 128], strides = [1, 1]} : vector<2x128xf32> to vector<1x128xf32>
    %cst_3 = arith.constant 3.125000e-02 : f32
    %6 = vector.broadcast %cst_3 : f32 to vector<1x128xf32>
    %7 = arith.mulf %5, %6 : vector<1x128xf32>
    %8 = arith.mulf %4, %4 : vector<1x128xf32>
    %9 = arith.subf %7, %8 : vector<1x128xf32>
    %c0_4 = arith.constant 0 : index
    %c0_5 = arith.constant 0 : index
    %10 = vector.load %arg3[%c0_4, %c0_5] : memref<1x128xf32, #tpu.memory_space<vmem>>, vector<1x128xf32>
    %cst_6 = arith.constant 9.99999974E-6 : f32
    %11 = vector.broadcast %cst_6 : f32 to vector<1x128xf32>
    %12 = arith.addf %9, %11 : vector<1x128xf32>
    %13 = math.rsqrt %12 : vector<1x128xf32>
    %14 = arith.mulf %10, %13 : vector<1x128xf32>
    %c0_7 = arith.constant 0 : index
    %c0_8 = arith.constant 0 : index
    %15 = vector.load %arg4[%c0_7, %c0_8] : memref<1x128xf32, #tpu.memory_space<vmem>>, vector<1x128xf32>
    %16 = arith.mulf %4, %14 : vector<1x128xf32>
    %17 = arith.subf %15, %16 : vector<1x128xf32>
    %c0_9 = arith.constant 0 : index
    %c0_10 = arith.constant 0 : index
    %c0_11 = arith.constant 0 : index
    %18 = vector.load %arg1[%c0_9, %c0_10, %c0_11] : memref<1x22x128xf32, #tpu.memory_space<vmem>>, vector<1x22x128xf32>
    %19 = vector.shape_cast %18 : vector<1x22x128xf32> to vector<22x128xf32>
    %20 = vector.broadcast %14 : vector<1x128xf32> to vector<22x128xf32>
    %21 = arith.mulf %19, %20 : vector<22x128xf32>
    %22 = vector.broadcast %17 : vector<1x128xf32> to vector<22x128xf32>
    %23 = arith.addf %21, %22 : vector<22x128xf32>
    %c0_12 = arith.constant 0 : index
    %c7 = arith.constant 7 : index
    %c0_13 = arith.constant 0 : index
    %24 = vector.load %arg6[%c0_12, %c7, %c0_13] : memref<1x36x128xbf16, #tpu.memory_space<vmem>>, vector<1x22x128xbf16>
    %25 = vector.shape_cast %24 : vector<1x22x128xbf16> to vector<22x128xbf16>
    %26 = arith.extf %25 : vector<22x128xbf16> to vector<22x128xf32>
    %27 = arith.addf %23, %26 : vector<22x128xf32>
    %cst_14 = arith.constant 0.000000e+00 : f32
    %28 = vector.broadcast %cst_14 : f32 to vector<22x128xf32>
    %29 = arith.maximumf %27, %28 : vector<22x128xf32>
    %c0_15 = arith.constant 0 : index
    %c0_16 = arith.constant 0 : index
    %30 = vector.load %arg5[%c0_15, %c0_16] : memref<22x1xf32, #tpu.memory_space<vmem>>, vector<22x1xf32>
    %31 = vector.broadcast %30 : vector<22x1xf32> to vector<22x128xf32>
    %32 = arith.mulf %29, %31 : vector<22x128xf32>
    %cst_17 = arith.constant 0.000000e+00 : bf16
    %33 = vector.broadcast %cst_17 : bf16 to vector<1x36x128xbf16>
    %c0_18 = arith.constant 0 : index
    %c0_19 = arith.constant 0 : index
    %c0_20 = arith.constant 0 : index
    %34 = vector.load %arg7[%c0_18, %c0_19, %c0_20] : memref<1x36x128xbf16, #tpu.memory_space<vmem>>, vector<1x36x128xbf16>
    tpu.vector_store %arg7[%c0_18, %c0_19, %c0_20], %33 {strides = array<i32>} : memref<1x36x128xbf16, #tpu.memory_space<vmem>>, vector<1x36x128xbf16>,
    %35 = arith.truncf %32 : vector<22x128xf32> to vector<22x128xbf16>
    %c0_21 = arith.constant 0 : index
    %c7_22 = arith.constant 7 : index
    %c0_23 = arith.constant 0 : index
    %36 = vector.load %arg7[%c0_21, %c7_22, %c0_23] : memref<1x36x128xbf16, #tpu.memory_space<vmem>>, vector<1x22x128xbf16>
    %37 = vector.shape_cast %36 : vector<1x22x128xbf16> to vector<22x128xbf16>
    %38 = vector.shape_cast %35 : vector<22x128xbf16> to vector<1x22x128xbf16>
    tpu.vector_store %arg7[%c0_21, %c7_22, %c0_23], %38 {strides = array<i32>} : memref<1x36x128xbf16, #tpu.memory_space<vmem>>, vector<1x22x128xbf16>,
    return
  }
  func.func @transform_0(%arg0: i32) -> (i32, i32, i32) {
    %c0_i32 = arith.constant 0 : i32
    %c0_i32_0 = arith.constant 0 : i32
    %c0_i32_1 = arith.constant 0 : i32
    return %arg0, %c0_i32, %c0_i32_0 : i32, i32, i32
  }
  func.func @transform_1(%arg0: i32) -> (i32, i32, i32) {
    %c0_i32 = arith.constant 0 : i32
    %c0_i32_0 = arith.constant 0 : i32
    %c0_i32_1 = arith.constant 0 : i32
    %c0_i32_2 = arith.constant 0 : i32
    return %c0_i32, %c0_i32_0, %c0_i32_1 : i32, i32, i32
  }
  func.func @transform_2(%arg0: i32) -> (i32, i32) {
    %c0_i32 = arith.constant 0 : i32
    %c0_i32_0 = arith.constant 0 : i32
    %c0_i32_1 = arith.constant 0 : i32
    return %c0_i32, %c0_i32_0 : i32, i32
  }
  func.func @transform_3(%arg0: i32) -> (i32, i32) {
    %c0_i32 = arith.constant 0 : i32
    %c0_i32_0 = arith.constant 0 : i32
    %c0_i32_1 = arith.constant 0 : i32
    return %c0_i32, %c0_i32_0 : i32, i32
  }
  func.func @transform_4(%arg0: i32) -> (i32, i32) {
    %c0_i32 = arith.constant 0 : i32
    %c0_i32_0 = arith.constant 0 : i32
    %c0_i32_1 = arith.constant 0 : i32
    return %c0_i32, %c0_i32_0 : i32, i32
  }
  func.func @transform_5(%arg0: i32) -> (i32, i32, i32) {
    %c0_i32 = arith.constant 0 : i32
    %c0_i32_0 = arith.constant 0 : i32
    %c0_i32_1 = arith.constant 0 : i32
    return %arg0, %c0_i32, %c0_i32_0 : i32, i32, i32
  }
  func.func @transform_6(%arg0: i32) -> (i32, i32, i32) {
    %c0_i32 = arith.constant 0 : i32
    %c0_i32_0 = arith.constant 0 : i32
    %c0_i32_1 = arith.constant 0 : i32
    return %arg0, %c0_i32, %c0_i32_0 : i32, i32, i32
  }
}

module attributes {stable_mosaic.version = 11 : i64} {
  func.func @_pool_kernel(%arg0: i32, %arg1: memref<9x1x4x128xbf16, #tpu.memory_space<vmem>>, %arg2: memref<1x4x128xbf16, #tpu.memory_space<vmem>>) attributes {dimension_semantics = [#tpu.dimension_semantics<parallel>], iteration_bounds = array<i64: 2>, scalar_prefetch = 0 : i64, scratch_operands = 0 : i64, tpu.core_type = #tpu.core_type<tc>, window_params = [{transform_indices = @transform_0, window_bounds = array<i64: 9, 1, 4, 128>}, {transform_indices = @transform_1, window_bounds = array<i64: 1, 4, 128>}]} {
    %c0 = arith.constant 0 : index
    %c0_0 = arith.constant 0 : index
    %c0_1 = arith.constant 0 : index
    %c0_2 = arith.constant 0 : index
    %0 = vector.load %arg1[%c0, %c0_0, %c0_1, %c0_2] : memref<9x1x4x128xbf16, #tpu.memory_space<vmem>>, vector<1x1x4x128xbf16>
    %1 = vector.shape_cast %0 : vector<1x1x4x128xbf16> to vector<4x128xbf16>
    %2 = arith.extf %1 : vector<4x128xbf16> to vector<4x128xf32>
    %c1 = arith.constant 1 : index
    %c0_3 = arith.constant 0 : index
    %c0_4 = arith.constant 0 : index
    %c0_5 = arith.constant 0 : index
    %3 = vector.load %arg1[%c1, %c0_3, %c0_4, %c0_5] : memref<9x1x4x128xbf16, #tpu.memory_space<vmem>>, vector<1x1x4x128xbf16>
    %4 = vector.shape_cast %3 : vector<1x1x4x128xbf16> to vector<4x128xbf16>
    %5 = arith.extf %4 : vector<4x128xbf16> to vector<4x128xf32>
    %6 = arith.addf %2, %5 : vector<4x128xf32>
    %c2 = arith.constant 2 : index
    %c0_6 = arith.constant 0 : index
    %c0_7 = arith.constant 0 : index
    %c0_8 = arith.constant 0 : index
    %7 = vector.load %arg1[%c2, %c0_6, %c0_7, %c0_8] : memref<9x1x4x128xbf16, #tpu.memory_space<vmem>>, vector<1x1x4x128xbf16>
    %8 = vector.shape_cast %7 : vector<1x1x4x128xbf16> to vector<4x128xbf16>
    %9 = arith.extf %8 : vector<4x128xbf16> to vector<4x128xf32>
    %10 = arith.addf %6, %9 : vector<4x128xf32>
    %c3 = arith.constant 3 : index
    %c0_9 = arith.constant 0 : index
    %c0_10 = arith.constant 0 : index
    %c0_11 = arith.constant 0 : index
    %11 = vector.load %arg1[%c3, %c0_9, %c0_10, %c0_11] : memref<9x1x4x128xbf16, #tpu.memory_space<vmem>>, vector<1x1x4x128xbf16>
    %12 = vector.shape_cast %11 : vector<1x1x4x128xbf16> to vector<4x128xbf16>
    %13 = arith.extf %12 : vector<4x128xbf16> to vector<4x128xf32>
    %14 = arith.addf %10, %13 : vector<4x128xf32>
    %c4 = arith.constant 4 : index
    %c0_12 = arith.constant 0 : index
    %c0_13 = arith.constant 0 : index
    %c0_14 = arith.constant 0 : index
    %15 = vector.load %arg1[%c4, %c0_12, %c0_13, %c0_14] : memref<9x1x4x128xbf16, #tpu.memory_space<vmem>>, vector<1x1x4x128xbf16>
    %16 = vector.shape_cast %15 : vector<1x1x4x128xbf16> to vector<4x128xbf16>
    %17 = arith.extf %16 : vector<4x128xbf16> to vector<4x128xf32>
    %18 = arith.addf %14, %17 : vector<4x128xf32>
    %c5 = arith.constant 5 : index
    %c0_15 = arith.constant 0 : index
    %c0_16 = arith.constant 0 : index
    %c0_17 = arith.constant 0 : index
    %19 = vector.load %arg1[%c5, %c0_15, %c0_16, %c0_17] : memref<9x1x4x128xbf16, #tpu.memory_space<vmem>>, vector<1x1x4x128xbf16>
    %20 = vector.shape_cast %19 : vector<1x1x4x128xbf16> to vector<4x128xbf16>
    %21 = arith.extf %20 : vector<4x128xbf16> to vector<4x128xf32>
    %22 = arith.addf %18, %21 : vector<4x128xf32>
    %c6 = arith.constant 6 : index
    %c0_18 = arith.constant 0 : index
    %c0_19 = arith.constant 0 : index
    %c0_20 = arith.constant 0 : index
    %23 = vector.load %arg1[%c6, %c0_18, %c0_19, %c0_20] : memref<9x1x4x128xbf16, #tpu.memory_space<vmem>>, vector<1x1x4x128xbf16>
    %24 = vector.shape_cast %23 : vector<1x1x4x128xbf16> to vector<4x128xbf16>
    %25 = arith.extf %24 : vector<4x128xbf16> to vector<4x128xf32>
    %26 = arith.addf %22, %25 : vector<4x128xf32>
    %c7 = arith.constant 7 : index
    %c0_21 = arith.constant 0 : index
    %c0_22 = arith.constant 0 : index
    %c0_23 = arith.constant 0 : index
    %27 = vector.load %arg1[%c7, %c0_21, %c0_22, %c0_23] : memref<9x1x4x128xbf16, #tpu.memory_space<vmem>>, vector<1x1x4x128xbf16>
    %28 = vector.shape_cast %27 : vector<1x1x4x128xbf16> to vector<4x128xbf16>
    %29 = arith.extf %28 : vector<4x128xbf16> to vector<4x128xf32>
    %30 = arith.addf %26, %29 : vector<4x128xf32>
    %c8 = arith.constant 8 : index
    %c0_24 = arith.constant 0 : index
    %c0_25 = arith.constant 0 : index
    %c0_26 = arith.constant 0 : index
    %31 = vector.load %arg1[%c8, %c0_24, %c0_25, %c0_26] : memref<9x1x4x128xbf16, #tpu.memory_space<vmem>>, vector<1x1x4x128xbf16>
    %32 = vector.shape_cast %31 : vector<1x1x4x128xbf16> to vector<4x128xbf16>
    %33 = arith.extf %32 : vector<4x128xbf16> to vector<4x128xf32>
    %34 = arith.addf %30, %33 : vector<4x128xf32>
    %cst = arith.constant 0.111111112 : f32
    %35 = vector.broadcast %cst : f32 to vector<4x128xf32>
    %36 = arith.mulf %34, %35 : vector<4x128xf32>
    %37 = arith.truncf %36 : vector<4x128xf32> to vector<4x128xbf16>
    %c0_27 = arith.constant 0 : index
    %c0_28 = arith.constant 0 : index
    %c0_29 = arith.constant 0 : index
    %38 = vector.load %arg2[%c0_27, %c0_28, %c0_29] : memref<1x4x128xbf16, #tpu.memory_space<vmem>>, vector<1x4x128xbf16>
    %39 = vector.shape_cast %38 : vector<1x4x128xbf16> to vector<4x128xbf16>
    %40 = vector.shape_cast %37 : vector<4x128xbf16> to vector<1x4x128xbf16>
    tpu.vector_store %arg2[%c0_27, %c0_28, %c0_29], %40 {strides = array<i32>} : memref<1x4x128xbf16, #tpu.memory_space<vmem>>, vector<1x4x128xbf16>,
    return
  }
  func.func @transform_0(%arg0: i32) -> (i32, i32, i32, i32) {
    %c0_i32 = arith.constant 0 : i32
    %c0_i32_0 = arith.constant 0 : i32
    %c0_i32_1 = arith.constant 0 : i32
    %c0_i32_2 = arith.constant 0 : i32
    return %c0_i32, %arg0, %c0_i32_0, %c0_i32_1 : i32, i32, i32, i32
  }
  func.func @transform_1(%arg0: i32) -> (i32, i32, i32) {
    %c0_i32 = arith.constant 0 : i32
    %c0_i32_0 = arith.constant 0 : i32
    %c0_i32_1 = arith.constant 0 : i32
    return %arg0, %c0_i32, %c0_i32_0 : i32, i32, i32
  }
}

module attributes {stable_mosaic.version = 11 : i64} {
  func.func @_conv_s1_kernel(%arg0: i32, %arg1: memref<1x16x128xbf16, #tpu.memory_space<vmem>>, %arg2: memref<9x128x128xbf16, #tpu.memory_space<vmem>>, %arg3: memref<6x1xf32, #tpu.memory_space<vmem>>, %arg4: memref<1x6x128xf32, #tpu.memory_space<vmem>>, %arg5: memref<1x2x128xf32, #tpu.memory_space<vmem>>) attributes {dimension_semantics = [#tpu.dimension_semantics<parallel>], iteration_bounds = array<i64: 2>, scalar_prefetch = 0 : i64, scratch_operands = 0 : i64, tpu.core_type = #tpu.core_type<tc>, window_params = [{transform_indices = @transform_0, window_bounds = array<i64: 1, 16, 128>}, {pipeline_mode = #tpu.pipeline_mode<synchronous>, transform_indices = @transform_1, window_bounds = array<i64: 9, 128, 128>}, {pipeline_mode = #tpu.pipeline_mode<synchronous>, transform_indices = @transform_2, window_bounds = array<i64: 6, 1>}, {transform_indices = @transform_3, window_bounds = array<i64: 1, 6, 128>}, {transform_indices = @transform_4, window_bounds = array<i64: 1, 2, 128>}]} {
    %cst = arith.constant 0.000000e+00 : f32
    %0 = vector.broadcast %cst : f32 to vector<6x128xf32>
    %c0 = arith.constant 0 : index
    %c0_0 = arith.constant 0 : index
    %c0_1 = arith.constant 0 : index
    %1 = vector.load %arg1[%c0, %c0_0, %c0_1] : memref<1x16x128xbf16, #tpu.memory_space<vmem>>, vector<1x6x128xbf16>
    %2 = vector.shape_cast %1 : vector<1x6x128xbf16> to vector<6x128xbf16>
    %c0_2 = arith.constant 0 : index
    %c0_3 = arith.constant 0 : index
    %c0_4 = arith.constant 0 : index
    %3 = vector.load %arg2[%c0_2, %c0_3, %c0_4] : memref<9x128x128xbf16, #tpu.memory_space<vmem>>, vector<1x128x128xbf16>
    %4 = vector.shape_cast %3 : vector<1x128x128xbf16> to vector<128x128xbf16>
    %cst_5 = arith.constant dense<0.000000e+00> : vector<6x128xf32>
    %5 = tpu.matmul %2, %4, %cst_5 {dimension_numbers = #tpu.dot_dimension_numbers<[1], [0], [0], [1], [0, 0, 1, 1], [], []>} : vector<6x128xbf16>, vector<128x128xbf16>, vector<6x128xf32> -> vector<6x128xf32>
    %6 = arith.addf %0, %5 : vector<6x128xf32>
    %c0_6 = arith.constant 0 : index
    %c1 = arith.constant 1 : index
    %c0_7 = arith.constant 0 : index
    %7 = vector.load %arg1[%c0_6, %c1, %c0_7] : memref<1x16x128xbf16, #tpu.memory_space<vmem>>, vector<1x6x128xbf16>
    %8 = vector.shape_cast %7 : vector<1x6x128xbf16> to vector<6x128xbf16>
    %c1_8 = arith.constant 1 : index
    %c0_9 = arith.constant 0 : index
    %c0_10 = arith.constant 0 : index
    %9 = vector.load %arg2[%c1_8, %c0_9, %c0_10] : memref<9x128x128xbf16, #tpu.memory_space<vmem>>, vector<1x128x128xbf16>
    %10 = vector.shape_cast %9 : vector<1x128x128xbf16> to vector<128x128xbf16>
    %cst_11 = arith.constant dense<0.000000e+00> : vector<6x128xf32>
    %11 = tpu.matmul %8, %10, %cst_11 {dimension_numbers = #tpu.dot_dimension_numbers<[1], [0], [0], [1], [0, 0, 1, 1], [], []>} : vector<6x128xbf16>, vector<128x128xbf16>, vector<6x128xf32> -> vector<6x128xf32>
    %12 = arith.addf %6, %11 : vector<6x128xf32>
    %c0_12 = arith.constant 0 : index
    %c2 = arith.constant 2 : index
    %c0_13 = arith.constant 0 : index
    %13 = vector.load %arg1[%c0_12, %c2, %c0_13] : memref<1x16x128xbf16, #tpu.memory_space<vmem>>, vector<1x6x128xbf16>
    %14 = vector.shape_cast %13 : vector<1x6x128xbf16> to vector<6x128xbf16>
    %c2_14 = arith.constant 2 : index
    %c0_15 = arith.constant 0 : index
    %c0_16 = arith.constant 0 : index
    %15 = vector.load %arg2[%c2_14, %c0_15, %c0_16] : memref<9x128x128xbf16, #tpu.memory_space<vmem>>, vector<1x128x128xbf16>
    %16 = vector.shape_cast %15 : vector<1x128x128xbf16> to vector<128x128xbf16>
    %cst_17 = arith.constant dense<0.000000e+00> : vector<6x128xf32>
    %17 = tpu.matmul %14, %16, %cst_17 {dimension_numbers = #tpu.dot_dimension_numbers<[1], [0], [0], [1], [0, 0, 1, 1], [], []>} : vector<6x128xbf16>, vector<128x128xbf16>, vector<6x128xf32> -> vector<6x128xf32>
    %18 = arith.addf %12, %17 : vector<6x128xf32>
    %c0_18 = arith.constant 0 : index
    %c4 = arith.constant 4 : index
    %c0_19 = arith.constant 0 : index
    %19 = vector.load %arg1[%c0_18, %c4, %c0_19] : memref<1x16x128xbf16, #tpu.memory_space<vmem>>, vector<1x6x128xbf16>
    %20 = vector.shape_cast %19 : vector<1x6x128xbf16> to vector<6x128xbf16>
    %c3 = arith.constant 3 : index
    %c0_20 = arith.constant 0 : index
    %c0_21 = arith.constant 0 : index
    %21 = vector.load %arg2[%c3, %c0_20, %c0_21] : memref<9x128x128xbf16, #tpu.memory_space<vmem>>, vector<1x128x128xbf16>
    %22 = vector.shape_cast %21 : vector<1x128x128xbf16> to vector<128x128xbf16>
    %cst_22 = arith.constant dense<0.000000e+00> : vector<6x128xf32>
    %23 = tpu.matmul %20, %22, %cst_22 {dimension_numbers = #tpu.dot_dimension_numbers<[1], [0], [0], [1], [0, 0, 1, 1], [], []>} : vector<6x128xbf16>, vector<128x128xbf16>, vector<6x128xf32> -> vector<6x128xf32>
    %24 = arith.addf %18, %23 : vector<6x128xf32>
    %c0_23 = arith.constant 0 : index
    %c5 = arith.constant 5 : index
    %c0_24 = arith.constant 0 : index
    %25 = vector.load %arg1[%c0_23, %c5, %c0_24] : memref<1x16x128xbf16, #tpu.memory_space<vmem>>, vector<1x6x128xbf16>
    %26 = vector.shape_cast %25 : vector<1x6x128xbf16> to vector<6x128xbf16>
    %c4_25 = arith.constant 4 : index
    %c0_26 = arith.constant 0 : index
    %c0_27 = arith.constant 0 : index
    %27 = vector.load %arg2[%c4_25, %c0_26, %c0_27] : memref<9x128x128xbf16, #tpu.memory_space<vmem>>, vector<1x128x128xbf16>
    %28 = vector.shape_cast %27 : vector<1x128x128xbf16> to vector<128x128xbf16>
    %cst_28 = arith.constant dense<0.000000e+00> : vector<6x128xf32>
    %29 = tpu.matmul %26, %28, %cst_28 {dimension_numbers = #tpu.dot_dimension_numbers<[1], [0], [0], [1], [0, 0, 1, 1], [], []>} : vector<6x128xbf16>, vector<128x128xbf16>, vector<6x128xf32> -> vector<6x128xf32>
    %30 = arith.addf %24, %29 : vector<6x128xf32>
    %c0_29 = arith.constant 0 : index
    %c6 = arith.constant 6 : index
    %c0_30 = arith.constant 0 : index
    %31 = vector.load %arg1[%c0_29, %c6, %c0_30] : memref<1x16x128xbf16, #tpu.memory_space<vmem>>, vector<1x6x128xbf16>
    %32 = vector.shape_cast %31 : vector<1x6x128xbf16> to vector<6x128xbf16>
    %c5_31 = arith.constant 5 : index
    %c0_32 = arith.constant 0 : index
    %c0_33 = arith.constant 0 : index
    %33 = vector.load %arg2[%c5_31, %c0_32, %c0_33] : memref<9x128x128xbf16, #tpu.memory_space<vmem>>, vector<1x128x128xbf16>
    %34 = vector.shape_cast %33 : vector<1x128x128xbf16> to vector<128x128xbf16>
    %cst_34 = arith.constant dense<0.000000e+00> : vector<6x128xf32>
    %35 = tpu.matmul %32, %34, %cst_34 {dimension_numbers = #tpu.dot_dimension_numbers<[1], [0], [0], [1], [0, 0, 1, 1], [], []>} : vector<6x128xbf16>, vector<128x128xbf16>, vector<6x128xf32> -> vector<6x128xf32>
    %36 = arith.addf %30, %35 : vector<6x128xf32>
    %c0_35 = arith.constant 0 : index
    %c8 = arith.constant 8 : index
    %c0_36 = arith.constant 0 : index
    %37 = vector.load %arg1[%c0_35, %c8, %c0_36] : memref<1x16x128xbf16, #tpu.memory_space<vmem>>, vector<1x6x128xbf16>
    %38 = vector.shape_cast %37 : vector<1x6x128xbf16> to vector<6x128xbf16>
    %c6_37 = arith.constant 6 : index
    %c0_38 = arith.constant 0 : index
    %c0_39 = arith.constant 0 : index
    %39 = vector.load %arg2[%c6_37, %c0_38, %c0_39] : memref<9x128x128xbf16, #tpu.memory_space<vmem>>, vector<1x128x128xbf16>
    %40 = vector.shape_cast %39 : vector<1x128x128xbf16> to vector<128x128xbf16>
    %cst_40 = arith.constant dense<0.000000e+00> : vector<6x128xf32>
    %41 = tpu.matmul %38, %40, %cst_40 {dimension_numbers = #tpu.dot_dimension_numbers<[1], [0], [0], [1], [0, 0, 1, 1], [], []>} : vector<6x128xbf16>, vector<128x128xbf16>, vector<6x128xf32> -> vector<6x128xf32>
    %42 = arith.addf %36, %41 : vector<6x128xf32>
    %c0_41 = arith.constant 0 : index
    %c9 = arith.constant 9 : index
    %c0_42 = arith.constant 0 : index
    %43 = vector.load %arg1[%c0_41, %c9, %c0_42] : memref<1x16x128xbf16, #tpu.memory_space<vmem>>, vector<1x6x128xbf16>
    %44 = vector.shape_cast %43 : vector<1x6x128xbf16> to vector<6x128xbf16>
    %c7 = arith.constant 7 : index
    %c0_43 = arith.constant 0 : index
    %c0_44 = arith.constant 0 : index
    %45 = vector.load %arg2[%c7, %c0_43, %c0_44] : memref<9x128x128xbf16, #tpu.memory_space<vmem>>, vector<1x128x128xbf16>
    %46 = vector.shape_cast %45 : vector<1x128x128xbf16> to vector<128x128xbf16>
    %cst_45 = arith.constant dense<0.000000e+00> : vector<6x128xf32>
    %47 = tpu.matmul %44, %46, %cst_45 {dimension_numbers = #tpu.dot_dimension_numbers<[1], [0], [0], [1], [0, 0, 1, 1], [], []>} : vector<6x128xbf16>, vector<128x128xbf16>, vector<6x128xf32> -> vector<6x128xf32>
    %48 = arith.addf %42, %47 : vector<6x128xf32>
    %c0_46 = arith.constant 0 : index
    %c10 = arith.constant 10 : index
    %c0_47 = arith.constant 0 : index
    %49 = vector.load %arg1[%c0_46, %c10, %c0_47] : memref<1x16x128xbf16, #tpu.memory_space<vmem>>, vector<1x6x128xbf16>
    %50 = vector.shape_cast %49 : vector<1x6x128xbf16> to vector<6x128xbf16>
    %c8_48 = arith.constant 8 : index
    %c0_49 = arith.constant 0 : index
    %c0_50 = arith.constant 0 : index
    %51 = vector.load %arg2[%c8_48, %c0_49, %c0_50] : memref<9x128x128xbf16, #tpu.memory_space<vmem>>, vector<1x128x128xbf16>
    %52 = vector.shape_cast %51 : vector<1x128x128xbf16> to vector<128x128xbf16>
    %cst_51 = arith.constant dense<0.000000e+00> : vector<6x128xf32>
    %53 = tpu.matmul %50, %52, %cst_51 {dimension_numbers = #tpu.dot_dimension_numbers<[1], [0], [0], [1], [0, 0, 1, 1], [], []>} : vector<6x128xbf16>, vector<128x128xbf16>, vector<6x128xf32> -> vector<6x128xf32>
    %54 = arith.addf %48, %53 : vector<6x128xf32>
    %c0_52 = arith.constant 0 : index
    %c0_53 = arith.constant 0 : index
    %c0_54 = arith.constant 0 : index
    %55 = vector.load %arg4[%c0_52, %c0_53, %c0_54] : memref<1x6x128xf32, #tpu.memory_space<vmem>>, vector<1x6x128xf32>
    %56 = vector.shape_cast %55 : vector<1x6x128xf32> to vector<6x128xf32>
    %57 = vector.shape_cast %54 : vector<6x128xf32> to vector<1x6x128xf32>
    tpu.vector_store %arg4[%c0_52, %c0_53, %c0_54], %57 {strides = array<i32>} : memref<1x6x128xf32, #tpu.memory_space<vmem>>, vector<1x6x128xf32>,
    %c0_55 = arith.constant 0 : index
    %c0_56 = arith.constant 0 : index
    %58 = vector.load %arg3[%c0_55, %c0_56] : memref<6x1xf32, #tpu.memory_space<vmem>>, vector<6x1xf32>
    %59 = vector.broadcast %58 : vector<6x1xf32> to vector<6x128xf32>
    %60 = arith.mulf %54, %59 : vector<6x128xf32>
    %cst_57 = arith.constant dense<0.000000e+00> : vector<128xf32>
    %61 = vector.multi_reduction <add>, %60, %cst_57 [0] : vector<6x128xf32> to vector<128xf32>
    %62 = vector.shape_cast %61 : vector<128xf32> to vector<1x128xf32>
    %c0_58 = arith.constant 0 : index
    %c0_59 = arith.constant 0 : index
    %c0_60 = arith.constant 0 : index
    %63 = vector.load %arg5[%c0_58, %c0_59, %c0_60] : memref<1x2x128xf32, #tpu.memory_space<vmem>>, vector<1x1x128xf32>
    %64 = vector.shape_cast %63 : vector<1x1x128xf32> to vector<1x128xf32>
    %65 = vector.shape_cast %62 : vector<1x128xf32> to vector<1x1x128xf32>
    tpu.vector_store %arg5[%c0_58, %c0_59, %c0_60], %65 {strides = array<i32>} : memref<1x2x128xf32, #tpu.memory_space<vmem>>, vector<1x1x128xf32>,
    %66 = arith.mulf %60, %54 : vector<6x128xf32>
    %cst_61 = arith.constant dense<0.000000e+00> : vector<128xf32>
    %67 = vector.multi_reduction <add>, %66, %cst_61 [0] : vector<6x128xf32> to vector<128xf32>
    %68 = vector.shape_cast %67 : vector<128xf32> to vector<1x128xf32>
    %c0_62 = arith.constant 0 : index
    %c1_63 = arith.constant 1 : index
    %c0_64 = arith.constant 0 : index
    %69 = vector.load %arg5[%c0_62, %c1_63, %c0_64] : memref<1x2x128xf32, #tpu.memory_space<vmem>>, vector<1x1x128xf32>
    %70 = vector.shape_cast %69 : vector<1x1x128xf32> to vector<1x128xf32>
    %71 = vector.shape_cast %68 : vector<1x128xf32> to vector<1x1x128xf32>
    tpu.vector_store %arg5[%c0_62, %c1_63, %c0_64], %71 {strides = array<i32>} : memref<1x2x128xf32, #tpu.memory_space<vmem>>, vector<1x1x128xf32>,
    return
  }
  func.func @transform_0(%arg0: i32) -> (i32, i32, i32) {
    %c0_i32 = arith.constant 0 : i32
    %c0_i32_0 = arith.constant 0 : i32
    %c0_i32_1 = arith.constant 0 : i32
    return %arg0, %c0_i32, %c0_i32_0 : i32, i32, i32
  }
  func.func @transform_1(%arg0: i32) -> (i32, i32, i32) {
    %c0_i32 = arith.constant 0 : i32
    %c0_i32_0 = arith.constant 0 : i32
    %c0_i32_1 = arith.constant 0 : i32
    %c0_i32_2 = arith.constant 0 : i32
    return %c0_i32, %c0_i32_0, %c0_i32_1 : i32, i32, i32
  }
  func.func @transform_2(%arg0: i32) -> (i32, i32) {
    %c0_i32 = arith.constant 0 : i32
    %c0_i32_0 = arith.constant 0 : i32
    %c0_i32_1 = arith.constant 0 : i32
    return %c0_i32, %c0_i32_0 : i32, i32
  }
  func.func @transform_3(%arg0: i32) -> (i32, i32, i32) {
    %c0_i32 = arith.constant 0 : i32
    %c0_i32_0 = arith.constant 0 : i32
    %c0_i32_1 = arith.constant 0 : i32
    return %arg0, %c0_i32, %c0_i32_0 : i32, i32, i32
  }
  func.func @transform_4(%arg0: i32) -> (i32, i32, i32) {
    %c0_i32 = arith.constant 0 : i32
    %c0_i32_0 = arith.constant 0 : i32
    %c0_i32_1 = arith.constant 0 : i32
    return %arg0, %c0_i32, %c0_i32_0 : i32, i32, i32
  }
}

module attributes {stable_mosaic.version = 11 : i64} {
  func.func @_bn_apply_kernel(%arg0: i32, %arg1: memref<1x6x128xf32, #tpu.memory_space<vmem>>, %arg2: memref<2x2x128xf32, #tpu.memory_space<vmem>>, %arg3: memref<1x128xf32, #tpu.memory_space<vmem>>, %arg4: memref<1x128xf32, #tpu.memory_space<vmem>>, %arg5: memref<6x1xf32, #tpu.memory_space<vmem>>, %arg6: memref<1x16x128xbf16, #tpu.memory_space<vmem>>) attributes {dimension_semantics = [#tpu.dimension_semantics<parallel>], iteration_bounds = array<i64: 2>, scalar_prefetch = 0 : i64, scratch_operands = 0 : i64, tpu.core_type = #tpu.core_type<tc>, window_params = [{transform_indices = @transform_0, window_bounds = array<i64: 1, 6, 128>}, {pipeline_mode = #tpu.pipeline_mode<synchronous>, transform_indices = @transform_1, window_bounds = array<i64: 2, 2, 128>}, {pipeline_mode = #tpu.pipeline_mode<synchronous>, transform_indices = @transform_2, window_bounds = array<i64: 1, 128>}, {pipeline_mode = #tpu.pipeline_mode<synchronous>, transform_indices = @transform_3, window_bounds = array<i64: 1, 128>}, {pipeline_mode = #tpu.pipeline_mode<synchronous>, transform_indices = @transform_4, window_bounds = array<i64: 6, 1>}, {transform_indices = @transform_5, window_bounds = array<i64: 1, 16, 128>}]} {
    %c0 = arith.constant 0 : index
    %c0_0 = arith.constant 0 : index
    %c0_1 = arith.constant 0 : index
    %0 = vector.load %arg2[%c0, %c0_0, %c0_1] : memref<2x2x128xf32, #tpu.memory_space<vmem>>, vector<2x2x128xf32>
    %cst = arith.constant dense<0.000000e+00> : vector<2x128xf32>
    %1 = vector.multi_reduction <add>, %0, %cst [0] : vector<2x2x128xf32> to vector<2x128xf32>
    %2 = vector.extract_strided_slice %1 {offsets = [0, 0], sizes = [1, 128], strides = [1, 1]} : vector<2x128xf32> to vector<1x128xf32>
    %cst_2 = arith.constant 1.250000e-01 : f32
    %3 = vector.broadcast %cst_2 : f32 to vector<1x128xf32>
    %4 = arith.mulf %2, %3 : vector<1x128xf32>
    %5 = vector.extract_strided_slice %1 {offsets = [1, 0], sizes = [1, 128], strides = [1, 1]} : vector<2x128xf32> to vector<1x128xf32>
    %cst_3 = arith.constant 1.250000e-01 : f32
    %6 = vector.broadcast %cst_3 : f32 to vector<1x128xf32>
    %7 = arith.mulf %5, %6 : vector<1x128xf32>
    %8 = arith.mulf %4, %4 : vector<1x128xf32>
    %9 = arith.subf %7, %8 : vector<1x128xf32>
    %c0_4 = arith.constant 0 : index
    %c0_5 = arith.constant 0 : index
    %10 = vector.load %arg3[%c0_4, %c0_5] : memref<1x128xf32, #tpu.memory_space<vmem>>, vector<1x128xf32>
    %cst_6 = arith.constant 9.99999974E-6 : f32
    %11 = vector.broadcast %cst_6 : f32 to vector<1x128xf32>
    %12 = arith.addf %9, %11 : vector<1x128xf32>
    %13 = math.rsqrt %12 : vector<1x128xf32>
    %14 = arith.mulf %10, %13 : vector<1x128xf32>
    %c0_7 = arith.constant 0 : index
    %c0_8 = arith.constant 0 : index
    %15 = vector.load %arg4[%c0_7, %c0_8] : memref<1x128xf32, #tpu.memory_space<vmem>>, vector<1x128xf32>
    %16 = arith.mulf %4, %14 : vector<1x128xf32>
    %17 = arith.subf %15, %16 : vector<1x128xf32>
    %c0_9 = arith.constant 0 : index
    %c0_10 = arith.constant 0 : index
    %c0_11 = arith.constant 0 : index
    %18 = vector.load %arg1[%c0_9, %c0_10, %c0_11] : memref<1x6x128xf32, #tpu.memory_space<vmem>>, vector<1x6x128xf32>
    %19 = vector.shape_cast %18 : vector<1x6x128xf32> to vector<6x128xf32>
    %20 = vector.broadcast %14 : vector<1x128xf32> to vector<6x128xf32>
    %21 = arith.mulf %19, %20 : vector<6x128xf32>
    %22 = vector.broadcast %17 : vector<1x128xf32> to vector<6x128xf32>
    %23 = arith.addf %21, %22 : vector<6x128xf32>
    %cst_12 = arith.constant 0.000000e+00 : f32
    %24 = vector.broadcast %cst_12 : f32 to vector<6x128xf32>
    %25 = arith.maximumf %23, %24 : vector<6x128xf32>
    %c0_13 = arith.constant 0 : index
    %c0_14 = arith.constant 0 : index
    %26 = vector.load %arg5[%c0_13, %c0_14] : memref<6x1xf32, #tpu.memory_space<vmem>>, vector<6x1xf32>
    %27 = vector.broadcast %26 : vector<6x1xf32> to vector<6x128xf32>
    %28 = arith.mulf %25, %27 : vector<6x128xf32>
    %cst_15 = arith.constant 0.000000e+00 : bf16
    %29 = vector.broadcast %cst_15 : bf16 to vector<1x16x128xbf16>
    %c0_16 = arith.constant 0 : index
    %c0_17 = arith.constant 0 : index
    %c0_18 = arith.constant 0 : index
    %30 = vector.load %arg6[%c0_16, %c0_17, %c0_18] : memref<1x16x128xbf16, #tpu.memory_space<vmem>>, vector<1x16x128xbf16>
    tpu.vector_store %arg6[%c0_16, %c0_17, %c0_18], %29 {strides = array<i32>} : memref<1x16x128xbf16, #tpu.memory_space<vmem>>, vector<1x16x128xbf16>,
    %31 = arith.truncf %28 : vector<6x128xf32> to vector<6x128xbf16>
    %c0_19 = arith.constant 0 : index
    %c5 = arith.constant 5 : index
    %c0_20 = arith.constant 0 : index
    %32 = vector.load %arg6[%c0_19, %c5, %c0_20] : memref<1x16x128xbf16, #tpu.memory_space<vmem>>, vector<1x6x128xbf16>
    %33 = vector.shape_cast %32 : vector<1x6x128xbf16> to vector<6x128xbf16>
    %34 = vector.shape_cast %31 : vector<6x128xbf16> to vector<1x6x128xbf16>
    tpu.vector_store %arg6[%c0_19, %c5, %c0_20], %34 {strides = array<i32>} : memref<1x16x128xbf16, #tpu.memory_space<vmem>>, vector<1x6x128xbf16>,
    return
  }
  func.func @transform_0(%arg0: i32) -> (i32, i32, i32) {
    %c0_i32 = arith.constant 0 : i32
    %c0_i32_0 = arith.constant 0 : i32
    %c0_i32_1 = arith.constant 0 : i32
    return %arg0, %c0_i32, %c0_i32_0 : i32, i32, i32
  }
  func.func @transform_1(%arg0: i32) -> (i32, i32, i32) {
    %c0_i32 = arith.constant 0 : i32
    %c0_i32_0 = arith.constant 0 : i32
    %c0_i32_1 = arith.constant 0 : i32
    %c0_i32_2 = arith.constant 0 : i32
    return %c0_i32, %c0_i32_0, %c0_i32_1 : i32, i32, i32
  }
  func.func @transform_2(%arg0: i32) -> (i32, i32) {
    %c0_i32 = arith.constant 0 : i32
    %c0_i32_0 = arith.constant 0 : i32
    %c0_i32_1 = arith.constant 0 : i32
    return %c0_i32, %c0_i32_0 : i32, i32
  }
  func.func @transform_3(%arg0: i32) -> (i32, i32) {
    %c0_i32 = arith.constant 0 : i32
    %c0_i32_0 = arith.constant 0 : i32
    %c0_i32_1 = arith.constant 0 : i32
    return %c0_i32, %c0_i32_0 : i32, i32
  }
  func.func @transform_4(%arg0: i32) -> (i32, i32) {
    %c0_i32 = arith.constant 0 : i32
    %c0_i32_0 = arith.constant 0 : i32
    %c0_i32_1 = arith.constant 0 : i32
    return %c0_i32, %c0_i32_0 : i32, i32
  }
  func.func @transform_5(%arg0: i32) -> (i32, i32, i32) {
    %c0_i32 = arith.constant 0 : i32
    %c0_i32_0 = arith.constant 0 : i32
    %c0_i32_1 = arith.constant 0 : i32
    return %arg0, %c0_i32, %c0_i32_0 : i32, i32, i32
  }
}

module attributes {stable_mosaic.version = 11 : i64} {
  func.func @_bn_apply_kernel(%arg0: i32, %arg1: memref<1x6x128xf32, #tpu.memory_space<vmem>>, %arg2: memref<2x2x128xf32, #tpu.memory_space<vmem>>, %arg3: memref<1x128xf32, #tpu.memory_space<vmem>>, %arg4: memref<1x128xf32, #tpu.memory_space<vmem>>, %arg5: memref<6x1xf32, #tpu.memory_space<vmem>>, %arg6: memref<1x16x128xbf16, #tpu.memory_space<vmem>>, %arg7: memref<1x16x128xbf16, #tpu.memory_space<vmem>>) attributes {dimension_semantics = [#tpu.dimension_semantics<parallel>], iteration_bounds = array<i64: 2>, scalar_prefetch = 0 : i64, scratch_operands = 0 : i64, tpu.core_type = #tpu.core_type<tc>, window_params = [{transform_indices = @transform_0, window_bounds = array<i64: 1, 6, 128>}, {pipeline_mode = #tpu.pipeline_mode<synchronous>, transform_indices = @transform_1, window_bounds = array<i64: 2, 2, 128>}, {pipeline_mode = #tpu.pipeline_mode<synchronous>, transform_indices = @transform_2, window_bounds = array<i64: 1, 128>}, {pipeline_mode = #tpu.pipeline_mode<synchronous>, transform_indices = @transform_3, window_bounds = array<i64: 1, 128>}, {pipeline_mode = #tpu.pipeline_mode<synchronous>, transform_indices = @transform_4, window_bounds = array<i64: 6, 1>}, {transform_indices = @transform_5, window_bounds = array<i64: 1, 16, 128>}, {transform_indices = @transform_6, window_bounds = array<i64: 1, 16, 128>}]} {
    %c0 = arith.constant 0 : index
    %c0_0 = arith.constant 0 : index
    %c0_1 = arith.constant 0 : index
    %0 = vector.load %arg2[%c0, %c0_0, %c0_1] : memref<2x2x128xf32, #tpu.memory_space<vmem>>, vector<2x2x128xf32>
    %cst = arith.constant dense<0.000000e+00> : vector<2x128xf32>
    %1 = vector.multi_reduction <add>, %0, %cst [0] : vector<2x2x128xf32> to vector<2x128xf32>
    %2 = vector.extract_strided_slice %1 {offsets = [0, 0], sizes = [1, 128], strides = [1, 1]} : vector<2x128xf32> to vector<1x128xf32>
    %cst_2 = arith.constant 1.250000e-01 : f32
    %3 = vector.broadcast %cst_2 : f32 to vector<1x128xf32>
    %4 = arith.mulf %2, %3 : vector<1x128xf32>
    %5 = vector.extract_strided_slice %1 {offsets = [1, 0], sizes = [1, 128], strides = [1, 1]} : vector<2x128xf32> to vector<1x128xf32>
    %cst_3 = arith.constant 1.250000e-01 : f32
    %6 = vector.broadcast %cst_3 : f32 to vector<1x128xf32>
    %7 = arith.mulf %5, %6 : vector<1x128xf32>
    %8 = arith.mulf %4, %4 : vector<1x128xf32>
    %9 = arith.subf %7, %8 : vector<1x128xf32>
    %c0_4 = arith.constant 0 : index
    %c0_5 = arith.constant 0 : index
    %10 = vector.load %arg3[%c0_4, %c0_5] : memref<1x128xf32, #tpu.memory_space<vmem>>, vector<1x128xf32>
    %cst_6 = arith.constant 9.99999974E-6 : f32
    %11 = vector.broadcast %cst_6 : f32 to vector<1x128xf32>
    %12 = arith.addf %9, %11 : vector<1x128xf32>
    %13 = math.rsqrt %12 : vector<1x128xf32>
    %14 = arith.mulf %10, %13 : vector<1x128xf32>
    %c0_7 = arith.constant 0 : index
    %c0_8 = arith.constant 0 : index
    %15 = vector.load %arg4[%c0_7, %c0_8] : memref<1x128xf32, #tpu.memory_space<vmem>>, vector<1x128xf32>
    %16 = arith.mulf %4, %14 : vector<1x128xf32>
    %17 = arith.subf %15, %16 : vector<1x128xf32>
    %c0_9 = arith.constant 0 : index
    %c0_10 = arith.constant 0 : index
    %c0_11 = arith.constant 0 : index
    %18 = vector.load %arg1[%c0_9, %c0_10, %c0_11] : memref<1x6x128xf32, #tpu.memory_space<vmem>>, vector<1x6x128xf32>
    %19 = vector.shape_cast %18 : vector<1x6x128xf32> to vector<6x128xf32>
    %20 = vector.broadcast %14 : vector<1x128xf32> to vector<6x128xf32>
    %21 = arith.mulf %19, %20 : vector<6x128xf32>
    %22 = vector.broadcast %17 : vector<1x128xf32> to vector<6x128xf32>
    %23 = arith.addf %21, %22 : vector<6x128xf32>
    %c0_12 = arith.constant 0 : index
    %c5 = arith.constant 5 : index
    %c0_13 = arith.constant 0 : index
    %24 = vector.load %arg6[%c0_12, %c5, %c0_13] : memref<1x16x128xbf16, #tpu.memory_space<vmem>>, vector<1x6x128xbf16>
    %25 = vector.shape_cast %24 : vector<1x6x128xbf16> to vector<6x128xbf16>
    %26 = arith.extf %25 : vector<6x128xbf16> to vector<6x128xf32>
    %27 = arith.addf %23, %26 : vector<6x128xf32>
    %cst_14 = arith.constant 0.000000e+00 : f32
    %28 = vector.broadcast %cst_14 : f32 to vector<6x128xf32>
    %29 = arith.maximumf %27, %28 : vector<6x128xf32>
    %c0_15 = arith.constant 0 : index
    %c0_16 = arith.constant 0 : index
    %30 = vector.load %arg5[%c0_15, %c0_16] : memref<6x1xf32, #tpu.memory_space<vmem>>, vector<6x1xf32>
    %31 = vector.broadcast %30 : vector<6x1xf32> to vector<6x128xf32>
    %32 = arith.mulf %29, %31 : vector<6x128xf32>
    %cst_17 = arith.constant 0.000000e+00 : bf16
    %33 = vector.broadcast %cst_17 : bf16 to vector<1x16x128xbf16>
    %c0_18 = arith.constant 0 : index
    %c0_19 = arith.constant 0 : index
    %c0_20 = arith.constant 0 : index
    %34 = vector.load %arg7[%c0_18, %c0_19, %c0_20] : memref<1x16x128xbf16, #tpu.memory_space<vmem>>, vector<1x16x128xbf16>
    tpu.vector_store %arg7[%c0_18, %c0_19, %c0_20], %33 {strides = array<i32>} : memref<1x16x128xbf16, #tpu.memory_space<vmem>>, vector<1x16x128xbf16>,
    %35 = arith.truncf %32 : vector<6x128xf32> to vector<6x128xbf16>
    %c0_21 = arith.constant 0 : index
    %c5_22 = arith.constant 5 : index
    %c0_23 = arith.constant 0 : index
    %36 = vector.load %arg7[%c0_21, %c5_22, %c0_23] : memref<1x16x128xbf16, #tpu.memory_space<vmem>>, vector<1x6x128xbf16>
    %37 = vector.shape_cast %36 : vector<1x6x128xbf16> to vector<6x128xbf16>
    %38 = vector.shape_cast %35 : vector<6x128xbf16> to vector<1x6x128xbf16>
    tpu.vector_store %arg7[%c0_21, %c5_22, %c0_23], %38 {strides = array<i32>} : memref<1x16x128xbf16, #tpu.memory_space<vmem>>, vector<1x6x128xbf16>,
    return
  }
  func.func @transform_0(%arg0: i32) -> (i32, i32, i32) {
    %c0_i32 = arith.constant 0 : i32
    %c0_i32_0 = arith.constant 0 : i32
    %c0_i32_1 = arith.constant 0 : i32
    return %arg0, %c0_i32, %c0_i32_0 : i32, i32, i32
  }
  func.func @transform_1(%arg0: i32) -> (i32, i32, i32) {
    %c0_i32 = arith.constant 0 : i32
    %c0_i32_0 = arith.constant 0 : i32
    %c0_i32_1 = arith.constant 0 : i32
    %c0_i32_2 = arith.constant 0 : i32
    return %c0_i32, %c0_i32_0, %c0_i32_1 : i32, i32, i32
  }
  func.func @transform_2(%arg0: i32) -> (i32, i32) {
    %c0_i32 = arith.constant 0 : i32
    %c0_i32_0 = arith.constant 0 : i32
    %c0_i32_1 = arith.constant 0 : i32
    return %c0_i32, %c0_i32_0 : i32, i32
  }
  func.func @transform_3(%arg0: i32) -> (i32, i32) {
    %c0_i32 = arith.constant 0 : i32
    %c0_i32_0 = arith.constant 0 : i32
    %c0_i32_1 = arith.constant 0 : i32
    return %c0_i32, %c0_i32_0 : i32, i32
  }
  func.func @transform_4(%arg0: i32) -> (i32, i32) {
    %c0_i32 = arith.constant 0 : i32
    %c0_i32_0 = arith.constant 0 : i32
    %c0_i32_1 = arith.constant 0 : i32
    return %c0_i32, %c0_i32_0 : i32, i32
  }
  func.func @transform_5(%arg0: i32) -> (i32, i32, i32) {
    %c0_i32 = arith.constant 0 : i32
    %c0_i32_0 = arith.constant 0 : i32
    %c0_i32_1 = arith.constant 0 : i32
    return %arg0, %c0_i32, %c0_i32_0 : i32, i32, i32
  }
  func.func @transform_6(%arg0: i32) -> (i32, i32, i32) {
    %c0_i32 = arith.constant 0 : i32
    %c0_i32_0 = arith.constant 0 : i32
    %c0_i32_1 = arith.constant 0 : i32
    return %arg0, %c0_i32, %c0_i32_0 : i32, i32, i32
  }
}

module attributes {stable_mosaic.version = 11 : i64} {
  func.func @_pool_kernel(%arg0: i32, %arg1: memref<9x1x1x128xbf16, #tpu.memory_space<vmem>>, %arg2: memref<1x1x128xbf16, #tpu.memory_space<vmem>>) attributes {dimension_semantics = [#tpu.dimension_semantics<parallel>], iteration_bounds = array<i64: 2>, scalar_prefetch = 0 : i64, scratch_operands = 0 : i64, tpu.core_type = #tpu.core_type<tc>, window_params = [{transform_indices = @transform_0, window_bounds = array<i64: 9, 1, 1, 128>}, {transform_indices = @transform_1, window_bounds = array<i64: 1, 1, 128>}]} {
    %c0 = arith.constant 0 : index
    %c0_0 = arith.constant 0 : index
    %c0_1 = arith.constant 0 : index
    %c0_2 = arith.constant 0 : index
    %0 = vector.load %arg1[%c0, %c0_0, %c0_1, %c0_2] : memref<9x1x1x128xbf16, #tpu.memory_space<vmem>>, vector<1x1x1x128xbf16>
    %1 = vector.shape_cast %0 : vector<1x1x1x128xbf16> to vector<1x128xbf16>
    %2 = arith.extf %1 : vector<1x128xbf16> to vector<1x128xf32>
    %c1 = arith.constant 1 : index
    %c0_3 = arith.constant 0 : index
    %c0_4 = arith.constant 0 : index
    %c0_5 = arith.constant 0 : index
    %3 = vector.load %arg1[%c1, %c0_3, %c0_4, %c0_5] : memref<9x1x1x128xbf16, #tpu.memory_space<vmem>>, vector<1x1x1x128xbf16>
    %4 = vector.shape_cast %3 : vector<1x1x1x128xbf16> to vector<1x128xbf16>
    %5 = arith.extf %4 : vector<1x128xbf16> to vector<1x128xf32>
    %6 = arith.addf %2, %5 : vector<1x128xf32>
    %c2 = arith.constant 2 : index
    %c0_6 = arith.constant 0 : index
    %c0_7 = arith.constant 0 : index
    %c0_8 = arith.constant 0 : index
    %7 = vector.load %arg1[%c2, %c0_6, %c0_7, %c0_8] : memref<9x1x1x128xbf16, #tpu.memory_space<vmem>>, vector<1x1x1x128xbf16>
    %8 = vector.shape_cast %7 : vector<1x1x1x128xbf16> to vector<1x128xbf16>
    %9 = arith.extf %8 : vector<1x128xbf16> to vector<1x128xf32>
    %10 = arith.addf %6, %9 : vector<1x128xf32>
    %c3 = arith.constant 3 : index
    %c0_9 = arith.constant 0 : index
    %c0_10 = arith.constant 0 : index
    %c0_11 = arith.constant 0 : index
    %11 = vector.load %arg1[%c3, %c0_9, %c0_10, %c0_11] : memref<9x1x1x128xbf16, #tpu.memory_space<vmem>>, vector<1x1x1x128xbf16>
    %12 = vector.shape_cast %11 : vector<1x1x1x128xbf16> to vector<1x128xbf16>
    %13 = arith.extf %12 : vector<1x128xbf16> to vector<1x128xf32>
    %14 = arith.addf %10, %13 : vector<1x128xf32>
    %c4 = arith.constant 4 : index
    %c0_12 = arith.constant 0 : index
    %c0_13 = arith.constant 0 : index
    %c0_14 = arith.constant 0 : index
    %15 = vector.load %arg1[%c4, %c0_12, %c0_13, %c0_14] : memref<9x1x1x128xbf16, #tpu.memory_space<vmem>>, vector<1x1x1x128xbf16>
    %16 = vector.shape_cast %15 : vector<1x1x1x128xbf16> to vector<1x128xbf16>
    %17 = arith.extf %16 : vector<1x128xbf16> to vector<1x128xf32>
    %18 = arith.addf %14, %17 : vector<1x128xf32>
    %c5 = arith.constant 5 : index
    %c0_15 = arith.constant 0 : index
    %c0_16 = arith.constant 0 : index
    %c0_17 = arith.constant 0 : index
    %19 = vector.load %arg1[%c5, %c0_15, %c0_16, %c0_17] : memref<9x1x1x128xbf16, #tpu.memory_space<vmem>>, vector<1x1x1x128xbf16>
    %20 = vector.shape_cast %19 : vector<1x1x1x128xbf16> to vector<1x128xbf16>
    %21 = arith.extf %20 : vector<1x128xbf16> to vector<1x128xf32>
    %22 = arith.addf %18, %21 : vector<1x128xf32>
    %c6 = arith.constant 6 : index
    %c0_18 = arith.constant 0 : index
    %c0_19 = arith.constant 0 : index
    %c0_20 = arith.constant 0 : index
    %23 = vector.load %arg1[%c6, %c0_18, %c0_19, %c0_20] : memref<9x1x1x128xbf16, #tpu.memory_space<vmem>>, vector<1x1x1x128xbf16>
    %24 = vector.shape_cast %23 : vector<1x1x1x128xbf16> to vector<1x128xbf16>
    %25 = arith.extf %24 : vector<1x128xbf16> to vector<1x128xf32>
    %26 = arith.addf %22, %25 : vector<1x128xf32>
    %c7 = arith.constant 7 : index
    %c0_21 = arith.constant 0 : index
    %c0_22 = arith.constant 0 : index
    %c0_23 = arith.constant 0 : index
    %27 = vector.load %arg1[%c7, %c0_21, %c0_22, %c0_23] : memref<9x1x1x128xbf16, #tpu.memory_space<vmem>>, vector<1x1x1x128xbf16>
    %28 = vector.shape_cast %27 : vector<1x1x1x128xbf16> to vector<1x128xbf16>
    %29 = arith.extf %28 : vector<1x128xbf16> to vector<1x128xf32>
    %30 = arith.addf %26, %29 : vector<1x128xf32>
    %c8 = arith.constant 8 : index
    %c0_24 = arith.constant 0 : index
    %c0_25 = arith.constant 0 : index
    %c0_26 = arith.constant 0 : index
    %31 = vector.load %arg1[%c8, %c0_24, %c0_25, %c0_26] : memref<9x1x1x128xbf16, #tpu.memory_space<vmem>>, vector<1x1x1x128xbf16>
    %32 = vector.shape_cast %31 : vector<1x1x1x128xbf16> to vector<1x128xbf16>
    %33 = arith.extf %32 : vector<1x128xbf16> to vector<1x128xf32>
    %34 = arith.addf %30, %33 : vector<1x128xf32>
    %cst = arith.constant 0.111111112 : f32
    %35 = vector.broadcast %cst : f32 to vector<1x128xf32>
    %36 = arith.mulf %34, %35 : vector<1x128xf32>
    %37 = arith.truncf %36 : vector<1x128xf32> to vector<1x128xbf16>
    %c0_27 = arith.constant 0 : index
    %c0_28 = arith.constant 0 : index
    %c0_29 = arith.constant 0 : index
    %38 = vector.load %arg2[%c0_27, %c0_28, %c0_29] : memref<1x1x128xbf16, #tpu.memory_space<vmem>>, vector<1x1x128xbf16>
    %39 = vector.shape_cast %38 : vector<1x1x128xbf16> to vector<1x128xbf16>
    %40 = vector.shape_cast %37 : vector<1x128xbf16> to vector<1x1x128xbf16>
    tpu.vector_store %arg2[%c0_27, %c0_28, %c0_29], %40 {strides = array<i32>} : memref<1x1x128xbf16, #tpu.memory_space<vmem>>, vector<1x1x128xbf16>,
    return
  }
  func.func @transform_0(%arg0: i32) -> (i32, i32, i32, i32) {
    %c0_i32 = arith.constant 0 : i32
    %c0_i32_0 = arith.constant 0 : i32
    %c0_i32_1 = arith.constant 0 : i32
    %c0_i32_2 = arith.constant 0 : i32
    return %c0_i32, %arg0, %c0_i32_0, %c0_i32_1 : i32, i32, i32, i32
  }
  func.func @transform_1(%arg0: i32) -> (i32, i32, i32) {
    %c0_i32 = arith.constant 0 : i32
    %c0_i32_0 = arith.constant 0 : i32
    %c0_i32_1 = arith.constant 0 : i32
    return %arg0, %c0_i32, %c0_i32_0 : i32, i32, i32
  }
}

</mosaic_0001>

<bundles_post_ra>
// kernel: downsample_forward.36
= control target key start
LH: loop header
LB: loop body
LE: loop exit
PB: predicated region body
PF: predicated region fallthrough
CT: control target
= control target key end

     0   :  { %7 = vsyncpa [#allocation3], 0  ;;  %s3016_s0 = inlined_call_operand.hbm [shape: bf16[9,2,64,128], index: 0, kind: input, shape index: {}]   ;;  %s3017_s1 = inlined_call_operand.hbm [shape: bf16[9,128,128], index: 1, kind: input, shape index: {}]   ;;  %s3018_s2 = inlined_call_operand.hbm [shape: bf16[2,64,128], index: 2, kind: output, shape index: {}]  }
   0x1   :  { %9 = vsyncpa [#allocation3 + $0x1], 0 }
   0x2   :  { %10 = vsyncpa [#allocation6], 0 }
   0x3   :  { %11 = vsyncpa [#allocation4], 0 }
   0x4   :  { %13 = vsyncpa [#allocation4 + $0x1], 0  ;;  %s2800_s9 = smov 0   ;;  %s2802_s10 = smov 0  }
   0x5   :  { %s2804_s11 = smov 0   ;;  %s2806_s12 = smov 0  }
   0x6 LB: > { %s2821_s13 = sadd.s32 4294967295, %s2771_s12   ;;  %s1861_s14 = sadd.s32 4294967294, %s2771_s12   ;;  %s2771_s12 = sphi %s2806_s12, %s3040_s12   ;;  %s2767_s11 = sphi %s2804_s11, %s3039_s11   ;;  %s2763_s10 = sphi %s2802_s10, %s3038_s10   ;;  %s2759_s9 = sphi %s2800_s9, %s3037_s9  }
   0x7   : > { %s2825_s15 = sadd.s32 1, %s2771_s12   ;;  %s26_s16 = sadd.s32 1, %s2767_s11 }
   0x8   : > { %s23_s17 = ssub.s32 %s2771_s12, %s2825_s15  ;;  %p33_p0 = scmp.ne.s32.totalorder %s2767_s11, %s2763_s10 }
   0x9   : > { %p24_p1 = scmp.eq.s32.totalorder %s23_s17, 0  ;;  %p34_p2 = scmp.eq.s32.totalorder %s2771_s12, 0 }
   0xa   : > { %p39_p3 = scmp.ne.s32.totalorder %s2763_s10, %s2759_s9  ;;  %p3019_p4 = scmp.eq.s32.totalorder %s2821_s13, 0 }
   0xb   : > { %s2837_s18 = scalar_select %p24_p1, %s2767_s11, %s26_s16  }
   0xc   : > { %p2839_p5 = por %p34_p2, %p33_p0  ;;  %p2845_p6 = por %p3019_p4, %p39_p3 }
   0xd   : > { %p84_p7 = scmp.eq.s32.totalorder %s2821_s13, 1  ;;  %p90_p8 = scmp.eq.s32.totalorder %s1861_s14, 1 }
   0xe   : > { %s3024_s19 = scalar_select %p2839_p5, 1, 0 }
   0xf   : > { %s3025_s20 = scalar_select %p2845_p6, 1, 0 }
  0x10   : > { %p1862_p9 = scmp.ge.s32.totalorder %s2771_s12, 1  ;;  %p97_p10 = scmp.lt.s32.totalorder %s2771_s12, 3 }
  0x11   : > { %p2852_p11 = por %p84_p7, %p33_p0  ;;  %p2856_p12 = por %p90_p8, %p39_p3 }
  0x12   : > { %p2860_p13 = pnand %p1862_p9, %p97_p10  ;;  %s2773_s24 = smov [#allocation5]  }
  0x13   : > { %s3026_s21 = scalar_select %p2852_p11, 1, 0 }
  0x14   : > { %s3027_s22 = scalar_select %p2856_p12, 1, 0 }
  0x15   : > { %s3028_s23 = scalar_select %p2860_p13, 1, 0 }
  0x16   : > { %p2511_p1 = pneg %p2860_p13  ;;  %s109_s25 = sshll.u32 %s2773_s24, 4  ;;  %s110_s25 = int_to_ptr.vmem [resolvable:$true] %s109_s25 }
  0x17   : > { %s2673_s29 = scalar_lea.hbm %s3017_s1, 9216 }
  0x18   : > { %p2868_p2 = pnand %p2511_p1, %p3019_p4  ;;  %p2674_p0 = scmp.ne.s32.totalorder %s3017_s1, %s2673_s29 }
  0x19   : > { %p2680_p9 = scmp.lt.u32.totalorder %s2673_s29, %s3017_s1 }
  0x1a   : > { %p2675_p3 = pneg %p2868_p2 }
  0x1c   : > { %p2676_p7 = pnand %p2675_p3, %p2674_p0 }
  0x1e   : > { %p2677_p8 = pneg %p2676_p7 }
  0x20   : > { %p2682_p10 = pnand %p2680_p9, %p2677_p8 }
  0x22   : > { %2685 = shalt.err (!%p2682_p10)
}
  0x23   : > { %s2686_s6 = scalar_lea.vmem %s110_s25, 9216  ;;  %p2694_p11 = scmp.lt.s32.totalorder %s110_s25, %s110_s25 }
  0x24   : > { %p2687_p1 = scmp.ne.s32.totalorder %s110_s25, %s2686_s6  ;;  %p2695_p6 = scmp.lt.s32.totalorder %s2686_s6, %s2686_s6 }
  0x26   : > { %p2689_p4 = pnand %p2687_p1, %p2675_p3  ;;  %p2696_p13 = por %p2695_p6, %p2694_p11 }
  0x28   : > { %p2690_p12 = pneg %p2689_p4 }
  0x2a   : > { %p2697_p5 = pnand %p2696_p13, %p2690_p12 }
  0x2c   : > { %2700 = shalt.err (!%p2697_p5)
}
  0x2d   : > { %s2774_s7 = smov 64   ;;  %s2775_s8 = smov 4  }
  0x2e   : > { %2514 = dma.hbm_to_vmem [thread:$0]  (!%p2868_p2), %s3017_s1, 9216, %s110_s25, [#allocation6], %s2774_s7, %s2774_s7, %s2775_s8  }
  0x2f   : > { %p1864_p0 = scmp.ge.s32.totalorder %s2771_s12, 2 }
  0x31   : > { %119 = sbr.rel (%p1864_p0) target bundleno = 72 (0x48), region = 20 }
  0x38   : > { %s123_s17 = sand.u32 1, %s2767_s11   ;;  %s2057_s26 = sshll.u32 %s2771_s12, 9 }
  0x39   : > { %s2494_s24 = smul.u32 288, %s123_s17  ;;  %s2776_s27 = smov 1024  }
  0x3a   : > { %p3030_p4 = scmp.ne.s32.totalorder %s3024_s19, 0  ;;  %s133_s30 = scalar_lea.hbm %s3016_s0, %s2057_s26 }
  0x3b   : > { %s127_s4 = scalar_lea.vmem [#allocation2], %s2494_s24  ;;  %s2777_s6 = smov 512  }
  0x3c   : > { %2499 = sst [smem:[#allocation9]] (%p3030_p4), %s2776_s27  ;;  %s146_s5 = sshll.u32 %s127_s4, 4  ;;  %s147_s5 = int_to_ptr.vmem [resolvable:$true] %s146_s5 }
  0x3d   : > { %s2498_s25 = scalar_select %p3030_p4, [#allocation0], [#allocation10] }
  0x3e   : > { %2500 = sst [smem:[#allocation9 + $0x1]] (%p3030_p4), %s2777_s6  ;;  %s2778_s7 = smov 8  }
  0x3f   : > { %s138_s3 = sld [smem:[%s2498_s25]]   ;;  %s2779_s8 = smov 64  }
  0x40   : > { %2501 = sst [smem:[#allocation9 + $0x2]] (%p3030_p4), %s2778_s7  ;;  %s2780_s14 = smov 4  }
  0x41   : > { %2502 = sst [smem:[#allocation9 + $0x3]] (%p3030_p4), %s2779_s8  ;;  %s124_s24 = scalar_lea.sflag [#allocation3], %s123_s17 }
  0x42   : > { %2503 = sst [smem:[#allocation9 + $0x4]] (%p3030_p4), %s2779_s8  ;;  %s2781_s27 = smov [#allocation8]  }
  0x43   : > { %2504 = sst [smem:[#allocation9 + $0x5]] (%p3030_p4), %s2780_s14 }
  0x45   : > { %s1867_s16 = sshll.u32 %s138_s3, 26 }
  0x46   : > { %s1868_s26 = sadd.s32 134217728, %s1867_s16 }
  0x47   : > { %2505 = dma.general (%p3030_p4), %s133_s30, 4608, %s147_s5, %s124_s24, %s2781_s27, [#allocation9], %s1868_s26, 0  }
  0x48 PF: > { %p3031_p5 = scmp.ne.s32.totalorder %s3028_s23, 0 }
  0x49   : > { %s2915_s25 = sand.u32 (!%p3031_p5), 1, %s2763_s10   ;;  %p3032_p6 = scmp.ne.s32.totalorder (!%p3031_p5), %s3025_s20, 0 }
  0x4a   : > { %171 = sbr.rel (%p3031_p5) target bundleno = 481 (0x1e1), region = 28  ;;  %s174_s29 = scalar_lea.sflag (!%p3031_p5), [#allocation3], %s2915_s25 }
  0x4b   : > { %s2495_s28 = smul.u32 (!%p3031_p5), 288, %s2915_s25 }
  0x4d   : > { %s2919_s4 = scalar_lea.vmem (!%p3031_p5), [#allocation2], %s2495_s28 }
  0x51   : > { %2746 = dma.done.wait (%p3032_p6), %s174_s29, 4608  }
  0x52   : > { %2748 = vsyncadd (%p3032_p6), %s174_s29, 4294962688  ;;  %p3033_p11 = scmp.eq.s32.totalorder %s2821_s13, 0 }
  0x54   : > { %2750 = dma.done.wait (%p3033_p11), [#allocation6], 9216   ;;  %p3034_p12 = pmov %p3033_p11 }
  0x55   : > { %v2565_v0 = vld [vmem:[#allocation5 + $0x40] sm:$0xff]   ;;  %v2567_v2 = vld [vmem:[#allocation5 + $0x48] sm:$0xff]   ;;  %v2569_v4 = vld [vmem:[#allocation5 + $0x50] sm:$0xff]   ;;  %s1871_s19 = sshll.u32 %s2915_s25, 5  ;;  %s2066_s17 = sshll.u32 %s2821_s13, 9 }
  0x56   : > { %2752 = vsyncadd (%p3034_p12), [#allocation6], 4294958080  ;;  %v2566_v1 = vld [vmem:[#allocation5 + $0x100] sm:$0xff]   ;;  %2198 = vmatprep.subr.bf16.mxu1 %v2565_v0  ;;  %v2568_v3 = vld [vmem:[#allocation5 + $0x108] sm:$0xff]   ;;  %s201_s20 = scalar_lea.vmem [#allocation7], %s1871_s19  ;;  %s2972_s5 = scalar_lea.hbm %s3018_s2, %s2066_s17 }
  0x57   : > { %2294 = vmatprep.subr.bf16.mxu0 %v2566_v1  ;;  %2199 = vmatpush3.bf16.msra.mxu1 %v2565_v0  ;;  %v2570_v5 = vld [vmem:[#allocation5 + $0x110] sm:$0xff]   ;;  %v2571_v6 = vld [vmem:[#allocation5 + $0x58] sm:$0xff]   ;;  %v2573_v8 = vld [vmem:[#allocation5 + $0x60] sm:$0xff]   ;;  %s1778_s23 = sshll.u32 %s201_s20, 4  ;;  %s1765_s13 = scalar_lea.sflag [#allocation4], %s2915_s25  ;;  %s2967_s23 = int_to_ptr.vmem [resolvable:$true] %s1778_s23 }
  0x58   : > { %2295 = vmatpush3.bf16.msra.mxu0 %v2566_v1  ;;  %2200 = vmatprep.subr.bf16.mxu1 %v2567_v2  ;;  %v2572_v7 = vld [vmem:[#allocation5 + $0x118] sm:$0xff]   ;;  %v2574_v9 = vld [vmem:[#allocation5 + $0x120] sm:$0xff]   ;;  %v2575_v10 = vld [vmem:[#allocation5 + $0x68] sm:$0xff]   ;;  %s2701_s6 = scalar_lea.vmem %s2967_s23, 512  ;;  %p3035_p2 = scmp.ne.s32.totalorder %s3026_s21, 0 }
  0x59   : > { %2296 = vmatprep.subr.bf16.mxu0 %v2568_v3  ;;  %v2581_v11 = vld [vmem:[%s2919_s4 + $0x20] sm:$0xff]   ;;  %v2576_v12 = vld [vmem:[#allocation5 + $0x128] sm:$0xff]   ;;  %v2577_v14 = vld [vmem:[#allocation5 + $0x70] sm:$0xff]   ;;  %p2702_p13 = scmp.ne.s32.totalorder %s2967_s23, %s2701_s6  ;;  %s2782_s7 = smov [#allocation7]  }
  0x5a   : > { %2214 = vmatprep.mubr.bf16.mxu1 %v2581_v11  ;;  %v2583_v13 = vld [vmem:[%s2919_s4 + $0x80] sm:$0xff]   ;;  %v2578_v15 = vld [vmem:[#allocation5 + $0x130] sm:$0xff]   ;;  %v2579_v16 = vld [vmem:[#allocation5 + $0x78] sm:$0xff]   ;;  %s2705_s8 = sshll.u32 %s2782_s7, 4  ;;  %s2706_s8 = int_to_ptr.vmem [resolvable:$false] %s2705_s8 }
  0x5b   : > { %2201 = vmatpush3.bf16.msra.mxu1 %v2567_v2  ;;  %2310 = vmatprep.mubr.bf16.mxu0 %v2583_v13  ;;  %v2580_v17 = vld [vmem:[#allocation5 + $0x138] sm:$0xff]   ;;  %v2582_v18 = vld [vmem:[#allocation5] sm:$0xff]   ;;  %v2585_v20 = vld [vmem:[%s2919_s4 + $0x28] sm:$0xff]   ;;  %p2703_p3 = pnand %p2702_p13, %p3035_p2  ;;  %s2707_s14 = scalar_lea.vmem %s2706_s8, 1024 }
  0x5c   : > { %2297 = vmatpush3.bf16.msra.mxu0 %v2568_v3  ;;  %2202 = vmatprep.subr.bf16.mxu1 %v2569_v4  ;;  %v2584_v19 = vld [vmem:[#allocation5 + $0x140] sm:$0xff]   ;;  %v2586_v21 = vld [vmem:[%s2919_s4 + $0x88] sm:$0xff]   ;;  %v2597_v24 = vld [vmem:[%s2919_s4 + $0x30] sm:$0xff]   ;;  %p2708_p8 = scmp.lt.s32.totalorder %s2967_s23, %s2706_s8  ;;  %p2709_p9 = scmp.lt.s32.totalorder %s2707_s14, %s2701_s6 }
  0x5d   : > { %2298 = vmatprep.subr.bf16.mxu0 %v2570_v5  ;;  %v2587_v22 = vld [vmem:[#allocation5 + $0x8] sm:$0xff]   ;;  %v2599_v25 = vld [vmem:[%s2919_s4 + $0x90] sm:$0xff]   ;;  %v2591_v28 = vld [vmem:[#allocation5 + $0x18] sm:$0xff]   ;;  %p2704_p7 = pneg %p2703_p3 }
  0x5e   : > { %v2588_v23 = vld [vmem:[#allocation5 + $0x148] sm:$0xff]   ;;  %v2589_v26 = vld [vmem:[#allocation5 + $0x10] sm:$0xff]   ;;  %v2601_v29 = vld [vmem:[%s2919_s4 + $0x38] sm:$0xff]   ;;  %p2710_p10 = por %p2709_p9, %p2708_p8 }
  0x5f   : > { %2203 = vmatpush3.bf16.msra.mxu1 %v2569_v4  ;;  %v2590_v27 = vld [vmem:[#allocation5 + $0x150] sm:$0xff]   ;;  %v2602_v30 = vld [vmem:[%s2919_s4 + $0x98] sm:$0xff]   ;;  %v2605_v32 = vld [vmem:[%s2919_s4] sm:$0xff]  }
  0x60   : > { %2299 = vmatpush3.bf16.msra.mxu0 %v2570_v5  ;;  %2204 = vmatprep.subr.bf16.mxu1 %v2571_v6  ;;  %v2592_v31 = vld [vmem:[#allocation5 + $0x158] sm:$0xff]   ;;  %v2607_v33 = vld [vmem:[%s2919_s4 + $0xa0] sm:$0xff]   ;;  %v2595_v36 = vld [vmem:[#allocation5 + $0x28] sm:$0xff]   ;;  %p2711_p1 = pnand %p2710_p10, %p2704_p7 }
  0x61   : > { %2300 = vmatprep.subr.bf16.mxu0 %v2572_v7  ;;  %v2593_v34 = vld [vmem:[#allocation5 + $0x20] sm:$0xff]   ;;  %v2596_v37 = vld [vmem:[#allocation5 + $0x168] sm:$0xff]   ;;  %v2598_v38 = vld [vmem:[#allocation5 + $0x30] sm:$0xff]  }
  0x62   : > { %v2594_v35 = vld [vmem:[#allocation5 + $0x160] sm:$0xff]   ;;  %v2600_v39 = vld [vmem:[#allocation5 + $0x170] sm:$0xff]   ;;  %v2603_v40 = vld [vmem:[#allocation5 + $0x38] sm:$0xff]  }
  0x63   : > { %2205 = vmatpush3.bf16.msra.mxu1 %v2571_v6  ;;  %v2604_v41 = vld [vmem:[#allocation5 + $0x178] sm:$0xff]   ;;  %v2606_v42 = vld [vmem:[#allocation5 + $0x80] sm:$0xff]   ;;  %v2609_v44 = vld [vmem:[%s2919_s4 + $0x8] sm:$0xff]  }
  0x64   : > { %2301 = vmatpush3.bf16.msra.mxu0 %v2572_v7  ;;  %2206 = vmatprep.subr.bf16.mxu1 %v2573_v8  ;;  %v2608_v43 = vld [vmem:[#allocation5 + $0x180] sm:$0xff]   ;;  %v2610_v45 = vld [vmem:[%s2919_s4 + $0xa8] sm:$0xff]   ;;  %v2621_v48 = vld [vmem:[%s2919_s4 + $0x10] sm:$0xff]  }
  0x65   : > { %2302 = vmatprep.subr.bf16.mxu0 %v2574_v9  ;;  %v2611_v46 = vld [vmem:[#allocation5 + $0x88] sm:$0xff]   ;;  %v2623_v49 = vld [vmem:[%s2919_s4 + $0xb0] sm:$0xff]   ;;  %v2615_v52 = vld [vmem:[#allocation5 + $0x98] sm:$0xff]  }
  0x66   : > { %v2612_v47 = vld [vmem:[#allocation5 + $0x188] sm:$0xff]   ;;  %v2613_v50 = vld [vmem:[#allocation5 + $0x90] sm:$0xff]   ;;  %v2625_v53 = vld [vmem:[%s2919_s4 + $0x18] sm:$0xff]  }
  0x67   : > { %2207 = vmatpush3.bf16.msra.mxu1 %v2573_v8  ;;  %v2614_v51 = vld [vmem:[#allocation5 + $0x190] sm:$0xff]   ;;  %v2626_v54 = vld [vmem:[%s2919_s4 + $0xb8] sm:$0xff]   ;;  %v2629_v56 = vld [vmem:[%s2919_s4 + $0x40] sm:$0xff]  }
  0x68   : > { %2303 = vmatpush3.bf16.msra.mxu0 %v2574_v9  ;;  %2208 = vmatprep.subr.bf16.mxu1 %v2575_v10  ;;  %v2616_v55 = vld [vmem:[#allocation5 + $0x198] sm:$0xff]   ;;  %v2631_v57 = vld [vmem:[%s2919_s4 + $0xc0] sm:$0xff]   ;;  %v2619_v60 = vld [vmem:[#allocation5 + $0xa8] sm:$0xff]  }
  0x69   : > { %2304 = vmatprep.subr.bf16.mxu0 %v2576_v12  ;;  %v2617_v58 = vld [vmem:[#allocation5 + $0xa0] sm:$0xff]   ;;  %v2620_v61 = vld [vmem:[#allocation5 + $0x1a8] sm:$0xff]   ;;  %v2622_v62 = vld [vmem:[#allocation5 + $0xb0] sm:$0xff]  }
  0x6a   : > { %v2618_v59 = vld [vmem:[#allocation5 + $0x1a0] sm:$0xff]   ;;  %v2624_v63 = vld [vmem:[#allocation5 + $0x1b0] sm:$0xff]   ;;  %v2627_v0 = vld [vmem:[#allocation5 + $0xb8] sm:$0xff]  }
  0x6b   : > { %2209 = vmatpush3.bf16.msra.mxu1 %v2575_v10  ;;  %v2628_v1 = vld [vmem:[#allocation5 + $0x1b8] sm:$0xff]   ;;  %v2630_v2 = vld [vmem:[#allocation5 + $0xc0] sm:$0xff]   ;;  %v2633_v4 = vld [vmem:[%s2919_s4 + $0x48] sm:$0xff]  }
  0x6c   : > { %2305 = vmatpush3.bf16.msra.mxu0 %v2576_v12  ;;  %2210 = vmatprep.subr.bf16.mxu1 %v2577_v14  ;;  %v2632_v3 = vld [vmem:[#allocation5 + $0x1c0] sm:$0xff]   ;;  %v2634_v5 = vld [vmem:[%s2919_s4 + $0xc8] sm:$0xff]   ;;  %v2645_v8 = vld [vmem:[%s2919_s4 + $0x50] sm:$0xff]  }
  0x6d   : > { %2306 = vmatprep.subr.bf16.mxu0 %v2578_v15  ;;  %v2635_v6 = vld [vmem:[#allocation5 + $0xc8] sm:$0xff]   ;;  %v2646_v9 = vld [vmem:[%s2919_s4 + $0xd0] sm:$0xff]   ;;  %v2639_v12 = vld [vmem:[#allocation5 + $0xd8] sm:$0xff]  }
  0x6e   : > { %v2636_v7 = vld [vmem:[#allocation5 + $0x1c8] sm:$0xff]   ;;  %v2637_v10 = vld [vmem:[#allocation5 + $0xd0] sm:$0xff]   ;;  %v2647_v13 = vld [vmem:[%s2919_s4 + $0x58] sm:$0xff]  }
  0x6f   : > { %2211 = vmatpush3.bf16.msra.mxu1 %v2577_v14  ;;  %v2638_v11 = vld [vmem:[#allocation5 + $0x1d0] sm:$0xff]   ;;  %v2649_v14 = vld [vmem:[%s2919_s4 + $0xd8] sm:$0xff]  }
  0x70   : > { %2307 = vmatpush3.bf16.msra.mxu0 %v2578_v15  ;;  %2212 = vmatprep.subr.bf16.mxu1 %v2579_v16  ;;  %v2640_v15 = vld [vmem:[#allocation5 + $0x1d8] sm:$0xff]  }
  0x71   : > { %2308 = vmatprep.subr.bf16.mxu0 %v2580_v17 }
  0x73   : > { %2213 = vmatpush3.bf16.msra.mxu1 %v2579_v16  ;;  %v2653_v16 = vld [vmem:[%s2919_s4 + $0x60] sm:$0xff]  }
  0x74   : > { %2309 = vmatpush3.bf16.msra.mxu0 %v2580_v17  ;;  %2222 = vmatprep.subr.bf16.mxu1 %v2582_v18  ;;  %v2654_v17 = vld [vmem:[%s2919_s4 + $0xe0] sm:$0xff]  }
  0x75   : > { %2318 = vmatprep.subr.bf16.mxu0 %v2584_v19 }
  0x76   : > { %2215 = vmatmul.mubr.bf16.vlgmr.msra.gmra.mrb[0].mxu1 %v2585_v20  ;;  %v2643_v20 = vld [vmem:[#allocation5 + $0xe8] sm:$0xff]  }
  0x77   : > { %2223 = vmatpush3.bf16.msra.mxu1 %v2582_v18  ;;  %2311 = vmatmul.mubr.bf16.vlgmr.msra.gmra.mrb[0].mxu0 %v2586_v21  ;;  %v2641_v18 = vld [vmem:[#allocation5 + $0xe0] sm:$0xff]   ;;  %v2644_v21 = vld [vmem:[#allocation5 + $0x1e8] sm:$0xff]  }
  0x78   : > { %2319 = vmatpush3.bf16.msra.mxu0 %v2584_v19  ;;  %2224 = vmatprep.subr.bf16.mxu1 %v2587_v22  ;;  %v2642_v19 = vld [vmem:[#allocation5 + $0x1e0] sm:$0xff]  }
  0x79   : > { %2320 = vmatprep.subr.bf16.mxu0 %v2588_v23  ;;  %2218 = vmatprep.mubr.bf16.mxu1 %v2597_v24  ;;  %v2651_v24 = vld [vmem:[#allocation5 + $0xf8] sm:$0xff]  }
  0x7a   : > { %2314 = vmatprep.mubr.bf16.mxu0 %v2599_v25  ;;  %v2652_v25 = vld [vmem:[#allocation5 + $0x1f8] sm:$0xff]  }
  0x7b   : > { %2225 = vmatpush3.bf16.msra.mxu1 %v2587_v22  ;;  %v2648_v22 = vld [vmem:[#allocation5 + $0xf0] sm:$0xff]  }
  0x7c   : > { %2321 = vmatpush3.bf16.msra.mxu0 %v2588_v23  ;;  %2226 = vmatprep.subr.bf16.mxu1 %v2589_v26  ;;  %v2650_v23 = vld [vmem:[#allocation5 + $0x1f0] sm:$0xff]  }
  0x7d   : > { %2322 = vmatprep.subr.bf16.mxu0 %v2590_v27 }
  0x7e   : > { %2219 = vmatmul.mubr.bf16.gmra.mrb[4].mxu1 %v2601_v29  ;;  %v2658_v29 = vld [vmem:[#allocation5 + $0x208] sm:$0xff]  }
  0x7f   : > { %2227 = vmatpush3.bf16.msra.mxu1 %v2589_v26  ;;  %2315 = vmatmul.mubr.bf16.gmra.mrb[4].mxu0 %v2602_v30  ;;  %v2657_v26 = vld [vmem:[#allocation5 + $0x200] sm:$0xff]   ;;  %v2659_v30 = vld [vmem:[%s2919_s4 + $0x70] sm:$0xff]  }
  0x80   : > { %2323 = vmatpush3.bf16.msra.mxu0 %v2590_v27  ;;  %2228 = vmatprep.subr.bf16.mxu1 %v2591_v28  ;;  %v2655_v27 = vld [vmem:[%s2919_s4 + $0x68] sm:$0xff]  }
  0x81   : > { %2324 = vmatprep.subr.bf16.mxu0 %v2592_v31  ;;  %2238 = vmatprep.mubr.bf16.mxu1 %v2605_v32  ;;  %v2663_v32 = vld [vmem:[#allocation5 + $0x210] sm:$0xff]  }
  0x82   : > { %2334 = vmatprep.mubr.bf16.mxu0 %v2607_v33  ;;  %v2661_v33 = vld [vmem:[%s2919_s4 + $0x78] sm:$0xff]  }
  0x83   : > { %2229 = vmatpush3.bf16.msra.mxu1 %v2591_v28  ;;  %v2656_v28 = vld [vmem:[%s2919_s4 + $0xe8] sm:$0xff]  }
  0x84   : > { %2325 = vmatpush3.bf16.msra.mxu0 %v2592_v31  ;;  %2230 = vmatprep.subr.bf16.mxu1 %v2593_v34  ;;  %v2660_v31 = vld [vmem:[%s2919_s4 + $0xf0] sm:$0xff]  }
  0x85   : > { %2326 = vmatprep.subr.bf16.mxu0 %v2594_v35 }
  0x87   : > { %2231 = vmatpush3.bf16.msra.mxu1 %v2593_v34  ;;  %v2662_v34 = vld [vmem:[%s2919_s4 + $0xf8] sm:$0xff]  }
  0x88   : > { %2327 = vmatpush3.bf16.msra.mxu0 %v2594_v35  ;;  %2232 = vmatprep.subr.bf16.mxu1 %v2595_v36  ;;  %v2664_v35 = vld [vmem:[#allocation5 + $0x218] sm:$0xff]  }
  0x89   : > { %2328 = vmatprep.subr.bf16.mxu0 %v2596_v37 }
  0x8b   : > { %2233 = vmatpush3.bf16.msra.mxu1 %v2595_v36  ;;  %v2669_v36 = vld [vmem:[%s2919_s4 + $0x100] sm:$0xff]  }
  0x8c   : > { %2329 = vmatpush3.bf16.msra.mxu0 %v2596_v37  ;;  %2234 = vmatprep.subr.bf16.mxu1 %v2598_v38  ;;  %v2670_v37 = vld [vmem:[%s2919_s4 + $0x110] sm:$0xff]  }
  0x8d   : > { %2330 = vmatprep.subr.bf16.mxu0 %v2600_v39 }
  0x8f   : > { %2235 = vmatpush3.bf16.msra.mxu1 %v2598_v38  ;;  %v2665_v38 = vld [vmem:[#allocation5 + $0x220] sm:$0xff]  }
  0x90   : > { %2331 = vmatpush3.bf16.msra.mxu0 %v2600_v39  ;;  %2236 = vmatprep.subr.bf16.mxu1 %v2603_v40  ;;  %v2666_v39 = vld [vmem:[#allocation5 + $0x228] sm:$0xff]  }
  0x91   : > { %2332 = vmatprep.subr.bf16.mxu0 %v2604_v41 }
  0x93   : > { %2237 = vmatpush3.bf16.msra.mxu1 %v2603_v40  ;;  %v2667_v40 = vld [vmem:[#allocation5 + $0x230] sm:$0xff]  }
  0x94   : > { %2333 = vmatpush3.bf16.msra.mxu0 %v2604_v41  ;;  %2246 = vmatprep.subr.bf16.mxu1 %v2606_v42  ;;  %v2668_v41 = vld [vmem:[#allocation5 + $0x238] sm:$0xff]  }
  0x95   : > { %2342 = vmatprep.subr.bf16.mxu0 %v2608_v43 }
  0x96   : > { %2239 = vmatmul.mubr.bf16.vlgmr.msra.gmra.mrb[0].mxu1 %v2609_v44 }
  0x97   : > { %2247 = vmatpush3.bf16.msra.mxu1 %v2606_v42  ;;  %2335 = vmatmul.mubr.bf16.vlgmr.msra.gmra.mrb[0].mxu0 %v2610_v45  ;;  %v2672_v42 = vld [vmem:[%s2919_s4 + $0x118] sm:$0xff]  }
  0x98   : > { %2343 = vmatpush3.bf16.msra.mxu0 %v2608_v43  ;;  %2248 = vmatprep.subr.bf16.mxu1 %v2611_v46  ;;  %v2671_v43 = vld [vmem:[%s2919_s4 + $0x108] sm:$0xff]  }
  0x99   : > { %2344 = vmatprep.subr.bf16.mxu0 %v2612_v47  ;;  %2242 = vmatprep.mubr.bf16.mxu1 %v2621_v48 }
  0x9a   : > { %2338 = vmatprep.mubr.bf16.mxu0 %v2623_v49 }
  0x9b   : > { %2249 = vmatpush3.bf16.msra.mxu1 %v2611_v46 }
  0x9c   : > { %2345 = vmatpush3.bf16.msra.mxu0 %v2612_v47  ;;  %2250 = vmatprep.subr.bf16.mxu1 %v2613_v50 }
  0x9d   : > { %2346 = vmatprep.subr.bf16.mxu0 %v2614_v51 }
  0x9e   : > { %2243 = vmatmul.mubr.bf16.gmra.mrb[4].mxu1 %v2625_v53 }
  0x9f   : > { %2251 = vmatpush3.bf16.msra.mxu1 %v2613_v50  ;;  %2339 = vmatmul.mubr.bf16.gmra.mrb[4].mxu0 %v2626_v54 }
  0xa0   : > { %2347 = vmatpush3.bf16.msra.mxu0 %v2614_v51  ;;  %2252 = vmatprep.subr.bf16.mxu1 %v2615_v52 }
  0xa1   : > { %2348 = vmatprep.subr.bf16.mxu0 %v2616_v55  ;;  %2262 = vmatprep.mubr.bf16.mxu1 %v2629_v56 }
  0xa2   : > { %2358 = vmatprep.mubr.bf16.mxu0 %v2631_v57 }
  0xa3   : > { %2253 = vmatpush3.bf16.msra.mxu1 %v2615_v52 }
  0xa4   : > { %2349 = vmatpush3.bf16.msra.mxu0 %v2616_v55  ;;  %2254 = vmatprep.subr.bf16.mxu1 %v2617_v58 }
  0xa5   : > { %2350 = vmatprep.subr.bf16.mxu0 %v2618_v59 }
  0xa7   : > { %2255 = vmatpush3.bf16.msra.mxu1 %v2617_v58 }
  0xa8   : > { %2351 = vmatpush3.bf16.msra.mxu0 %v2618_v59  ;;  %2256 = vmatprep.subr.bf16.mxu1 %v2619_v60 }
  0xa9   : > { %2352 = vmatprep.subr.bf16.mxu0 %v2620_v61 }
  0xab   : > { %2257 = vmatpush3.bf16.msra.mxu1 %v2619_v60 }
  0xac   : > { %2353 = vmatpush3.bf16.msra.mxu0 %v2620_v61  ;;  %2258 = vmatprep.subr.bf16.mxu1 %v2622_v62 }
  0xad   : > { %2354 = vmatprep.subr.bf16.mxu0 %v2624_v63 }
  0xaf   : > { %2259 = vmatpush3.bf16.msra.mxu1 %v2622_v62 }
  0xb0   : > { %2355 = vmatpush3.bf16.msra.mxu0 %v2624_v63  ;;  %2260 = vmatprep.subr.bf16.mxu1 %v2627_v0 }
  0xb1   : > { %2356 = vmatprep.subr.bf16.mxu0 %v2628_v1 }
  0xb3   : > { %2261 = vmatpush3.bf16.msra.mxu1 %v2627_v0 }
  0xb4   : > { %2357 = vmatpush3.bf16.msra.mxu0 %v2628_v1  ;;  %2270 = vmatprep.subr.bf16.mxu1 %v2630_v2 }
  0xb5   : > { %2366 = vmatprep.subr.bf16.mxu0 %v2632_v3 }
  0xb6   : > { %2263 = vmatmul.mubr.bf16.vlgmr.msra.gmra.mrb[0].mxu1 %v2633_v4 }
  0xb7   : > { %2271 = vmatpush3.bf16.msra.mxu1 %v2630_v2  ;;  %2359 = vmatmul.mubr.bf16.vlgmr.msra.gmra.mrb[0].mxu0 %v2634_v5 }
  0xb8   : > { %2367 = vmatpush3.bf16.msra.mxu0 %v2632_v3  ;;  %2272 = vmatprep.subr.bf16.mxu1 %v2635_v6 }
  0xb9   : > { %2368 = vmatprep.subr.bf16.mxu0 %v2636_v7  ;;  %2266 = vmatprep.mubr.bf16.mxu1 %v2645_v8 }
  0xba   : > { %2362 = vmatprep.mubr.bf16.mxu0 %v2646_v9 }
  0xbb   : > { %2273 = vmatpush3.bf16.msra.mxu1 %v2635_v6 }
  0xbc   : > { %2369 = vmatpush3.bf16.msra.mxu0 %v2636_v7  ;;  %2274 = vmatprep.subr.bf16.mxu1 %v2637_v10 }
  0xbd   : > { %2370 = vmatprep.subr.bf16.mxu0 %v2638_v11 }
  0xbe   : > { %2267 = vmatmul.mubr.bf16.gmra.mrb[4].mxu1 %v2647_v13 }
  0xbf   : > { %2275 = vmatpush3.bf16.msra.mxu1 %v2637_v10  ;;  %2363 = vmatmul.mubr.bf16.gmra.mrb[4].mxu0 %v2649_v14 }
  0xc0   : > { %2371 = vmatpush3.bf16.msra.mxu0 %v2638_v11  ;;  %2276 = vmatprep.subr.bf16.mxu1 %v2639_v12 }
  0xc1   : > { %2372 = vmatprep.subr.bf16.mxu0 %v2640_v15  ;;  %2286 = vmatprep.mubr.bf16.mxu1 %v2653_v16 }
  0xc2   : > { %2382 = vmatprep.mubr.bf16.mxu0 %v2654_v17 }
  0xc3   : > { %2277 = vmatpush3.bf16.msra.mxu1 %v2639_v12 }
  0xc4   : > { %2373 = vmatpush3.bf16.msra.mxu0 %v2640_v15  ;;  %2278 = vmatprep.subr.bf16.mxu1 %v2641_v18 }
  0xc5   : > { %2374 = vmatprep.subr.bf16.mxu0 %v2642_v19 }
  0xc7   : > { %2279 = vmatpush3.bf16.msra.mxu1 %v2641_v18 }
  0xc8   : > { %2375 = vmatpush3.bf16.msra.mxu0 %v2642_v19  ;;  %2280 = vmatprep.subr.bf16.mxu1 %v2643_v20 }
  0xc9   : > { %2376 = vmatprep.subr.bf16.mxu0 %v2644_v21 }
  0xcb   : > { %2281 = vmatpush3.bf16.msra.mxu1 %v2643_v20 }
  0xcc   : > { %2377 = vmatpush3.bf16.msra.mxu0 %v2644_v21  ;;  %2282 = vmatprep.subr.bf16.mxu1 %v2648_v22 }
  0xcd   : > { %2378 = vmatprep.subr.bf16.mxu0 %v2650_v23 }
  0xcf   : > { %2283 = vmatpush3.bf16.msra.mxu1 %v2648_v22 }
  0xd0   : > { %2379 = vmatpush3.bf16.msra.mxu0 %v2650_v23  ;;  %2284 = vmatprep.subr.bf16.mxu1 %v2651_v24 }
  0xd1   : > { %2380 = vmatprep.subr.bf16.mxu0 %v2652_v25 }
  0xd3   : > { %2285 = vmatpush3.bf16.msra.mxu1 %v2651_v24 }
  0xd4   : > { %2381 = vmatpush3.bf16.msra.mxu0 %v2652_v25  ;;  %2414 = vmatprep.subr.bf16.mxu1 %v2657_v26 }
  0xd5   : > { %2390 = vmatprep.subr.bf16.mxu0 %v2657_v26 }
  0xd6   : > { %2287 = vmatmul.mubr.bf16.vlgmr.msra.gmra.mrb[0].mxu1 %v2655_v27 }
  0xd7   : > { %2383 = vmatmul.mubr.bf16.vlgmr.msra.gmra.mrb[0].mxu0 %v2656_v28  ;;  %2422 = vmatpush3.bf16.msra.mxu1 %v2657_v26 }
  0xd8   : > { %2391 = vmatpush3.bf16.msra.mxu0 %v2657_v26  ;;  %2415 = vmatprep.subr.bf16.mxu1 %v2658_v29 }
  0xd9   : > { %2392 = vmatprep.subr.bf16.mxu0 %v2658_v29  ;;  %2290 = vmatprep.mubr.bf16.mxu1 %v2659_v30 }
  0xda   : > { %2386 = vmatprep.mubr.bf16.mxu0 %v2660_v31 }
  0xdb   : > { %2423 = vmatpush3.bf16.msra.mxu1 %v2658_v29 }
  0xdc   : > { %2393 = vmatpush3.bf16.msra.mxu0 %v2658_v29  ;;  %2416 = vmatprep.subr.bf16.mxu1 %v2663_v32 }
  0xdd   : > { %2394 = vmatprep.subr.bf16.mxu0 %v2663_v32 }
  0xde   : > { %2291 = vmatmul.mubr.bf16.gmra.mrb[4].mxu1 %v2661_v33 }
  0xdf   : > { %2387 = vmatmul.mubr.bf16.gmra.mrb[4].mxu0 %v2662_v34  ;;  %2424 = vmatpush3.bf16.msra.mxu1 %v2663_v32 }
  0xe0   : > { %2395 = vmatpush3.bf16.msra.mxu0 %v2663_v32  ;;  %2417 = vmatprep.subr.bf16.mxu1 %v2664_v35 }
  0xe1   : > { %2396 = vmatprep.subr.bf16.mxu0 %v2664_v35  ;;  %2406 = vmatprep.mubr.bf16.mxu0 %v2669_v36 }
  0xe2   : > { %2410 = vmatprep.mubr.bf16.mxu1 %v2670_v37 }
  0xe3   : > { %2425 = vmatpush3.bf16.msra.mxu1 %v2664_v35 }
  0xe4   : > { %2397 = vmatpush3.bf16.msra.mxu0 %v2664_v35  ;;  %2418 = vmatprep.subr.bf16.mxu1 %v2665_v38 }
  0xe5   : > { %2398 = vmatprep.subr.bf16.mxu0 %v2665_v38 }
  0xe7   : > { %2426 = vmatpush3.bf16.msra.mxu1 %v2665_v38 }
  0xe8   : > { %2399 = vmatpush3.bf16.msra.mxu0 %v2665_v38  ;;  %2419 = vmatprep.subr.bf16.mxu1 %v2666_v39 }
  0xe9   : > { %2400 = vmatprep.subr.bf16.mxu0 %v2666_v39 }
  0xeb   : > { %2427 = vmatpush3.bf16.msra.mxu1 %v2666_v39 }
  0xec   : > { %2401 = vmatpush3.bf16.msra.mxu0 %v2666_v39  ;;  %2420 = vmatprep.subr.bf16.mxu1 %v2667_v40 }
  0xed   : > { %2402 = vmatprep.subr.bf16.mxu0 %v2667_v40 }
  0xef   : > { %2428 = vmatpush3.bf16.msra.mxu1 %v2667_v40 }
  0xf0   : > { %2403 = vmatpush3.bf16.msra.mxu0 %v2667_v40  ;;  %2421 = vmatprep.subr.bf16.mxu1 %v2668_v41 }
  0xf1   : > { %2404 = vmatprep.subr.bf16.mxu0 %v2668_v41 }
  0xf3   : > { %2429 = vmatpush3.bf16.msra.mxu1 %v2668_v41 }
  0xf4   : > { %2405 = vmatpush3.bf16.msra.mxu0 %v2668_v41 }
  0xf6   : > { %2411 = vmatmul.mubr.bf16.vlgmr.msra.gmra.mrb[8].mxu1 %v2672_v42 }
  0xf7   : > { %2407 = vmatmul.mubr.bf16.vlgmr.msra.gmra.mrb[0].mxu0 %v2671_v43 }
 0x1a9   : > { %v2288_v44 = vpop.f32.mrb[0].mxu1 }
 0x1aa   : > { %v830_v45 = vpop.f32.mrb[1].mxu1 }
 0x1ab   : > { %v2289_v46 = vpop.f32.mrb[2].mxu1 }
 0x1ac   : > { %v833_v47 = vpop.f32.mrb[3].mxu1 }
 0x1b1   : > { %v2292_v48 = vpop.f32.mrb[4].mxu1 }
 0x1b2   : > { %v2388_v49 = vpop.f32.mrb[4].mxu0  ;;  %v846_v50 = vpop.f32.mrb[5].mxu1 }
 0x1b3   : > { %v2434_v51 = vadd.f32 %v2388_v49, %v2292_v48  ;;  %v1530_v52 = vpop.f32.mrb[5].mxu0  ;;  %v2293_v53 = vpop.f32.mrb[6].mxu1 }
 0x1b4   : > { %v2436_v54 = vadd.f32 %v1530_v52, %v846_v50  ;;  %v2389_v55 = vpop.f32.mrb[6].mxu0  ;;  %v849_v56 = vpop.f32.mrb[7].mxu1 }
 0x1b5   : > { %v2438_v57 = vadd.f32 %v2389_v55, %v2293_v53  ;;  %v1533_v58 = vpop.f32.mrb[7].mxu0 }
 0x1b6   : > { %v2440_v59 = vadd.f32 %v1533_v58, %v849_v56 }
 0x1c9   : > { %v2412_v60 = vpop.f32.mrb[8].mxu1 }
 0x1ca   : > { %v2408_v61 = vpop.f32.mrb[0].mxu0  ;;  %v2435_v62 = vadd.f32 %v2434_v51, %v2412_v60  ;;  %v1701_v63 = vpop.f32.mrb[9].mxu1 }
 0x1cb   : > { %v2430_v0 = vadd.f32 %v2408_v61, %v2288_v44  ;;  %v1685_v1 = vpop.f32.mrb[1].mxu0  ;;  %v2437_v2 = vadd.f32 %v2436_v54, %v1701_v63  ;;  %v2413_v3 = vpop.f32.mrb[10].mxu1 }
 0x1cc   : > { %v2431_v4 = vadd.f32 %v1685_v1, %v830_v45  ;;  %v2409_v5 = vpop.f32.mrb[2].mxu0  ;;  %v2439_v6 = vadd.f32 %v2438_v57, %v2413_v3  ;;  %v1704_v7 = vpop.f32.mrb[11].mxu1 }
 0x1cd   : > { %v2432_v8 = vadd.f32 %v2409_v5, %v2289_v46  ;;  %v1688_v9 = vpop.f32.mrb[3].mxu0  ;;  %v2441_v10 = vadd.f32 %v2440_v59, %v1704_v7 }
 0x1ce   : > { %v2085_v11 = vpack.c.bf16 %v2439_v6, %v2435_v62  ;;  %v2433_v12 = vadd.f32 %v1688_v9, %v833_v47 }
 0x1cf   : > { %v2075_v13 = vpack.c.bf16 %v2432_v8, %v2430_v0  ;;  %v2080_v14 = vpack.c.bf16 %v2441_v10, %v2437_v2 }
 0x1d0   : > { %2089 = vst [vmem:[%s201_s20 + $0x18] sm:$0xff] %v2085_v11   ;;  %v2070_v15 = vpack.c.bf16 %v2433_v12, %v2431_v4 }
 0x1d1   : > { %2087 = vst [vmem:[%s201_s20 + $0x8] sm:$0xff] %v2075_v13   ;;  %2088 = vst [vmem:[%s201_s20 + $0x10] sm:$0xff] %v2080_v14  }
 0x1d2   : > { %2071 = vst [vmem:[%s201_s20] sm:$0xff] %v2070_v15  }
 0x1d3   : > { %2714 = shalt.err (!%p2711_p1)
}
 0x1d4   : > { %s2715_s16 = scalar_lea.hbm %s2972_s5, 512  ;;  %s2719_s27 = scalar_lea.hbm %s3018_s2, 1024 }
 0x1d5   : > { %p2716_p4 = scmp.ne.s32.totalorder %s2972_s5, %s2715_s16  ;;  %p2720_p11 = scmp.lt.u32.totalorder %s2972_s5, %s3018_s2 }
 0x1d6   : > { %p2721_p12 = scmp.lt.u32.totalorder %s2719_s27, %s2715_s16  ;;  %p2723_p3 = scmp.lt.u32.totalorder %s2715_s16, %s2972_s5 }
 0x1d7   : > { %p2717_p5 = pnand %p2716_p4, %p3035_p2 }
 0x1d8   : > { %p2722_p13 = por %p2721_p12, %p2720_p11 }
 0x1d9   : > { %p2718_p6 = pneg %p2717_p5 }
 0x1da   : > { %p2724_p7 = por %p2723_p3, %p2722_p13 }
 0x1dc   : > { %p2725_p8 = pnand %p2724_p7, %p2718_p6 }
 0x1de   : > { %2728 = shalt.err (!%p2725_p8)
}
 0x1df   : > { %s2783_s4 = smov 64   ;;  %s2784_s19 = smov 4  }
 0x1e0   : > { %2509 = dma.vmem_to_hbm [thread:$0]  (%p3035_p2), %s2967_s23, 512, %s2972_s5, %s1765_s13, %s2783_s4, %s2783_s4, %s2784_s19  }
 0x1e1 PF: > { %s1793_s20 = sand.u32 1, %s2759_s9   ;;  %p3036_p9 = scmp.ne.s32.totalorder %s3027_s22, 0 }
 0x1e2   : > { %s1794_s17 = scalar_lea.sflag [#allocation4], %s1793_s20 }
 0x1e3   : > { %p2516_p10 = pnand %p1864_p0, %p3036_p9 }
 0x1e5   : > { %2754 = dma.done.wait (!%p2516_p10), %s1794_s17, 512  }
 0x1e6   : > { %2756 = vsyncadd (!%p2516_p10), %s1794_s17, 4294966784  ;;  %p16_p1 = scmp.ge.s32.totalorder %s2825_s15, 4   ;;  %s3037_s9 = smov %s2763_s10 }
 0x1e7   : > { %s3038_s10 = smov %s2767_s11  ;;  %s3039_s11 = smov %s2837_s18 }
 0x1e8   : > { %s3040_s12 = smov %s2825_s15  ;;  %18 = sbr.rel (!%p16_p1) target bundleno = 6 (0x6), region = 98 }
 0x1ef   :  { %1799 = vsyncpa [#allocation3], 1 }
 0x1f0   :  { %1801 = vsyncpa [#allocation3 + $0x1], 1 }
 0x1f1   :  { %1802 = vsyncpa [#allocation6], 1 }
 0x1f2   :  { %1803 = vsyncpa [#allocation4], 1 }
 0x1f3   :  { %1805 = vsyncpa [#allocation4 + $0x1], 1 }

// kernel: downsample_forward.38
= control target key start
LH: loop header
LB: loop body
LE: loop exit
PB: predicated region body
PF: predicated region fallthrough
CT: control target
= control target key end

     0   :  { %10 = vsyncpa [#allocation3], 0  ;;  %s1523_s0 = inlined_call_operand.hbm [shape: f32[2,78,128], index: 0, kind: input, shape index: {}]   ;;  %s1524_s1 = inlined_call_operand.hbm [shape: f32[2,2,128], index: 1, kind: input, shape index: {}]   ;;  %s1525_s2 = inlined_call_operand.hbm [shape: f32[1,128], index: 2, kind: input, shape index: {}]   ;;  %s1526_s3 = inlined_call_operand.hbm [shape: f32[1,128], index: 3, kind: input, shape index: {}]   ;;  %s1527_s4 = inlined_call_operand.hbm [shape: f32[78,1], index: 4, kind: input, shape index: {}]   ;;  %s1528_s5 = inlined_call_operand.hbm [shape: bf16[2,100,128], index: 5, kind: output, shape index: {}]  }
   0x1   :  { %12 = vsyncpa [#allocation3 + $0x1], 0 }
   0x2   :  { %13 = vsyncpa [#allocation6], 0 }
   0x3   :  { %14 = vsyncpa [#allocation9], 0 }
   0x4   :  { %15 = vsyncpa [#allocation4], 0 }
   0x5   :  { %17 = vsyncpa [#allocation4 + $0x1], 0  ;;  %s1160_s18 = smov 0   ;;  %s1162_s19 = smov 0  }
   0x6   :  { %s1164_s20 = smov 0   ;;  %s1166_s21 = smov 0  }
   0x7 LB: > { %s1181_s22 = sadd.s32 4294967295, %s1114_s21   ;;  %s758_s23 = sadd.s32 4294967294, %s1114_s21   ;;  %s1114_s21 = sphi %s1166_s21, %s1557_s21   ;;  %s1110_s20 = sphi %s1164_s20, %s1556_s20   ;;  %s1106_s19 = sphi %s1162_s19, %s1555_s19   ;;  %s1102_s18 = sphi %s1160_s18, %s1554_s18  }
   0x8   : > { %p43_p0 = scmp.ne.s32.totalorder %s1106_s19, %s1102_s18  ;;  %p1529_p1 = scmp.eq.s32.totalorder %s1181_s22, 0 }
   0x9   : > { %p157_p3 = scmp.eq.s32.totalorder %s758_s23, 1  ;;  %p759_p5 = scmp.ge.s32.totalorder %s1114_s21, 1 }
   0xa   : > { %p1190_p4 = por %p1529_p1, %p43_p0  ;;  %p164_p7 = scmp.lt.s32.totalorder %s1114_s21, 3 }
   0xb   : > { %p1195_p6 = por %p157_p3, %p43_p0  ;;  %s1116_s27 = smov [#allocation5]  }
   0xc   : > { %s1533_s24 = scalar_select %p1190_p4, 1, 0 }
   0xd   : > { %s1534_s25 = scalar_select %p1195_p6, 1, 0 }
   0xe   : > { %p1200_p8 = pnand %p759_p5, %p164_p7  ;;  %s176_s28 = sshll.u32 %s1116_s27, 4  ;;  %s1204_s28 = int_to_ptr.vmem [resolvable:$true] %s176_s28 }
   0xf   : > { %s1117_s30 = smov [#allocation8]   ;;  %s1118_s7 = smov [#allocation7]  }
  0x10   : > { %s1535_s26 = scalar_select %p1200_p8, 1, 0 }
  0x11   : > { %p819_p9 = pneg %p1200_p8  ;;  %s201_s6 = sshll.u32 %s1117_s30, 4  ;;  %s1215_s6 = int_to_ptr.vmem [resolvable:$true] %s201_s6 }
  0x12   : > { %s1217_s8 = sshll.u32 %s1118_s7, 4  ;;  %s898_s11 = scalar_lea.hbm %s1524_s1, 64  ;;  %s191_s8 = int_to_ptr.vmem [resolvable:$true] %s1217_s8 }
  0x13   : > { %p1211_p11 = pnand %p819_p9, %p1529_p1  ;;  %p899_p12 = scmp.ne.s32.totalorder %s1524_s1, %s898_s11 }
  0x14   : > { %p905_p5 = scmp.lt.u32.totalorder %s898_s11, %s1524_s1 }
  0x15   : > { %p1227_p13 = pneg %p1211_p11 }
  0x17   : > { %p901_p0 = pnand %p1227_p13, %p899_p12 }
  0x19   : > { %p902_p3 = pneg %p901_p0 }
  0x1b   : > { %p907_p7 = pnand %p905_p5, %p902_p3 }
  0x1d   : > { %910 = shalt.err (!%p907_p7)
}
  0x1e   : > { %s911_s17 = scalar_lea.vmem %s1204_s28, 64  ;;  %p919_p2 = scmp.lt.s32.totalorder %s1204_s28, %s1204_s28 }
  0x1f   : > { %p912_p9 = scmp.ne.s32.totalorder %s1204_s28, %s911_s17  ;;  %p920_p6 = scmp.lt.s32.totalorder %s911_s17, %s911_s17 }
  0x21   : > { %p914_p10 = pnand %p912_p9, %p1227_p13  ;;  %p921_p12 = por %p920_p6, %p919_p2 }
  0x23   : > { %p915_p1 = pneg %p914_p10 }
  0x25   : > { %p922_p0 = pnand %p921_p12, %p915_p1 }
  0x27   : > { %925 = shalt.err (!%p922_p0)
}
  0x28   : > { %s1119_s23 = smov 32   ;;  %s1120_s27 = smov 2  }
  0x29   : > { %822 = dma.hbm_to_vmem [thread:$0]  (!%p1211_p11), %s1524_s1, 64, %s1204_s28, [#allocation6], %s1119_s23, %s1119_s23, %s1120_s27  }
  0x2a   : > { %s926_s11 = scalar_lea.hbm %s1526_s3, 16 }
  0x2b   : > { %p927_p2 = scmp.ne.s32.totalorder %s1526_s3, %s926_s11  ;;  %p933_p10 = scmp.lt.u32.totalorder %s926_s11, %s1526_s3 }
  0x2d   : > { %p929_p1 = pnand %p927_p2, %p1227_p13 }
  0x2f   : > { %p930_p6 = pneg %p929_p1 }
  0x31   : > { %p935_p3 = pnand %p933_p10, %p930_p6 }
  0x33   : > { %938 = shalt.err (!%p935_p3)
}
  0x34   : > { %s939_s28 = scalar_lea.vmem %s1215_s6, 16  ;;  %s946_s17 = scalar_lea.vmem %s1215_s6, 32 }
  0x35   : > { %p940_p5 = scmp.ne.s32.totalorder %s1215_s6, %s939_s28  ;;  %p947_p12 = scmp.lt.s32.totalorder %s1215_s6, %s1215_s6 }
  0x36   : > { %p948_p0 = scmp.lt.s32.totalorder %s946_s17, %s939_s28 }
  0x37   : > { %p942_p7 = pnand %p940_p5, %p1227_p13 }
  0x38   : > { %p949_p2 = por %p948_p0, %p947_p12 }
  0x39   : > { %p943_p9 = pneg %p942_p7 }
  0x3b   : > { %p950_p1 = pnand %p949_p2, %p943_p9 }
  0x3d   : > { %953 = shalt.err (!%p950_p1)
}
  0x3e   : > { %828 = dma.hbm_to_vmem [thread:$0]  (!%p1211_p11), %s1526_s3, 16, %s1215_s6, [#allocation9]  }
  0x3f   : > { %s954_s9 = scalar_lea.hbm %s1525_s2, 16 }
  0x40   : > { %p955_p6 = scmp.ne.s32.totalorder %s1525_s2, %s954_s9  ;;  %p961_p5 = scmp.lt.u32.totalorder %s954_s9, %s1525_s2 }
  0x42   : > { %p957_p10 = pnand %p955_p6, %p1227_p13 }
  0x44   : > { %p958_p3 = pneg %p957_p10 }
  0x46   : > { %p963_p7 = pnand %p961_p5, %p958_p3 }
  0x48   : > { %966 = shalt.err (!%p963_p7)
}
  0x49   : > { %s967_s15 = scalar_lea.vmem %s191_s8, 16  ;;  %s974_s6 = scalar_lea.vmem %s191_s8, 32 }
  0x4a   : > { %p968_p9 = scmp.ne.s32.totalorder %s191_s8, %s967_s15  ;;  %p975_p2 = scmp.lt.s32.totalorder %s191_s8, %s191_s8 }
  0x4b   : > { %p976_p1 = scmp.lt.s32.totalorder %s974_s6, %s967_s15 }
  0x4c   : > { %p970_p12 = pnand %p968_p9, %p1227_p13 }
  0x4d   : > { %p977_p4 = por %p976_p1, %p975_p2 }
  0x4e   : > { %p971_p0 = pneg %p970_p12 }
  0x50   : > { %p978_p8 = pnand %p977_p4, %p971_p0 }
  0x52   : > { %981 = shalt.err (!%p978_p8)
}
  0x53   : > { %825 = dma.hbm_to_vmem [thread:$0]  (!%p1211_p11), %s1525_s2, 16, %s191_s8, [#allocation6]  }
  0x54   : > { %s1121_s17 = smov [#allocation10]   ;;  %s982_s7 = scalar_lea.hbm %s1527_s4, 1280 }
  0x55   : > { %s211_s23 = sshll.u32 %s1121_s17, 4  ;;  %p983_p6 = scmp.ne.s32.totalorder %s1527_s4, %s982_s7  ;;  %s212_s23 = int_to_ptr.vmem [resolvable:$true] %s211_s23 }
  0x56   : > { %p989_p10 = scmp.lt.u32.totalorder %s982_s7, %s1527_s4 }
  0x57   : > { %p985_p4 = pnand %p983_p6, %p1227_p13 }
  0x59   : > { %p986_p8 = pneg %p985_p4 }
  0x5b   : > { %p991_p3 = pnand %p989_p10, %p986_p8 }
  0x5d   : > { %994 = shalt.err (!%p991_p3)
}
  0x5e   : > { %s995_s8 = scalar_lea.vmem %s212_s23, 1280  ;;  %p1003_p12 = scmp.lt.s32.totalorder %s212_s23, %s212_s23 }
  0x5f   : > { %p996_p5 = scmp.ne.s32.totalorder %s212_s23, %s995_s8  ;;  %p1004_p0 = scmp.lt.s32.totalorder %s995_s8, %s995_s8 }
  0x61   : > { %p998_p7 = pnand %p996_p5, %p1227_p13  ;;  %p1005_p2 = por %p1004_p0, %p1003_p12 }
  0x63   : > { %p999_p9 = pneg %p998_p7 }
  0x65   : > { %p1006_p1 = pnand %p1005_p2, %p999_p9 }
  0x67   : > { %1009 = shalt.err (!%p1006_p1)
}
  0x68   : > { %s1532_s13 = smov 128   ;;  %s1123_s14 = smov 8  }
  0x69   : > { %831 = dma.hbm_to_vmem [thread:$0]  (!%p1211_p11), %s1527_s4, 1280, %s212_s23, [#allocation9], %s1532_s13, %s1532_s13, %s1123_s14  }
  0x6a   : > { %s1313_s16 = sadd.s32 1, %s1114_s21   ;;  %s30_s17 = sadd.s32 1, %s1110_s20 }
  0x6b   : > { %s27_s28 = ssub.s32 %s1114_s21, %s1313_s16  ;;  %p37_p6 = scmp.ne.s32.totalorder %s1110_s20, %s1106_s19 }
  0x6c   : > { %p28_p13 = scmp.eq.s32.totalorder %s27_s28, 0  ;;  %p38_p4 = scmp.eq.s32.totalorder %s1114_s21, 0 }
  0x6d   : > { %p1538_p10 = scmp.eq.s32.totalorder %s1181_s22, 1  ;;  %p844_p5 = scmp.lt.s32.totalorder %s1114_s21, 2 }
  0x6e   : > { %s1322_s27 = scalar_select %p28_p13, %s1110_s20, %s30_s17  }
  0x6f   : > { %p39_p8 = por %p38_p4, %p37_p6  ;;  %p1326_p3 = por %p1538_p10, %p37_p6 }
  0x70   : > { %s225_s30 = sand.u32 1, %s1110_s20   ;;  %s795_s23 = smul.u32 1280, %s1114_s21 }
  0x71   : > { %s794_s7 = smul.u32 80, %s225_s30  ;;  %p1333_p11 = pnand %p844_p5, %p39_p8 }
  0x72   : > { %s1340_s12 = scalar_lea.hbm %s1523_s0, %s795_s23  ;;  %s1344_s6 = scalar_lea.sflag [#allocation3], %s225_s30 }
  0x73   : > { %s229_s8 = scalar_lea.vmem [#allocation2], %s794_s7  ;;  %s1010_s28 = scalar_lea.hbm %s1340_s12, 1280 }
  0x74   : > { %s236_s15 = sshll.u32 %s229_s8, 4  ;;  %p1011_p7 = scmp.ne.s32.totalorder %s1340_s12, %s1010_s28  ;;  %s1342_s15 = int_to_ptr.vmem [resolvable:$true] %s236_s15 }
  0x75   : > { %p1012_p9 = pneg %p1333_p11  ;;  %s1015_s10 = scalar_lea.hbm %s1523_s0, 2560 }
  0x76   : > { %p1016_p2 = scmp.lt.u32.totalorder %s1340_s12, %s1523_s0  ;;  %p1017_p1 = scmp.lt.u32.totalorder %s1015_s10, %s1010_s28 }
  0x77   : > { %p1013_p12 = pnand %p1012_p9, %p1011_p7  ;;  %p1019_p6 = scmp.lt.u32.totalorder %s1010_s28, %s1340_s12 }
  0x78   : > { %p1018_p13 = por %p1017_p1, %p1016_p2 }
  0x79   : > { %p1014_p0 = pneg %p1013_p12 }
  0x7a   : > { %p1020_p4 = por %p1019_p6, %p1018_p13 }
  0x7c   : > { %p1021_p8 = pnand %p1020_p4, %p1014_p0 }
  0x7e   : > { %1024 = shalt.err (!%p1021_p8)
}
  0x7f   : > { %s1025_s30 = scalar_lea.vmem %s1342_s15, 1280  ;;  %s1124_s7 = smov [#allocation2]  }
  0x80   : > { %p1026_p10 = scmp.ne.s32.totalorder %s1342_s15, %s1025_s30  ;;  %s1030_s8 = sshll.u32 %s1124_s7, 4  ;;  %s1031_s8 = int_to_ptr.vmem [resolvable:$false] %s1030_s8 }
  0x81   : > { %s1032_s13 = scalar_lea.vmem %s1031_s8, 2560  ;;  %p1033_p12 = scmp.lt.s32.totalorder %s1342_s15, %s1031_s8 }
  0x82   : > { %p1028_p5 = pnand %p1026_p10, %p1012_p9  ;;  %p1034_p2 = scmp.lt.s32.totalorder %s1032_s13, %s1025_s30 }
  0x84   : > { %p1029_p7 = pneg %p1028_p5  ;;  %p1035_p1 = por %p1034_p2, %p1033_p12 }
  0x86   : > { %p1036_p13 = pnand %p1035_p1, %p1029_p7 }
  0x88   : > { %1039 = shalt.err (!%p1036_p13)
}
  0x89   : > { %s1541_s28 = smov 128   ;;  %p1542_p9 = scmp.ne.s32.totalorder %s1535_s26, 0 }
  0x8a   : > { %835 = dma.hbm_to_vmem [thread:$0]  (!%p1333_p11), %s1340_s12, 1280, %s1342_s15, %s1344_s6, %s1541_s28, %s1541_s28, %s1123_s14  }
  0x8b   : > { %248 = sbr.rel (%p1542_p9) target bundleno = 330 (0x14a), region = 40  ;;  %s1378_s17 = sand.u32 (!%p1542_p9), 1, %s1106_s19  }
  0x8c   : > { %s796_s23 = smul.u32 (!%p1542_p9), 80, %s1378_s17  ;;  %s251_s10 = scalar_lea.sflag (!%p1542_p9), [#allocation3], %s1378_s17 }
  0x8d   : > { %p1543_p0 = scmp.ne.s32.totalorder (!%p1542_p9), %s1533_s24, 0 }
  0x8e   : > { %s1382_s11 = scalar_lea.vmem (!%p1542_p9), [#allocation2], %s796_s23 }
  0x92   : > { %1085 = dma.done.wait (%p1543_p0), %s251_s10, 1280  }
  0x93   : > { %1087 = vsyncadd (%p1543_p0), %s251_s10, 4294966016  ;;  %p1544_p11 = scmp.eq.s32.totalorder %s1181_s22, 0 }
  0x95   : > { %1089 = dma.done.wait (%p1544_p11), [#allocation6], 80   ;;  %p1545_p6 = pmov %p1544_p11 }
  0x97   : > { %1091 = vsyncadd (%p1545_p6), [#allocation6], 4294967216  ;;  %p1546_p4 = pmov %p1545_p6 }
  0x99   : > { %1093 = dma.done.wait (%p1546_p4), [#allocation9], 1296   ;;  %p1547_p8 = pmov %p1546_p4 }
  0x9a   : > { %v1125_v0 = vmov 0   ;;  %v388_v1 = vld [vmem:[#allocation10 + $0x10] sm:$0xff]  ;;  %v386_v2 = vld [vmem:[#allocation10] sm:$0xff]  ;;  %s797_s24 = smul.u32 52, %s1378_s17  ;;  %v389_v3 = vld [vmem:[#allocation10 + $0x18] sm:$0xff]  ;;  %vm300_vm0 = vcmask 1041408   ;;  %v317_v23 = vlaneseq }
  0x9b   : > { %1095 = vsyncadd (%p1547_p8), [#allocation9], 4294966000  ;;  %895 = vset.pattern.permute.xlu1 %v1125_v0  ;;  %894 = vset.pattern.permute.xlu0 %v1125_v0  ;;  %v387_v4 = vld [vmem:[#allocation10 + $0x8] sm:$0xff]  ;;  %v390_v6 = vld [vmem:[#allocation10 + $0x20] sm:$0xff]  ;;  %v1126_v21 = vmov 1966171168  }
  0x9c   : > { %408 = vperm.xlu1 %895, %v388_v1   ;;  %398 = vperm.xlu0 %894, %v386_v2   ;;  %s1397_s26 = scalar_lea.vmem [#allocation11], %s797_s24  ;;  %v391_v5 = vld [vmem:[#allocation10 + $0x28] sm:$0xff]  ;;  %v393_v7 = vld [vmem:[#allocation10 + $0x38] sm:$0xff]  ;;  %v392_v8 = vld [vmem:[#allocation10 + $0x30] sm:$0xff]  ;;  %v315_v22 = vunpack.c.l.s4 %v1126_v21  ;;  %v318_v25 = vshrl.u32 %v317_v23, 7  ;;  %vm612_vm1 = vcmask 1043457  }
  0x9d   : > { %457 = vst [vmem:[%s1397_s26 + $0x4] sm:$0xf] %v1125_v0  ;;  %456 = vst [vmem:[%s1397_s26] sm:$0xf] %v1125_v0  ;;  %v395_v9 = vld [vmem:[#allocation10 + $0x48] sm:$0x3f]  ;;  %v394_v10 = vld [vmem:[#allocation10 + $0x40] sm:$0xff] }
  0x9e   : > { %458 = vst [vmem:[%s1397_s26 + $0x8] sm:$0xf] %v1125_v0  ;;  %459 = vst [vmem:[%s1397_s26 + $0xc] sm:$0xf] %v1125_v0  ;;  %v298_v11 = vld [vmem:[#allocation5] sm:$0x3]  ;;  %v316_v24 = vunpack.c.0.s8 %v315_v22 }
  0x9f   : > { %460 = vst [vmem:[%s1397_s26 + $0x10] sm:$0xf] %v1125_v0  ;;  %461 = vst [vmem:[%s1397_s26 + $0x14] sm:$0xf] %v1125_v0  ;;  %v299_v12 = vld [vmem:[#allocation5 + $0x2] sm:$0x3] }
  0xa0   : > { %462 = vst [vmem:[%s1397_s26 + $0x18] sm:$0xf] %v1125_v0  ;;  %463 = vst [vmem:[%s1397_s26 + $0x1c] sm:$0xf] %v1125_v0  ;;  %413 = vperm.xlu1 %895, %v389_v3   ;;  %403 = vperm.xlu0 %894, %v387_v4   ;;  %v301_v13 = vsel %vm300_vm0, %v298_v11, 0.0  ;;  %v302_v14 = vsel %vm300_vm0, %v299_v12, 0.0  ;;  %v319_v26 = vsub.s32 %v316_v24, %v318_v25 }
  0xa1   : > { %464 = vst [vmem:[%s1397_s26 + $0x20] sm:$0xf] %v1125_v0  ;;  %465 = vst [vmem:[%s1397_s26 + $0x24] sm:$0xf] %v1125_v0  ;;  %v303_v15 = vadd.f32 %v302_v14, %v301_v13  ;;  %v310_v31 = vld [vmem:[#allocation7] sm:$0x1] }
  0xa2   : > { %466 = vst [vmem:[%s1397_s26 + $0x28] sm:$0xf] %v1125_v0  ;;  %467 = vst [vmem:[%s1397_s26 + $0x2c] sm:$0xf] %v1125_v0  ;;  %v347_v33 = vsub.s32 0, %v318_v25  ;;  %v336_v38 = vld [vmem:[%s1382_s11 + $0x10] sm:$0xff] }
  0xa3   : > { %468 = vst [vmem:[%s1397_s26 + $0x30] sm:$0x3] %v1125_v0  ;;  %v304_v16 = vmul.f32 0.0078125, %v303_v15  ;;  %v331_v35 = vld [vmem:[#allocation8] sm:$0x1]  ;;  %v337_v43 = vld [vmem:[%s1382_s11 + $0x18] sm:$0xff] }
  0xa4   : > { %423 = vperm.xlu1 %895, %v391_v5   ;;  %418 = vperm.xlu0 %894, %v390_v6   ;;  %v334_v39 = vld [vmem:[%s1382_s11] sm:$0xff]  ;;  %v335_v44 = vld [vmem:[%s1382_s11 + $0x8] sm:$0xff]  ;;  %v341_v51 = vld [vmem:[%s1382_s11 + $0x38] sm:$0xff]  ;;  %vm613_vm2 = vsmask.f32 7942  ;;  %vm627_vm7 = vcmask 1040384  }
  0xa5   : > { %v305_v17 = vmul.f32 %v304_v16, %v304_v16  ;;  %v339_v47 = vld [vmem:[%s1382_s11 + $0x28] sm:$0xff]  ;;  %v338_v48 = vld [vmem:[%s1382_s11 + $0x20] sm:$0xff]  ;;  %v340_v56 = vld [vmem:[%s1382_s11 + $0x30] sm:$0xff]  ;;  %vm499_vm3 = vsmask.f32 1280  ;;  %s798_s14 = smul.u32 832, %s1181_s22 }
  0xa6   : > { %v343_v57 = vld [vmem:[%s1382_s11 + $0x48] sm:$0x3f]  ;;  %v342_v61 = vld [vmem:[%s1382_s11 + $0x40] sm:$0xff]  ;;  %vm500_vm4 = vsmask.f32 5392  ;;  %vm1426_vm5 = vmand %vm612_vm1, %vm613_vm2  ;;  %s647_s9 = sshll.u32 %s1397_s26, 4  ;;  %s1475_s9 = int_to_ptr.vmem [resolvable:$true] %s647_s9 }
  0xa7   : > { %v307_v18 = vrot.slane %v305_v17, 7  ;;  %vm1437_vm6 = vmor %vm499_vm3, %vm500_vm4  ;;  %vm628_vm8 = vsmask.f32 256  ;;  %s1473_s15 = scalar_lea.hbm %s1528_s5, %s798_s14  ;;  %s634_s6 = scalar_lea.sflag [#allocation4], %s1378_s17 }
  0xa8   : > { %433 = vperm.xlu1 %895, %v393_v7   ;;  %428 = vperm.xlu0 %894, %v392_v8   ;;  %vm629_vm9 = vmand %vm627_vm7, %vm628_vm8  ;;  %s1040_s30 = scalar_lea.vmem %s1475_s9, 832  ;;  %s1127_s7 = smov [#allocation11]  }
  0xa9   : > { %v309_v19 = vsub.f32 %v304_v16, %v307_v18  ;;  %p1041_p10 = scmp.ne.s32.totalorder %s1475_s9, %s1040_s30  ;;  %s1044_s8 = sshll.u32 %s1127_s7, 4  ;;  %s1045_s8 = int_to_ptr.vmem [resolvable:$false] %s1044_s8 }
  0xaa   : > { %s1046_s13 = scalar_lea.vmem %s1045_s8, 1664  ;;  %p1047_p12 = scmp.lt.s32.totalorder %s1475_s9, %s1045_s8 }
  0xab   : > { %v311_v20 = vadd.f32 1e-05, %v309_v19  ;;  %p1042_p5 = pnand %p1041_p10, %p1326_p3  ;;  %p1048_p2 = scmp.lt.s32.totalorder %s1046_s13, %s1040_s30 }
  0xac   : > { %443 = vperm.xlu1 %895, %v395_v9   ;;  %438 = vperm.xlu0 %894, %v394_v10  }
  0xad   : > { %896 = vrsqrt.f32 %v311_v20  ;;  %p1043_p7 = pneg %p1042_p5  ;;  %p1049_p1 = por %p1048_p2, %p1047_p12 }
  0xaf   : > { %p1050_p13 = pnand %p1049_p1, %p1043_p7 }
  0xb7   : > { %v897_v27 = vpop.eup %896 }
  0xb8   : > { %v320_v28 = vrot.slane %v897_v27, %v319_v26 }
  0xba   : > { %v321_v29 = vcombine.high %v320_v28, %v320_v28 }
  0xbc   : > { %v328_v30 = vrot.slane %v321_v29, %v319_v26 }
  0xbe   : > { %v330_v32 = vmul.f32 %v328_v30, %v310_v31  ;;  %v615_v31 = vld [vmem:[%s1397_s26 + $0x4] sm:$0xe] }
  0xc0   : > { %v332_v34 = vmul.f32 %v330_v32, %v304_v16  ;;  %v348_v37 = vrot.slane %v330_v32, %v347_v33 }
  0xc2   : > { %v333_v36 = vsub.f32 %v331_v35, %v332_v34  ;;  %v352_v40 = vmul.f32 %v348_v37, %v336_v38  ;;  %v350_v42 = vmul.f32 %v348_v37, %v334_v39  ;;  %v353_v49 = vmul.f32 %v348_v37, %v337_v43 }
  0xc3   : > { %v351_v50 = vmul.f32 %v348_v37, %v335_v44  ;;  %v355_v52 = vmul.f32 %v348_v37, %v339_v47  ;;  %v354_v53 = vmul.f32 %v348_v37, %v338_v48  ;;  %v357_v60 = vmul.f32 %v348_v37, %v341_v51 }
  0xc4   : > { %v364_v41 = vrot.slane %v333_v36, %v347_v33  ;;  %v356_v2 = vmul.f32 %v348_v37, %v340_v56  ;;  %v359_v3 = vmul.f32 %v348_v37, %v343_v57  ;;  %v358_v9 = vmul.f32 %v348_v37, %v342_v61 }
  0xc6   : > { %v368_v45 = vadd.f32 %v364_v41, %v352_v40  ;;  %v366_v46 = vadd.f32 %v364_v41, %v350_v42  ;;  %v369_v58 = vadd.f32 %v364_v41, %v353_v49  ;;  %v367_v59 = vadd.f32 %v364_v41, %v351_v50 }
  0xc7   : > { %v371_v0 = vadd.f32 %v364_v41, %v355_v52  ;;  %v370_v1 = vadd.f32 %v364_v41, %v354_v53  ;;  %v373_v8 = vadd.f32 %v364_v41, %v357_v60  ;;  %v372_v16 = vadd.f32 %v364_v41, %v356_v2 }
  0xc8   : > { %v378_v54 = vmax.f32 %v368_v45, 0.0  ;;  %v376_v55 = vmax.f32 %v366_v46, 0.0  ;;  %v379_v6 = vmax.f32 %v369_v58, 0.0  ;;  %v377_v7 = vmax.f32 %v367_v59, 0.0 }
  0xc9   : > { %v381_v14 = vmax.f32 %v371_v0, 0.0  ;;  %v380_v15 = vmax.f32 %v370_v1, 0.0  ;;  %v1422_v17 = vadd.f32 %v364_v41, %v359_v3  ;;  %v383_v24 = vmax.f32 %v373_v8, 0.0 }
  0xca   : > { %v374_v25 = vadd.f32 %v364_v41, %v358_v9  ;;  %v382_v36 = vmax.f32 %v372_v16, 0.0 }
  0xcb   : > { %v385_v37 = vmax.f32 %v1422_v17, 0.0 }
  0xcc   : > { %v384_v49 = vmax.f32 %v374_v25, 0.0 }
 0x11b   : > { %v409_v62 = vpop.permute.xlu1 %408  ;;  %v399_v63 = vpop.permute.xlu0 %398 }
 0x11c   : > { %v448_v4 = vmul.f32 %v409_v62, %v378_v54  ;;  %v446_v5 = vmul.f32 %v399_v63, %v376_v55 }
 0x11e   : > { %v786_v10 = vpack.c.bf16 %v448_v4, %v448_v4  ;;  %v784_v11 = vpack.c.bf16 %v446_v5, %v446_v5 }
 0x11f   : > { %v414_v12 = vpop.permute.xlu1 %413  ;;  %v404_v13 = vpop.permute.xlu0 %403 }
 0x120   : > { %v522_v18 = vshrl.u32 %v786_v10, 16  ;;  %v525_v19 = vshll.u32 %v786_v10, 16  ;;  %v503_v20 = vshrl.u32 %v784_v11, 16  ;;  %v506_v21 = vshll.u32 %v784_v11, 16 }
 0x121   : > { %v449_v22 = vmul.f32 %v414_v12, %v379_v6  ;;  %v447_v23 = vmul.f32 %v404_v13, %v377_v7 }
 0x122   : > { %v524_v26 = vrot.slane %v522_v18, 6  ;;  %v527_v27 = vrot.slane %v525_v19, 7  ;;  %v505_v28 = vrot.slane %v503_v20, 6  ;;  %v508_v29 = vrot.slane %v506_v21, 7 }
 0x123   : > { %v787_v32 = vpack.c.bf16 %v449_v22, %v449_v22  ;;  %v785_v33 = vpack.c.bf16 %v447_v23, %v447_v23  ;;  %v424_v34 = vpop.permute.xlu1 %423  ;;  %v419_v35 = vpop.permute.xlu0 %418 }
 0x124   : > { %v528_v38 = vor.u32 %v527_v27, %v524_v26  ;;  %v509_v39 = vor.u32 %v508_v29, %v505_v28  ;;  %v451_v40 = vmul.f32 %v424_v34, %v381_v14  ;;  %v450_v41 = vmul.f32 %v419_v35, %v380_v15 }
 0x125   : > { %v532_v42 = vshrl.u32 %v787_v32, 16  ;;  %v535_v43 = vshll.u32 %v787_v32, 16  ;;  %v512_v44 = vshrl.u32 %v785_v33, 16  ;;  %v515_v45 = vshll.u32 %v785_v33, 16 }
 0x126   : > { %v530_v46 = vrot.slane %v528_v38, 4  ;;  %v616_v47 = vsel %vm1426_vm5, %v509_v39, %v615_v31  ;;  %v789_v48 = vpack.c.bf16 %v451_v40, %v451_v40  ;;  %v788_v59 = vpack.c.bf16 %v450_v41, %v450_v41  ;;  %v630_v41 = vld [vmem:[%s1397_s26 + $0x2c] sm:$0x1] }
 0x127   : > { %617 = vst [vmem:[%s1397_s26 + $0x4] sm:$0xe] %v616_v47  ;;  %v534_v50 = vrot.slane %v532_v42, 6  ;;  %v537_v51 = vrot.slane %v535_v43, 7  ;;  %v514_v52 = vrot.slane %v512_v44, 6  ;;  %v517_v53 = vrot.slane %v515_v45, 7  ;;  %v434_v54 = vpop.permute.xlu1 %433  ;;  %v429_v55 = vpop.permute.xlu0 %428 }
 0x128   : > { %v552_v57 = vshrl.u32 %v789_v48, 16  ;;  %v555_v58 = vshll.u32 %v789_v48, 16  ;;  %v453_v60 = vmul.f32 %v434_v54, %v383_v24  ;;  %v510_v61 = vrot.slane %v509_v39, 4 }
 0x129   : > { %v538_v62 = vor.u32 %v537_v51, %v534_v50  ;;  %v518_v63 = vor.u32 %v517_v53, %v514_v52  ;;  %v452_v0 = vmul.f32 %v429_v55, %v382_v36  ;;  %v542_v3 = vshrl.u32 %v788_v59, 16 }
 0x12a   : > { %v554_v1 = vrot.slane %v552_v57, 6  ;;  %v557_v2 = vrot.slane %v555_v58, 7  ;;  %v545_v4 = vshll.u32 %v788_v59, 16  ;;  %v791_v13 = vpack.c.bf16 %v453_v60, %v453_v60 }
 0x12b   : > { %v539_v5 = vsel %vm1437_vm6, %v530_v46, %v538_v62  ;;  %v519_v6 = vsel %vm1437_vm6, %v510_v61, %v518_v63  ;;  %v520_v7 = vrot.slane %v518_v63, 4  ;;  %v444_v8 = vpop.permute.xlu1 %443  ;;  %v439_v9 = vpop.permute.xlu0 %438  ;;  %v540_v10 = vrot.slane %v538_v62, 4 }
 0x12c   : > { %620 = vst [vmem:[%s1397_s26 + $0x10] sm:$0xf] %v539_v5  ;;  %618 = vst [vmem:[%s1397_s26 + $0x8] sm:$0xf] %v519_v6  ;;  %v544_v11 = vrot.slane %v542_v3, 6  ;;  %v547_v12 = vrot.slane %v545_v4, 7  ;;  %v790_v15 = vpack.c.bf16 %v452_v0, %v452_v0  ;;  %v455_v16 = vmul.f32 %v444_v8, %v385_v37 }
 0x12d   : > { %v529_v14 = vsel %vm1437_vm6, %v520_v7, %v528_v38  ;;  %v454_v17 = vmul.f32 %v439_v9, %v384_v49  ;;  %v558_v18 = vor.u32 %v557_v2, %v554_v1  ;;  %v572_v20 = vshrl.u32 %v791_v13, 16 }
 0x12e   : > { %619 = vst [vmem:[%s1397_s26 + $0xc] sm:$0xf] %v529_v14  ;;  %v548_v19 = vor.u32 %v547_v12, %v544_v11  ;;  %v575_v21 = vshll.u32 %v791_v13, 16  ;;  %v562_v22 = vshrl.u32 %v790_v15, 16  ;;  %v565_v23 = vshll.u32 %v790_v15, 16 }
 0x12f   : > { %v793_v24 = vpack.c.bf16 %v455_v16, %v455_v16  ;;  %v792_v25 = vpack.c.bf16 %v454_v17, %v454_v17  ;;  %v574_v28 = vrot.slane %v572_v20, 6  ;;  %v560_v38 = vrot.slane %v558_v18, 4 }
 0x130   : > { %v549_v26 = vsel %vm1437_vm6, %v540_v10, %v548_v19  ;;  %v550_v27 = vrot.slane %v548_v19, 4  ;;  %v577_v29 = vrot.slane %v575_v21, 7  ;;  %v564_v30 = vrot.slane %v562_v22, 6 }
 0x131   : > { %621 = vst [vmem:[%s1397_s26 + $0x14] sm:$0xf] %v549_v26  ;;  %v567_v31 = vrot.slane %v565_v23, 7  ;;  %v592_v32 = vshrl.u32 %v793_v24, 16  ;;  %v595_v33 = vshll.u32 %v793_v24, 16  ;;  %v582_v36 = vshrl.u32 %v792_v25, 16 }
 0x132   : > { %v559_v34 = vsel %vm1437_vm6, %v550_v27, %v558_v18  ;;  %v578_v35 = vor.u32 %v577_v29, %v574_v28  ;;  %v585_v37 = vshll.u32 %v792_v25, 16 }
 0x133   : > { %622 = vst [vmem:[%s1397_s26 + $0x18] sm:$0xf] %v559_v34  ;;  %v568_v39 = vor.u32 %v567_v31, %v564_v30  ;;  %v594_v40 = vrot.slane %v592_v32, 6  ;;  %v597_v42 = vrot.slane %v595_v33, 7  ;;  %v584_v43 = vrot.slane %v582_v36, 6 }
 0x134   : > { %v587_v44 = vrot.slane %v585_v37, 7  ;;  %v580_v48 = vrot.slane %v578_v35, 4 }
 0x135   : > { %v569_v45 = vsel %vm1437_vm6, %v560_v38, %v568_v39  ;;  %v570_v46 = vrot.slane %v568_v39, 4  ;;  %v600_v47 = vrot.slane %v594_v40, 4  ;;  %v598_v52 = vor.u32 %v597_v42, %v594_v40 }
 0x136   : > { %623 = vst [vmem:[%s1397_s26 + $0x1c] sm:$0xf] %v569_v45  ;;  %v588_v49 = vor.u32 %v587_v44, %v584_v43 }
 0x137   : > { %v579_v50 = vsel %vm1437_vm6, %v570_v46, %v578_v35  ;;  %v631_v51 = vsel %vm629_vm9, %v600_v47, %v630_v41 }
 0x138   : > { %624 = vst [vmem:[%s1397_s26 + $0x20] sm:$0xf] %v579_v50  ;;  %632 = vst [vmem:[%s1397_s26 + $0x2c] sm:$0x1] %v631_v51  ;;  %v589_v53 = vsel %vm1437_vm6, %v580_v48, %v588_v49  ;;  %v590_v54 = vrot.slane %v588_v49, 4 }
 0x139   : > { %625 = vst [vmem:[%s1397_s26 + $0x24] sm:$0xf] %v589_v53 }
 0x13a   : > { %v599_v55 = vsel %vm1437_vm6, %v590_v54, %v598_v52 }
 0x13b   : > { %626 = vst [vmem:[%s1397_s26 + $0x28] sm:$0xf] %v599_v55 }
 0x13c   : > { %1053 = shalt.err (!%p1050_p13)
}
 0x13d   : > { %s1054_s28 = scalar_lea.hbm %s1473_s15, 832  ;;  %s1058_s11 = scalar_lea.hbm %s1528_s5, 1664 }
 0x13e   : > { %p1055_p9 = scmp.ne.s32.totalorder %s1473_s15, %s1054_s28  ;;  %p1059_p6 = scmp.lt.u32.totalorder %s1473_s15, %s1528_s5 }
 0x13f   : > { %p1060_p4 = scmp.lt.u32.totalorder %s1058_s11, %s1054_s28  ;;  %p1062_p10 = scmp.lt.u32.totalorder %s1054_s28, %s1473_s15 }
 0x140   : > { %p1056_p0 = pnand %p1055_p9, %p1326_p3 }
 0x141   : > { %p1061_p8 = por %p1060_p4, %p1059_p6 }
 0x142   : > { %p1057_p11 = pneg %p1056_p0 }
 0x143   : > { %p1063_p5 = por %p1062_p10, %p1061_p8 }
 0x145   : > { %p1064_p7 = pnand %p1063_p5, %p1057_p11 }
 0x147   : > { %1067 = shalt.err (!%p1064_p7)
}
 0x148   : > { %s1128_s14 = smov 64   ;;  %s1129_s22 = smov 4  }
 0x149   : > { %817 = dma.vmem_to_hbm [thread:$0]  (%p1326_p3), %s1475_s9, 832, %s1473_s15, %s634_s6, %s1128_s14, %s1128_s14, %s1129_s22  }
 0x14a PF: > { %s662_s12 = sand.u32 1, %s1102_s18   ;;  %p1552_p12 = scmp.ne.s32.totalorder %s1534_s25, 0 }
 0x14b   : > { %p1553_p2 = scmp.ge.s32.totalorder %s1114_s21, 2  ;;  %s663_s30 = scalar_lea.sflag [#allocation4], %s662_s12 }
 0x14d   : > { %p837_p1 = pnand %p1553_p2, %p1552_p12 }
 0x14f   : > { %1097 = dma.done.wait (!%p837_p1), %s663_s30, 832  }
 0x150   : > { %1099 = vsyncadd (!%p837_p1), %s663_s30, 4294966464  ;;  %p20_p13 = scmp.ge.s32.totalorder %s1313_s16, 4   ;;  %s1554_s18 = smov %s1106_s19 }
 0x151   : > { %s1555_s19 = smov %s1110_s20  ;;  %s1556_s20 = smov %s1322_s27 }
 0x152   : > { %s1557_s21 = smov %s1313_s16  ;;  %22 = sbr.rel (!%p20_p13) target bundleno = 7 (0x7), region = 101 }
 0x159   :  { %668 = vsyncpa [#allocation3], 1 }
 0x15a   :  { %670 = vsyncpa [#allocation3 + $0x1], 1 }
 0x15b   :  { %671 = vsyncpa [#allocation6], 1 }
 0x15c   :  { %672 = vsyncpa [#allocation9], 1 }
 0x15d   :  { %673 = vsyncpa [#allocation4], 1 }
 0x15e   :  { %675 = vsyncpa [#allocation4 + $0x1], 1 }

// kernel: downsample_forward.37
= control target key start
LH: loop header
LB: loop body
LE: loop exit
PB: predicated region body
PF: predicated region fallthrough
CT: control target
= control target key end

     0   :  { %10 = vsyncpa [#allocation3], 0  ;;  %s4062_s0 = inlined_call_operand.hbm [shape: bf16[2,100,128], index: 0, kind: input, shape index: {}]   ;;  %s4063_s1 = inlined_call_operand.hbm [shape: bf16[9,128,128], index: 1, kind: input, shape index: {}]   ;;  %s4064_s2 = inlined_call_operand.hbm [shape: f32[78,1], index: 2, kind: input, shape index: {}]   ;;  %s4065_s3 = inlined_call_operand.hbm [shape: f32[2,78,128], index: 3, kind: output, shape index: {0}]   ;;  %s4066_s4 = inlined_call_operand.hbm [shape: f32[2,2,128], index: 4, kind: output, shape index: {1}]  }
   0x1   :  { %12 = vsyncpa [#allocation3 + $0x1], 0 }
   0x2   :  { %13 = vsyncpa [#allocation6], 0 }
   0x3   :  { %14 = vsyncpa [#allocation4], 0 }
   0x4   :  { %16 = vsyncpa [#allocation4 + $0x1], 0 }
   0x5   :  { %17 = vsyncpa [#allocation10], 0 }
   0x6   :  { %19 = vsyncpa [#allocation10 + $0x1], 0  ;;  %s3393_s15 = smov 0   ;;  %s3395_s16 = smov 0  }
   0x7   :  { %s3397_s17 = smov 0   ;;  %s3399_s18 = smov 0  }
   0x8 LB: > { %s3414_s19 = sadd.s32 4294967295, %s3352_s18   ;;  %s2260_s20 = sadd.s32 4294967294, %s3352_s18   ;;  %s3352_s18 = sphi %s3399_s18, %s4086_s18   ;;  %s3348_s17 = sphi %s3397_s17, %s4085_s17   ;;  %s3344_s16 = sphi %s3395_s16, %s4084_s16   ;;  %s3340_s15 = sphi %s3393_s15, %s4083_s15  }
   0x9   : > { %p45_p0 = scmp.ne.s32.totalorder %s3344_s16, %s3340_s15  ;;  %p4067_p1 = scmp.eq.s32.totalorder %s3414_s19, 0 }
   0xa   : > { %p117_p3 = scmp.eq.s32.totalorder %s2260_s20, 1  ;;  %p2261_p5 = scmp.ge.s32.totalorder %s3352_s18, 1 }
   0xb   : > { %p3423_p4 = por %p4067_p1, %p45_p0  ;;  %p150_p7 = scmp.lt.s32.totalorder %s3352_s18, 3 }
   0xc   : > { %p3428_p6 = por %p117_p3, %p45_p0  ;;  %s3354_s24 = smov [#allocation5]  }
   0xd   : > { %s4070_s21 = scalar_select %p3423_p4, 1, 0 }
   0xe   : > { %s4071_s22 = scalar_select %p3428_p6, 1, 0 }
   0xf   : > { %p3433_p8 = pnand %p2261_p5, %p150_p7  ;;  %s162_s25 = sshll.u32 %s3354_s24, 4  ;;  %s3437_s25 = int_to_ptr.vmem [resolvable:$true] %s162_s25 }
  0x10   : > { %s3355_s27 = smov [#allocation7]   ;;  %s3164_s5 = scalar_lea.hbm %s4063_s1, 9216 }
  0x11   : > { %p2996_p9 = pneg %p3433_p8  ;;  %s175_s28 = sshll.u32 %s3355_s27, 4  ;;  %s3448_s28 = int_to_ptr.vmem [resolvable:$true] %s175_s28 }
  0x12   : > { %p3165_p12 = scmp.ne.s32.totalorder %s4063_s1, %s3164_s5  ;;  %p3171_p5 = scmp.lt.u32.totalorder %s3164_s5, %s4063_s1 }
  0x13   : > { %p3444_p11 = pnand %p2996_p9, %p4067_p1 }
  0x15   : > { %p3166_p13 = pneg %p3444_p11 }
  0x17   : > { %p3167_p0 = pnand %p3166_p13, %p3165_p12 }
  0x19   : > { %p3168_p3 = pneg %p3167_p0 }
  0x1b   : > { %p3173_p7 = pnand %p3171_p5, %p3168_p3 }
  0x1d   : > { %3176 = shalt.err (!%p3173_p7)
}
  0x1e   : > { %s3177_s10 = scalar_lea.vmem %s3437_s25, 9216  ;;  %p3185_p2 = scmp.lt.s32.totalorder %s3437_s25, %s3437_s25 }
  0x1f   : > { %p3178_p9 = scmp.ne.s32.totalorder %s3437_s25, %s3177_s10  ;;  %p3186_p12 = scmp.lt.s32.totalorder %s3177_s10, %s3177_s10 }
  0x21   : > { %p3180_p10 = pnand %p3178_p9, %p3166_p13  ;;  %p3187_p0 = por %p3186_p12, %p3185_p2 }
  0x23   : > { %p3181_p1 = pneg %p3180_p10 }
  0x25   : > { %p3188_p6 = pnand %p3187_p0, %p3181_p1 }
  0x27   : > { %3191 = shalt.err (!%p3188_p6)
}
  0x28   : > { %s3356_s11 = smov 64   ;;  %s3357_s12 = smov 4  }
  0x29   : > { %2999 = dma.hbm_to_vmem [thread:$0]  (!%p3444_p11), %s4063_s1, 9216, %s3437_s25, [#allocation6], %s3356_s11, %s3356_s11, %s3357_s12  }
  0x2a   : > { %s3192_s27 = scalar_lea.hbm %s4064_s2, 1280 }
  0x2b   : > { %p3193_p1 = scmp.ne.s32.totalorder %s4064_s2, %s3192_s27  ;;  %p3199_p10 = scmp.lt.u32.totalorder %s3192_s27, %s4064_s2 }
  0x2d   : > { %p3195_p2 = pnand %p3193_p1, %p3166_p13 }
  0x2f   : > { %p3196_p6 = pneg %p3195_p2 }
  0x31   : > { %p3201_p3 = pnand %p3199_p10, %p3196_p6 }
  0x33   : > { %3204 = shalt.err (!%p3201_p3)
}
  0x34   : > { %s3205_s25 = scalar_lea.vmem %s3448_s28, 1280  ;;  %p3213_p12 = scmp.lt.s32.totalorder %s3448_s28, %s3448_s28 }
  0x35   : > { %p3206_p5 = scmp.ne.s32.totalorder %s3448_s28, %s3205_s25  ;;  %p3214_p0 = scmp.lt.s32.totalorder %s3205_s25, %s3205_s25 }
  0x37   : > { %p3208_p7 = pnand %p3206_p5, %p3166_p13  ;;  %p3215_p1 = por %p3214_p0, %p3213_p12 }
  0x39   : > { %p3209_p9 = pneg %p3208_p7 }
  0x3b   : > { %p3216_p2 = pnand %p3215_p1, %p3209_p9 }
  0x3d   : > { %3219 = shalt.err (!%p3216_p2)
}
  0x3e   : > { %s3358_s7 = smov 128   ;;  %s3359_s8 = smov 8  }
  0x3f   : > { %3002 = dma.hbm_to_vmem [thread:$0]  (!%p3444_p11), %s4064_s2, 1280, %s3448_s28, [#allocation6], %s3358_s7, %s3358_s7, %s3359_s8  }
  0x40   : > { %s3506_s13 = sadd.s32 1, %s3352_s18   ;;  %s32_s20 = sadd.s32 1, %s3348_s17 }
  0x41   : > { %s29_s14 = ssub.s32 %s3352_s18, %s3506_s13  ;;  %p39_p6 = scmp.ne.s32.totalorder %s3348_s17, %s3344_s16 }
  0x42   : > { %p30_p13 = scmp.eq.s32.totalorder %s29_s14, 0  ;;  %p40_p10 = scmp.eq.s32.totalorder %s3352_s18, 0 }
  0x43   : > { %p4074_p5 = scmp.eq.s32.totalorder %s3414_s19, 1  ;;  %p3016_p9 = scmp.lt.s32.totalorder %s3352_s18, 2 }
  0x44   : > { %s3515_s24 = scalar_select %p30_p13, %s3348_s17, %s32_s20  }
  0x45   : > { %p41_p3 = por %p40_p10, %p39_p6  ;;  %p3519_p7 = por %p4074_p5, %p39_p6 }
  0x46   : > { %s189_s26 = sand.u32 1, %s3348_s17   ;;  %s2978_s28 = smul.u32 832, %s3352_s18 }
  0x47   : > { %s4075_s27 = scalar_select %p3519_p7, 1, 0 }
  0x48   : > { %s2977_s29 = smul.u32 52, %s189_s26  ;;  %p3526_p11 = pnand %p3016_p9, %p41_p3 }
  0x49   : > { %s3533_s25 = scalar_lea.hbm %s4062_s0, %s2978_s28  ;;  %s3537_s9 = scalar_lea.sflag [#allocation3], %s189_s26 }
  0x4a   : > { %s193_s7 = scalar_lea.vmem [#allocation2], %s2977_s29  ;;  %s3220_s10 = scalar_lea.hbm %s3533_s25, 832 }
  0x4b   : > { %s200_s8 = sshll.u32 %s193_s7, 4  ;;  %p3221_p12 = scmp.ne.s32.totalorder %s3533_s25, %s3220_s10  ;;  %s3535_s8 = int_to_ptr.vmem [resolvable:$true] %s200_s8 }
  0x4c   : > { %p3222_p0 = pneg %p3526_p11  ;;  %s3225_s28 = scalar_lea.hbm %s4062_s0, 1664 }
  0x4d   : > { %p3226_p13 = scmp.lt.u32.totalorder %s3533_s25, %s4062_s0  ;;  %p3227_p6 = scmp.lt.u32.totalorder %s3225_s28, %s3220_s10 }
  0x4e   : > { %p3223_p1 = pnand %p3222_p0, %p3221_p12  ;;  %p3229_p3 = scmp.lt.u32.totalorder %s3220_s10, %s3533_s25 }
  0x4f   : > { %p3228_p10 = por %p3227_p6, %p3226_p13 }
  0x50   : > { %p3224_p2 = pneg %p3223_p1 }
  0x51   : > { %p3230_p5 = por %p3229_p3, %p3228_p10 }
  0x53   : > { %p3231_p9 = pnand %p3230_p5, %p3224_p2 }
  0x55   : > { %3234 = shalt.err (!%p3231_p9)
}
  0x56   : > { %s3235_s26 = scalar_lea.vmem %s3535_s8, 832  ;;  %s3360_s29 = smov [#allocation2]  }
  0x57   : > { %p3236_p12 = scmp.ne.s32.totalorder %s3535_s8, %s3235_s26  ;;  %s3240_s7 = sshll.u32 %s3360_s29, 4  ;;  %s3241_s7 = int_to_ptr.vmem [resolvable:$false] %s3240_s7 }
  0x58   : > { %s3242_s14 = scalar_lea.vmem %s3241_s7, 1664  ;;  %p3243_p4 = scmp.lt.s32.totalorder %s3535_s8, %s3241_s7 }
  0x59   : > { %p3238_p1 = pnand %p3236_p12, %p3222_p0  ;;  %p3244_p13 = scmp.lt.s32.totalorder %s3242_s14, %s3235_s26 }
  0x5b   : > { %p3239_p7 = pneg %p3238_p1  ;;  %p3245_p6 = por %p3244_p13, %p3243_p4 }
  0x5d   : > { %p3246_p10 = pnand %p3245_p6, %p3239_p7 }
  0x5f   : > { %3249 = shalt.err (!%p3246_p10)
}
  0x60   : > { %3006 = dma.hbm_to_vmem [thread:$0]  (!%p3526_p11), %s3533_s25, 832, %s3535_s8, %s3537_s9, %s3356_s11, %s3356_s11, %s3357_s12  }
  0x61   : > { %212 = sbr.rel (%p3433_p8) target bundleno = 586 (0x24a), region = 32  ;;  %s3571_s10 = sand.u32 (!%p3433_p8), 1, %s3344_s16  }
  0x62   : > { %s2979_s20 = smul.u32 (!%p3433_p8), 52, %s3571_s10  ;;  %s215_s28 = scalar_lea.sflag (!%p3433_p8), [#allocation3], %s3571_s10 }
  0x63   : > { %p4077_p4 = scmp.ne.s32.totalorder (!%p3433_p8), %s4070_s21, 0 }
  0x64   : > { %s3575_s5 = scalar_lea.vmem (!%p3433_p8), [#allocation2], %s2979_s20 }
  0x68   : > { %3323 = dma.done.wait (%p4077_p4), %s215_s28, 832  }
  0x69   : > { %3325 = vsyncadd (%p4077_p4), %s215_s28, 4294966464  ;;  %p4078_p7 = scmp.eq.s32.totalorder %s3414_s19, 0 }
  0x6b   : > { %3327 = dma.done.wait (%p4078_p7), [#allocation6], 10496   ;;  %p4079_p8 = pmov %p4078_p7 }
  0x6c   : > { %v3361_v0 = vmov 0.0   ;;  %vm3362_vm0 = vmmov 0   ;;  %v3065_v1 = vld [vmem:[#allocation5 + $0x40] sm:$0xff]   ;;  %v3067_v3 = vld [vmem:[#allocation5 + $0x48] sm:$0xff]   ;;  %v3069_v5 = vld [vmem:[#allocation5 + $0x50] sm:$0xff]   ;;  %vm642_vm3 = vcmask 1046528  }
  0x6d   : > { %3329 = vsyncadd (%p4079_p8), [#allocation6], 4294956800  ;;  %2491 = vmatprep.subr.bf16.mxu1 %v3361_v0  ;;  %2635 = vmatprep.subr.bf16.mxu0 %v3361_v0  ;;  %v3066_v2 = vld [vmem:[#allocation5 + $0x100] sm:$0xff]   ;;  %v3068_v4 = vld [vmem:[#allocation5 + $0x108] sm:$0xff]   ;;  %vm326_vm1 = vsmask.f32 7424 }
  0x6e   : > { %2507 = vmatprep.mubr.msk.bf16.mxu1 %vm3362_vm0, %v3361_v0  ;;  %2651 = vmatprep.mubr.msk.bf16.mxu0 %vm3362_vm0, %v3361_v0  ;;  %v3070_v6 = vld [vmem:[#allocation5 + $0x110] sm:$0xff]   ;;  %v3071_v7 = vld [vmem:[#allocation5 + $0x58] sm:$0xff]   ;;  %v3073_v9 = vld [vmem:[#allocation5 + $0x60] sm:$0xff]   ;;  %vm1041_vm2 = vsmask.f32 6400  ;;  %vm1248_vm4 = vcmask 1045504  }
  0x6f   : > { %2492 = vmatpush3.bf16.msra.mxu1 %v3065_v1  ;;  %2636 = vmatpush3.bf16.msra.mxu0 %v3066_v2  ;;  %v3072_v8 = vld [vmem:[#allocation5 + $0x118] sm:$0xff]   ;;  %v3074_v10 = vld [vmem:[#allocation5 + $0x120] sm:$0xff]   ;;  %v3075_v11 = vld [vmem:[#allocation5 + $0x68] sm:$0xff]   ;;  %vm1831_vm5 = vcmask 1044480   ;;  %vm1620_vm6 = vsmask.f32 5376 }
  0x70   : > { %2493 = vmatprep.subr.bf16.mxu1 %v3361_v0  ;;  %2637 = vmatprep.subr.bf16.mxu0 %v3361_v0  ;;  %v257_v12 = vld [vmem:[%s3575_s5] sm:$0xf]  ;;  %v3601_v13 = vld [vmem:[%s3575_s5 + $0x4] sm:$0xf]  ;;  %v3607_v15 = vld [vmem:[%s3575_s5 + $0x8] sm:$0xff]   ;;  %s2980_s21 = smul.u32 80, %s3571_s10 }
  0x71   : > { %v3604_v14 = vcombine.low %v257_v12, %v3601_v13  ;;  %v985_v16 = vld [vmem:[%s3575_s5 + $0x4] sm:$0xe]  ;;  %v3611_v17 = vld [vmem:[%s3575_s5 + $0x8] sm:$0xf]  ;;  %v3076_v18 = vld [vmem:[#allocation5 + $0x128] sm:$0xff]   ;;  %v335_v28 = vshll.u32 %v3607_v15, 16 }
  0x72   : > { %v2314_v20 = vcombine.low %v985_v16, %v3611_v17  ;;  %v3617_v21 = vld [vmem:[%s3575_s5 + $0xc] sm:$0xff]   ;;  %v3077_v22 = vld [vmem:[#allocation5 + $0x70] sm:$0xff]   ;;  %v339_v45 = vshrl.u32 %v3607_v15, 16  ;;  %s3945_s23 = scalar_lea.vmem [#allocation8], %s2980_s21  ;;  %s2981_s11 = smul.u32 1280, %s3414_s19 }
  0x73   : > { %2494 = vmatpush3.bf16.msra.mxu1 %v3067_v3  ;;  %2638 = vmatpush3.bf16.msra.mxu0 %v3068_v4  ;;  %v330_v19 = vshll.u32 %v3604_v14, 16  ;;  %v3078_v23 = vld [vmem:[#allocation5 + $0x130] sm:$0xff]   ;;  %v328_v24 = vshrl.u32 %v3604_v14, 16  ;;  %v1051_v29 = vshrl.u32 %v3617_v21, 16  ;;  %v1054_v30 = vshll.u32 %v3617_v21, 16  ;;  %v3079_v33 = vld [vmem:[#allocation5 + $0x78] sm:$0xff]  }
  0x74   : > { %2495 = vmatprep.subr.bf16.mxu1 %v3361_v0  ;;  %2639 = vmatprep.subr.bf16.mxu0 %v3361_v0  ;;  %v1043_v25 = vshrl.u32 %v2314_v20, 16  ;;  %v1046_v26 = vshll.u32 %v2314_v20, 16  ;;  %v3627_v36 = vld [vmem:[%s3575_s5 + $0x14] sm:$0xff]   ;;  %v3080_v37 = vld [vmem:[#allocation5 + $0x138] sm:$0xff]   ;;  %v337_v39 = vrot.slane %v335_v28, 1  ;;  %s2123_s12 = sshll.u32 %s3945_s23, 4  ;;  %s3972_s8 = scalar_lea.hbm %s4065_s3, %s2981_s11  ;;  %s3976_s12 = int_to_ptr.vmem [resolvable:$true] %s2123_s12 }
  0x75   : > { %v332_v27 = vrot.slane %v330_v19, 1  ;;  %v1053_v34 = vrot.slane %v1051_v29, 1  ;;  %v1056_v35 = vrot.slane %v1054_v30, 2  ;;  %v3630_v40 = vld [vmem:[%s3575_s5 + $0x10] sm:$0xff]   ;;  %v1060_v41 = vshrl.u32 %v3627_v36, 16  ;;  %v3640_v49 = vld [vmem:[%s3575_s5 + $0x1c] sm:$0xff]  }
  0x76   : > { %v1045_v31 = vrot.slane %v1043_v25, 1  ;;  %v1048_v32 = vrot.slane %v1046_v26, 2  ;;  %v1063_v42 = vshll.u32 %v3627_v36, 16  ;;  %v3085_v46 = vld [vmem:[#allocation5 + $0x140] sm:$0xff]   ;;  %v343_v48 = vshll.u32 %v3630_v40, 16  ;;  %v3086_v59 = vld [vmem:[#allocation5 + $0x148] sm:$0xff]  }
  0x77   : > { %2496 = vmatpush3.bf16.msra.mxu1 %v3069_v5  ;;  %2640 = vmatpush3.bf16.msra.mxu0 %v3070_v6  ;;  %v333_v38 = vor.u32 %v332_v27, %v328_v24  ;;  %v1057_v44 = vor.u32 %v1056_v35, %v1053_v34  ;;  %v1062_v51 = vrot.slane %v1060_v41, 1  ;;  %v3089_v53 = vld [vmem:[#allocation5] sm:$0xff]   ;;  %v1069_v55 = vshrl.u32 %v3640_v49, 16  ;;  %v3091_v61 = vld [vmem:[#allocation5 + $0x8] sm:$0xff]   ;;  %v3090_v63 = vld [vmem:[#allocation5 + $0x150] sm:$0xff]   ;;  %s2105_s9 = scalar_lea.sflag [#allocation4], %s3571_s10 }
  0x78   : > { %2497 = vmatprep.subr.bf16.mxu1 %v3361_v0  ;;  %2641 = vmatprep.subr.bf16.mxu0 %v3361_v0  ;;  %v1049_v43 = vor.u32 %v1048_v32, %v1045_v31  ;;  %v1065_v52 = vrot.slane %v1063_v42, 2  ;;  %v3646_v54 = vld [vmem:[%s3575_s5 + $0x18] sm:$0xff]   ;;  %v341_v56 = vor.u32 %v339_v45, %v337_v39  ;;  %v345_v57 = vrot.slane %v343_v48, 1  ;;  %v3660_v5 = vld [vmem:[%s3575_s5 + $0x20] sm:$0xf]  ;;  %v3663_v6 = vld [vmem:[%s3575_s5 + $0x24] sm:$0xff]  }
  0x79   : > { %v338_v47 = vsel %vm326_vm1, %v333_v38, %v337_v39  ;;  %v1072_v58 = vshll.u32 %v3640_v49, 16  ;;  %v347_v62 = vshrl.u32 %v3630_v40, 16  ;;  %v351_v1 = vshll.u32 %v3646_v54, 16  ;;  %v3097_v25 = vld [vmem:[#allocation5 + $0x160] sm:$0xff]   ;;  %v3101_v35 = vld [vmem:[#allocation5 + $0x168] sm:$0xff]   ;;  %v3103_v41 = vld [vmem:[#allocation5 + $0x170] sm:$0xff]  }
  0x7a   : > { %v1058_v50 = vsel %vm1041_vm2, %v1049_v43, %v1057_v44  ;;  %v1066_v60 = vor.u32 %v1065_v52, %v1062_v51  ;;  %v1071_v2 = vrot.slane %v1069_v55, 1  ;;  %v346_v3 = vsel %vm326_vm1, %v341_v56, %v345_v57  ;;  %v3100_v30 = vld [vmem:[#allocation5 + $0x20] sm:$0xff]   ;;  %v3105_v43 = vld [vmem:[#allocation5 + $0x30] sm:$0xff]   ;;  %v3106_v45 = vld [vmem:[#allocation5 + $0x178] sm:$0xff]   ;;  %s3250_s6 = scalar_lea.vmem %s3976_s12, 1280  ;;  %p4080_p0 = scmp.ne.s32.totalorder %s4075_s27, 0 }
  0x7b   : > { %2498 = vmatpush3.bf16.msra.mxu1 %v3071_v7  ;;  %2642 = vmatpush3.bf16.msra.mxu0 %v3072_v8  ;;  %v1074_v4 = vrot.slane %v1072_v58, 2  ;;  %v283_v8 = vld [vmem:[%s3575_s5 + $0x24] sm:$0xf]  ;;  %v349_v12 = vor.u32 %v347_v62, %v345_v57  ;;  %v1078_v19 = vshrl.u32 %v3663_v6, 16  ;;  %v1081_v20 = vshll.u32 %v3663_v6, 16  ;;  %v3110_v62 = vld [vmem:[#allocation5 + $0x188] sm:$0xff]   ;;  %p3251_p11 = scmp.ne.s32.totalorder %s3976_s12, %s3250_s6 }
  0x7c   : > { %2499 = vmatprep.subr.bf16.mxu1 %v3361_v0  ;;  %2643 = vmatprep.subr.bf16.mxu0 %v3361_v0  ;;  %v1067_v7 = vsel %vm1041_vm2, %v1057_v44, %v1066_v60  ;;  %v3672_v16 = vcombine.low %v3660_v5, %v283_v8  ;;  %v3687_v31 = vld [vmem:[%s3575_s5 + $0x2c] ss:$0 sps:$4 sm:$0x11]   ;;  %v1227_v48 = vld [vmem:[%s3575_s5 + $0x4] sm:$0xc]  ;;  %v1250_v58 = vrot.slane %v3617_v21, 2 }
  0x7d   : > { %v1080_v28 = vrot.slane %v1078_v19, 1  ;;  %v1083_v29 = vrot.slane %v1081_v20, 2  ;;  %v1087_v42 = vshll.u32 %v3687_v31, 16  ;;  %v621_v51 = vld [vmem:[%s3575_s5] sm:$0xe]  ;;  %v2328_v56 = vcombine.low %v1227_v48, %v3611_v17  ;;  %p3252_p2 = pnand %p3251_p11, %p4080_p0  ;;  %s3364_s26 = smov [#allocation8]  }
  0x7e   : > { %v359_v26 = vshll.u32 %v3672_v16, 16  ;;  %v363_v44 = vshrl.u32 %v3672_v16, 16  ;;  %v2292_v52 = vcombine.low %v621_v51, %v3601_v13  ;;  %v3113_v21 = vld [vmem:[#allocation5 + $0x88] sm:$0xff]   ;;  %v1397_v20 = vld [vmem:[%s3575_s5 + $0xc] sm:$0xf]  ;;  %s3254_s29 = sshll.u32 %s3364_s26, 4  ;;  %s3255_s29 = int_to_ptr.vmem [resolvable:$false] %s3254_s29 }
  0x7f   : > { %2500 = vmatpush3.bf16.msra.mxu1 %v3073_v9  ;;  %2644 = vmatpush3.bf16.msra.mxu0 %v3074_v10  ;;  %v3095_v9 = vld [vmem:[#allocation5 + $0x10] sm:$0xff]   ;;  %v353_v10 = vrot.slane %v351_v1, 1  ;;  %v1084_v34 = vor.u32 %v1083_v29, %v1080_v28  ;;  %v1249_v17 = vrot.slane %v2328_v56, 2  ;;  %v1258_v28 = vrot.slane %v3687_v31, 2  ;;  %v3124_v29 = vld [vmem:[#allocation5 + $0x1b8] sm:$0xff]   ;;  %p3253_p3 = pneg %p3252_p2  ;;  %s3256_s7 = scalar_lea.vmem %s3255_s29, 2560 }
  0x80   : > { %2501 = vmatprep.subr.bf16.mxu1 %v3361_v0  ;;  %2645 = vmatprep.subr.bf16.mxu0 %v3361_v0  ;;  %v643_v57 = vrot.slane %v2292_v52, 1  ;;  %v3112_v1 = vld [vmem:[#allocation5 + $0x190] sm:$0xff]   ;;  %v1992_v48 = vld [vmem:[#allocation7 + $0x18] sm:$0xff]  ;;  %v3129_v52 = vld [vmem:[#allocation5 + $0x1c0] sm:$0xff]   ;;  %v646_v56 = vrot.slane %v3630_v40, 1  ;;  %p3257_p5 = scmp.lt.s32.totalorder %s3976_s12, %s3255_s29  ;;  %p3258_p9 = scmp.lt.s32.totalorder %s3256_s7, %s3250_s6 }
  0x81   : > { %v354_v24 = vsel %vm326_vm1, %v349_v12, %v353_v10  ;;  %v3121_v12 = vld [vmem:[#allocation5 + $0x1b0] sm:$0xff]  }
  0x82   : > { %p3259_p12 = por %p3258_p9, %p3257_p5 }
  0x83   : > { %2502 = vmatpush3.bf16.msra.mxu1 %v3075_v11  ;;  %2646 = vmatpush3.bf16.msra.mxu0 %v3076_v18  ;;  %v3094_v11 = vld [vmem:[#allocation5 + $0x158] sm:$0xff]   ;;  %v1075_v18 = vor.u32 %v1074_v4, %v1071_v2  ;;  %v3115_v2 = vld [vmem:[#allocation5 + $0x90] sm:$0xff]  }
  0x84   : > { %2503 = vmatprep.subr.bf16.mxu1 %v3361_v0  ;;  %2647 = vmatprep.subr.bf16.mxu0 %v3361_v0  ;;  %v3116_v4 = vld [vmem:[#allocation5 + $0x98] sm:$0xff]   ;;  %p3260_p1 = pnand %p3259_p12, %p3253_p3 }
  0x85   : > { %v1076_v27 = vsel %vm1041_vm2, %v1066_v60, %v1075_v18  ;;  %v1085_v39 = vsel %vm1041_vm2, %v1075_v18, %v1084_v34  ;;  %v3109_v60 = vld [vmem:[#allocation5 + $0x180] sm:$0xff]   ;;  %v3123_v18 = vld [vmem:[#allocation5 + $0xb0] sm:$0xff]  }
  0x87   : > { %2504 = vmatpush3.bf16.msra.mxu1 %v3077_v22  ;;  %2648 = vmatpush3.bf16.msra.mxu0 %v3078_v23  ;;  %v3096_v22 = vld [vmem:[#allocation5 + $0x18] sm:$0xff]   ;;  %v355_v23 = vshrl.u32 %v3646_v54, 16 }
  0x88   : > { %2505 = vmatprep.subr.bf16.mxu1 %v3361_v0  ;;  %2649 = vmatprep.subr.bf16.mxu0 %v3361_v0 }
  0x89   : > { %v357_v32 = vor.u32 %v355_v23, %v353_v10  ;;  %v3119_v10 = vld [vmem:[#allocation5 + $0x1a8] sm:$0xff]  }
  0x8a   : > { %v3766_v23 = vld [vmem:[%s3575_s5 + $0x20] sm:$0xff]  }
  0x8b   : > { %2506 = vmatpush3.bf16.msra.mxu1 %v3079_v33  ;;  %2650 = vmatpush3.bf16.msra.mxu0 %v3080_v37  ;;  %v361_v33 = vrot.slane %v359_v26, 1  ;;  %v3102_v37 = vld [vmem:[#allocation5 + $0x28] sm:$0xff]  }
  0x8c   : > { %2527 = vmatprep.subr.bf16.mxu1 %v3361_v0  ;;  %2671 = vmatprep.subr.bf16.mxu0 %v3361_v0 }
  0x8d   : > { %v362_v38 = vsel %vm326_vm1, %v357_v32, %v361_v33 }
  0x8e   : > { %2508 = vmatmul.mubr.bf16.vlgmr.msra.gmra.mrb[0].mxu1 %v338_v47  ;;  %2652 = vmatmul.mubr.bf16.vlgmr.msra.gmra.mrb[0].mxu0 %v1058_v50  ;;  %v3107_v47 = vld [vmem:[#allocation5 + $0x38] sm:$0xff]   ;;  %v365_v50 = vor.u32 %v363_v44, %v361_v33  ;;  %v1991_v44 = vld [vmem:[#allocation7 + $0x10] sm:$0xff] }
  0x8f   : > { %2511 = vmatprep.mubr.msk.bf16.mxu1 %vm3362_vm0, %v3361_v0  ;;  %2672 = vmatpush3.bf16.msra.mxu0 %v3085_v46  ;;  %v1089_v46 = vrot.slane %v1087_v42, 2  ;;  %v3125_v33 = vld [vmem:[#allocation5 + $0xb8] sm:$0xff]   ;;  %v3363_v42 = vmov 0  }
  0x90   : > { %2655 = vmatprep.mubr.msk.bf16.mxu0 %vm3362_vm0, %v3361_v0  ;;  %2673 = vmatprep.subr.bf16.mxu0 %v3361_v0 }
  0x91   : > { %2528 = vmatpush3.bf16.msra.mxu1 %v3089_v53  ;;  %v644_v53 = vrot.slane %v3607_v15, 1  ;;  %v1090_v55 = vsel %vm1041_vm2, %v1084_v34, %v1089_v46  ;;  %v1396_v34 = vld [vmem:[%s3575_s5 + $0x8] sm:$0xc]  ;;  %3063 = vset.pattern.permute.xlu0 %v3363_v42 }
  0x92   : > { %2529 = vmatprep.subr.bf16.mxu1 %v3361_v0  ;;  %3064 = vset.pattern.permute.xlu1 %v3363_v42 }
  0x93   : > { %2674 = vmatpush3.bf16.msra.mxu0 %v3086_v59  ;;  %v3720_v13 = vsel %vm642_vm3, %v643_v57, %v644_v53  ;;  %v1251_v59 = vsel %vm1248_vm4, %v1249_v17, %v1250_v58  ;;  %2011 = vperm.xlu1 %3064, %v1991_v44   ;;  %v1994_v57 = vld [vmem:[#allocation7 + $0x28] sm:$0xff] }
  0x94   : > { %2675 = vmatprep.subr.bf16.mxu0 %v3361_v0  ;;  %v3130_v17 = vld [vmem:[#allocation5 + $0x1c8] sm:$0xff]  }
  0x95   : > { %2530 = vmatpush3.bf16.msra.mxu1 %v3091_v61  ;;  %v3111_v61 = vld [vmem:[#allocation5 + $0x80] sm:$0xff]  }
  0x96   : > { %2512 = vmatmul.mubr.bf16.gmra.mrb[4].mxu1 %v346_v3  ;;  %2531 = vmatprep.subr.bf16.mxu1 %v3361_v0  ;;  %v3114_v3 = vld [vmem:[#allocation5 + $0x198] sm:$0xff]  }
  0x97   : > { %2656 = vmatmul.mubr.bf16.gmra.mrb[4].mxu0 %v1067_v7  ;;  %2515 = vmatprep.mubr.msk.bf16.mxu1 %vm3362_vm0, %v3361_v0  ;;  %v3117_v7 = vld [vmem:[#allocation5 + $0x1a0] sm:$0xff]  }
  0x98   : > { %2676 = vmatpush3.bf16.msra.mxu0 %v3090_v63  ;;  %2659 = vmatprep.mubr.msk.bf16.mxu0 %vm3362_vm0, %v3361_v0  ;;  %v1252_v63 = vrot.slane %v3627_v36, 2  ;;  %v1254_v36 = vrot.slane %v3640_v49, 2  ;;  %v1256_v49 = vrot.slane %v3663_v6, 2  ;;  %v3763_v6 = vld [vmem:[%s3575_s5 + $0x18] sm:$0xff]  }
  0x99   : > { %2677 = vmatprep.subr.bf16.mxu0 %v3361_v0  ;;  %2532 = vmatpush3.bf16.msra.mxu1 %v3095_v9  ;;  %v3118_v9 = vld [vmem:[#allocation5 + $0xa0] sm:$0xff]   ;;  %v1835_v32 = vrot.slane %v3763_v6, 3 }
  0x9a   : > { %2533 = vmatprep.subr.bf16.mxu1 %v3361_v0  ;;  %v1255_v8 = vsel %vm1248_vm4, %v1252_v63, %v1254_v36  ;;  %v1257_v19 = vsel %vm1248_vm4, %v1254_v36, %v1256_v49  ;;  %2016 = vperm.xlu1 %3064, %v1992_v48   ;;  %v3139_v36 = vld [vmem:[#allocation5 + $0x1e0] sm:$0xff]  }
  0x9b   : > { %v3153_v48 = vld [vmem:[%s3575_s5 + $0x14] sm:$0xff]  }
  0x9c   : > { %2678 = vmatpush3.bf16.msra.mxu0 %v3094_v11  ;;  %v3120_v11 = vld [vmem:[#allocation5 + $0xa8] sm:$0xff]  }
  0x9d   : > { %2679 = vmatprep.subr.bf16.mxu0 %v3361_v0  ;;  %2534 = vmatpush3.bf16.msra.mxu1 %v3096_v22  ;;  %v3759_v22 = vld [vmem:[%s3575_s5 + $0x10] sm:$0xff]  }
  0x9e   : > { %2516 = vmatmul.mubr.bf16.gmra.mrb[8].mxu1 %v354_v24  ;;  %2535 = vmatprep.subr.bf16.mxu1 %v3361_v0  ;;  %v1810_v24 = vld [vmem:[%s3575_s5 + $0x8] sm:$0x8] }
  0x9f   : > { %2660 = vmatmul.mubr.bf16.gmra.mrb[8].mxu0 %v1076_v27  ;;  %2519 = vmatprep.mubr.msk.bf16.mxu1 %vm3362_vm0, %v3361_v0  ;;  %v2360_v26 = vcombine.low %v1810_v24, %v1397_v20  ;;  %v1833_v27 = vrot.slane %v3759_v22, 3 }
  0xa0   : > { %2680 = vmatpush3.bf16.msra.mxu0 %v3097_v25  ;;  %2663 = vmatprep.mubr.msk.bf16.mxu0 %vm3362_vm0, %v3361_v0  ;;  %v266_v25 = vld [vmem:[%s3575_s5 + $0x24] sm:$0x7] }
  0xa1   : > { %2536 = vmatpush3.bf16.msra.mxu1 %v3100_v30  ;;  %2681 = vmatprep.subr.bf16.mxu0 %v3361_v0  ;;  %v1837_v30 = vrot.slane %v3766_v23, 3 }
  0xa2   : > { %2537 = vmatprep.subr.bf16.mxu1 %v3361_v0  ;;  %2026 = vperm.xlu1 %3064, %v1994_v57   ;;  %v3152_v57 = vld [vmem:[#allocation5 + $0x208] sm:$0xff]  }
  0xa3   : > { %v3790_v31 = vsel %vm1831_vm5, %v1835_v32, %v1837_v30 }
  0xa4   : > { %2682 = vmatpush3.bf16.msra.mxu0 %v3101_v35  ;;  %v1832_v35 = vrot.slane %v2360_v26, 3 }
  0xa5   : > { %2538 = vmatpush3.bf16.msra.mxu1 %v3102_v37  ;;  %2683 = vmatprep.subr.bf16.mxu0 %v3361_v0  ;;  %v1989_v37 = vld [vmem:[#allocation7] sm:$0xff] }
  0xa6   : > { %2520 = vmatmul.mubr.bf16.gmra.mrb[12].mxu1 %v362_v38  ;;  %2539 = vmatprep.subr.bf16.mxu1 %v3361_v0  ;;  %v2283_v38 = vcombine.low %v3660_v5, %v266_v25  ;;  %v3796_v5 = vcombine.low %v1396_v34, %v1397_v20  ;;  %v3147_v25 = vld [vmem:[#allocation5 + $0x1f8] sm:$0xff]  }
  0xa7   : > { %2664 = vmatmul.mubr.bf16.gmra.mrb[12].mxu0 %v1085_v39  ;;  %2523 = vmatprep.mubr.msk.bf16.mxu1 %vm3362_vm0, %v3361_v0  ;;  %v3785_v39 = vsel %vm1831_vm5, %v1833_v27, %v1835_v32  ;;  %v3149_v32 = vld [vmem:[%s3575_s5 + $0x4] sm:$0xfe]  }
  0xa8   : > { %2667 = vmatprep.mubr.msk.bf16.mxu0 %vm3362_vm0, %v3361_v0  ;;  %2684 = vmatpush3.bf16.msra.mxu0 %v3103_v41  ;;  %v3793_v41 = vsel %vm1831_vm5, %v1832_v35, %v1833_v27  ;;  %v1452_v46 = vrot.slane %v3796_v5, 2  ;;  %v1622_v20 = vshrl.u32 %v3796_v5, 16  ;;  %v1625_v26 = vshll.u32 %v3796_v5, 16 }
  0xa9   : > { %2540 = vmatpush3.bf16.msra.mxu1 %v3105_v43  ;;  %2685 = vmatprep.subr.bf16.mxu0 %v3361_v0  ;;  %v1259_v43 = vsel %vm1248_vm4, %v1256_v49, %v1258_v28  ;;  %v3142_v49 = vld [vmem:[#allocation5 + $0x1e8] sm:$0xff]   ;;  %v1630_v27 = vshrl.u32 %v3759_v22, 16  ;;  %v1633_v28 = vshll.u32 %v3759_v22, 16 }
  0xaa   : > { %2541 = vmatprep.subr.bf16.mxu1 %v3361_v0  ;;  %2001 = vperm.xlu0 %3063, %v1989_v37   ;;  %v1624_v34 = vrot.slane %v1622_v20, 2  ;;  %v1627_v37 = vrot.slane %v1625_v26, 3  ;;  %v3162_v26 = vld [vmem:[#allocation5 + $0x238] sm:$0xff]  }
  0xab   : > { %v1635_v42 = vrot.slane %v1633_v28, 3 }
  0xac   : > { %2686 = vmatpush3.bf16.msra.mxu0 %v3106_v45  ;;  %v1990_v45 = vld [vmem:[#allocation7 + $0x8] sm:$0xff]  ;;  %v1628_v5 = vor.u32 %v1627_v37, %v1624_v34 }
  0xad   : > { %2542 = vmatpush3.bf16.msra.mxu1 %v3107_v47  ;;  %2707 = vmatprep.subr.bf16.mxu0 %v3361_v0  ;;  %v1453_v47 = vrot.slane %v3759_v22, 2  ;;  %v840_v22 = vrot.slane %v3149_v32, 1 }
  0xae   : > { %2524 = vmatmul.mubr.bf16.gmra.mrb[16].mxu1 %v365_v50  ;;  %2563 = vmatprep.subr.bf16.mxu1 %v3361_v0  ;;  %v1993_v50 = vld [vmem:[#allocation7 + $0x20] sm:$0xff] }
  0xaf   : > { %2668 = vmatmul.mubr.bf16.gmra.mrb[16].mxu0 %v1090_v55  ;;  %2543 = vmatprep.mubr.msk.bf16.mxu1 %vm3362_vm0, %v3361_v0  ;;  %v1454_v51 = vsel %vm1248_vm4, %v1452_v46, %v1453_v47  ;;  %v3132_v55 = vld [vmem:[#allocation5 + $0xc0] sm:$0xff]   ;;  %v1642_v46 = vshll.u32 %v3763_v6, 16 }
  0xb0   : > { %2687 = vmatprep.mubr.msk.bf16.mxu0 %vm3362_vm0, %v3361_v0  ;;  %2006 = vperm.xlu0 %3063, %v1990_v45   ;;  %v1639_v45 = vshrl.u32 %v3763_v6, 16 }
  0xb4   : > { %2021 = vperm.xlu0 %3063, %v1993_v50  }
  0xb6   : > { %2544 = vmatmul.mubr.bf16.vlgmr.msra.gmra.mrb[0].mxu1 %v3604_v14  ;;  %v1253_v14 = vsel %vm1248_vm4, %v1250_v58, %v1252_v63  ;;  %v1455_v58 = vrot.slane %v3763_v6, 2  ;;  %v1996_v63 = vld [vmem:[#allocation7 + $0x38] sm:$0xff] }
  0xb7   : > { %2688 = vmatmul.mubr.bf16.vlgmr.msra.gmra.mrb[0].mxu0 %v1251_v59  ;;  %2547 = vmatprep.mubr.msk.bf16.mxu1 %vm3362_vm0, %v3361_v0  ;;  %v1995_v59 = vld [vmem:[#allocation7 + $0x30] sm:$0xff] }
  0xb8   : > { %2708 = vmatpush3.bf16.msra.mxu0 %v3109_v60  ;;  %2691 = vmatprep.mubr.msk.bf16.mxu0 %vm3362_vm0, %v3361_v0  ;;  %v3134_v60 = vld [vmem:[#allocation5 + $0xc8] sm:$0xff]  }
  0xb9   : > { %2709 = vmatprep.subr.bf16.mxu0 %v3361_v0  ;;  %2564 = vmatpush3.bf16.msra.mxu1 %v3111_v61  ;;  %v3133_v61 = vld [vmem:[#allocation5 + $0x1d0] sm:$0xff]  }
  0xba   : > { %2565 = vmatprep.subr.bf16.mxu1 %v3361_v0  ;;  %2031 = vperm.xlu0 %3063, %v1995_v59  }
  0xbb   : > { %2036 = vperm.xlu1 %3064, %v1996_v63  }
  0xbc   : > { %2710 = vmatpush3.bf16.msra.mxu0 %v3110_v62  ;;  %v3137_v62 = vld [vmem:[#allocation5 + $0xd0] sm:$0xff]  }
  0xbd   : > { %2711 = vmatprep.subr.bf16.mxu0 %v3361_v0  ;;  %2566 = vmatpush3.bf16.msra.mxu1 %v3113_v21  ;;  %v3136_v21 = vld [vmem:[#allocation5 + $0x1d8] sm:$0xff]  }
  0xbe   : > { %2548 = vmatmul.mubr.bf16.gmra.mrb[4].mxu1 %v3607_v15  ;;  %2567 = vmatprep.subr.bf16.mxu1 %v3361_v0  ;;  %v648_v15 = vrot.slane %v3646_v54, 1 }
  0xbf   : > { %2692 = vmatmul.mubr.bf16.gmra.mrb[4].mxu0 %v1253_v14  ;;  %2551 = vmatprep.mubr.msk.bf16.mxu1 %vm3362_vm0, %v3361_v0  ;;  %v1997_v14 = vld [vmem:[#allocation7 + $0x40] sm:$0xff] }
  0xc0   : > { %2712 = vmatpush3.bf16.msra.mxu0 %v3112_v1  ;;  %2695 = vmatprep.mubr.msk.bf16.mxu0 %vm3362_vm0, %v3361_v0  ;;  %v3138_v1 = vld [vmem:[#allocation5 + $0xd8] sm:$0xff]  }
  0xc1   : > { %2713 = vmatprep.subr.bf16.mxu0 %v3361_v0  ;;  %2568 = vmatpush3.bf16.msra.mxu1 %v3115_v2  ;;  %v649_v2 = vsel %vm642_vm3, %v646_v56, %v648_v15 }
  0xc2   : > { %2569 = vmatprep.subr.bf16.mxu1 %v3361_v0  ;;  %2041 = vperm.xlu0 %3063, %v1997_v14  }
  0xc4   : > { %2714 = vmatpush3.bf16.msra.mxu0 %v3114_v3  ;;  %v3833_v3 = vld [vmem:[%s3575_s5 + $0x28] sm:$0xff]  }
  0xc5   : > { %2715 = vmatprep.subr.bf16.mxu0 %v3361_v0  ;;  %2570 = vmatpush3.bf16.msra.mxu1 %v3116_v4  ;;  %v3141_v4 = vld [vmem:[#allocation5 + $0xe0] sm:$0xff]   ;;  %v1660_v14 = vshll.u32 %v3833_v3, 16  ;;  %v1839_v28 = vrot.slane %v3833_v3, 3 }
  0xc6   : > { %2552 = vmatmul.mubr.bf16.gmra.mrb[8].mxu1 %v3630_v40  ;;  %2571 = vmatprep.subr.bf16.mxu1 %v3361_v0  ;;  %v647_v40 = vsel %vm642_vm3, %v644_v53, %v646_v56  ;;  %v1457_v53 = vrot.slane %v3766_v23, 2  ;;  %v843_v56 = vrot.slane %v3153_v48, 1 }
  0xc7   : > { %2696 = vmatmul.mubr.bf16.gmra.mrb[8].mxu0 %v1255_v8  ;;  %2555 = vmatprep.mubr.msk.bf16.mxu1 %vm3362_vm0, %v3361_v0  ;;  %v1998_v8 = vld [vmem:[#allocation7 + $0x48] sm:$0x3f] }
  0xc8   : > { %2716 = vmatpush3.bf16.msra.mxu0 %v3117_v7  ;;  %2699 = vmatprep.mubr.msk.bf16.mxu0 %vm3362_vm0, %v3361_v0  ;;  %v650_v7 = vrot.slane %v3672_v16, 1  ;;  %v3144_v16 = vld [vmem:[#allocation5 + $0x1f0] sm:$0xff]  }
  0xc9   : > { %2572 = vmatpush3.bf16.msra.mxu1 %v3118_v9  ;;  %2717 = vmatprep.subr.bf16.mxu0 %v3361_v0  ;;  %v1459_v9 = vrot.slane %v3833_v3, 2 }
  0xca   : > { %2573 = vmatprep.subr.bf16.mxu1 %v3361_v0  ;;  %2046 = vperm.xlu1 %3064, %v1998_v8   ;;  %v3161_v8 = vld [vmem:[%s3575_s5 + $0x30] ss:$0 sps:$4 sm:$0x33]  }
  0xcb   : > { %v1841_v32 = vrot.slane %v3161_v8, 3 }
  0xcc   : > { %2718 = vmatpush3.bf16.msra.mxu0 %v3119_v10  ;;  %v3143_v10 = vld [vmem:[#allocation5 + $0xe8] sm:$0xff]  }
  0xcd   : > { %2574 = vmatpush3.bf16.msra.mxu1 %v3120_v11  ;;  %2719 = vmatprep.subr.bf16.mxu0 %v3361_v0  ;;  %v651_v11 = vsel %vm642_vm3, %v648_v15, %v650_v7 }
  0xce   : > { %2556 = vmatmul.mubr.bf16.gmra.mrb[12].mxu1 %v3646_v54  ;;  %2575 = vmatprep.subr.bf16.mxu1 %v3361_v0  ;;  %v1458_v54 = vsel %vm1248_vm4, %v1455_v58, %v1457_v53 }
  0xcf   : > { %2700 = vmatmul.mubr.bf16.gmra.mrb[12].mxu0 %v1257_v19  ;;  %2559 = vmatprep.mubr.msk.bf16.mxu1 %vm3362_vm0, %v3361_v0  ;;  %v3146_v19 = vld [vmem:[#allocation5 + $0xf0] sm:$0xff]  }
  0xd0   : > { %2703 = vmatprep.mubr.msk.bf16.mxu0 %vm3362_vm0, %v3361_v0  ;;  %2720 = vmatpush3.bf16.msra.mxu0 %v3121_v12  ;;  %v1460_v12 = vsel %vm1248_vm4, %v1457_v53, %v1459_v9  ;;  %v3156_v53 = vld [vmem:[#allocation5 + $0x218] sm:$0xff]  }
  0xd1   : > { %2576 = vmatpush3.bf16.msra.mxu1 %v3123_v18  ;;  %2721 = vmatprep.subr.bf16.mxu0 %v3361_v0  ;;  %v3145_v18 = vld [vmem:[%s3575_s5 + $0x30] ss:$0 sps:$4 sm:$0x11]  }
  0xd2   : > { %2577 = vmatprep.subr.bf16.mxu1 %v3361_v0  ;;  %v1461_v24 = vrot.slane %v3145_v18, 2 }
  0xd4   : > { %2722 = vmatpush3.bf16.msra.mxu0 %v3124_v29  ;;  %v3148_v29 = vld [vmem:[#allocation5 + $0xf8] sm:$0xff]   ;;  %v1462_v35 = vsel %vm1248_vm4, %v1459_v9, %v1461_v24 }
  0xd5   : > { %2578 = vmatpush3.bf16.msra.mxu1 %v3125_v33  ;;  %2743 = vmatprep.subr.bf16.mxu0 %v3361_v0  ;;  %v3150_v33 = vld [vmem:[%s3575_s5 + $0xc] sm:$0xff]  }
  0xd6   : > { %2560 = vmatmul.mubr.bf16.gmra.mrb[16].mxu1 %v2283_v38  ;;  %2599 = vmatprep.subr.bf16.mxu1 %v3361_v0  ;;  %v1632_v38 = vrot.slane %v1630_v27, 2 }
  0xd7   : > { %2704 = vmatmul.mubr.bf16.gmra.mrb[16].mxu0 %v1259_v43  ;;  %2579 = vmatprep.mubr.msk.bf16.mxu1 %vm3362_vm0, %v3361_v0  ;;  %v841_v43 = vrot.slane %v3150_v33, 1  ;;  %v1842_v33 = vsel %vm1831_vm5, %v1839_v28, %v1841_v32 }
  0xd8   : > { %2723 = vmatprep.mubr.msk.bf16.mxu0 %vm3362_vm0, %v3361_v0  ;;  %v1636_v44 = vor.u32 %v1635_v42, %v1632_v38 }
  0xd9   : > { %v844_v59 = vsel %vm642_vm3, %v841_v43, %v843_v56 }
  0xda   : > { %v1637_v50 = vsel %vm1620_vm6, %v1628_v5, %v1636_v44 }
  0xde   : > { %2580 = vmatmul.mubr.bf16.vlgmr.msra.gmra.mrb[0].mxu1 %v3720_v13  ;;  %v1456_v13 = vsel %vm1248_vm4, %v1453_v47, %v1455_v58  ;;  %v842_v47 = vsel %vm642_vm3, %v840_v22, %v841_v43  ;;  %v1651_v58 = vshll.u32 %v3766_v23, 16 }
  0xdf   : > { %2724 = vmatmul.mubr.bf16.vlgmr.msra.gmra.mrb[0].mxu0 %v1454_v51  ;;  %2583 = vmatprep.mubr.msk.bf16.mxu1 %vm3362_vm0, %v3361_v0  ;;  %v3151_v51 = vld [vmem:[#allocation5 + $0x200] sm:$0xff]  }
  0xe0   : > { %2744 = vmatpush3.bf16.msra.mxu0 %v3129_v52  ;;  %2727 = vmatprep.mubr.msk.bf16.mxu0 %vm3362_vm0, %v3361_v0  ;;  %v1641_v52 = vrot.slane %v1639_v45, 2 }
  0xe1   : > { %2745 = vmatprep.subr.bf16.mxu0 %v3361_v0  ;;  %2600 = vmatpush3.bf16.msra.mxu1 %v3132_v55  ;;  %v1644_v55 = vrot.slane %v1642_v46, 3 }
  0xe2   : > { %2601 = vmatprep.subr.bf16.mxu1 %v3361_v0 }
  0xe3   : > { %v1645_v6 = vor.u32 %v1644_v55, %v1641_v52 }
  0xe4   : > { %2746 = vmatpush3.bf16.msra.mxu0 %v3130_v17  ;;  %v1648_v17 = vshrl.u32 %v3766_v23, 16 }
  0xe5   : > { %2747 = vmatprep.subr.bf16.mxu0 %v3361_v0  ;;  %2602 = vmatpush3.bf16.msra.mxu1 %v3134_v60  ;;  %v3155_v60 = vld [vmem:[%s3575_s5 + $0x1c] sm:$0xff]  }
  0xe6   : > { %2584 = vmatmul.mubr.bf16.gmra.mrb[4].mxu1 %v647_v40  ;;  %2603 = vmatprep.subr.bf16.mxu1 %v3361_v0  ;;  %v1646_v40 = vsel %vm1620_vm6, %v1636_v44, %v1645_v6  ;;  %v845_v15 = vrot.slane %v3155_v60, 1 }
  0xe7   : > { %2728 = vmatmul.mubr.bf16.gmra.mrb[4].mxu0 %v1456_v13  ;;  %2587 = vmatprep.mubr.msk.bf16.mxu1 %vm3362_vm0, %v3361_v0  ;;  %v3154_v13 = vld [vmem:[#allocation5 + $0x210] sm:$0xff]  }
  0xe8   : > { %2748 = vmatpush3.bf16.msra.mxu0 %v3133_v61  ;;  %2731 = vmatprep.mubr.msk.bf16.mxu0 %vm3362_vm0, %v3361_v0  ;;  %v1650_v61 = vrot.slane %v1648_v17, 2 }
  0xe9   : > { %2749 = vmatprep.subr.bf16.mxu0 %v3361_v0  ;;  %2604 = vmatpush3.bf16.msra.mxu1 %v3137_v62  ;;  %v1653_v62 = vrot.slane %v1651_v58, 3 }
  0xea   : > { %2605 = vmatprep.subr.bf16.mxu1 %v3361_v0 }
  0xeb   : > { %v1654_v63 = vor.u32 %v1653_v62, %v1650_v61 }
  0xec   : > { %2750 = vmatpush3.bf16.msra.mxu0 %v3136_v21  ;;  %v1657_v21 = vshrl.u32 %v3833_v3, 16 }
  0xed   : > { %2751 = vmatprep.subr.bf16.mxu0 %v3361_v0  ;;  %2606 = vmatpush3.bf16.msra.mxu1 %v3138_v1  ;;  %v846_v1 = vsel %vm642_vm3, %v843_v56, %v845_v15 }
  0xee   : > { %2588 = vmatmul.mubr.bf16.gmra.mrb[8].mxu1 %v649_v2  ;;  %2607 = vmatprep.subr.bf16.mxu1 %v3361_v0  ;;  %v3158_v2 = vld [vmem:[%s3575_s5 + $0x24] sm:$0xff]  }
  0xef   : > { %2732 = vmatmul.mubr.bf16.gmra.mrb[8].mxu0 %v1458_v54  ;;  %2591 = vmatprep.mubr.msk.bf16.mxu1 %vm3362_vm0, %v3361_v0  ;;  %v1655_v54 = vsel %vm1620_vm6, %v1645_v6, %v1654_v63  ;;  %v847_v9 = vrot.slane %v3158_v2, 1 }
  0xf0   : > { %2752 = vmatpush3.bf16.msra.mxu0 %v3139_v36  ;;  %2735 = vmatprep.mubr.msk.bf16.mxu0 %vm3362_vm0, %v3361_v0  ;;  %v3157_v36 = vld [vmem:[#allocation5 + $0x220] sm:$0xff]  }
  0xf1   : > { %2608 = vmatpush3.bf16.msra.mxu1 %v3141_v4  ;;  %2753 = vmatprep.subr.bf16.mxu0 %v3361_v0  ;;  %v1659_v4 = vrot.slane %v1657_v21, 2 }
  0xf2   : > { %2609 = vmatprep.subr.bf16.mxu1 %v3361_v0 }
  0xf4   : > { %2754 = vmatpush3.bf16.msra.mxu0 %v3142_v49 }
  0xf5   : > { %2610 = vmatpush3.bf16.msra.mxu1 %v3143_v10  ;;  %2755 = vmatprep.subr.bf16.mxu0 %v3361_v0  ;;  %v3159_v10 = vld [vmem:[#allocation5 + $0x228] sm:$0xff]  }
  0xf6   : > { %2592 = vmatmul.mubr.bf16.gmra.mrb[12].mxu1 %v651_v11  ;;  %2611 = vmatprep.subr.bf16.mxu1 %v3361_v0  ;;  %v1666_v11 = vshrl.u32 %v3161_v8, 16 }
  0xf7   : > { %2736 = vmatmul.mubr.bf16.gmra.mrb[12].mxu0 %v1460_v12  ;;  %2595 = vmatprep.mubr.msk.bf16.mxu1 %vm3362_vm0, %v3361_v0  ;;  %v1669_v12 = vshll.u32 %v3161_v8, 16 }
  0xf8   : > { %2739 = vmatprep.mubr.msk.bf16.mxu0 %vm3362_vm0, %v3361_v0  ;;  %2756 = vmatpush3.bf16.msra.mxu0 %v3144_v16  ;;  %v848_v16 = vsel %vm642_vm3, %v845_v15, %v847_v9  ;;  %v1668_v20 = vrot.slane %v1666_v11, 2 }
  0xf9   : > { %2612 = vmatpush3.bf16.msra.mxu1 %v3146_v19  ;;  %2757 = vmatprep.subr.bf16.mxu0 %v3361_v0  ;;  %v3160_v19 = vld [vmem:[#allocation5 + $0x230] sm:$0xff]   ;;  %v1671_v24 = vrot.slane %v1669_v12, 3 }
  0xfa   : > { %2613 = vmatprep.subr.bf16.mxu1 %v3361_v0 }
  0xfc   : > { %2758 = vmatpush3.bf16.msra.mxu0 %v3147_v25  ;;  %v1672_v25 = vor.u32 %v1671_v24, %v1668_v20 }
  0xfd   : > { %2614 = vmatpush3.bf16.msra.mxu1 %v3148_v29  ;;  %2779 = vmatprep.subr.bf16.mxu0 %v3361_v0  ;;  %v1840_v29 = vsel %vm1831_vm5, %v1837_v30, %v1839_v28 }
  0xfe   : > { %2596 = vmatmul.mubr.bf16.gmra.mrb[16].mxu1 %v650_v7  ;;  %2815 = vmatprep.subr.bf16.mxu1 %v3361_v0  ;;  %v1662_v7 = vrot.slane %v1660_v14, 3 }
  0xff   : > { %2740 = vmatmul.mubr.bf16.gmra.mrb[16].mxu0 %v1462_v35  ;;  %2615 = vmatprep.mubr.msk.bf16.mxu1 %vm3362_vm0, %v3361_v0 }
 0x100   : > { %2759 = vmatprep.mubr.msk.bf16.mxu0 %vm3362_vm0, %v3361_v0  ;;  %v1663_v49 = vor.u32 %v1662_v7, %v1659_v4 }
 0x102   : > { %v1664_v18 = vsel %vm1620_vm6, %v1654_v63, %v1663_v49  ;;  %v1673_v27 = vsel %vm1620_vm6, %v1663_v49, %v1672_v25 }
 0x106   : > { %2616 = vmatmul.mubr.bf16.vlgmr.msra.gmra.mrb[0].mxu1 %v842_v47 }
 0x107   : > { %2760 = vmatmul.mubr.bf16.vlgmr.msra.gmra.mrb[0].mxu0 %v1637_v50  ;;  %2619 = vmatprep.mubr.msk.bf16.mxu1 %vm3362_vm0, %v3361_v0 }
 0x108   : > { %2780 = vmatpush3.bf16.msra.mxu0 %v3151_v51  ;;  %2763 = vmatprep.mubr.msk.bf16.mxu0 %vm3362_vm0, %v3361_v0 }
 0x109   : > { %2781 = vmatprep.subr.bf16.mxu0 %v3361_v0  ;;  %2823 = vmatpush3.bf16.msra.mxu1 %v3151_v51 }
 0x10a   : > { %2816 = vmatprep.subr.bf16.mxu1 %v3361_v0 }
 0x10c   : > { %2782 = vmatpush3.bf16.msra.mxu0 %v3152_v57 }
 0x10d   : > { %2783 = vmatprep.subr.bf16.mxu0 %v3361_v0  ;;  %2824 = vmatpush3.bf16.msra.mxu1 %v3152_v57 }
 0x10e   : > { %2620 = vmatmul.mubr.bf16.gmra.mrb[4].mxu1 %v844_v59  ;;  %2817 = vmatprep.subr.bf16.mxu1 %v3361_v0 }
 0x10f   : > { %2764 = vmatmul.mubr.bf16.gmra.mrb[4].mxu0 %v1646_v40  ;;  %2623 = vmatprep.mubr.msk.bf16.mxu1 %vm3362_vm0, %v3361_v0 }
 0x110   : > { %2784 = vmatpush3.bf16.msra.mxu0 %v3154_v13  ;;  %2767 = vmatprep.mubr.msk.bf16.mxu0 %vm3362_vm0, %v3361_v0 }
 0x111   : > { %2785 = vmatprep.subr.bf16.mxu0 %v3361_v0  ;;  %2825 = vmatpush3.bf16.msra.mxu1 %v3154_v13 }
 0x112   : > { %2818 = vmatprep.subr.bf16.mxu1 %v3361_v0  ;;  %v2012_v61 = vpop.permute.xlu1 %2011 }
 0x114   : > { %2786 = vmatpush3.bf16.msra.mxu0 %v3156_v53 }
 0x115   : > { %2787 = vmatprep.subr.bf16.mxu0 %v3361_v0  ;;  %2826 = vmatpush3.bf16.msra.mxu1 %v3156_v53 }
 0x116   : > { %2624 = vmatmul.mubr.bf16.gmra.mrb[8].mxu1 %v846_v1  ;;  %2819 = vmatprep.subr.bf16.mxu1 %v3361_v0 }
 0x117   : > { %2768 = vmatmul.mubr.bf16.gmra.mrb[8].mxu0 %v1655_v54  ;;  %2627 = vmatprep.mubr.msk.bf16.mxu1 %vm3362_vm0, %v3361_v0 }
 0x118   : > { %2788 = vmatpush3.bf16.msra.mxu0 %v3157_v36  ;;  %2771 = vmatprep.mubr.msk.bf16.mxu0 %vm3362_vm0, %v3361_v0 }
 0x119   : > { %2827 = vmatpush3.bf16.msra.mxu1 %v3157_v36  ;;  %2789 = vmatprep.subr.bf16.mxu0 %v3361_v0  ;;  %v2017_v49 = vpop.permute.xlu1 %2016 }
 0x11a   : > { %2820 = vmatprep.subr.bf16.mxu1 %v3361_v0 }
 0x11c   : > { %2790 = vmatpush3.bf16.msra.mxu0 %v3159_v10 }
 0x11d   : > { %2828 = vmatpush3.bf16.msra.mxu1 %v3159_v10  ;;  %2791 = vmatprep.subr.bf16.mxu0 %v3361_v0 }
 0x11e   : > { %2628 = vmatmul.mubr.bf16.gmra.mrb[12].mxu1 %v848_v16  ;;  %2821 = vmatprep.subr.bf16.mxu1 %v3361_v0 }
 0x11f   : > { %2772 = vmatmul.mubr.bf16.gmra.mrb[12].mxu0 %v1664_v18  ;;  %2631 = vmatprep.mubr.msk.bf16.mxu1 %vm3362_vm0, %v3361_v0 }
 0x120   : > { %2775 = vmatprep.mubr.msk.bf16.mxu0 %vm3362_vm0, %v3361_v0  ;;  %2792 = vmatpush3.bf16.msra.mxu0 %v3160_v19 }
 0x121   : > { %2829 = vmatpush3.bf16.msra.mxu1 %v3160_v19  ;;  %2793 = vmatprep.subr.bf16.mxu0 %v3361_v0 }
 0x122   : > { %2822 = vmatprep.subr.bf16.mxu1 %v3361_v0 }
 0x124   : > { %2794 = vmatpush3.bf16.msra.mxu0 %v3162_v26 }
 0x125   : > { %2830 = vmatpush3.bf16.msra.mxu1 %v3162_v26 }
 0x126   : > { %2632 = vmatmul.mubr.bf16.gmra.mrb[16].mxu1 %v847_v9 }
 0x127   : > { %2776 = vmatmul.mubr.bf16.gmra.mrb[16].mxu0 %v1673_v27  ;;  %2807 = vmatprep.mubr.msk.bf16.mxu1 %vm3362_vm0, %v3361_v0 }
 0x128   : > { %2795 = vmatprep.mubr.msk.bf16.mxu0 %vm3362_vm0, %v3361_v0 }
 0x129   : > { %v2002_v13 = vpop.permute.xlu0 %2001 }
 0x12e   : > { %2808 = vmatmul.mubr.bf16.vlgmr.msra.gmra.mrb[20].mxu1 %v1840_v29 }
 0x12f   : > { %2796 = vmatmul.mubr.bf16.vlgmr.msra.gmra.mrb[0].mxu0 %v3793_v41  ;;  %2811 = vmatprep.mubr.msk.bf16.mxu1 %vm3362_vm0, %v3361_v0  ;;  %v2007_v9 = vpop.permute.xlu0 %2006 }
 0x130   : > { %2799 = vmatprep.mubr.msk.bf16.mxu0 %vm3362_vm0, %v3361_v0 }
 0x136   : > { %2812 = vmatmul.mubr.bf16.gmra.mrb[24].mxu1 %v1842_v33 }
 0x137   : > { %2800 = vmatmul.mubr.bf16.gmra.mrb[4].mxu0 %v3785_v39 }
 0x138   : > { %2803 = vmatprep.mubr.msk.bf16.mxu0 %vm3362_vm0, %v3361_v0 }
 0x13f   : > { %2804 = vmatmul.mubr.bf16.gmra.mrb[8].mxu0 %v3790_v31 }
 0x1d9   : > { %v936_v23 = vpop.f32.mrb[0].mxu1 }
 0x1da   : > { %v2617_v30 = vpop.f32.mrb[1].mxu1 }
 0x1db   : > { %v939_v41 = vpop.f32.mrb[2].mxu1 }
 0x1dc   : > { %v2618_v3 = vpop.f32.mrb[3].mxu1 }
 0x1e1   : > { %v944_v34 = vpop.f32.mrb[4].mxu1 }
 0x1e2   : > { %v2621_v35 = vpop.f32.mrb[5].mxu1 }
 0x1e3   : > { %v3936_v37 = vpop.f32.mrb[6].mxu1  ;;  %v2022_v35 = vpop.permute.xlu0 %2021 }
 0x1e4   : > { %v2622_v38 = vpop.f32.mrb[7].mxu1 }
 0x1e9   : > { %v3938_v42 = vpop.f32.mrb[8].mxu1 }
 0x1ea   : > { %v2625_v22 = vpop.f32.mrb[9].mxu1 }
 0x1eb   : > { %v3940_v43 = vpop.f32.mrb[10].mxu1 }
 0x1ec   : > { %v2626_v39 = vpop.f32.mrb[11].mxu1 }
 0x1f1   : > { %v960_v5 = vpop.f32.mrb[12].mxu1 }
 0x1f2   : > { %v1785_v44 = vpop.f32.mrb[12].mxu0  ;;  %v2629_v0 = vpop.f32.mrb[13].mxu1 }
 0x1f3   : > { %v2837_v45 = vadd.f32 %v1785_v44, %v960_v5  ;;  %v2773_v31 = vpop.f32.mrb[13].mxu0  ;;  %v963_v46 = vpop.f32.mrb[14].mxu1 }
 0x1f4   : > { %v1788_v47 = vpop.f32.mrb[14].mxu0  ;;  %v2630_v48 = vpop.f32.mrb[15].mxu1 }
 0x1f5   : > { %v2839_v50 = vadd.f32 %v1788_v47, %v963_v46  ;;  %v2774_v51 = vpop.f32.mrb[15].mxu0  ;;  %v2032_v47 = vpop.permute.xlu0 %2031 }
 0x1f9   : > { %v968_v52 = vpop.f32.mrb[16].mxu1 }
 0x1fa   : > { %v1793_v55 = vpop.f32.mrb[16].mxu0  ;;  %v2633_v56 = vpop.f32.mrb[17].mxu1 }
 0x1fb   : > { %v2841_v57 = vadd.f32 %v1793_v55, %v968_v52  ;;  %v2777_v6 = vpop.f32.mrb[17].mxu0  ;;  %v971_v17 = vpop.f32.mrb[18].mxu1 }
 0x1fc   : > { %v1796_v58 = vpop.f32.mrb[18].mxu0  ;;  %v2634_v59 = vpop.f32.mrb[19].mxu1 }
 0x1fd   : > { %v2843_v60 = vadd.f32 %v1796_v58, %v971_v17  ;;  %v2778_v40 = vpop.f32.mrb[19].mxu0 }
 0x201   : > { %v1954_v62 = vpop.f32.mrb[20].mxu1 }
 0x202   : > { %v1930_v15 = vpop.f32.mrb[0].mxu0  ;;  %v3943_v63 = vadd.f32 %v2837_v45, %v1954_v62  ;;  %v2809_v53 = vpop.f32.mrb[21].mxu1 }
 0x203   : > { %v2831_v21 = vadd.f32 %v1930_v15, %v936_v23  ;;  %v2797_v14 = vpop.f32.mrb[1].mxu0  ;;  %v1957_v1 = vpop.f32.mrb[22].mxu1 }
 0x204   : > { %1985 = vst [vmem:[%s3945_s23 + $0x30] sm:$0xff] %v3943_v63  ;;  %v1933_v2 = vpop.f32.mrb[2].mxu0  ;;  %v3949_v54 = vadd.f32 %v2839_v50, %v1957_v1  ;;  %v2810_v36 = vpop.f32.mrb[23].mxu1 }
 0x205   : > { %1979 = vst [vmem:[%s3945_s23] sm:$0xff] %v2831_v21  ;;  %v2049_v4 = vmul.f32 %v2831_v21, %v2002_v13  ;;  %v2832_v7 = vadd.f32 %v1933_v2, %v939_v41  ;;  %v2798_v8 = vpop.f32.mrb[3].mxu0  ;;  %v2027_v23 = vpop.permute.xlu1 %2026 }
 0x206   : > { %1986 = vst [vmem:[%s3945_s23 + $0x38] sm:$0xff] %v3949_v54 }
 0x207   : > { %1980 = vst [vmem:[%s3945_s23 + $0x8] sm:$0xff] %v2832_v7  ;;  %v2050_v10 = vmul.f32 %v2832_v7, %v2007_v9  ;;  %v2077_v11 = vmul.f32 %v2831_v21, %v2049_v4 }
 0x209   : > { %v2059_v12 = vadd.f32 %v2050_v10, %v2049_v4  ;;  %v2078_v16 = vmul.f32 %v2832_v7, %v2050_v10  ;;  %v1962_v18 = vpop.f32.mrb[24].mxu1  ;;  %v2037_v45 = vpop.permute.xlu1 %2036 }
 0x20a   : > { %v1938_v19 = vpop.f32.mrb[4].mxu0  ;;  %v3955_v20 = vadd.f32 %v2841_v57, %v1962_v18  ;;  %v2813_v24 = vpop.f32.mrb[25].mxu1 }
 0x20b   : > { %v2087_v25 = vadd.f32 %v2078_v16, %v2077_v11  ;;  %v2833_v26 = vadd.f32 %v1938_v19, %v944_v34  ;;  %v2801_v27 = vpop.f32.mrb[5].mxu0  ;;  %v1965_v28 = vpop.f32.mrb[26].mxu1 }
 0x20c   : > { %1987 = vst [vmem:[%s3945_s23 + $0x40] sm:$0xff] %v3955_v20  ;;  %v1941_v29 = vpop.f32.mrb[6].mxu0  ;;  %v3959_v32 = vadd.f32 %v2843_v60, %v1965_v28  ;;  %v2814_v33 = vpop.f32.mrb[27].mxu1 }
 0x20d   : > { %1981 = vst [vmem:[%s3945_s23 + $0x10] sm:$0xff] %v2833_v26  ;;  %v2051_v30 = vmul.f32 %v2833_v26, %v2012_v61  ;;  %v2834_v41 = vadd.f32 %v1941_v29, %v3936_v37  ;;  %v2802_v3 = vpop.f32.mrb[7].mxu0  ;;  %v2047_v55 = vpop.permute.xlu1 %2046 }
 0x20e   : > { %1988 = vst [vmem:[%s3945_s23 + $0x48] sm:$0x3f] %v3959_v32 }
 0x20f   : > { %v2060_v34 = vadd.f32 %v2059_v12, %v2051_v30  ;;  %v2079_v38 = vmul.f32 %v2833_v26, %v2051_v30  ;;  %1982 = vst [vmem:[%s3945_s23 + $0x18] sm:$0xff] %v2834_v41  ;;  %v2052_v22 = vmul.f32 %v2834_v41, %v2017_v49 }
 0x211   : > { %v2088_v39 = vadd.f32 %v2087_v25, %v2079_v38  ;;  %v2061_v5 = vadd.f32 %v2060_v34, %v2052_v22  ;;  %v2080_v44 = vmul.f32 %v2834_v41, %v2052_v22 }
 0x212   : > { %v1946_v0 = vpop.f32.mrb[8].mxu0 }
 0x213   : > { %v2089_v31 = vadd.f32 %v2088_v39, %v2080_v44  ;;  %v2835_v37 = vadd.f32 %v1946_v0, %v3938_v42  ;;  %v2805_v46 = vpop.f32.mrb[9].mxu0  ;;  %v2055_v42 = vmul.f32 %v3943_v63, %v2032_v47 }
 0x214   : > { %v1949_v48 = vpop.f32.mrb[10].mxu0 }
 0x215   : > { %1983 = vst [vmem:[%s3945_s23 + $0x20] sm:$0xff] %v2835_v37  ;;  %v2053_v50 = vmul.f32 %v2835_v37, %v2022_v35  ;;  %v2836_v51 = vadd.f32 %v1949_v48, %v3940_v43  ;;  %v2806_v52 = vpop.f32.mrb[11].mxu0 }
 0x217   : > { %v2062_v56 = vadd.f32 %v2061_v5, %v2053_v50  ;;  %v2081_v57 = vmul.f32 %v2835_v37, %v2053_v50  ;;  %1984 = vst [vmem:[%s3945_s23 + $0x28] sm:$0xff] %v2836_v51  ;;  %v2054_v6 = vmul.f32 %v2836_v51, %v2027_v23 }
 0x218   : > { %3263 = shalt.err (!%p3260_p1)
}
 0x219   : > { %s3264_s14 = scalar_lea.hbm %s3972_s8, 1280  ;;  %s3268_s5 = scalar_lea.hbm %s4065_s3, 2560 }
 0x21a   : > { %p3265_p13 = scmp.ne.s32.totalorder %s3972_s8, %s3264_s14  ;;  %p3269_p4 = scmp.lt.u32.totalorder %s3972_s8, %s4065_s3 }
 0x21b   : > { %p3270_p7 = scmp.lt.u32.totalorder %s3268_s5, %s3264_s14  ;;  %p3272_p11 = scmp.lt.u32.totalorder %s3264_s14, %s3972_s8 }
 0x21c   : > { %p3266_p6 = pnand %p3265_p13, %p4080_p0 }
 0x21d   : > { %p3271_p8 = por %p3270_p7, %p3269_p4 }
 0x21e   : > { %p3267_p10 = pneg %p3266_p6 }
 0x21f   : > { %p3273_p2 = por %p3272_p11, %p3271_p8 }
 0x221   : > { %p3274_p3 = pnand %p3273_p2, %p3267_p10 }
 0x223   : > { %3277 = shalt.err (!%p3274_p3)
}
 0x224   : > { %s3365_s11 = smov 128   ;;  %s3366_s30 = smov 8   ;;  %v2056_v43 = vmul.f32 %v3949_v54, %v2037_v45  ;;  %v2090_v17 = vadd.f32 %v2089_v31, %v2081_v57  ;;  %v2063_v58 = vadd.f32 %v2062_v56, %v2054_v6  ;;  %v2082_v59 = vmul.f32 %v2836_v51, %v2054_v6  ;;  %v2042_v60 = vpop.permute.xlu0 %2041 }
 0x225   : > { %2992 = dma.vmem_to_hbm [thread:$0]  (%p4080_p0), %s3976_s12, 1280, %s3972_s8, %s2105_s9, %s3365_s11, %s3365_s11, %s3366_s30   ;;  %v2058_v40 = vmul.f32 %v3959_v32, %v2047_v55  ;;  %v2083_v13 = vmul.f32 %v3943_v63, %v2055_v42  ;;  %v2057_v61 = vmul.f32 %v3955_v20, %v2042_v60 }
 0x226   : > { %v2064_v62 = vadd.f32 %v2063_v58, %v2055_v42  ;;  %v2091_v15 = vadd.f32 %v2090_v17, %v2082_v59  ;;  %v2084_v53 = vmul.f32 %v3949_v54, %v2056_v43  ;;  %s2269_s12 = sshll.u32 %s3571_s10, 1  ;;  %s2371_s25 = sshll.u32 %s3414_s19, 5 }
 0x227   : > { %v2086_v1 = vmul.f32 %v3959_v32, %v2058_v40  ;;  %v2085_v2 = vmul.f32 %v3955_v20, %v2057_v61  ;;  %v2068_v7 = vsel %vm1248_vm4, %v2058_v40, 0.0  ;;  %s255_s8 = scalar_lea.vmem [#allocation9], %s2269_s12  ;;  %s4018_s29 = scalar_lea.hbm %s4066_s4, %s2371_s25 }
 0x228   : > { %v2065_v21 = vadd.f32 %v2064_v62, %v2056_v43  ;;  %v2092_v14 = vadd.f32 %v2091_v15, %v2083_v13  ;;  %s2139_s9 = sshll.u32 %s255_s8, 4  ;;  %s2110_s7 = scalar_lea.sflag [#allocation10], %s3571_s10  ;;  %s4020_s9 = int_to_ptr.vmem [resolvable:$true] %s2139_s9 }
 0x229   : > { %v2095_v9 = vsel %vm1248_vm4, %v2086_v1, 0.0  ;;  %s3278_s14 = scalar_lea.vmem %s4020_s9, 32  ;;  %s3367_s19 = smov [#allocation9]  }
 0x22a   : > { %v2066_v36 = vadd.f32 %v2065_v21, %v2057_v61  ;;  %v2093_v4 = vadd.f32 %v2092_v14, %v2084_v53  ;;  %p3279_p5 = scmp.ne.s32.totalorder %s4020_s9, %s3278_s14  ;;  %s3282_s20 = sshll.u32 %s3367_s19, 4  ;;  %s3283_s20 = int_to_ptr.vmem [resolvable:$false] %s3282_s20 }
 0x22b   : > { %s3284_s28 = scalar_lea.vmem %s3283_s20, 64  ;;  %p3285_p1 = scmp.lt.s32.totalorder %s4020_s9, %s3283_s20 }
 0x22c   : > { %v2069_v8 = vadd.f32 %v2068_v7, %v2066_v36  ;;  %v2094_v63 = vadd.f32 %v2093_v4, %v2085_v2  ;;  %p3280_p9 = pnand %p3279_p5, %p4080_p0  ;;  %p3286_p13 = scmp.lt.s32.totalorder %s3284_s28, %s3278_s14 }
 0x22e   : > { %v2070_v49 = vrot.slane %v2069_v8, 4  ;;  %v2096_v10 = vadd.f32 %v2095_v9, %v2094_v63  ;;  %p3281_p12 = pneg %p3280_p9  ;;  %p3287_p6 = por %p3286_p13, %p3285_p1 }
 0x230   : > { %v2097_v11 = vrot.slane %v2096_v10, 4  ;;  %v2071_v12 = vadd.f32 %v2070_v49, %v2069_v8  ;;  %p3288_p10 = pnand %p3287_p6, %p3281_p12 }
 0x232   : > { %v2072_v54 = vrot.slane %v2071_v12, 2  ;;  %v2098_v16 = vadd.f32 %v2097_v11, %v2096_v10 }
 0x234   : > { %v2073_v18 = vadd.f32 %v2072_v54, %v2071_v12  ;;  %v2099_v19 = vrot.slane %v2098_v16, 2 }
 0x236   : > { %v2074_v20 = vrot.slane %v2073_v18, 1  ;;  %v2100_v24 = vadd.f32 %v2099_v19, %v2098_v16 }
 0x238   : > { %v2075_v25 = vadd.f32 %v2074_v20, %v2073_v18  ;;  %v2101_v26 = vrot.slane %v2100_v24, 1 }
 0x23a   : > { %2076 = vst [vmem:[%s255_s8] sm:$0x1] %v2075_v25  ;;  %v2102_v27 = vadd.f32 %v2101_v26, %v2100_v24 }
 0x23c   : > { %2103 = vst [vmem:[%s255_s8 + $0x1] sm:$0x1] %v2102_v27 }
 0x23d   : > { %3291 = shalt.err (!%p3288_p10)
}
 0x23e   : > { %s3292_s10 = scalar_lea.hbm %s4018_s29, 32  ;;  %s3296_s23 = scalar_lea.hbm %s4066_s4, 64 }
 0x23f   : > { %p3293_p4 = scmp.ne.s32.totalorder %s4018_s29, %s3292_s10  ;;  %p3297_p11 = scmp.lt.u32.totalorder %s4018_s29, %s4066_s4 }
 0x240   : > { %p3298_p2 = scmp.lt.u32.totalorder %s3296_s23, %s3292_s10  ;;  %p3300_p5 = scmp.lt.u32.totalorder %s3292_s10, %s4018_s29 }
 0x241   : > { %p3294_p7 = pnand %p3293_p4, %p4080_p0 }
 0x242   : > { %p3299_p3 = por %p3298_p2, %p3297_p11 }
 0x243   : > { %p3295_p8 = pneg %p3294_p7 }
 0x244   : > { %p3301_p9 = por %p3300_p5, %p3299_p3 }
 0x246   : > { %p3302_p12 = pnand %p3301_p9, %p3295_p8 }
 0x248   : > { %3305 = shalt.err (!%p3302_p12)
}
 0x249   : > { %2993 = dma.vmem_to_hbm [thread:$0]  (%p4080_p0), %s4020_s9, 32, %s4018_s29, %s2110_s7  }
 0x24a PF: > { %s2151_s12 = sand.u32 1, %s3340_s15   ;;  %p4081_p1 = scmp.ne.s32.totalorder %s4071_s22, 0 }
 0x24b   : > { %p4082_p13 = scmp.ge.s32.totalorder %s3352_s18, 2  ;;  %s2152_s25 = scalar_lea.sflag [#allocation4], %s2151_s12 }
 0x24d   : > { %p3008_p6 = pnand %p4082_p13, %p4081_p1 }
 0x24f   : > { %3331 = dma.done.wait (!%p3008_p6), %s2152_s25, 1280  }
 0x250   : > { %3333 = vsyncadd (!%p3008_p6), %s2152_s25, 4294966016  ;;  %s2161_s8 = scalar_lea.sflag [#allocation10], %s2151_s12 }
 0x251   : > { %3335 = dma.done.wait (!%p3008_p6), %s2161_s8, 32  }
 0x252   : > { %3337 = vsyncadd (!%p3008_p6), %s2161_s8, 4294967264  ;;  %p22_p0 = scmp.ge.s32.totalorder %s3506_s13, 4   ;;  %s4083_s15 = smov %s3344_s16 }
 0x253   : > { %s4084_s16 = smov %s3348_s17  ;;  %s4085_s17 = smov %s3515_s24 }
 0x254   : > { %s4086_s18 = smov %s3506_s13  ;;  %24 = sbr.rel (!%p22_p0) target bundleno = 8 (0x8), region = 110 }
 0x25b   :  { %2166 = vsyncpa [#allocation3], 1 }
 0x25c   :  { %2168 = vsyncpa [#allocation3 + $0x1], 1 }
 0x25d   :  { %2169 = vsyncpa [#allocation6], 1 }
 0x25e   :  { %2170 = vsyncpa [#allocation4], 1 }
 0x25f   :  { %2172 = vsyncpa [#allocation4 + $0x1], 1 }
 0x260   :  { %2173 = vsyncpa [#allocation10], 1 }
 0x261   :  { %2175 = vsyncpa [#allocation10 + $0x1], 1 }

// kernel: downsample_forward.40
= control target key start
LH: loop header
LB: loop body
LE: loop exit
PB: predicated region body
PF: predicated region fallthrough
CT: control target
= control target key end

     0   :  { %s1846_s0 = inlined_call_operand.hbm [shape: f32[2,78,128], index: 0, kind: input, shape index: {}]   ;;  %s1847_s1 = inlined_call_operand.hbm [shape: f32[2,2,128], index: 1, kind: input, shape index: {}]   ;;  %s1848_s2 = inlined_call_operand.hbm [shape: f32[1,128], index: 2, kind: input, shape index: {}]   ;;  %s1849_s3 = inlined_call_operand.hbm [shape: f32[1,128], index: 3, kind: input, shape index: {}]   ;;  %s1850_s4 = inlined_call_operand.hbm [shape: f32[78,1], index: 4, kind: input, shape index: {}]   ;;  %s1851_s5 = inlined_call_operand.hbm [shape: bf16[2,100,128], index: 5, kind: input, shape index: {}]   ;;  %s1852_s6 = inlined_call_operand.hbm [shape: bf16[2,100,128], index: 6, kind: output, shape index: {}]  }
   0x1   :  { %1858 = sst [smem:[#allocation19_spill]] %s1846_s0 }
   0x2   :  { %1859 = sst [smem:[#allocation20_spill]] %s1847_s1 }
   0x3   :  { %1860 = sst [smem:[#allocation21_spill]] %s1848_s2 }
   0x4   :  { %11 = vsyncpa [#allocation3], 0 }
   0x5   :  { %13 = vsyncpa [#allocation3 + $0x1], 0 }
   0x6   :  { %14 = vsyncpa [#allocation6], 0 }
   0x7   :  { %15 = vsyncpa [#allocation9], 0 }
   0x8   :  { %16 = vsyncpa [#allocation12], 0 }
   0x9   :  { %18 = vsyncpa [#allocation12 + $0x1], 0 }
   0xa   :  { %19 = vsyncpa [#allocation4], 0 }
   0xb   :  { %21 = vsyncpa [#allocation4 + $0x1], 0  ;;  %s1397_s21 = smov 0   ;;  %s1399_s22 = smov 0  }
   0xc   :  { %s1401_s23 = smov 0   ;;  %s1403_s24 = smov 0  }
   0xd LB: > { %s1418_s25 = sadd.s32 4294967295, %s1343_s24   ;;  %s923_s26 = sadd.s32 4294967294, %s1343_s24   ;;  %s1343_s24 = sphi %s1403_s24, %s1889_s24   ;;  %s1339_s23 = sphi %s1401_s23, %s1888_s23   ;;  %s1335_s22 = sphi %s1399_s22, %s1887_s22   ;;  %s1331_s21 = sphi %s1397_s21, %s1886_s21  }
   0xe   : > { %p47_p0 = scmp.ne.s32.totalorder %s1335_s22, %s1331_s21  ;;  %p1853_p1 = scmp.eq.s32.totalorder %s1418_s25, 0 }
   0xf   : > { %p187_p3 = scmp.eq.s32.totalorder %s923_s26, 1  ;;  %p924_p5 = scmp.ge.s32.totalorder %s1343_s24, 1 }
  0x10   : > { %p1427_p4 = por %p1853_p1, %p47_p0  ;;  %p194_p7 = scmp.lt.s32.totalorder %s1343_s24, 3 }
  0x11   : > { %p1432_p6 = por %p187_p3, %p47_p0  ;;  %s1345_s30 = smov [#allocation5]  }
  0x12   : > { %s1861_s27 = scalar_select %p1427_p4, 1, 0 }
  0x13   : > { %s1862_s28 = scalar_select %p1432_p6, 1, 0 }
  0x14   : > { %p1437_p8 = pnand %p924_p5, %p194_p7  ;;  %s206_s7 = sshll.u32 %s1345_s30, 4  ;;  %s1441_s7 = int_to_ptr.vmem [resolvable:$true] %s206_s7 }
  0x15   : > { %s1346_s9 = smov [#allocation8]   ;;  %s1347_s11 = smov [#allocation7]  }
  0x16   : > { %s1863_s29 = scalar_select %p1437_p8, 1, 0 }
  0x17   : > { %p1009_p9 = pneg %p1437_p8  ;;  %s231_s10 = sshll.u32 %s1346_s9, 4  ;;  %s1452_s10 = int_to_ptr.vmem [resolvable:$true] %s231_s10 }
  0x18   : > { %s1454_s12 = sshll.u32 %s1347_s11, 4  ;;  %s1865_s1 = sld [smem:[#allocation20_spill]]  ;;  %s221_s12 = int_to_ptr.vmem [resolvable:$true] %s1454_s12 }
  0x19   : > { %p1448_p11 = pnand %p1009_p9, %p1853_p1 }
  0x1b   : > { %p1464_p13 = pneg %p1448_p11 }
  0x1e   : > { %s1093_s15 = scalar_lea.hbm %s1865_s1, 64 }
  0x1f   : > { %p1094_p12 = scmp.ne.s32.totalorder %s1865_s1, %s1093_s15  ;;  %p1100_p5 = scmp.lt.u32.totalorder %s1093_s15, %s1865_s1 }
  0x21   : > { %p1096_p0 = pnand %p1464_p13, %p1094_p12 }
  0x23   : > { %p1097_p3 = pneg %p1096_p0 }
  0x25   : > { %p1102_p7 = pnand %p1100_p5, %p1097_p3 }
  0x27   : > { %1105 = shalt.err (!%p1102_p7)
}
  0x28   : > { %s1106_s26 = scalar_lea.vmem %s1441_s7, 64  ;;  %p1114_p2 = scmp.lt.s32.totalorder %s1441_s7, %s1441_s7 }
  0x29   : > { %p1107_p9 = scmp.ne.s32.totalorder %s1441_s7, %s1106_s26  ;;  %p1115_p6 = scmp.lt.s32.totalorder %s1106_s26, %s1106_s26 }
  0x2b   : > { %p1109_p10 = pnand %p1107_p9, %p1464_p13  ;;  %p1116_p12 = por %p1115_p6, %p1114_p2 }
  0x2d   : > { %p1110_p1 = pneg %p1109_p10 }
  0x2f   : > { %p1117_p0 = pnand %p1116_p12, %p1110_p1 }
  0x31   : > { %1120 = shalt.err (!%p1117_p0)
}
  0x32   : > { %s1348_s30 = smov 32   ;;  %s1349_s9 = smov 2  }
  0x33   : > { %1012 = dma.hbm_to_vmem [thread:$0]  (!%p1448_p11), %s1865_s1, 64, %s1441_s7, [#allocation6], %s1348_s30, %s1348_s30, %s1349_s9  }
  0x34   : > { %s1121_s16 = scalar_lea.hbm %s1849_s3, 16 }
  0x35   : > { %p1122_p2 = scmp.ne.s32.totalorder %s1849_s3, %s1121_s16  ;;  %p1128_p10 = scmp.lt.u32.totalorder %s1121_s16, %s1849_s3 }
  0x37   : > { %p1124_p1 = pnand %p1122_p2, %p1464_p13 }
  0x39   : > { %p1125_p6 = pneg %p1124_p1 }
  0x3b   : > { %p1130_p3 = pnand %p1128_p10, %p1125_p6 }
  0x3d   : > { %1133 = shalt.err (!%p1130_p3)
}
  0x3e   : > { %s1134_s7 = scalar_lea.vmem %s1452_s10, 16  ;;  %s1141_s30 = scalar_lea.vmem %s1452_s10, 32 }
  0x3f   : > { %p1135_p5 = scmp.ne.s32.totalorder %s1452_s10, %s1134_s7  ;;  %p1142_p12 = scmp.lt.s32.totalorder %s1452_s10, %s1452_s10 }
  0x40   : > { %p1143_p0 = scmp.lt.s32.totalorder %s1141_s30, %s1134_s7 }
  0x41   : > { %p1137_p7 = pnand %p1135_p5, %p1464_p13 }
  0x42   : > { %p1144_p2 = por %p1143_p0, %p1142_p12 }
  0x43   : > { %p1138_p9 = pneg %p1137_p7 }
  0x45   : > { %p1145_p1 = pnand %p1144_p2, %p1138_p9 }
  0x47   : > { %1148 = shalt.err (!%p1145_p1)
}
  0x48   : > { %1018 = dma.hbm_to_vmem [thread:$0]  (!%p1448_p11), %s1849_s3, 16, %s1452_s10, [#allocation9]  }
  0x49   : > { %s1867_s2 = sld [smem:[#allocation21_spill]] }
  0x4f   : > { %s1149_s15 = scalar_lea.hbm %s1867_s2, 16 }
  0x50   : > { %p1150_p6 = scmp.ne.s32.totalorder %s1867_s2, %s1149_s15  ;;  %p1156_p5 = scmp.lt.u32.totalorder %s1149_s15, %s1867_s2 }
  0x52   : > { %p1152_p10 = pnand %p1150_p6, %p1464_p13 }
  0x54   : > { %p1153_p3 = pneg %p1152_p10 }
  0x56   : > { %p1158_p7 = pnand %p1156_p5, %p1153_p3 }
  0x58   : > { %1161 = shalt.err (!%p1158_p7)
}
  0x59   : > { %s1162_s26 = scalar_lea.vmem %s221_s12, 16  ;;  %s1169_s10 = scalar_lea.vmem %s221_s12, 32 }
  0x5a   : > { %p1163_p9 = scmp.ne.s32.totalorder %s221_s12, %s1162_s26  ;;  %p1170_p2 = scmp.lt.s32.totalorder %s221_s12, %s221_s12 }
  0x5b   : > { %p1171_p1 = scmp.lt.s32.totalorder %s1169_s10, %s1162_s26 }
  0x5c   : > { %p1165_p12 = pnand %p1163_p9, %p1464_p13 }
  0x5d   : > { %p1172_p4 = por %p1171_p1, %p1170_p2 }
  0x5e   : > { %p1166_p0 = pneg %p1165_p12 }
  0x60   : > { %p1173_p8 = pnand %p1172_p4, %p1166_p0 }
  0x62   : > { %1176 = shalt.err (!%p1173_p8)
}
  0x63   : > { %1015 = dma.hbm_to_vmem [thread:$0]  (!%p1448_p11), %s1867_s2, 16, %s221_s12, [#allocation6]  }
  0x64   : > { %s1350_s9 = smov [#allocation10]   ;;  %s1177_s15 = scalar_lea.hbm %s1850_s4, 1280 }
  0x65   : > { %s241_s11 = sshll.u32 %s1350_s9, 4  ;;  %p1178_p6 = scmp.ne.s32.totalorder %s1850_s4, %s1177_s15  ;;  %s242_s11 = int_to_ptr.vmem [resolvable:$true] %s241_s11 }
  0x66   : > { %p1184_p10 = scmp.lt.u32.totalorder %s1177_s15, %s1850_s4 }
  0x67   : > { %p1180_p4 = pnand %p1178_p6, %p1464_p13 }
  0x69   : > { %p1181_p8 = pneg %p1180_p4 }
  0x6b   : > { %p1186_p3 = pnand %p1184_p10, %p1181_p8 }
  0x6d   : > { %1189 = shalt.err (!%p1186_p3)
}
  0x6e   : > { %s1190_s12 = scalar_lea.vmem %s242_s11, 1280  ;;  %p1198_p12 = scmp.lt.s32.totalorder %s242_s11, %s242_s11 }
  0x6f   : > { %p1191_p5 = scmp.ne.s32.totalorder %s242_s11, %s1190_s12  ;;  %p1199_p0 = scmp.lt.s32.totalorder %s1190_s12, %s1190_s12 }
  0x71   : > { %p1193_p7 = pnand %p1191_p5, %p1464_p13  ;;  %p1200_p2 = por %p1199_p0, %p1198_p12 }
  0x73   : > { %p1194_p9 = pneg %p1193_p7 }
  0x75   : > { %p1201_p1 = pnand %p1200_p2, %p1194_p9 }
  0x77   : > { %1204 = shalt.err (!%p1201_p1)
}
  0x78   : > { %s1856_s26 = smov 128   ;;  %s1857_s18 = smov 8  }
  0x79   : > { %1021 = dma.hbm_to_vmem [thread:$0]  (!%p1448_p11), %s1850_s4, 1280, %s242_s11, [#allocation9], %s1856_s26, %s1856_s26, %s1857_s18  }
  0x7a   : > { %s1550_s30 = sadd.s32 1, %s1343_s24   ;;  %s34_s13 = sadd.s32 1, %s1339_s23 }
  0x7b   : > { %s31_s9 = ssub.s32 %s1343_s24, %s1550_s30  ;;  %p41_p6 = scmp.ne.s32.totalorder %s1339_s23, %s1335_s22 }
  0x7c   : > { %p32_p13 = scmp.eq.s32.totalorder %s31_s9, 0  ;;  %p42_p4 = scmp.eq.s32.totalorder %s1343_s24, 0 }
  0x7d   : > { %p1868_p10 = scmp.eq.s32.totalorder %s1418_s25, 1  ;;  %p1037_p5 = scmp.lt.s32.totalorder %s1343_s24, 2 }
  0x7e   : > { %s1559_s14 = scalar_select %p32_p13, %s1339_s23, %s34_s13  }
  0x7f   : > { %p43_p8 = por %p42_p4, %p41_p6  ;;  %p1563_p3 = por %p1868_p10, %p41_p6 }
  0x80   : > { %s1569_s15 = sand.u32 1, %s1339_s23   ;;  %s981_s16 = smul.u32 1280, %s1343_s24 }
  0x81   : > { %s980_s11 = smul.u32 80, %s1569_s15  ;;  %p1573_p11 = pnand %p1037_p5, %p43_p8 }
  0x82   : > { %s1871_s0 = sld [smem:[#allocation19_spill]]  ;;  %s256_s9 = scalar_lea.sflag [#allocation3], %s1569_s15 }
  0x83   : > { %s259_s10 = scalar_lea.vmem [#allocation2], %s980_s11  ;;  %p1207_p9 = pneg %p1573_p11 }
  0x84   : > { %s266_s7 = sshll.u32 %s259_s10, 4  ;;  %s1582_s7 = int_to_ptr.vmem [resolvable:$true] %s266_s7 }
  0x88   : > { %s1580_s12 = scalar_lea.hbm %s1871_s0, %s981_s16  ;;  %s1210_s20 = scalar_lea.hbm %s1871_s0, 2560 }
  0x89   : > { %s1205_s13 = scalar_lea.hbm %s1580_s12, 1280  ;;  %p1211_p2 = scmp.lt.u32.totalorder %s1580_s12, %s1871_s0 }
  0x8a   : > { %p1206_p7 = scmp.ne.s32.totalorder %s1580_s12, %s1205_s13  ;;  %p1212_p1 = scmp.lt.u32.totalorder %s1210_s20, %s1205_s13 }
  0x8b   : > { %p1214_p6 = scmp.lt.u32.totalorder %s1205_s13, %s1580_s12 }
  0x8c   : > { %p1208_p12 = pnand %p1207_p9, %p1206_p7  ;;  %p1213_p13 = por %p1212_p1, %p1211_p2 }
  0x8e   : > { %p1209_p0 = pneg %p1208_p12  ;;  %p1215_p4 = por %p1214_p6, %p1213_p13 }
  0x90   : > { %p1216_p8 = pnand %p1215_p4, %p1209_p0 }
  0x92   : > { %1219 = shalt.err (!%p1216_p8)
}
  0x93   : > { %s1220_s11 = scalar_lea.vmem %s1582_s7, 1280  ;;  %s1353_s10 = smov [#allocation2]  }
  0x94   : > { %p1221_p10 = scmp.ne.s32.totalorder %s1582_s7, %s1220_s11  ;;  %s1225_s19 = sshll.u32 %s1353_s10, 4  ;;  %s1226_s19 = int_to_ptr.vmem [resolvable:$false] %s1225_s19 }
  0x95   : > { %s1227_s26 = scalar_lea.vmem %s1226_s19, 2560  ;;  %p1228_p12 = scmp.lt.s32.totalorder %s1582_s7, %s1226_s19 }
  0x96   : > { %p1223_p5 = pnand %p1221_p10, %p1207_p9  ;;  %p1229_p2 = scmp.lt.s32.totalorder %s1227_s26, %s1220_s11 }
  0x98   : > { %p1224_p7 = pneg %p1223_p5  ;;  %p1230_p1 = por %p1229_p2, %p1228_p12 }
  0x9a   : > { %p1231_p13 = pnand %p1230_p1, %p1224_p7 }
  0x9c   : > { %1234 = shalt.err (!%p1231_p13)
}
  0x9d   : > { %s1872_s18 = smov 8   ;;  %s1873_s13 = smov 128  }
  0x9e   : > { %1025 = dma.hbm_to_vmem [thread:$0]  (!%p1573_p11), %s1580_s12, 1280, %s1582_s7, %s256_s9, %s1873_s13, %s1873_s13, %s1872_s18  }
  0x9f   : > { %s982_s16 = smul.u32 52, %s1569_s15  ;;  %s277_s1 = scalar_lea.sflag [#allocation12], %s1569_s15 }
  0xa0   : > { %s983_s20 = smul.u32 832, %s1343_s24  ;;  %s1240_s9 = scalar_lea.hbm %s1851_s5, 1664 }
  0xa1   : > { %s280_s26 = scalar_lea.vmem [#allocation11], %s982_s16 }
  0xa2   : > { %s1620_s19 = scalar_lea.hbm %s1851_s5, %s983_s20  ;;  %s287_s0 = sshll.u32 %s280_s26, 4  ;;  %s1622_s0 = int_to_ptr.vmem [resolvable:$true] %s287_s0 }
  0xa3   : > { %s1235_s2 = scalar_lea.hbm %s1620_s19, 832  ;;  %p1241_p8 = scmp.lt.u32.totalorder %s1620_s19, %s1851_s5 }
  0xa4   : > { %p1236_p0 = scmp.ne.s32.totalorder %s1620_s19, %s1235_s2  ;;  %p1242_p10 = scmp.lt.u32.totalorder %s1240_s9, %s1235_s2 }
  0xa5   : > { %p1244_p7 = scmp.lt.u32.totalorder %s1235_s2, %s1620_s19 }
  0xa6   : > { %p1238_p6 = pnand %p1236_p0, %p1207_p9  ;;  %p1243_p5 = por %p1242_p10, %p1241_p8 }
  0xa8   : > { %p1239_p4 = pneg %p1238_p6  ;;  %p1245_p12 = por %p1244_p7, %p1243_p5 }
  0xaa   : > { %p1246_p2 = pnand %p1245_p12, %p1239_p4 }
  0xac   : > { %1249 = shalt.err (!%p1246_p2)
}
  0xad   : > { %s1250_s16 = scalar_lea.vmem %s1622_s0, 832  ;;  %s1354_s20 = smov [#allocation11]  }
  0xae   : > { %p1251_p1 = scmp.ne.s32.totalorder %s1622_s0, %s1250_s16  ;;  %s1255_s11 = sshll.u32 %s1354_s20, 4  ;;  %s1256_s11 = int_to_ptr.vmem [resolvable:$false] %s1255_s11 }
  0xaf   : > { %s1257_s10 = scalar_lea.vmem %s1256_s11, 1664  ;;  %p1258_p6 = scmp.lt.s32.totalorder %s1622_s0, %s1256_s11 }
  0xb0   : > { %p1253_p13 = pnand %p1251_p1, %p1207_p9  ;;  %p1259_p8 = scmp.lt.s32.totalorder %s1257_s10, %s1250_s16 }
  0xb2   : > { %p1254_p0 = pneg %p1253_p13  ;;  %p1260_p10 = por %p1259_p8, %p1258_p6 }
  0xb4   : > { %p1261_p5 = pnand %p1260_p10, %p1254_p0 }
  0xb6   : > { %1264 = shalt.err (!%p1261_p5)
}
  0xb7   : > { %s1355_s2 = smov 64   ;;  %s1356_s26 = smov 4  }
  0xb8   : > { %1028 = dma.hbm_to_vmem [thread:$0]  (!%p1573_p11), %s1620_s19, 832, %s1622_s0, %s277_s1, %s1355_s2, %s1355_s2, %s1356_s26  }
  0xb9   : > { %p1874_p9 = scmp.ne.s32.totalorder %s1863_s29, 0 }
  0xba   : > { %s1653_s12 = sand.u32 (!%p1874_p9), 1, %s1335_s22   ;;  %p1875_p4 = scmp.ne.s32.totalorder (!%p1874_p9), %s1861_s27, 0 }
  0xbb   : > { %299 = sbr.rel (%p1874_p9) target bundleno = 382 (0x17e), region = 44  ;;  %s302_s9 = scalar_lea.sflag (!%p1874_p9), [#allocation3], %s1653_s12 }
  0xbc   : > { %s984_s7 = smul.u32 (!%p1874_p9), 80, %s1653_s12 }
  0xbe   : > { %s1657_s18 = scalar_lea.vmem (!%p1874_p9), [#allocation2], %s984_s7 }
  0xc2   : > { %1310 = dma.done.wait (%p1875_p4), %s302_s9, 1280  }
  0xc3   : > { %1312 = vsyncadd (%p1875_p4), %s302_s9, 4294966016  ;;  %p1876_p11 = scmp.eq.s32.totalorder %s1418_s25, 0 }
  0xc5   : > { %1314 = dma.done.wait (%p1876_p11), [#allocation6], 80   ;;  %p1877_p7 = pmov %p1876_p11 }
  0xc7   : > { %1316 = vsyncadd (%p1877_p7), [#allocation6], 4294967216  ;;  %p1878_p12 = pmov %p1877_p7 }
  0xc8   : > { %p1879_p2 = pmov %p1877_p7 }
  0xc9   : > { %1318 = dma.done.wait (%p1878_p12), [#allocation9], 1296  }
  0xca   : > { %1320 = vsyncadd (%p1879_p2), [#allocation9], 4294966000  ;;  %s985_s0 = smul.u32 52, %s1653_s12  ;;  %s327_s1 = scalar_lea.sflag [#allocation12], %s1653_s12 }
  0xcc   : > { %s1673_s29 = scalar_lea.vmem [#allocation11], %s985_s0 }
  0xcd   : > { %1322 = dma.done.wait (%p1875_p4), %s327_s1, 832  }
  0xce   : > { %1324 = vsyncadd (%p1875_p4), %s327_s1, 4294966464  ;;  %v1357_v0 = vmov 0   ;;  %v530_v1 = vld [vmem:[#allocation10 + $0x10] sm:$0xff]  ;;  %v528_v2 = vld [vmem:[#allocation10] sm:$0xff]  ;;  %s1679_s15 = scalar_lea.vmem [#allocation13], %s985_s0  ;;  %vm367_vm0 = vcmask 1041408   ;;  %v384_v23 = vlaneseq }
  0xcf   : > { %1090 = vset.pattern.permute.xlu1 %v1357_v0  ;;  %1089 = vset.pattern.permute.xlu0 %v1357_v0  ;;  %v531_v3 = vld [vmem:[#allocation10 + $0x18] sm:$0xff]  ;;  %v529_v4 = vld [vmem:[#allocation10 + $0x8] sm:$0xff]  ;;  %599 = vst [vmem:[%s1679_s15 + $0x4] sm:$0xf] %v1357_v0  ;;  %598 = vst [vmem:[%s1679_s15] sm:$0xf] %v1357_v0  ;;  %vm476_vm1 = vcmask 1044480  }
  0xd0   : > { %550 = vperm.xlu1 %1090, %v530_v1   ;;  %540 = vperm.xlu0 %1089, %v528_v2   ;;  %600 = vst [vmem:[%s1679_s15 + $0x8] sm:$0xf] %v1357_v0  ;;  %601 = vst [vmem:[%s1679_s15 + $0xc] sm:$0xf] %v1357_v0  ;;  %v533_v5 = vld [vmem:[#allocation10 + $0x28] sm:$0xff]  ;;  %v532_v6 = vld [vmem:[#allocation10 + $0x20] sm:$0xff] }
  0xd1   : > { %602 = vst [vmem:[%s1679_s15 + $0x10] sm:$0xf] %v1357_v0  ;;  %603 = vst [vmem:[%s1679_s15 + $0x14] sm:$0xf] %v1357_v0  ;;  %v535_v7 = vld [vmem:[#allocation10 + $0x38] sm:$0xff]  ;;  %v534_v8 = vld [vmem:[#allocation10 + $0x30] sm:$0xff] }
  0xd2   : > { %604 = vst [vmem:[%s1679_s15 + $0x18] sm:$0xf] %v1357_v0  ;;  %605 = vst [vmem:[%s1679_s15 + $0x1c] sm:$0xf] %v1357_v0  ;;  %v537_v9 = vld [vmem:[#allocation10 + $0x48] sm:$0x3f] }
  0xd3   : > { %606 = vst [vmem:[%s1679_s15 + $0x20] sm:$0xf] %v1357_v0  ;;  %607 = vst [vmem:[%s1679_s15 + $0x24] sm:$0xf] %v1357_v0  ;;  %v536_v10 = vld [vmem:[#allocation10 + $0x40] sm:$0xff]  ;;  %v385_v25 = vshrl.u32 %v384_v23, 7 }
  0xd4   : > { %608 = vst [vmem:[%s1679_s15 + $0x28] sm:$0xf] %v1357_v0  ;;  %609 = vst [vmem:[%s1679_s15 + $0x2c] sm:$0xf] %v1357_v0  ;;  %555 = vperm.xlu1 %1090, %v531_v3   ;;  %545 = vperm.xlu0 %1089, %v529_v4   ;;  %v365_v11 = vld [vmem:[#allocation5] sm:$0x3] }
  0xd5   : > { %610 = vst [vmem:[%s1679_s15 + $0x30] sm:$0x3] %v1357_v0  ;;  %v366_v12 = vld [vmem:[#allocation5 + $0x2] sm:$0x3]  ;;  %v368_v13 = vsel %vm367_vm0, %v365_v11, 0.0  ;;  %v414_v33 = vsub.s32 0, %v385_v25 }
  0xd6   : > { %v369_v14 = vsel %vm367_vm0, %v366_v12, 0.0  ;;  %v1358_v21 = vmov 1966171168   ;;  %v377_v31 = vld [vmem:[#allocation7] sm:$0x1]  ;;  %v977_v37 = vld [vmem:[%s1673_s29 + $0x10] sm:$0xff]  }
  0xd7   : > { %v370_v15 = vadd.f32 %v369_v14, %v368_v13  ;;  %v382_v22 = vunpack.c.l.s4 %v1358_v21  ;;  %v398_v35 = vld [vmem:[#allocation8] sm:$0x1]  ;;  %v443_v38 = vld [vmem:[%s1673_s29 + $0x4] sm:$0xe]  ;;  %v966_v43 = vunpack.c.l.bf16 %v977_v37  ;;  %v967_v47 = vunpack.c.h.bf16 %v977_v37  ;;  %v402_v57 = vld [vmem:[%s1657_s18 + $0x8] sm:$0xff]  ;;  %s986_s27 = smul.u32 832, %s1418_s25 }
  0xd8   : > { %565 = vperm.xlu1 %1090, %v533_v5   ;;  %560 = vperm.xlu0 %1089, %v532_v6   ;;  %v976_v36 = vld [vmem:[%s1673_s29 + $0x8] sm:$0xff]   ;;  %v403_v41 = vld [vmem:[%s1657_s18 + $0x10] sm:$0xff]  ;;  %v454_v46 = vunpack.c.l.bf16 %v443_v38  ;;  %v404_v56 = vld [vmem:[%s1657_s18 + $0x18] sm:$0xff]  ;;  %vm754_vm2 = vcmask 1043457   ;;  %vm755_vm3 = vsmask.f32 7942 }
  0xd9   : > { %v371_v16 = vmul.f32 0.0078125, %v370_v15  ;;  %v383_v24 = vunpack.c.0.s8 %v382_v22  ;;  %v963_v42 = vunpack.c.h.bf16 %v976_v36  ;;  %v401_v44 = vld [vmem:[%s1657_s18] sm:$0xff]  ;;  %v962_v45 = vunpack.c.l.bf16 %v976_v36  ;;  %v978_v48 = vld [vmem:[%s1673_s29 + $0x18] sm:$0xff]   ;;  %v406_v0 = vld [vmem:[%s1657_s18 + $0x28] sm:$0xff]  ;;  %s789_s17 = sshll.u32 %s1679_s15, 4  ;;  %s1796_s13 = scalar_lea.hbm %s1852_s6, %s986_s27  ;;  %s1798_s17 = int_to_ptr.vmem [resolvable:$true] %s789_s17 }
  0xda   : > { %v482_v53 = vrot.slane %v966_v43, 3  ;;  %v477_v54 = vrot.slane %v454_v46, 3  ;;  %v970_v58 = vunpack.c.l.bf16 %v978_v48  ;;  %v971_v59 = vunpack.c.h.bf16 %v978_v48  ;;  %v979_v61 = vld [vmem:[%s1673_s29 + $0x20] sm:$0xff]   ;;  %v452_v6 = vld [vmem:[%s1673_s29 + $0x28] sm:$0xf]  ;;  %vm1749_vm6 = vmand %vm754_vm2, %vm755_vm3  ;;  %s776_s16 = scalar_lea.sflag [#allocation4], %s1653_s12 }
  0xdb   : > { %v372_v17 = vmul.f32 %v371_v16, %v371_v16  ;;  %v386_v26 = vsub.s32 %v383_v24, %v385_v25  ;;  %v480_v52 = vrot.slane %v963_v42, 3  ;;  %v478_v55 = vrot.slane %v962_v45, 3  ;;  %v405_v1 = vld [vmem:[%s1657_s18 + $0x20] sm:$0xff]  ;;  %s1265_s20 = scalar_lea.vmem %s1798_s17, 832  ;;  %s1359_s11 = smov [#allocation13]  }
  0xdc   : > { %575 = vperm.xlu1 %1090, %v535_v7   ;;  %570 = vperm.xlu0 %1089, %v534_v8   ;;  %v484_v60 = vrot.slane %v967_v47, 3  ;;  %v453_v7 = vld [vmem:[%s1673_s29 + $0x2c] sm:$0x1]  ;;  %v486_v8 = vrot.slane %v970_v58, 3  ;;  %v974_v11 = vunpack.c.l.bf16 %v979_v61  ;;  %v975_v12 = vunpack.c.h.bf16 %v979_v61  ;;  %p1266_p1 = scmp.ne.s32.totalorder %s1798_s17, %s1265_s20  ;;  %s1269_s10 = sshll.u32 %s1359_s11, 4  ;;  %s1270_s10 = int_to_ptr.vmem [resolvable:$false] %s1269_s10 }
  0xdd   : > { %v374_v18 = vrot.slane %v372_v17, 7  ;;  %v483_v2 = vsel %vm476_vm1, %v480_v52, %v482_v53  ;;  %v479_v3 = vsel %vm476_vm1, %v477_v54, %v478_v55  ;;  %v464_v21 = vunpack.c.l.bf16 %v453_v7  ;;  %s1271_s2 = scalar_lea.vmem %s1270_s10, 1664  ;;  %p1272_p6 = scmp.lt.s32.totalorder %s1798_s17, %s1270_s10 }
  0xde   : > { %v485_v13 = vsel %vm476_vm1, %v482_v53, %v484_v60  ;;  %v481_v24 = vsel %vm476_vm1, %v478_v55, %v480_v52  ;;  %vm641_vm4 = vsmask.f32 1280  ;;  %vm642_vm5 = vsmask.f32 5392  ;;  %p1267_p13 = pnand %p1266_p1, %p1563_p3  ;;  %p1273_p8 = scmp.lt.s32.totalorder %s1271_s2, %s1265_s20 }
  0xdf   : > { %v376_v19 = vsub.f32 %v371_v16, %v374_v18  ;;  %v407_v18 = vld [vmem:[%s1657_s18 + $0x30] sm:$0xff]  ;;  %v496_v38 = vrot.slane %v464_v21, 3  ;;  %vm1760_vm7 = vmor %vm641_vm4, %vm642_vm5  ;;  %vm769_vm8 = vcmask 1040384   ;;  %vm770_vm9 = vsmask.f32 256 }
  0xe0   : > { %585 = vperm.xlu1 %1090, %v537_v9   ;;  %580 = vperm.xlu0 %1089, %v536_v10   ;;  %v488_v9 = vrot.slane %v971_v59, 3  ;;  %v408_v10 = vld [vmem:[%s1657_s18 + $0x38] sm:$0xff]  ;;  %vm771_vm10 = vmand %vm769_vm8, %vm770_vm9  ;;  %p1268_p0 = pneg %p1267_p13  ;;  %p1274_p10 = por %p1273_p8, %p1272_p6 }
  0xe1   : > { %v378_v20 = vadd.f32 1e-05, %v376_v19  ;;  %v410_v19 = vld [vmem:[%s1657_s18 + $0x48] sm:$0x3f] }
  0xe2   : > { %p1275_p5 = pnand %p1274_p10, %p1268_p0 }
  0xe3   : > { %1091 = vrsqrt.f32 %v378_v20  ;;  %v463_v20 = vunpack.c.l.bf16 %v452_v6 }
  0xe5   : > { %v494_v37 = vrot.slane %v463_v20, 3 }
  0xe7   : > { %v497_v55 = vsel %vm476_vm1, %v494_v37, %v496_v38 }
  0xed   : > { %v1092_v27 = vpop.eup %1091 }
  0xee   : > { %v387_v28 = vrot.slane %v1092_v27, %v386_v26  ;;  %v487_v27 = vsel %vm476_vm1, %v484_v60, %v486_v8 }
  0xf0   : > { %v388_v29 = vcombine.high %v387_v28, %v387_v28  ;;  %v490_v28 = vrot.slane %v974_v11, 3 }
  0xf2   : > { %v395_v30 = vrot.slane %v388_v29, %v386_v26  ;;  %v489_v26 = vsel %vm476_vm1, %v486_v8, %v488_v9  ;;  %v492_v29 = vrot.slane %v975_v12, 3  ;;  %v491_v54 = vsel %vm476_vm1, %v488_v9, %v490_v28 }
  0xf4   : > { %v397_v32 = vmul.f32 %v395_v30, %v377_v31  ;;  %v409_v30 = vld [vmem:[%s1657_s18 + $0x40] sm:$0xff]  ;;  %v495_v61 = vsel %vm476_vm1, %v492_v29, %v494_v37 }
  0xf6   : > { %v399_v34 = vmul.f32 %v397_v32, %v371_v16  ;;  %v1697_v40 = vrot.slane %v397_v32, %v414_v33 }
  0xf8   : > { %v400_v39 = vsub.f32 %v398_v35, %v399_v34  ;;  %v419_v49 = vmul.f32 %v1697_v40, %v403_v41  ;;  %v417_v51 = vmul.f32 %v1697_v40, %v401_v44  ;;  %v420_v4 = vmul.f32 %v1697_v40, %v404_v56 }
  0xf9   : > { %v418_v5 = vmul.f32 %v1697_v40, %v402_v57  ;;  %v422_v14 = vmul.f32 %v1697_v40, %v406_v0  ;;  %v421_v15 = vmul.f32 %v1697_v40, %v405_v1  ;;  %v424_v25 = vmul.f32 %v1697_v40, %v408_v10 }
  0xfa   : > { %v1703_v50 = vrot.slane %v400_v39, %v414_v33  ;;  %v423_v33 = vmul.f32 %v1697_v40, %v407_v18  ;;  %v426_v34 = vmul.f32 %v1697_v40, %v410_v19  ;;  %v425_v43 = vmul.f32 %v1697_v40, %v409_v30 }
  0xfb   : > { %v493_v44 = vsel %vm476_vm1, %v490_v28, %v492_v29 }
  0xfc   : > { %v435_v62 = vadd.f32 %v1703_v50, %v419_v49  ;;  %v433_v63 = vadd.f32 %v1703_v50, %v417_v51  ;;  %v436_v22 = vadd.f32 %v1703_v50, %v420_v4  ;;  %v434_v23 = vadd.f32 %v1703_v50, %v418_v5 }
  0xfd   : > { %v438_v31 = vadd.f32 %v1703_v50, %v422_v14  ;;  %v437_v32 = vadd.f32 %v1703_v50, %v421_v15  ;;  %v440_v42 = vadd.f32 %v1703_v50, %v424_v25  ;;  %v439_v49 = vadd.f32 %v1703_v50, %v423_v33 }
  0xfe   : > { %v510_v16 = vadd.f32 %v483_v2, %v435_v62  ;;  %v508_v17 = vadd.f32 %v479_v3, %v433_v63  ;;  %v511_v39 = vadd.f32 %v485_v13, %v436_v22  ;;  %v509_v41 = vadd.f32 %v481_v24, %v434_v23 }
  0xff   : > { %v513_v47 = vadd.f32 %v489_v26, %v438_v31  ;;  %v512_v48 = vadd.f32 %v487_v27, %v437_v32  ;;  %v442_v51 = vadd.f32 %v1703_v50, %v426_v34  ;;  %v515_v57 = vadd.f32 %v493_v44, %v440_v42 }
 0x100   : > { %v520_v35 = vmax.f32 %v510_v16, 0.0  ;;  %v518_v36 = vmax.f32 %v508_v17, 0.0  ;;  %v521_v40 = vmax.f32 %v511_v39, 0.0  ;;  %v519_v56 = vmax.f32 %v509_v41, 0.0  ;;  %v757_v16 = vld [vmem:[%s1679_s15 + $0x4] sm:$0xe] }
 0x101   : > { %v441_v58 = vadd.f32 %v1703_v50, %v425_v43  ;;  %v523_v0 = vmax.f32 %v513_v47, 0.0  ;;  %v522_v1 = vmax.f32 %v512_v48, 0.0  ;;  %v514_v2 = vadd.f32 %v491_v54, %v439_v49 }
 0x102   : > { %v1745_v3 = vadd.f32 %v497_v55, %v442_v51  ;;  %v525_v50 = vmax.f32 %v515_v57, 0.0 }
 0x103   : > { %v516_v10 = vadd.f32 %v495_v61, %v441_v58  ;;  %v524_v21 = vmax.f32 %v514_v2, 0.0 }
 0x104   : > { %v527_v22 = vmax.f32 %v1745_v3, 0.0 }
 0x105   : > { %v526_v34 = vmax.f32 %v516_v10, 0.0 }
 0x14f   : > { %v551_v45 = vpop.permute.xlu1 %550  ;;  %v541_v46 = vpop.permute.xlu0 %540 }
 0x150   : > { %v590_v52 = vmul.f32 %v551_v45, %v520_v35  ;;  %v588_v53 = vmul.f32 %v541_v46, %v518_v36 }
 0x152   : > { %v952_v59 = vpack.c.bf16 %v590_v52, %v590_v52  ;;  %v950_v60 = vpack.c.bf16 %v588_v53, %v588_v53 }
 0x153   : > { %v556_v62 = vpop.permute.xlu1 %555  ;;  %v546_v63 = vpop.permute.xlu0 %545 }
 0x154   : > { %v664_v4 = vshrl.u32 %v952_v59, 16  ;;  %v667_v5 = vshll.u32 %v952_v59, 16  ;;  %v645_v6 = vshrl.u32 %v950_v60, 16  ;;  %v648_v7 = vshll.u32 %v950_v60, 16 }
 0x155   : > { %v591_v8 = vmul.f32 %v556_v62, %v521_v40  ;;  %v589_v9 = vmul.f32 %v546_v63, %v519_v56 }
 0x156   : > { %v666_v11 = vrot.slane %v664_v4, 6  ;;  %v669_v12 = vrot.slane %v667_v5, 7  ;;  %v647_v13 = vrot.slane %v645_v6, 6  ;;  %v650_v14 = vrot.slane %v648_v7, 7 }
 0x157   : > { %v953_v17 = vpack.c.bf16 %v591_v8, %v591_v8  ;;  %v951_v18 = vpack.c.bf16 %v589_v9, %v589_v9  ;;  %v566_v19 = vpop.permute.xlu1 %565  ;;  %v561_v20 = vpop.permute.xlu0 %560 }
 0x158   : > { %v670_v23 = vor.u32 %v669_v12, %v666_v11  ;;  %v651_v24 = vor.u32 %v650_v14, %v647_v13  ;;  %v593_v25 = vmul.f32 %v566_v19, %v523_v0  ;;  %v592_v26 = vmul.f32 %v561_v20, %v522_v1 }
 0x159   : > { %v674_v27 = vshrl.u32 %v953_v17, 16  ;;  %v677_v28 = vshll.u32 %v953_v17, 16  ;;  %v654_v29 = vshrl.u32 %v951_v18, 16  ;;  %v657_v30 = vshll.u32 %v951_v18, 16 }
 0x15a   : > { %v672_v31 = vrot.slane %v670_v23, 4  ;;  %v758_v32 = vsel %vm1749_vm6, %v651_v24, %v757_v16  ;;  %v955_v33 = vpack.c.bf16 %v593_v25, %v593_v25  ;;  %v954_v45 = vpack.c.bf16 %v592_v26, %v592_v26  ;;  %v772_v26 = vld [vmem:[%s1679_s15 + $0x2c] sm:$0x1] }
 0x15b   : > { %759 = vst [vmem:[%s1679_s15 + $0x4] sm:$0xe] %v758_v32  ;;  %v676_v35 = vrot.slane %v674_v27, 6  ;;  %v679_v36 = vrot.slane %v677_v28, 7  ;;  %v656_v37 = vrot.slane %v654_v29, 6  ;;  %v659_v38 = vrot.slane %v657_v30, 7  ;;  %v576_v39 = vpop.permute.xlu1 %575  ;;  %v571_v41 = vpop.permute.xlu0 %570 }
 0x15c   : > { %v694_v43 = vshrl.u32 %v955_v33, 16  ;;  %v697_v44 = vshll.u32 %v955_v33, 16  ;;  %v595_v46 = vmul.f32 %v576_v39, %v525_v50  ;;  %v652_v47 = vrot.slane %v651_v24, 4 }
 0x15d   : > { %v680_v48 = vor.u32 %v679_v36, %v676_v35  ;;  %v660_v49 = vor.u32 %v659_v38, %v656_v37  ;;  %v594_v51 = vmul.f32 %v571_v41, %v524_v21  ;;  %v684_v54 = vshrl.u32 %v954_v45, 16 }
 0x15e   : > { %v696_v52 = vrot.slane %v694_v43, 6  ;;  %v699_v53 = vrot.slane %v697_v44, 7  ;;  %v687_v55 = vshll.u32 %v954_v45, 16  ;;  %v957_v63 = vpack.c.bf16 %v595_v46, %v595_v46 }
 0x15f   : > { %v681_v40 = vsel %vm1760_vm7, %v672_v31, %v680_v48  ;;  %v661_v56 = vsel %vm1760_vm7, %v652_v47, %v660_v49  ;;  %v662_v57 = vrot.slane %v660_v49, 4  ;;  %v586_v58 = vpop.permute.xlu1 %585  ;;  %v581_v59 = vpop.permute.xlu0 %580  ;;  %v682_v60 = vrot.slane %v680_v48, 4 }
 0x160   : > { %762 = vst [vmem:[%s1679_s15 + $0x10] sm:$0xf] %v681_v40  ;;  %760 = vst [vmem:[%s1679_s15 + $0x8] sm:$0xf] %v661_v56  ;;  %v686_v61 = vrot.slane %v684_v54, 6  ;;  %v689_v62 = vrot.slane %v687_v55, 7  ;;  %v956_v1 = vpack.c.bf16 %v594_v51, %v594_v51  ;;  %v597_v2 = vmul.f32 %v586_v58, %v527_v22 }
 0x161   : > { %v671_v0 = vsel %vm1760_vm7, %v662_v57, %v670_v23  ;;  %v596_v3 = vmul.f32 %v581_v59, %v526_v34  ;;  %v700_v4 = vor.u32 %v699_v53, %v696_v52  ;;  %v714_v6 = vshrl.u32 %v957_v63, 16 }
 0x162   : > { %761 = vst [vmem:[%s1679_s15 + $0xc] sm:$0xf] %v671_v0  ;;  %v690_v5 = vor.u32 %v689_v62, %v686_v61  ;;  %v717_v7 = vshll.u32 %v957_v63, 16  ;;  %v704_v8 = vshrl.u32 %v956_v1, 16  ;;  %v707_v9 = vshll.u32 %v956_v1, 16 }
 0x163   : > { %v959_v50 = vpack.c.bf16 %v597_v2, %v597_v2  ;;  %v958_v10 = vpack.c.bf16 %v596_v3, %v596_v3  ;;  %v716_v13 = vrot.slane %v714_v6, 6  ;;  %v702_v23 = vrot.slane %v700_v4, 4 }
 0x164   : > { %v691_v11 = vsel %vm1760_vm7, %v682_v60, %v690_v5  ;;  %v692_v12 = vrot.slane %v690_v5, 4  ;;  %v719_v14 = vrot.slane %v717_v7, 7  ;;  %v706_v15 = vrot.slane %v704_v8, 6 }
 0x165   : > { %763 = vst [vmem:[%s1679_s15 + $0x14] sm:$0xf] %v691_v11  ;;  %v709_v16 = vrot.slane %v707_v9, 7  ;;  %v734_v17 = vshrl.u32 %v959_v50, 16  ;;  %v737_v18 = vshll.u32 %v959_v50, 16  ;;  %v724_v21 = vshrl.u32 %v958_v10, 16 }
 0x166   : > { %v701_v19 = vsel %vm1760_vm7, %v692_v12, %v700_v4  ;;  %v720_v20 = vor.u32 %v719_v14, %v716_v13  ;;  %v727_v22 = vshll.u32 %v958_v10, 16 }
 0x167   : > { %764 = vst [vmem:[%s1679_s15 + $0x18] sm:$0xf] %v701_v19  ;;  %v710_v24 = vor.u32 %v709_v16, %v706_v15  ;;  %v736_v25 = vrot.slane %v734_v17, 6  ;;  %v739_v27 = vrot.slane %v737_v18, 7  ;;  %v726_v28 = vrot.slane %v724_v21, 6 }
 0x168   : > { %v729_v29 = vrot.slane %v727_v22, 7  ;;  %v722_v33 = vrot.slane %v720_v20, 4 }
 0x169   : > { %v711_v30 = vsel %vm1760_vm7, %v702_v23, %v710_v24  ;;  %v712_v31 = vrot.slane %v710_v24, 4  ;;  %v742_v32 = vrot.slane %v736_v25, 4  ;;  %v740_v37 = vor.u32 %v739_v27, %v736_v25 }
 0x16a   : > { %765 = vst [vmem:[%s1679_s15 + $0x1c] sm:$0xf] %v711_v30  ;;  %v730_v34 = vor.u32 %v729_v29, %v726_v28 }
 0x16b   : > { %v721_v35 = vsel %vm1760_vm7, %v712_v31, %v720_v20  ;;  %v773_v36 = vsel %vm771_vm10, %v742_v32, %v772_v26 }
 0x16c   : > { %766 = vst [vmem:[%s1679_s15 + $0x20] sm:$0xf] %v721_v35  ;;  %774 = vst [vmem:[%s1679_s15 + $0x2c] sm:$0x1] %v773_v36  ;;  %v731_v38 = vsel %vm1760_vm7, %v722_v33, %v730_v34  ;;  %v732_v39 = vrot.slane %v730_v34, 4 }
 0x16d   : > { %767 = vst [vmem:[%s1679_s15 + $0x24] sm:$0xf] %v731_v38 }
 0x16e   : > { %v741_v41 = vsel %vm1760_vm7, %v732_v39, %v740_v37 }
 0x16f   : > { %768 = vst [vmem:[%s1679_s15 + $0x28] sm:$0xf] %v741_v41 }
 0x170   : > { %1278 = shalt.err (!%p1275_p5)
}
 0x171   : > { %s1279_s26 = scalar_lea.hbm %s1796_s13, 832  ;;  %s1283_s18 = scalar_lea.hbm %s1852_s6, 1664 }
 0x172   : > { %p1280_p9 = scmp.ne.s32.totalorder %s1796_s13, %s1279_s26  ;;  %p1284_p7 = scmp.lt.u32.totalorder %s1796_s13, %s1852_s6 }
 0x173   : > { %p1285_p12 = scmp.lt.u32.totalorder %s1283_s18, %s1279_s26  ;;  %p1287_p1 = scmp.lt.u32.totalorder %s1279_s26, %s1796_s13 }
 0x174   : > { %p1281_p4 = pnand %p1280_p9, %p1563_p3 }
 0x175   : > { %p1286_p2 = por %p1285_p12, %p1284_p7 }
 0x176   : > { %p1282_p11 = pneg %p1281_p4 }
 0x177   : > { %p1288_p13 = por %p1287_p1, %p1286_p2 }
 0x179   : > { %p1289_p0 = pnand %p1288_p13, %p1282_p11 }
 0x17b   : > { %1292 = shalt.err (!%p1289_p0)
}
 0x17c   : > { %s1360_s29 = smov 64   ;;  %s1361_s15 = smov 4  }
 0x17d   : > { %1007 = dma.vmem_to_hbm [thread:$0]  (%p1563_p3), %s1798_s17, 832, %s1796_s13, %s776_s16, %s1360_s29, %s1360_s29, %s1361_s15  }
 0x17e PF: > { %s804_s27 = sand.u32 1, %s1331_s21   ;;  %p1884_p6 = scmp.ne.s32.totalorder %s1862_s28, 0 }
 0x17f   : > { %p1885_p8 = scmp.ge.s32.totalorder %s1343_s24, 2  ;;  %s805_s25 = scalar_lea.sflag [#allocation4], %s804_s27 }
 0x181   : > { %p1030_p10 = pnand %p1885_p8, %p1884_p6 }
 0x183   : > { %1326 = dma.done.wait (!%p1030_p10), %s805_s25, 832  }
 0x184   : > { %1328 = vsyncadd (!%p1030_p10), %s805_s25, 4294966464  ;;  %p24_p5 = scmp.ge.s32.totalorder %s1550_s30, 4   ;;  %s1886_s21 = smov %s1335_s22 }
 0x185   : > { %s1887_s22 = smov %s1339_s23  ;;  %s1888_s23 = smov %s1559_s14 }
 0x186   : > { %s1889_s24 = smov %s1550_s30  ;;  %26 = sbr.rel (!%p24_p5) target bundleno = 13 (0xd), region = 118 }
 0x18d   :  { %810 = vsyncpa [#allocation3], 1 }
 0x18e   :  { %812 = vsyncpa [#allocation3 + $0x1], 1 }
 0x18f   :  { %813 = vsyncpa [#allocation6], 1 }
 0x190   :  { %814 = vsyncpa [#allocation9], 1 }
 0x191   :  { %815 = vsyncpa [#allocation12], 1 }
 0x192   :  { %817 = vsyncpa [#allocation12 + $0x1], 1 }
 0x193   :  { %818 = vsyncpa [#allocation4], 1 }
 0x194   :  { %820 = vsyncpa [#allocation4 + $0x1], 1 }

// kernel: downsample_forward.47
= control target key start
LH: loop header
LB: loop body
LE: loop exit
PB: predicated region body
PF: predicated region fallthrough
CT: control target
= control target key end

     0   :  { %10 = vsyncpa [#allocation3], 0  ;;  %s1261_s0 = inlined_call_operand.hbm [shape: f32[2,22,128], index: 0, kind: input, shape index: {}]   ;;  %s1262_s1 = inlined_call_operand.hbm [shape: f32[2,2,128], index: 1, kind: input, shape index: {}]   ;;  %s1263_s2 = inlined_call_operand.hbm [shape: f32[1,128], index: 2, kind: input, shape index: {}]   ;;  %s1264_s3 = inlined_call_operand.hbm [shape: f32[1,128], index: 3, kind: input, shape index: {}]   ;;  %s1265_s4 = inlined_call_operand.hbm [shape: f32[22,1], index: 4, kind: input, shape index: {}]   ;;  %s1266_s5 = inlined_call_operand.hbm [shape: bf16[2,36,128], index: 5, kind: output, shape index: {}]  }
   0x1   :  { %12 = vsyncpa [#allocation3 + $0x1], 0 }
   0x2   :  { %13 = vsyncpa [#allocation6], 0 }
   0x3   :  { %14 = vsyncpa [#allocation9], 0 }
   0x4   :  { %15 = vsyncpa [#allocation4], 0 }
   0x5   :  { %17 = vsyncpa [#allocation4 + $0x1], 0  ;;  %s957_s18 = smov 0   ;;  %s959_s19 = smov 0  }
   0x6   :  { %s961_s20 = smov 0   ;;  %s963_s21 = smov 0  }
   0x7 LB: > { %s978_s22 = sadd.s32 4294967295, %s911_s21   ;;  %s569_s23 = sadd.s32 4294967294, %s911_s21   ;;  %s911_s21 = sphi %s963_s21, %s1291_s21   ;;  %s907_s20 = sphi %s961_s20, %s1290_s20   ;;  %s903_s19 = sphi %s959_s19, %s1289_s19   ;;  %s899_s18 = sphi %s957_s18, %s1288_s18  }
   0x8   : > { %p43_p0 = scmp.ne.s32.totalorder %s903_s19, %s899_s18  ;;  %p1267_p1 = scmp.eq.s32.totalorder %s978_s22, 0 }
   0x9   : > { %p157_p3 = scmp.eq.s32.totalorder %s569_s23, 1  ;;  %p570_p5 = scmp.ge.s32.totalorder %s911_s21, 1 }
   0xa   : > { %p987_p4 = por %p1267_p1, %p43_p0  ;;  %p164_p7 = scmp.lt.s32.totalorder %s911_s21, 3 }
   0xb   : > { %p992_p6 = por %p157_p3, %p43_p0  ;;  %s913_s27 = smov [#allocation5]  }
   0xc   : > { %s1271_s24 = scalar_select %p987_p4, 1, 0 }
   0xd   : > { %s1272_s25 = scalar_select %p992_p6, 1, 0 }
   0xe   : > { %p997_p8 = pnand %p570_p5, %p164_p7  ;;  %s176_s28 = sshll.u32 %s913_s27, 4  ;;  %s1001_s28 = int_to_ptr.vmem [resolvable:$true] %s176_s28 }
   0xf   : > { %s914_s30 = smov [#allocation8]   ;;  %s915_s7 = smov [#allocation7]  }
  0x10   : > { %s1273_s26 = scalar_select %p997_p8, 1, 0 }
  0x11   : > { %p616_p9 = pneg %p997_p8  ;;  %s201_s6 = sshll.u32 %s914_s30, 4  ;;  %s1012_s6 = int_to_ptr.vmem [resolvable:$true] %s201_s6 }
  0x12   : > { %s1014_s8 = sshll.u32 %s915_s7, 4  ;;  %s695_s11 = scalar_lea.hbm %s1262_s1, 64  ;;  %s191_s8 = int_to_ptr.vmem [resolvable:$true] %s1014_s8 }
  0x13   : > { %p1008_p11 = pnand %p616_p9, %p1267_p1  ;;  %p696_p12 = scmp.ne.s32.totalorder %s1262_s1, %s695_s11 }
  0x14   : > { %p702_p5 = scmp.lt.u32.totalorder %s695_s11, %s1262_s1 }
  0x15   : > { %p1024_p13 = pneg %p1008_p11 }
  0x17   : > { %p698_p0 = pnand %p1024_p13, %p696_p12 }
  0x19   : > { %p699_p3 = pneg %p698_p0 }
  0x1b   : > { %p704_p7 = pnand %p702_p5, %p699_p3 }
  0x1d   : > { %707 = shalt.err (!%p704_p7)
}
  0x1e   : > { %s708_s17 = scalar_lea.vmem %s1001_s28, 64  ;;  %p716_p2 = scmp.lt.s32.totalorder %s1001_s28, %s1001_s28 }
  0x1f   : > { %p709_p9 = scmp.ne.s32.totalorder %s1001_s28, %s708_s17  ;;  %p717_p6 = scmp.lt.s32.totalorder %s708_s17, %s708_s17 }
  0x21   : > { %p711_p10 = pnand %p709_p9, %p1024_p13  ;;  %p718_p12 = por %p717_p6, %p716_p2 }
  0x23   : > { %p712_p1 = pneg %p711_p10 }
  0x25   : > { %p719_p0 = pnand %p718_p12, %p712_p1 }
  0x27   : > { %722 = shalt.err (!%p719_p0)
}
  0x28   : > { %s916_s23 = smov 32   ;;  %s917_s27 = smov 2  }
  0x29   : > { %619 = dma.hbm_to_vmem [thread:$0]  (!%p1008_p11), %s1262_s1, 64, %s1001_s28, [#allocation6], %s916_s23, %s916_s23, %s917_s27  }
  0x2a   : > { %s723_s11 = scalar_lea.hbm %s1264_s3, 16 }
  0x2b   : > { %p724_p2 = scmp.ne.s32.totalorder %s1264_s3, %s723_s11  ;;  %p730_p10 = scmp.lt.u32.totalorder %s723_s11, %s1264_s3 }
  0x2d   : > { %p726_p1 = pnand %p724_p2, %p1024_p13 }
  0x2f   : > { %p727_p6 = pneg %p726_p1 }
  0x31   : > { %p732_p3 = pnand %p730_p10, %p727_p6 }
  0x33   : > { %735 = shalt.err (!%p732_p3)
}
  0x34   : > { %s736_s28 = scalar_lea.vmem %s1012_s6, 16  ;;  %s743_s17 = scalar_lea.vmem %s1012_s6, 32 }
  0x35   : > { %p737_p5 = scmp.ne.s32.totalorder %s1012_s6, %s736_s28  ;;  %p744_p12 = scmp.lt.s32.totalorder %s1012_s6, %s1012_s6 }
  0x36   : > { %p745_p0 = scmp.lt.s32.totalorder %s743_s17, %s736_s28 }
  0x37   : > { %p739_p7 = pnand %p737_p5, %p1024_p13 }
  0x38   : > { %p746_p2 = por %p745_p0, %p744_p12 }
  0x39   : > { %p740_p9 = pneg %p739_p7 }
  0x3b   : > { %p747_p1 = pnand %p746_p2, %p740_p9 }
  0x3d   : > { %750 = shalt.err (!%p747_p1)
}
  0x3e   : > { %625 = dma.hbm_to_vmem [thread:$0]  (!%p1008_p11), %s1264_s3, 16, %s1012_s6, [#allocation9]  }
  0x3f   : > { %s751_s9 = scalar_lea.hbm %s1263_s2, 16 }
  0x40   : > { %p752_p6 = scmp.ne.s32.totalorder %s1263_s2, %s751_s9  ;;  %p758_p5 = scmp.lt.u32.totalorder %s751_s9, %s1263_s2 }
  0x42   : > { %p754_p10 = pnand %p752_p6, %p1024_p13 }
  0x44   : > { %p755_p3 = pneg %p754_p10 }
  0x46   : > { %p760_p7 = pnand %p758_p5, %p755_p3 }
  0x48   : > { %763 = shalt.err (!%p760_p7)
}
  0x49   : > { %s764_s15 = scalar_lea.vmem %s191_s8, 16  ;;  %s771_s6 = scalar_lea.vmem %s191_s8, 32 }
  0x4a   : > { %p765_p9 = scmp.ne.s32.totalorder %s191_s8, %s764_s15  ;;  %p772_p2 = scmp.lt.s32.totalorder %s191_s8, %s191_s8 }
  0x4b   : > { %p773_p1 = scmp.lt.s32.totalorder %s771_s6, %s764_s15 }
  0x4c   : > { %p767_p12 = pnand %p765_p9, %p1024_p13 }
  0x4d   : > { %p774_p4 = por %p773_p1, %p772_p2 }
  0x4e   : > { %p768_p0 = pneg %p767_p12 }
  0x50   : > { %p775_p8 = pnand %p774_p4, %p768_p0 }
  0x52   : > { %778 = shalt.err (!%p775_p8)
}
  0x53   : > { %622 = dma.hbm_to_vmem [thread:$0]  (!%p1008_p11), %s1263_s2, 16, %s191_s8, [#allocation6]  }
  0x54   : > { %s918_s17 = smov [#allocation10]   ;;  %s779_s7 = scalar_lea.hbm %s1265_s4, 384 }
  0x55   : > { %s211_s23 = sshll.u32 %s918_s17, 4  ;;  %p780_p6 = scmp.ne.s32.totalorder %s1265_s4, %s779_s7  ;;  %s212_s23 = int_to_ptr.vmem [resolvable:$true] %s211_s23 }
  0x56   : > { %p786_p10 = scmp.lt.u32.totalorder %s779_s7, %s1265_s4 }
  0x57   : > { %p782_p4 = pnand %p780_p6, %p1024_p13 }
  0x59   : > { %p783_p8 = pneg %p782_p4 }
  0x5b   : > { %p788_p3 = pnand %p786_p10, %p783_p8 }
  0x5d   : > { %791 = shalt.err (!%p788_p3)
}
  0x5e   : > { %s792_s8 = scalar_lea.vmem %s212_s23, 384  ;;  %p800_p12 = scmp.lt.s32.totalorder %s212_s23, %s212_s23 }
  0x5f   : > { %p793_p5 = scmp.ne.s32.totalorder %s212_s23, %s792_s8  ;;  %p801_p0 = scmp.lt.s32.totalorder %s792_s8, %s792_s8 }
  0x61   : > { %p795_p7 = pnand %p793_p5, %p1024_p13  ;;  %p802_p2 = por %p801_p0, %p800_p12 }
  0x63   : > { %p796_p9 = pneg %p795_p7 }
  0x65   : > { %p803_p1 = pnand %p802_p2, %p796_p9 }
  0x67   : > { %806 = shalt.err (!%p803_p1)
}
  0x68   : > { %s1270_s13 = smov 128   ;;  %s920_s14 = smov 8  }
  0x69   : > { %628 = dma.hbm_to_vmem [thread:$0]  (!%p1008_p11), %s1265_s4, 384, %s212_s23, [#allocation9], %s1270_s13, %s1270_s13, %s920_s14  }
  0x6a   : > { %s1110_s16 = sadd.s32 1, %s911_s21   ;;  %s30_s17 = sadd.s32 1, %s907_s20 }
  0x6b   : > { %s27_s28 = ssub.s32 %s911_s21, %s1110_s16  ;;  %p37_p6 = scmp.ne.s32.totalorder %s907_s20, %s903_s19 }
  0x6c   : > { %p28_p13 = scmp.eq.s32.totalorder %s27_s28, 0  ;;  %p38_p4 = scmp.eq.s32.totalorder %s911_s21, 0 }
  0x6d   : > { %p1276_p10 = scmp.eq.s32.totalorder %s978_s22, 1  ;;  %p641_p5 = scmp.lt.s32.totalorder %s911_s21, 2 }
  0x6e   : > { %s1119_s27 = scalar_select %p28_p13, %s907_s20, %s30_s17  }
  0x6f   : > { %p39_p8 = por %p38_p4, %p37_p6  ;;  %p1123_p3 = por %p1276_p10, %p37_p6 }
  0x70   : > { %s225_s30 = sand.u32 1, %s907_s20   ;;  %s592_s23 = smul.u32 384, %s911_s21 }
  0x71   : > { %s591_s7 = smul.u32 24, %s225_s30  ;;  %p1130_p11 = pnand %p641_p5, %p39_p8 }
  0x72   : > { %s1137_s12 = scalar_lea.hbm %s1261_s0, %s592_s23  ;;  %s1141_s6 = scalar_lea.sflag [#allocation3], %s225_s30 }
  0x73   : > { %s229_s8 = scalar_lea.vmem [#allocation2], %s591_s7  ;;  %s807_s28 = scalar_lea.hbm %s1137_s12, 384 }
  0x74   : > { %s236_s15 = sshll.u32 %s229_s8, 4  ;;  %p808_p7 = scmp.ne.s32.totalorder %s1137_s12, %s807_s28  ;;  %s1139_s15 = int_to_ptr.vmem [resolvable:$true] %s236_s15 }
  0x75   : > { %p809_p9 = pneg %p1130_p11  ;;  %s812_s10 = scalar_lea.hbm %s1261_s0, 768 }
  0x76   : > { %p813_p2 = scmp.lt.u32.totalorder %s1137_s12, %s1261_s0  ;;  %p814_p1 = scmp.lt.u32.totalorder %s812_s10, %s807_s28 }
  0x77   : > { %p810_p12 = pnand %p809_p9, %p808_p7  ;;  %p816_p6 = scmp.lt.u32.totalorder %s807_s28, %s1137_s12 }
  0x78   : > { %p815_p13 = por %p814_p1, %p813_p2 }
  0x79   : > { %p811_p0 = pneg %p810_p12 }
  0x7a   : > { %p817_p4 = por %p816_p6, %p815_p13 }
  0x7c   : > { %p818_p8 = pnand %p817_p4, %p811_p0 }
  0x7e   : > { %821 = shalt.err (!%p818_p8)
}
  0x7f   : > { %s822_s30 = scalar_lea.vmem %s1139_s15, 384  ;;  %s921_s7 = smov [#allocation2]  }
  0x80   : > { %p823_p10 = scmp.ne.s32.totalorder %s1139_s15, %s822_s30  ;;  %s827_s8 = sshll.u32 %s921_s7, 4  ;;  %s828_s8 = int_to_ptr.vmem [resolvable:$false] %s827_s8 }
  0x81   : > { %s829_s13 = scalar_lea.vmem %s828_s8, 768  ;;  %p830_p12 = scmp.lt.s32.totalorder %s1139_s15, %s828_s8 }
  0x82   : > { %p825_p5 = pnand %p823_p10, %p809_p9  ;;  %p831_p2 = scmp.lt.s32.totalorder %s829_s13, %s822_s30 }
  0x84   : > { %p826_p7 = pneg %p825_p5  ;;  %p832_p1 = por %p831_p2, %p830_p12 }
  0x86   : > { %p833_p13 = pnand %p832_p1, %p826_p7 }
  0x88   : > { %836 = shalt.err (!%p833_p13)
}
  0x89   : > { %s1279_s28 = smov 128   ;;  %p1280_p9 = scmp.ne.s32.totalorder %s1273_s26, 0 }
  0x8a   : > { %632 = dma.hbm_to_vmem [thread:$0]  (!%p1130_p11), %s1137_s12, 384, %s1139_s15, %s1141_s6, %s1279_s28, %s1279_s28, %s920_s14  }
  0x8b   : > { %248 = sbr.rel (%p1280_p9) target bundleno = 317 (0x13d), region = 40  ;;  %s1175_s17 = sand.u32 (!%p1280_p9), 1, %s903_s19  }
  0x8c   : > { %s593_s23 = smul.u32 (!%p1280_p9), 24, %s1175_s17  ;;  %s251_s10 = scalar_lea.sflag (!%p1280_p9), [#allocation3], %s1175_s17 }
  0x8d   : > { %p1281_p0 = scmp.ne.s32.totalorder (!%p1280_p9), %s1271_s24, 0 }
  0x8e   : > { %s1179_s11 = scalar_lea.vmem (!%p1280_p9), [#allocation2], %s593_s23 }
  0x92   : > { %882 = dma.done.wait (%p1281_p0), %s251_s10, 384  }
  0x93   : > { %884 = vsyncadd (%p1281_p0), %s251_s10, 4294966912  ;;  %p1282_p11 = scmp.eq.s32.totalorder %s978_s22, 0 }
  0x95   : > { %886 = dma.done.wait (%p1282_p11), [#allocation6], 80   ;;  %p1283_p6 = pmov %p1282_p11 }
  0x97   : > { %888 = vsyncadd (%p1283_p6), [#allocation6], 4294967216  ;;  %p1284_p4 = pmov %p1283_p6 }
  0x99   : > { %890 = dma.done.wait (%p1284_p4), [#allocation9], 400   ;;  %p1285_p8 = pmov %p1284_p4 }
  0x9a   : > { %s594_s26 = smul.u32 20, %s1175_s17  ;;  %v922_v0 = vmov 0   ;;  %v358_v1 = vld [vmem:[#allocation10] sm:$0xff]  ;;  %v360_v2 = vld [vmem:[#allocation10 + $0x10] sm:$0x3f]  ;;  %v359_v3 = vld [vmem:[#allocation10 + $0x8] sm:$0xff]  ;;  %v317_v16 = vlaneseq }
  0x9b   : > { %892 = vsyncadd (%p1285_p8), [#allocation9], 4294966896  ;;  %691 = vset.pattern.permute.xlu0 %v922_v0  ;;  %692 = vset.pattern.permute.xlu1 %v922_v0  ;;  %vm300_vm0 = vcmask 1041408   ;;  %v298_v4 = vld [vmem:[#allocation5] sm:$0x3]  ;;  %v334_v31 = vld [vmem:[%s1179_s11] sm:$0xff] }
  0x9c   : > { %s1194_s14 = scalar_lea.vmem [#allocation11], %s594_s26  ;;  %363 = vperm.xlu0 %691, %v358_v1   ;;  %373 = vperm.xlu1 %692, %v360_v2   ;;  %v299_v5 = vld [vmem:[#allocation5 + $0x2] sm:$0x3]  ;;  %v301_v6 = vsel %vm300_vm0, %v298_v4, 0.0  ;;  %v923_v14 = vmov 1966171168  }
  0x9d   : > { %383 = vst [vmem:[%s1194_s14 + $0x10] sm:$0x3] %v922_v0  ;;  %379 = vst [vmem:[%s1194_s14] sm:$0xf] %v922_v0  ;;  %v302_v7 = vsel %vm300_vm0, %v299_v5, 0.0  ;;  %v315_v15 = vunpack.c.l.s4 %v923_v14  ;;  %v318_v18 = vshrl.u32 %v317_v16, 7  ;;  %v335_v36 = vld [vmem:[%s1179_s11 + $0x8] sm:$0xff] }
  0x9e   : > { %380 = vst [vmem:[%s1194_s14 + $0x4] sm:$0xf] %v922_v0  ;;  %381 = vst [vmem:[%s1194_s14 + $0x8] sm:$0xf] %v922_v0  ;;  %v303_v8 = vadd.f32 %v302_v7, %v301_v6  ;;  %v310_v24 = vld [vmem:[#allocation7] sm:$0x1] }
  0x9f   : > { %382 = vst [vmem:[%s1194_s14 + $0xc] sm:$0xf] %v922_v0  ;;  %v316_v17 = vunpack.c.0.s8 %v315_v15  ;;  %v340_v26 = vsub.s32 0, %v318_v18  ;;  %v331_v28 = vld [vmem:[#allocation8] sm:$0x1]  ;;  %vm430_vm1 = vcmask 1043459  }
  0xa0   : > { %368 = vperm.xlu0 %691, %v359_v3   ;;  %v304_v9 = vmul.f32 0.03125, %v303_v8  ;;  %v336_v32 = vld [vmem:[%s1179_s11 + $0x10] sm:$0x3f]  ;;  %vm431_vm2 = vsmask.f32 7950  ;;  %vm438_vm4 = vcmask 1042432  }
  0xa1   : > { %v319_v19 = vsub.s32 %v316_v17, %v318_v18  ;;  %vm432_vm3 = vmand %vm430_vm1, %vm431_vm2  ;;  %vm439_vm5 = vsmask.f32 2304  ;;  %vm394_vm6 = vsmask.f32 3328  ;;  %vm395_vm7 = vsmask.f32 7440 }
  0xa2   : > { %v305_v10 = vmul.f32 %v304_v9, %v304_v9  ;;  %vm440_vm8 = vmand %vm438_vm4, %vm439_vm5  ;;  %s595_s24 = smul.u32 320, %s978_s22  ;;  %s458_s9 = sshll.u32 %s1194_s14, 4  ;;  %s1216_s9 = int_to_ptr.vmem [resolvable:$true] %s458_s9 }
  0xa3   : > { %vm396_vm9 = vmor %vm394_vm6, %vm395_vm7  ;;  %s445_s22 = scalar_lea.sflag [#allocation4], %s1175_s17  ;;  %s837_s30 = scalar_lea.vmem %s1216_s9, 320 }
  0xa4   : > { %v307_v11 = vrot.slane %v305_v10, 7  ;;  %v433_v55 = vld [vmem:[%s1194_s14] sm:$0x8]  ;;  %s1214_s6 = scalar_lea.hbm %s1266_s5, %s595_s24  ;;  %p838_p10 = scmp.ne.s32.totalorder %s1216_s9, %s837_s30 }
  0xa5   : > { %s924_s7 = smov [#allocation11]  }
  0xa6   : > { %v309_v12 = vsub.f32 %v304_v9, %v307_v11  ;;  %v441_v1 = vld [vmem:[%s1194_s14 + $0xc] sm:$0x7]  ;;  %p839_p5 = pnand %p838_p10, %p1123_p3  ;;  %s841_s8 = sshll.u32 %s924_s7, 4  ;;  %s842_s8 = int_to_ptr.vmem [resolvable:$false] %s841_s8 }
  0xa7   : > { %s843_s13 = scalar_lea.vmem %s842_s8, 640  ;;  %p844_p12 = scmp.lt.s32.totalorder %s1216_s9, %s842_s8 }
  0xa8   : > { %v311_v13 = vadd.f32 1e-05, %v309_v12  ;;  %p840_p7 = pneg %p839_p5  ;;  %p845_p2 = scmp.lt.s32.totalorder %s843_s13, %s837_s30 }
  0xaa   : > { %693 = vrsqrt.f32 %v311_v13  ;;  %p846_p1 = por %p845_p2, %p844_p12 }
  0xac   : > { %p847_p13 = pnand %p846_p1, %p840_p7 }
  0xb4   : > { %v694_v20 = vpop.eup %693 }
  0xb5   : > { %v320_v21 = vrot.slane %v694_v20, %v319_v19 }
  0xb7   : > { %v321_v22 = vcombine.high %v320_v21, %v320_v21 }
  0xb9   : > { %v328_v23 = vrot.slane %v321_v22, %v319_v19 }
  0xbb   : > { %v330_v25 = vmul.f32 %v328_v23, %v310_v24 }
  0xbd   : > { %v332_v27 = vmul.f32 %v330_v25, %v304_v9  ;;  %v341_v30 = vrot.slane %v330_v25, %v340_v26 }
  0xbf   : > { %v333_v29 = vsub.f32 %v331_v28, %v332_v27  ;;  %v343_v33 = vmul.f32 %v341_v30, %v334_v31  ;;  %v345_v35 = vmul.f32 %v341_v30, %v336_v32  ;;  %v344_v39 = vmul.f32 %v341_v30, %v335_v36 }
  0xc1   : > { %v350_v34 = vrot.slane %v333_v29, %v340_v26 }
  0xc3   : > { %v352_v37 = vadd.f32 %v350_v34, %v343_v33  ;;  %v354_v38 = vadd.f32 %v350_v34, %v345_v35  ;;  %v353_v42 = vadd.f32 %v350_v34, %v344_v39 }
  0xc5   : > { %v355_v40 = vmax.f32 %v352_v37, 0.0  ;;  %v357_v41 = vmax.f32 %v354_v38, 0.0  ;;  %v356_v47 = vmax.f32 %v353_v42, 0.0 }
 0x11b   : > { %v364_v43 = vpop.permute.xlu0 %363  ;;  %v374_v44 = vpop.permute.xlu1 %373 }
 0x11c   : > { %v376_v45 = vmul.f32 %v364_v43, %v355_v40  ;;  %v378_v46 = vmul.f32 %v374_v44, %v357_v41 }
 0x11e   : > { %v588_v48 = vpack.c.bf16 %v376_v45, %v376_v45  ;;  %v590_v49 = vpack.c.bf16 %v378_v46, %v378_v46 }
 0x11f   : > { %v369_v50 = vpop.permute.xlu0 %368 }
 0x120   : > { %v398_v51 = vshll.u32 %v588_v48, 16  ;;  %v401_v52 = vshrl.u32 %v588_v48, 16  ;;  %v417_v53 = vshll.u32 %v590_v49, 16  ;;  %v421_v54 = vshrl.u32 %v590_v49, 16 }
 0x121   : > { %v377_v56 = vmul.f32 %v369_v50, %v356_v47 }
 0x122   : > { %v400_v57 = vrot.slane %v398_v51, 5  ;;  %v403_v58 = vrot.slane %v401_v52, 4  ;;  %v419_v59 = vrot.slane %v417_v53, 5  ;;  %v423_v60 = vrot.slane %v421_v54, 4 }
 0x123   : > { %v589_v61 = vpack.c.bf16 %v377_v56, %v377_v56 }
 0x124   : > { %v404_v62 = vor.u32 %v403_v58, %v400_v57  ;;  %v434_v63 = vsel %vm432_vm3, %v400_v57, %v433_v55  ;;  %v424_v0 = vor.u32 %v423_v60, %v419_v59 }
 0x125   : > { %435 = vst [vmem:[%s1194_s14] sm:$0x8] %v434_v63  ;;  %v407_v2 = vshll.u32 %v589_v61, 16  ;;  %v411_v3 = vshrl.u32 %v589_v61, 16 }
 0x126   : > { %v405_v4 = vrot.slane %v404_v62, 4  ;;  %v425_v5 = vrot.slane %v424_v0, 4 }
 0x127   : > { %v409_v6 = vrot.slane %v407_v2, 5  ;;  %v413_v7 = vrot.slane %v411_v3, 4 }
 0x128   : > { %v442_v8 = vsel %vm440_vm8, %v425_v5, %v441_v1 }
 0x129   : > { %443 = vst [vmem:[%s1194_s14 + $0xc] sm:$0x7] %v442_v8  ;;  %v410_v9 = vsel %vm396_vm9, %v405_v4, %v409_v6  ;;  %v414_v10 = vor.u32 %v413_v7, %v409_v6 }
 0x12a   : > { %436 = vst [vmem:[%s1194_s14 + $0x4] sm:$0xf] %v410_v9 }
 0x12b   : > { %v415_v11 = vrot.slane %v414_v10, 4 }
 0x12d   : > { %v420_v12 = vsel %vm396_vm9, %v415_v11, %v419_v59 }
 0x12e   : > { %437 = vst [vmem:[%s1194_s14 + $0x8] sm:$0xf] %v420_v12 }
 0x12f   : > { %850 = shalt.err (!%p847_p13)
}
 0x130   : > { %s851_s28 = scalar_lea.hbm %s1214_s6, 320  ;;  %s855_s11 = scalar_lea.hbm %s1266_s5, 640 }
 0x131   : > { %p852_p9 = scmp.ne.s32.totalorder %s1214_s6, %s851_s28  ;;  %p856_p6 = scmp.lt.u32.totalorder %s1214_s6, %s1266_s5 }
 0x132   : > { %p857_p4 = scmp.lt.u32.totalorder %s855_s11, %s851_s28  ;;  %p859_p10 = scmp.lt.u32.totalorder %s851_s28, %s1214_s6 }
 0x133   : > { %p853_p0 = pnand %p852_p9, %p1123_p3 }
 0x134   : > { %p858_p8 = por %p857_p4, %p856_p6 }
 0x135   : > { %p854_p11 = pneg %p853_p0 }
 0x136   : > { %p860_p5 = por %p859_p10, %p858_p8 }
 0x138   : > { %p861_p7 = pnand %p860_p5, %p854_p11 }
 0x13a   : > { %864 = shalt.err (!%p861_p7)
}
 0x13b   : > { %s925_s24 = smov 64   ;;  %s926_s12 = smov 4  }
 0x13c   : > { %614 = dma.vmem_to_hbm [thread:$0]  (%p1123_p3), %s1216_s9, 320, %s1214_s6, %s445_s22, %s925_s24, %s925_s24, %s926_s12  }
 0x13d PF: > { %s473_s15 = sand.u32 1, %s899_s18   ;;  %p1286_p12 = scmp.ne.s32.totalorder %s1272_s25, 0 }
 0x13e   : > { %p1287_p2 = scmp.ge.s32.totalorder %s911_s21, 2  ;;  %s474_s30 = scalar_lea.sflag [#allocation4], %s473_s15 }
 0x140   : > { %p634_p1 = pnand %p1287_p2, %p1286_p12 }
 0x142   : > { %894 = dma.done.wait (!%p634_p1), %s474_s30, 320  }
 0x143   : > { %896 = vsyncadd (!%p634_p1), %s474_s30, 4294966976  ;;  %p20_p13 = scmp.ge.s32.totalorder %s1110_s16, 4   ;;  %s1288_s18 = smov %s903_s19 }
 0x144   : > { %s1289_s19 = smov %s907_s20  ;;  %s1290_s20 = smov %s1119_s27 }
 0x145   : > { %s1291_s21 = smov %s1110_s16  ;;  %22 = sbr.rel (!%p20_p13) target bundleno = 7 (0x7), region = 101 }
 0x14c   :  { %479 = vsyncpa [#allocation3], 1 }
 0x14d   :  { %481 = vsyncpa [#allocation3 + $0x1], 1 }
 0x14e   :  { %482 = vsyncpa [#allocation6], 1 }
 0x14f   :  { %483 = vsyncpa [#allocation9], 1 }
 0x150   :  { %484 = vsyncpa [#allocation4], 1 }
 0x151   :  { %486 = vsyncpa [#allocation4 + $0x1], 1 }

// kernel: downsample_forward.49
= control target key start
LH: loop header
LB: loop body
LE: loop exit
PB: predicated region body
PF: predicated region fallthrough
CT: control target
= control target key end

     0   :  { %s1477_s0 = inlined_call_operand.hbm [shape: f32[2,22,128], index: 0, kind: input, shape index: {}]   ;;  %s1478_s1 = inlined_call_operand.hbm [shape: f32[2,2,128], index: 1, kind: input, shape index: {}]   ;;  %s1479_s2 = inlined_call_operand.hbm [shape: f32[1,128], index: 2, kind: input, shape index: {}]   ;;  %s1480_s3 = inlined_call_operand.hbm [shape: f32[1,128], index: 3, kind: input, shape index: {}]   ;;  %s1481_s4 = inlined_call_operand.hbm [shape: f32[22,1], index: 4, kind: input, shape index: {}]   ;;  %s1482_s5 = inlined_call_operand.hbm [shape: bf16[2,36,128], index: 5, kind: input, shape index: {}]   ;;  %s1483_s6 = inlined_call_operand.hbm [shape: bf16[2,36,128], index: 6, kind: output, shape index: {}]  }
   0x1   :  { %1489 = sst [smem:[#allocation19_spill]] %s1477_s0 }
   0x2   :  { %1490 = sst [smem:[#allocation20_spill]] %s1478_s1 }
   0x3   :  { %1491 = sst [smem:[#allocation21_spill]] %s1479_s2 }
   0x4   :  { %11 = vsyncpa [#allocation3], 0 }
   0x5   :  { %13 = vsyncpa [#allocation3 + $0x1], 0 }
   0x6   :  { %14 = vsyncpa [#allocation6], 0 }
   0x7   :  { %15 = vsyncpa [#allocation9], 0 }
   0x8   :  { %16 = vsyncpa [#allocation12], 0 }
   0x9   :  { %18 = vsyncpa [#allocation12 + $0x1], 0 }
   0xa   :  { %19 = vsyncpa [#allocation4], 0 }
   0xb   :  { %21 = vsyncpa [#allocation4 + $0x1], 0  ;;  %s1125_s21 = smov 0   ;;  %s1127_s22 = smov 0  }
   0xc   :  { %s1129_s23 = smov 0   ;;  %s1131_s24 = smov 0  }
   0xd LB: > { %s1146_s25 = sadd.s32 4294967295, %s1071_s24   ;;  %s685_s26 = sadd.s32 4294967294, %s1071_s24   ;;  %s1071_s24 = sphi %s1131_s24, %s1516_s24   ;;  %s1067_s23 = sphi %s1129_s23, %s1515_s23   ;;  %s1063_s22 = sphi %s1127_s22, %s1514_s22   ;;  %s1059_s21 = sphi %s1125_s21, %s1513_s21  }
   0xe   : > { %p47_p0 = scmp.ne.s32.totalorder %s1063_s22, %s1059_s21  ;;  %p1484_p1 = scmp.eq.s32.totalorder %s1146_s25, 0 }
   0xf   : > { %p187_p3 = scmp.eq.s32.totalorder %s685_s26, 1  ;;  %p686_p5 = scmp.ge.s32.totalorder %s1071_s24, 1 }
  0x10   : > { %p1155_p4 = por %p1484_p1, %p47_p0  ;;  %p194_p7 = scmp.lt.s32.totalorder %s1071_s24, 3 }
  0x11   : > { %p1160_p6 = por %p187_p3, %p47_p0  ;;  %s1073_s30 = smov [#allocation5]  }
  0x12   : > { %s1492_s27 = scalar_select %p1155_p4, 1, 0 }
  0x13   : > { %s1493_s28 = scalar_select %p1160_p6, 1, 0 }
  0x14   : > { %p1165_p8 = pnand %p686_p5, %p194_p7  ;;  %s206_s7 = sshll.u32 %s1073_s30, 4  ;;  %s1169_s7 = int_to_ptr.vmem [resolvable:$true] %s206_s7 }
  0x15   : > { %s1074_s9 = smov [#allocation8]   ;;  %s1075_s11 = smov [#allocation7]  }
  0x16   : > { %s1494_s29 = scalar_select %p1165_p8, 1, 0 }
  0x17   : > { %p737_p9 = pneg %p1165_p8  ;;  %s231_s10 = sshll.u32 %s1074_s9, 4  ;;  %s1180_s10 = int_to_ptr.vmem [resolvable:$true] %s231_s10 }
  0x18   : > { %s1182_s12 = sshll.u32 %s1075_s11, 4  ;;  %s1496_s1 = sld [smem:[#allocation20_spill]]  ;;  %s221_s12 = int_to_ptr.vmem [resolvable:$true] %s1182_s12 }
  0x19   : > { %p1176_p11 = pnand %p737_p9, %p1484_p1 }
  0x1b   : > { %p1192_p13 = pneg %p1176_p11 }
  0x1e   : > { %s821_s15 = scalar_lea.hbm %s1496_s1, 64 }
  0x1f   : > { %p822_p12 = scmp.ne.s32.totalorder %s1496_s1, %s821_s15  ;;  %p828_p5 = scmp.lt.u32.totalorder %s821_s15, %s1496_s1 }
  0x21   : > { %p824_p0 = pnand %p1192_p13, %p822_p12 }
  0x23   : > { %p825_p3 = pneg %p824_p0 }
  0x25   : > { %p830_p7 = pnand %p828_p5, %p825_p3 }
  0x27   : > { %833 = shalt.err (!%p830_p7)
}
  0x28   : > { %s834_s26 = scalar_lea.vmem %s1169_s7, 64  ;;  %p842_p2 = scmp.lt.s32.totalorder %s1169_s7, %s1169_s7 }
  0x29   : > { %p835_p9 = scmp.ne.s32.totalorder %s1169_s7, %s834_s26  ;;  %p843_p6 = scmp.lt.s32.totalorder %s834_s26, %s834_s26 }
  0x2b   : > { %p837_p10 = pnand %p835_p9, %p1192_p13  ;;  %p844_p12 = por %p843_p6, %p842_p2 }
  0x2d   : > { %p838_p1 = pneg %p837_p10 }
  0x2f   : > { %p845_p0 = pnand %p844_p12, %p838_p1 }
  0x31   : > { %848 = shalt.err (!%p845_p0)
}
  0x32   : > { %s1076_s30 = smov 32   ;;  %s1077_s9 = smov 2  }
  0x33   : > { %740 = dma.hbm_to_vmem [thread:$0]  (!%p1176_p11), %s1496_s1, 64, %s1169_s7, [#allocation6], %s1076_s30, %s1076_s30, %s1077_s9  }
  0x34   : > { %s849_s16 = scalar_lea.hbm %s1480_s3, 16 }
  0x35   : > { %p850_p2 = scmp.ne.s32.totalorder %s1480_s3, %s849_s16  ;;  %p856_p10 = scmp.lt.u32.totalorder %s849_s16, %s1480_s3 }
  0x37   : > { %p852_p1 = pnand %p850_p2, %p1192_p13 }
  0x39   : > { %p853_p6 = pneg %p852_p1 }
  0x3b   : > { %p858_p3 = pnand %p856_p10, %p853_p6 }
  0x3d   : > { %861 = shalt.err (!%p858_p3)
}
  0x3e   : > { %s862_s7 = scalar_lea.vmem %s1180_s10, 16  ;;  %s869_s30 = scalar_lea.vmem %s1180_s10, 32 }
  0x3f   : > { %p863_p5 = scmp.ne.s32.totalorder %s1180_s10, %s862_s7  ;;  %p870_p12 = scmp.lt.s32.totalorder %s1180_s10, %s1180_s10 }
  0x40   : > { %p871_p0 = scmp.lt.s32.totalorder %s869_s30, %s862_s7 }
  0x41   : > { %p865_p7 = pnand %p863_p5, %p1192_p13 }
  0x42   : > { %p872_p2 = por %p871_p0, %p870_p12 }
  0x43   : > { %p866_p9 = pneg %p865_p7 }
  0x45   : > { %p873_p1 = pnand %p872_p2, %p866_p9 }
  0x47   : > { %876 = shalt.err (!%p873_p1)
}
  0x48   : > { %746 = dma.hbm_to_vmem [thread:$0]  (!%p1176_p11), %s1480_s3, 16, %s1180_s10, [#allocation9]  }
  0x49   : > { %s1498_s2 = sld [smem:[#allocation21_spill]] }
  0x4f   : > { %s877_s15 = scalar_lea.hbm %s1498_s2, 16 }
  0x50   : > { %p878_p6 = scmp.ne.s32.totalorder %s1498_s2, %s877_s15  ;;  %p884_p5 = scmp.lt.u32.totalorder %s877_s15, %s1498_s2 }
  0x52   : > { %p880_p10 = pnand %p878_p6, %p1192_p13 }
  0x54   : > { %p881_p3 = pneg %p880_p10 }
  0x56   : > { %p886_p7 = pnand %p884_p5, %p881_p3 }
  0x58   : > { %889 = shalt.err (!%p886_p7)
}
  0x59   : > { %s890_s26 = scalar_lea.vmem %s221_s12, 16  ;;  %s897_s10 = scalar_lea.vmem %s221_s12, 32 }
  0x5a   : > { %p891_p9 = scmp.ne.s32.totalorder %s221_s12, %s890_s26  ;;  %p898_p2 = scmp.lt.s32.totalorder %s221_s12, %s221_s12 }
  0x5b   : > { %p899_p1 = scmp.lt.s32.totalorder %s897_s10, %s890_s26 }
  0x5c   : > { %p893_p12 = pnand %p891_p9, %p1192_p13 }
  0x5d   : > { %p900_p4 = por %p899_p1, %p898_p2 }
  0x5e   : > { %p894_p0 = pneg %p893_p12 }
  0x60   : > { %p901_p8 = pnand %p900_p4, %p894_p0 }
  0x62   : > { %904 = shalt.err (!%p901_p8)
}
  0x63   : > { %743 = dma.hbm_to_vmem [thread:$0]  (!%p1176_p11), %s1498_s2, 16, %s221_s12, [#allocation6]  }
  0x64   : > { %s1078_s9 = smov [#allocation10]   ;;  %s905_s15 = scalar_lea.hbm %s1481_s4, 384 }
  0x65   : > { %s241_s11 = sshll.u32 %s1078_s9, 4  ;;  %p906_p6 = scmp.ne.s32.totalorder %s1481_s4, %s905_s15  ;;  %s242_s11 = int_to_ptr.vmem [resolvable:$true] %s241_s11 }
  0x66   : > { %p912_p10 = scmp.lt.u32.totalorder %s905_s15, %s1481_s4 }
  0x67   : > { %p908_p4 = pnand %p906_p6, %p1192_p13 }
  0x69   : > { %p909_p8 = pneg %p908_p4 }
  0x6b   : > { %p914_p3 = pnand %p912_p10, %p909_p8 }
  0x6d   : > { %917 = shalt.err (!%p914_p3)
}
  0x6e   : > { %s918_s12 = scalar_lea.vmem %s242_s11, 384  ;;  %p926_p12 = scmp.lt.s32.totalorder %s242_s11, %s242_s11 }
  0x6f   : > { %p919_p5 = scmp.ne.s32.totalorder %s242_s11, %s918_s12  ;;  %p927_p0 = scmp.lt.s32.totalorder %s918_s12, %s918_s12 }
  0x71   : > { %p921_p7 = pnand %p919_p5, %p1192_p13  ;;  %p928_p2 = por %p927_p0, %p926_p12 }
  0x73   : > { %p922_p9 = pneg %p921_p7 }
  0x75   : > { %p929_p1 = pnand %p928_p2, %p922_p9 }
  0x77   : > { %932 = shalt.err (!%p929_p1)
}
  0x78   : > { %s1487_s26 = smov 128   ;;  %s1488_s18 = smov 8  }
  0x79   : > { %749 = dma.hbm_to_vmem [thread:$0]  (!%p1176_p11), %s1481_s4, 384, %s242_s11, [#allocation9], %s1487_s26, %s1487_s26, %s1488_s18  }
  0x7a   : > { %s1278_s30 = sadd.s32 1, %s1071_s24   ;;  %s34_s13 = sadd.s32 1, %s1067_s23 }
  0x7b   : > { %s31_s9 = ssub.s32 %s1071_s24, %s1278_s30  ;;  %p41_p6 = scmp.ne.s32.totalorder %s1067_s23, %s1063_s22 }
  0x7c   : > { %p32_p13 = scmp.eq.s32.totalorder %s31_s9, 0  ;;  %p42_p4 = scmp.eq.s32.totalorder %s1071_s24, 0 }
  0x7d   : > { %p1499_p10 = scmp.eq.s32.totalorder %s1146_s25, 1  ;;  %p765_p5 = scmp.lt.s32.totalorder %s1071_s24, 2 }
  0x7e   : > { %s1287_s14 = scalar_select %p32_p13, %s1067_s23, %s34_s13  }
  0x7f   : > { %p43_p8 = por %p42_p4, %p41_p6  ;;  %p1291_p3 = por %p1499_p10, %p41_p6 }
  0x80   : > { %s1297_s15 = sand.u32 1, %s1067_s23   ;;  %s709_s16 = smul.u32 384, %s1071_s24 }
  0x81   : > { %s708_s11 = smul.u32 24, %s1297_s15  ;;  %p1301_p11 = pnand %p765_p5, %p43_p8 }
  0x82   : > { %s1502_s0 = sld [smem:[#allocation19_spill]]  ;;  %s256_s9 = scalar_lea.sflag [#allocation3], %s1297_s15 }
  0x83   : > { %s259_s10 = scalar_lea.vmem [#allocation2], %s708_s11  ;;  %p935_p9 = pneg %p1301_p11 }
  0x84   : > { %s266_s7 = sshll.u32 %s259_s10, 4  ;;  %s1310_s7 = int_to_ptr.vmem [resolvable:$true] %s266_s7 }
  0x88   : > { %s1308_s12 = scalar_lea.hbm %s1502_s0, %s709_s16  ;;  %s938_s20 = scalar_lea.hbm %s1502_s0, 768 }
  0x89   : > { %s933_s13 = scalar_lea.hbm %s1308_s12, 384  ;;  %p939_p2 = scmp.lt.u32.totalorder %s1308_s12, %s1502_s0 }
  0x8a   : > { %p934_p7 = scmp.ne.s32.totalorder %s1308_s12, %s933_s13  ;;  %p940_p1 = scmp.lt.u32.totalorder %s938_s20, %s933_s13 }
  0x8b   : > { %p942_p6 = scmp.lt.u32.totalorder %s933_s13, %s1308_s12 }
  0x8c   : > { %p936_p12 = pnand %p935_p9, %p934_p7  ;;  %p941_p13 = por %p940_p1, %p939_p2 }
  0x8e   : > { %p937_p0 = pneg %p936_p12  ;;  %p943_p4 = por %p942_p6, %p941_p13 }
  0x90   : > { %p944_p8 = pnand %p943_p4, %p937_p0 }
  0x92   : > { %947 = shalt.err (!%p944_p8)
}
  0x93   : > { %s948_s11 = scalar_lea.vmem %s1310_s7, 384  ;;  %s1081_s10 = smov [#allocation2]  }
  0x94   : > { %p949_p10 = scmp.ne.s32.totalorder %s1310_s7, %s948_s11  ;;  %s953_s19 = sshll.u32 %s1081_s10, 4  ;;  %s954_s19 = int_to_ptr.vmem [resolvable:$false] %s953_s19 }
  0x95   : > { %s955_s26 = scalar_lea.vmem %s954_s19, 768  ;;  %p956_p12 = scmp.lt.s32.totalorder %s1310_s7, %s954_s19 }
  0x96   : > { %p951_p5 = pnand %p949_p10, %p935_p9  ;;  %p957_p2 = scmp.lt.s32.totalorder %s955_s26, %s948_s11 }
  0x98   : > { %p952_p7 = pneg %p951_p5  ;;  %p958_p1 = por %p957_p2, %p956_p12 }
  0x9a   : > { %p959_p13 = pnand %p958_p1, %p952_p7 }
  0x9c   : > { %962 = shalt.err (!%p959_p13)
}
  0x9d   : > { %s1503_s18 = smov 8   ;;  %s1504_s13 = smov 128  }
  0x9e   : > { %753 = dma.hbm_to_vmem [thread:$0]  (!%p1301_p11), %s1308_s12, 384, %s1310_s7, %s256_s9, %s1504_s13, %s1504_s13, %s1503_s18  }
  0x9f   : > { %s710_s16 = smul.u32 20, %s1297_s15  ;;  %s277_s1 = scalar_lea.sflag [#allocation12], %s1297_s15 }
  0xa0   : > { %s711_s20 = smul.u32 320, %s1071_s24  ;;  %s968_s9 = scalar_lea.hbm %s1482_s5, 640 }
  0xa1   : > { %s280_s26 = scalar_lea.vmem [#allocation11], %s710_s16 }
  0xa2   : > { %s1348_s19 = scalar_lea.hbm %s1482_s5, %s711_s20  ;;  %s287_s0 = sshll.u32 %s280_s26, 4  ;;  %s1350_s0 = int_to_ptr.vmem [resolvable:$true] %s287_s0 }
  0xa3   : > { %s963_s2 = scalar_lea.hbm %s1348_s19, 320  ;;  %p969_p8 = scmp.lt.u32.totalorder %s1348_s19, %s1482_s5 }
  0xa4   : > { %p964_p0 = scmp.ne.s32.totalorder %s1348_s19, %s963_s2  ;;  %p970_p10 = scmp.lt.u32.totalorder %s968_s9, %s963_s2 }
  0xa5   : > { %p972_p7 = scmp.lt.u32.totalorder %s963_s2, %s1348_s19 }
  0xa6   : > { %p966_p6 = pnand %p964_p0, %p935_p9  ;;  %p971_p5 = por %p970_p10, %p969_p8 }
  0xa8   : > { %p967_p4 = pneg %p966_p6  ;;  %p973_p12 = por %p972_p7, %p971_p5 }
  0xaa   : > { %p974_p2 = pnand %p973_p12, %p967_p4 }
  0xac   : > { %977 = shalt.err (!%p974_p2)
}
  0xad   : > { %s978_s16 = scalar_lea.vmem %s1350_s0, 320  ;;  %s1082_s20 = smov [#allocation11]  }
  0xae   : > { %p979_p1 = scmp.ne.s32.totalorder %s1350_s0, %s978_s16  ;;  %s983_s11 = sshll.u32 %s1082_s20, 4  ;;  %s984_s11 = int_to_ptr.vmem [resolvable:$false] %s983_s11 }
  0xaf   : > { %s985_s10 = scalar_lea.vmem %s984_s11, 640  ;;  %p986_p6 = scmp.lt.s32.totalorder %s1350_s0, %s984_s11 }
  0xb0   : > { %p981_p13 = pnand %p979_p1, %p935_p9  ;;  %p987_p8 = scmp.lt.s32.totalorder %s985_s10, %s978_s16 }
  0xb2   : > { %p982_p0 = pneg %p981_p13  ;;  %p988_p10 = por %p987_p8, %p986_p6 }
  0xb4   : > { %p989_p5 = pnand %p988_p10, %p982_p0 }
  0xb6   : > { %992 = shalt.err (!%p989_p5)
}
  0xb7   : > { %s1083_s2 = smov 64   ;;  %s1084_s26 = smov 4  }
  0xb8   : > { %756 = dma.hbm_to_vmem [thread:$0]  (!%p1301_p11), %s1348_s19, 320, %s1350_s0, %s277_s1, %s1083_s2, %s1083_s2, %s1084_s26  }
  0xb9   : > { %p1505_p9 = scmp.ne.s32.totalorder %s1494_s29, 0 }
  0xba   : > { %s1381_s12 = sand.u32 (!%p1505_p9), 1, %s1063_s22   ;;  %p1506_p4 = scmp.ne.s32.totalorder (!%p1505_p9), %s1492_s27, 0 }
  0xbb   : > { %299 = sbr.rel (%p1505_p9) target bundleno = 369 (0x171), region = 44  ;;  %s302_s9 = scalar_lea.sflag (!%p1505_p9), [#allocation3], %s1381_s12 }
  0xbc   : > { %s712_s7 = smul.u32 (!%p1505_p9), 24, %s1381_s12 }
  0xbe   : > { %s1385_s18 = scalar_lea.vmem (!%p1505_p9), [#allocation2], %s712_s7 }
  0xc2   : > { %1038 = dma.done.wait (%p1506_p4), %s302_s9, 384  }
  0xc3   : > { %1040 = vsyncadd (%p1506_p4), %s302_s9, 4294966912  ;;  %p1507_p11 = scmp.eq.s32.totalorder %s1146_s25, 0 }
  0xc5   : > { %1042 = dma.done.wait (%p1507_p11), [#allocation6], 80   ;;  %p1508_p7 = pmov %p1507_p11 }
  0xc7   : > { %1044 = vsyncadd (%p1508_p7), [#allocation6], 4294967216  ;;  %p1509_p12 = pmov %p1508_p7 }
  0xc8   : > { %p1510_p2 = pmov %p1508_p7 }
  0xc9   : > { %1046 = dma.done.wait (%p1509_p12), [#allocation9], 400  }
  0xca   : > { %1048 = vsyncadd (%p1510_p2), [#allocation9], 4294966896  ;;  %s713_s0 = smul.u32 20, %s1381_s12  ;;  %s327_s1 = scalar_lea.sflag [#allocation12], %s1381_s12 }
  0xcc   : > { %s1401_s29 = scalar_lea.vmem [#allocation11], %s713_s0 }
  0xcd   : > { %1050 = dma.done.wait (%p1506_p4), %s327_s1, 320  }
  0xce   : > { %1052 = vsyncadd (%p1506_p4), %s327_s1, 4294966976  ;;  %v1085_v0 = vmov 0   ;;  %s1407_s15 = scalar_lea.vmem [#allocation13], %s713_s0  ;;  %v451_v1 = vld [vmem:[#allocation10] sm:$0xff]  ;;  %v453_v2 = vld [vmem:[#allocation10 + $0x10] sm:$0x3f]  ;;  %v384_v16 = vlaneseq }
  0xcf   : > { %817 = vset.pattern.permute.xlu0 %v1085_v0  ;;  %476 = vst [vmem:[%s1407_s15 + $0x10] sm:$0x3] %v1085_v0  ;;  %472 = vst [vmem:[%s1407_s15] sm:$0xf] %v1085_v0  ;;  %818 = vset.pattern.permute.xlu1 %v1085_v0  ;;  %v452_v3 = vld [vmem:[#allocation10 + $0x8] sm:$0xff]  ;;  %vm367_vm0 = vcmask 1041408   ;;  %v423_v30 = vld [vmem:[%s1401_s29 + $0x4] sm:$0xff]  }
  0xd0   : > { %473 = vst [vmem:[%s1407_s15 + $0x4] sm:$0xf] %v1085_v0  ;;  %474 = vst [vmem:[%s1407_s15 + $0x8] sm:$0xf] %v1085_v0  ;;  %456 = vperm.xlu0 %817, %v451_v1   ;;  %466 = vperm.xlu1 %818, %v453_v2   ;;  %v365_v4 = vld [vmem:[#allocation5] sm:$0x3]  ;;  %v427_v36 = vunpack.c.l.bf16 %v423_v30  ;;  %v428_v38 = vunpack.c.h.bf16 %v423_v30 }
  0xd1   : > { %475 = vst [vmem:[%s1407_s15 + $0xc] sm:$0xf] %v1085_v0  ;;  %v366_v5 = vld [vmem:[#allocation5 + $0x2] sm:$0x3]  ;;  %v368_v6 = vsel %vm367_vm0, %v365_v4, 0.0  ;;  %v385_v18 = vshrl.u32 %v384_v16, 7 }
  0xd2   : > { %v369_v7 = vsel %vm367_vm0, %v366_v5, 0.0  ;;  %v1086_v14 = vmov 1966171168   ;;  %v377_v24 = vld [vmem:[#allocation7] sm:$0x1]  ;;  %v401_v34 = vld [vmem:[%s1385_s18] sm:$0xff] }
  0xd3   : > { %v370_v8 = vadd.f32 %v369_v7, %v368_v6  ;;  %v382_v15 = vunpack.c.l.s4 %v1086_v14  ;;  %v407_v26 = vsub.s32 0, %v385_v18  ;;  %v398_v28 = vld [vmem:[#allocation8] sm:$0x1]  ;;  %v422_v29 = vld [vmem:[%s1401_s29] sm:$0x8]  ;;  %v436_v44 = vrot.slane %v427_v36, 7 }
  0xd4   : > { %461 = vperm.xlu0 %817, %v452_v3   ;;  %v425_v31 = vld [vmem:[%s1401_s29 + $0xc] sm:$0x7]  ;;  %v426_v35 = vunpack.c.l.bf16 %v422_v29  ;;  %v403_v37 = vld [vmem:[%s1385_s18 + $0x10] sm:$0x3f]  ;;  %v438_v45 = vrot.slane %v428_v38, 7  ;;  %vm434_vm1 = vcmask 1040384  }
  0xd5   : > { %v371_v9 = vmul.f32 0.03125, %v370_v8  ;;  %v383_v17 = vunpack.c.0.s8 %v382_v15  ;;  %v429_v39 = vunpack.c.l.bf16 %v425_v31  ;;  %v402_v47 = vld [vmem:[%s1385_s18 + $0x8] sm:$0xff]  ;;  %vm523_vm2 = vcmask 1043459   ;;  %s714_s27 = smul.u32 320, %s1146_s25  ;;  %s551_s17 = sshll.u32 %s1407_s15, 4  ;;  %s1432_s17 = int_to_ptr.vmem [resolvable:$true] %s551_s17 }
  0xd6   : > { %v435_v43 = vrot.slane %v426_v35, 7  ;;  %v439_v56 = vsel %vm434_vm1, %v436_v44, %v438_v45  ;;  %vm524_vm3 = vsmask.f32 7950  ;;  %v526_v8 = vld [vmem:[%s1407_s15] sm:$0x8]  ;;  %vm531_vm5 = vcmask 1042432  }
  0xd7   : > { %v372_v10 = vmul.f32 %v371_v9, %v371_v9  ;;  %v386_v19 = vsub.s32 %v383_v17, %v385_v18  ;;  %v440_v46 = vrot.slane %v429_v39, 7  ;;  %vm525_vm4 = vmand %vm523_vm2, %vm524_vm3  ;;  %vm532_vm6 = vsmask.f32 2304  ;;  %s1430_s16 = scalar_lea.hbm %s1483_s6, %s714_s27  ;;  %s538_s25 = scalar_lea.sflag [#allocation4], %s1381_s12 }
  0xd8   : > { %v437_v50 = vsel %vm434_vm1, %v435_v43, %v436_v44  ;;  %vm487_vm7 = vsmask.f32 3328  ;;  %vm488_vm8 = vsmask.f32 7440  ;;  %vm533_vm9 = vmand %vm531_vm5, %vm532_vm6  ;;  %v534_v18 = vld [vmem:[%s1407_s15 + $0xc] sm:$0x7] }
  0xd9   : > { %v374_v11 = vrot.slane %v372_v10, 7  ;;  %v441_v51 = vsel %vm434_vm1, %v438_v45, %v440_v46  ;;  %vm489_vm10 = vmor %vm487_vm7, %vm488_vm8  ;;  %s993_s20 = scalar_lea.vmem %s1432_s17, 320  ;;  %s1087_s11 = smov [#allocation13]  }
  0xda   : > { %p994_p1 = scmp.ne.s32.totalorder %s1432_s17, %s993_s20  ;;  %s997_s10 = sshll.u32 %s1087_s11, 4  ;;  %s998_s10 = int_to_ptr.vmem [resolvable:$false] %s997_s10 }
  0xdb   : > { %v376_v12 = vsub.f32 %v371_v9, %v374_v11  ;;  %s999_s2 = scalar_lea.vmem %s998_s10, 640  ;;  %p1000_p6 = scmp.lt.s32.totalorder %s1432_s17, %s998_s10 }
  0xdc   : > { %p995_p13 = pnand %p994_p1, %p1291_p3  ;;  %p1001_p8 = scmp.lt.s32.totalorder %s999_s2, %s993_s20 }
  0xdd   : > { %v378_v13 = vadd.f32 1e-05, %v376_v12 }
  0xde   : > { %p996_p0 = pneg %p995_p13  ;;  %p1002_p10 = por %p1001_p8, %p1000_p6 }
  0xdf   : > { %819 = vrsqrt.f32 %v378_v13 }
  0xe0   : > { %p1003_p5 = pnand %p1002_p10, %p996_p0 }
  0xe9   : > { %v820_v20 = vpop.eup %819 }
  0xea   : > { %v387_v21 = vrot.slane %v820_v20, %v386_v19 }
  0xec   : > { %v388_v22 = vcombine.high %v387_v21, %v387_v21 }
  0xee   : > { %v395_v23 = vrot.slane %v388_v22, %v386_v19 }
  0xf0   : > { %v397_v25 = vmul.f32 %v395_v23, %v377_v24 }
  0xf2   : > { %v399_v27 = vmul.f32 %v397_v25, %v371_v9  ;;  %v408_v33 = vrot.slane %v397_v25, %v407_v26 }
  0xf4   : > { %v400_v32 = vsub.f32 %v398_v28, %v399_v27  ;;  %v410_v40 = vmul.f32 %v408_v33, %v401_v34  ;;  %v412_v42 = vmul.f32 %v408_v33, %v403_v37  ;;  %v411_v52 = vmul.f32 %v408_v33, %v402_v47 }
  0xf6   : > { %v417_v41 = vrot.slane %v400_v32, %v407_v26 }
  0xf8   : > { %v419_v48 = vadd.f32 %v417_v41, %v410_v40  ;;  %v421_v49 = vadd.f32 %v417_v41, %v412_v42  ;;  %v420_v55 = vadd.f32 %v417_v41, %v411_v52 }
  0xfa   : > { %v445_v53 = vadd.f32 %v437_v50, %v419_v48  ;;  %v447_v54 = vadd.f32 %v441_v51, %v421_v49  ;;  %v446_v59 = vadd.f32 %v439_v56, %v420_v55 }
  0xfc   : > { %v448_v57 = vmax.f32 %v445_v53, 0.0  ;;  %v450_v58 = vmax.f32 %v447_v54, 0.0  ;;  %v449_v0 = vmax.f32 %v446_v59, 0.0 }
 0x14f   : > { %v457_v60 = vpop.permute.xlu0 %456  ;;  %v467_v61 = vpop.permute.xlu1 %466 }
 0x150   : > { %v469_v62 = vmul.f32 %v457_v60, %v448_v57  ;;  %v471_v63 = vmul.f32 %v467_v61, %v450_v58 }
 0x152   : > { %v705_v1 = vpack.c.bf16 %v469_v62, %v469_v62  ;;  %v707_v2 = vpack.c.bf16 %v471_v63, %v471_v63 }
 0x153   : > { %v462_v3 = vpop.permute.xlu0 %461 }
 0x154   : > { %v491_v4 = vshll.u32 %v705_v1, 16  ;;  %v494_v5 = vshrl.u32 %v705_v1, 16  ;;  %v510_v6 = vshll.u32 %v707_v2, 16  ;;  %v514_v7 = vshrl.u32 %v707_v2, 16 }
 0x155   : > { %v470_v9 = vmul.f32 %v462_v3, %v449_v0 }
 0x156   : > { %v493_v10 = vrot.slane %v491_v4, 5  ;;  %v496_v11 = vrot.slane %v494_v5, 4  ;;  %v512_v12 = vrot.slane %v510_v6, 5  ;;  %v516_v13 = vrot.slane %v514_v7, 4 }
 0x157   : > { %v706_v14 = vpack.c.bf16 %v470_v9, %v470_v9 }
 0x158   : > { %v497_v15 = vor.u32 %v496_v11, %v493_v10  ;;  %v527_v16 = vsel %vm525_vm4, %v493_v10, %v526_v8  ;;  %v517_v17 = vor.u32 %v516_v13, %v512_v12 }
 0x159   : > { %528 = vst [vmem:[%s1407_s15] sm:$0x8] %v527_v16  ;;  %v500_v19 = vshll.u32 %v706_v14, 16  ;;  %v504_v20 = vshrl.u32 %v706_v14, 16 }
 0x15a   : > { %v498_v21 = vrot.slane %v497_v15, 4  ;;  %v518_v22 = vrot.slane %v517_v17, 4 }
 0x15b   : > { %v502_v23 = vrot.slane %v500_v19, 5  ;;  %v506_v24 = vrot.slane %v504_v20, 4 }
 0x15c   : > { %v535_v25 = vsel %vm533_vm9, %v518_v22, %v534_v18 }
 0x15d   : > { %536 = vst [vmem:[%s1407_s15 + $0xc] sm:$0x7] %v535_v25  ;;  %v503_v26 = vsel %vm489_vm10, %v498_v21, %v502_v23  ;;  %v507_v27 = vor.u32 %v506_v24, %v502_v23 }
 0x15e   : > { %529 = vst [vmem:[%s1407_s15 + $0x4] sm:$0xf] %v503_v26 }
 0x15f   : > { %v508_v28 = vrot.slane %v507_v27, 4 }
 0x161   : > { %v513_v29 = vsel %vm489_vm10, %v508_v28, %v512_v12 }
 0x162   : > { %530 = vst [vmem:[%s1407_s15 + $0x8] sm:$0xf] %v513_v29 }
 0x163   : > { %1006 = shalt.err (!%p1003_p5)
}
 0x164   : > { %s1007_s26 = scalar_lea.hbm %s1430_s16, 320  ;;  %s1011_s18 = scalar_lea.hbm %s1483_s6, 640 }
 0x165   : > { %p1008_p9 = scmp.ne.s32.totalorder %s1430_s16, %s1007_s26  ;;  %p1012_p7 = scmp.lt.u32.totalorder %s1430_s16, %s1483_s6 }
 0x166   : > { %p1013_p12 = scmp.lt.u32.totalorder %s1011_s18, %s1007_s26  ;;  %p1015_p1 = scmp.lt.u32.totalorder %s1007_s26, %s1430_s16 }
 0x167   : > { %p1009_p4 = pnand %p1008_p9, %p1291_p3 }
 0x168   : > { %p1014_p2 = por %p1013_p12, %p1012_p7 }
 0x169   : > { %p1010_p11 = pneg %p1009_p4 }
 0x16a   : > { %p1016_p13 = por %p1015_p1, %p1014_p2 }
 0x16c   : > { %p1017_p0 = pnand %p1016_p13, %p1010_p11 }
 0x16e   : > { %1020 = shalt.err (!%p1017_p0)
}
 0x16f   : > { %s1088_s29 = smov 64   ;;  %s1089_s15 = smov 4  }
 0x170   : > { %735 = dma.vmem_to_hbm [thread:$0]  (%p1291_p3), %s1432_s17, 320, %s1430_s16, %s538_s25, %s1088_s29, %s1088_s29, %s1089_s15  }
 0x171 PF: > { %s566_s27 = sand.u32 1, %s1059_s21   ;;  %p1511_p6 = scmp.ne.s32.totalorder %s1493_s28, 0 }
 0x172   : > { %p1512_p8 = scmp.ge.s32.totalorder %s1071_s24, 2  ;;  %s567_s19 = scalar_lea.sflag [#allocation4], %s566_s27 }
 0x174   : > { %p758_p10 = pnand %p1512_p8, %p1511_p6 }
 0x176   : > { %1054 = dma.done.wait (!%p758_p10), %s567_s19, 320  }
 0x177   : > { %1056 = vsyncadd (!%p758_p10), %s567_s19, 4294966976  ;;  %p24_p5 = scmp.ge.s32.totalorder %s1278_s30, 4   ;;  %s1513_s21 = smov %s1063_s22 }
 0x178   : > { %s1514_s22 = smov %s1067_s23  ;;  %s1515_s23 = smov %s1287_s14 }
 0x179   : > { %s1516_s24 = smov %s1278_s30  ;;  %26 = sbr.rel (!%p24_p5) target bundleno = 13 (0xd), region = 118 }
 0x180   :  { %572 = vsyncpa [#allocation3], 1 }
 0x181   :  { %574 = vsyncpa [#allocation3 + $0x1], 1 }
 0x182   :  { %575 = vsyncpa [#allocation6], 1 }
 0x183   :  { %576 = vsyncpa [#allocation9], 1 }
 0x184   :  { %577 = vsyncpa [#allocation12], 1 }
 0x185   :  { %579 = vsyncpa [#allocation12 + $0x1], 1 }
 0x186   :  { %580 = vsyncpa [#allocation4], 1 }
 0x187   :  { %582 = vsyncpa [#allocation4 + $0x1], 1 }

// kernel: downsample_forward.45
= control target key start
LH: loop header
LB: loop body
LE: loop exit
PB: predicated region body
PF: predicated region fallthrough
CT: control target
= control target key end

     0   :  { %7 = vsyncpa [#allocation3], 0  ;;  %s2334_s0 = inlined_call_operand.hbm [shape: bf16[9,2,16,128], index: 0, kind: input, shape index: {}]   ;;  %s2335_s1 = inlined_call_operand.hbm [shape: bf16[9,128,128], index: 1, kind: input, shape index: {}]   ;;  %s2336_s2 = inlined_call_operand.hbm [shape: bf16[2,16,128], index: 2, kind: output, shape index: {}]  }
   0x1   :  { %9 = vsyncpa [#allocation3 + $0x1], 0 }
   0x2   :  { %10 = vsyncpa [#allocation6], 0 }
   0x3   :  { %11 = vsyncpa [#allocation4], 0 }
   0x4   :  { %13 = vsyncpa [#allocation4 + $0x1], 0  ;;  %s2055_s9 = smov 0   ;;  %s2057_s10 = smov 0  }
   0x5   :  { %s2059_s11 = smov 0   ;;  %s2061_s12 = smov 0  }
   0x6 LB: > { %s2076_s13 = sadd.s32 4294967295, %s2024_s12   ;;  %s1357_s14 = sadd.s32 4294967294, %s2024_s12   ;;  %s2024_s12 = sphi %s2061_s12, %s2358_s12   ;;  %s2020_s11 = sphi %s2059_s11, %s2357_s11   ;;  %s2016_s10 = sphi %s2057_s10, %s2356_s10   ;;  %s2012_s9 = sphi %s2055_s9, %s2355_s9  }
   0x7   : > { %s2080_s15 = sadd.s32 1, %s2024_s12   ;;  %s26_s16 = sadd.s32 1, %s2020_s11 }
   0x8   : > { %s23_s17 = ssub.s32 %s2024_s12, %s2080_s15  ;;  %p33_p0 = scmp.ne.s32.totalorder %s2020_s11, %s2016_s10 }
   0x9   : > { %p24_p1 = scmp.eq.s32.totalorder %s23_s17, 0  ;;  %p34_p2 = scmp.eq.s32.totalorder %s2024_s12, 0 }
   0xa   : > { %p39_p3 = scmp.ne.s32.totalorder %s2016_s10, %s2012_s9  ;;  %p2337_p4 = scmp.eq.s32.totalorder %s2076_s13, 0 }
   0xb   : > { %s2092_s18 = scalar_select %p24_p1, %s2020_s11, %s26_s16  }
   0xc   : > { %p2094_p5 = por %p34_p2, %p33_p0  ;;  %p2100_p6 = por %p2337_p4, %p39_p3 }
   0xd   : > { %p84_p7 = scmp.eq.s32.totalorder %s2076_s13, 1  ;;  %p90_p8 = scmp.eq.s32.totalorder %s1357_s14, 1 }
   0xe   : > { %s2342_s19 = scalar_select %p2094_p5, 1, 0 }
   0xf   : > { %s2343_s20 = scalar_select %p2100_p6, 1, 0 }
  0x10   : > { %p1358_p9 = scmp.ge.s32.totalorder %s2024_s12, 1  ;;  %p97_p10 = scmp.lt.s32.totalorder %s2024_s12, 3 }
  0x11   : > { %p2107_p11 = por %p84_p7, %p33_p0  ;;  %p2111_p12 = por %p90_p8, %p39_p3 }
  0x12   : > { %p2115_p13 = pnand %p1358_p9, %p97_p10  ;;  %s2026_s24 = smov [#allocation5]  }
  0x13   : > { %s2344_s21 = scalar_select %p2107_p11, 1, 0 }
  0x14   : > { %s2345_s22 = scalar_select %p2111_p12, 1, 0 }
  0x15   : > { %s2346_s23 = scalar_select %p2115_p13, 1, 0 }
  0x16   : > { %p1789_p1 = pneg %p2115_p13  ;;  %s109_s25 = sshll.u32 %s2026_s24, 4  ;;  %s110_s25 = int_to_ptr.vmem [resolvable:$true] %s109_s25 }
  0x17   : > { %s1926_s29 = scalar_lea.hbm %s2335_s1, 9216 }
  0x18   : > { %p2123_p2 = pnand %p1789_p1, %p2337_p4  ;;  %p1927_p0 = scmp.ne.s32.totalorder %s2335_s1, %s1926_s29 }
  0x19   : > { %p1933_p9 = scmp.lt.u32.totalorder %s1926_s29, %s2335_s1 }
  0x1a   : > { %p1928_p3 = pneg %p2123_p2 }
  0x1c   : > { %p1929_p7 = pnand %p1928_p3, %p1927_p0 }
  0x1e   : > { %p1930_p8 = pneg %p1929_p7 }
  0x20   : > { %p1935_p10 = pnand %p1933_p9, %p1930_p8 }
  0x22   : > { %1938 = shalt.err (!%p1935_p10)
}
  0x23   : > { %s1939_s6 = scalar_lea.vmem %s110_s25, 9216  ;;  %p1947_p11 = scmp.lt.s32.totalorder %s110_s25, %s110_s25 }
  0x24   : > { %p1940_p1 = scmp.ne.s32.totalorder %s110_s25, %s1939_s6  ;;  %p1948_p6 = scmp.lt.s32.totalorder %s1939_s6, %s1939_s6 }
  0x26   : > { %p1942_p4 = pnand %p1940_p1, %p1928_p3  ;;  %p1949_p13 = por %p1948_p6, %p1947_p11 }
  0x28   : > { %p1943_p12 = pneg %p1942_p4 }
  0x2a   : > { %p1950_p5 = pnand %p1949_p13, %p1943_p12 }
  0x2c   : > { %1953 = shalt.err (!%p1950_p5)
}
  0x2d   : > { %s2027_s7 = smov 64   ;;  %s2028_s8 = smov 4  }
  0x2e   : > { %1792 = dma.hbm_to_vmem [thread:$0]  (!%p2123_p2), %s2335_s1, 9216, %s110_s25, [#allocation6], %s2027_s7, %s2027_s7, %s2028_s8  }
  0x2f   : > { %p1360_p0 = scmp.ge.s32.totalorder %s2024_s12, 2 }
  0x31   : > { %119 = sbr.rel (%p1360_p0) target bundleno = 72 (0x48), region = 20 }
  0x38   : > { %s123_s17 = sand.u32 1, %s2020_s11   ;;  %s1472_s26 = sshll.u32 %s2024_s12, 7 }
  0x39   : > { %s1772_s24 = smul.u32 72, %s123_s17  ;;  %s2029_s27 = smov 256  }
  0x3a   : > { %p2348_p4 = scmp.ne.s32.totalorder %s2342_s19, 0  ;;  %s133_s30 = scalar_lea.hbm %s2334_s0, %s1472_s26 }
  0x3b   : > { %s127_s4 = scalar_lea.vmem [#allocation2], %s1772_s24  ;;  %s2030_s6 = smov 128  }
  0x3c   : > { %1777 = sst [smem:[#allocation9]] (%p2348_p4), %s2029_s27  ;;  %s146_s5 = sshll.u32 %s127_s4, 4  ;;  %s147_s5 = int_to_ptr.vmem [resolvable:$true] %s146_s5 }
  0x3d   : > { %s1776_s25 = scalar_select %p2348_p4, [#allocation0], [#allocation10] }
  0x3e   : > { %1778 = sst [smem:[#allocation9 + $0x1]] (%p2348_p4), %s2030_s6  ;;  %s2031_s7 = smov 2  }
  0x3f   : > { %s138_s3 = sld [smem:[%s1776_s25]]   ;;  %s2032_s8 = smov 64  }
  0x40   : > { %1779 = sst [smem:[#allocation9 + $0x2]] (%p2348_p4), %s2031_s7  ;;  %s2033_s14 = smov 4  }
  0x41   : > { %1780 = sst [smem:[#allocation9 + $0x3]] (%p2348_p4), %s2032_s8  ;;  %s124_s24 = scalar_lea.sflag [#allocation3], %s123_s17 }
  0x42   : > { %1781 = sst [smem:[#allocation9 + $0x4]] (%p2348_p4), %s2032_s8  ;;  %s2034_s27 = smov [#allocation8]  }
  0x43   : > { %1782 = sst [smem:[#allocation9 + $0x5]] (%p2348_p4), %s2033_s14 }
  0x45   : > { %s1363_s16 = sshll.u32 %s138_s3, 26 }
  0x46   : > { %s1364_s26 = sadd.s32 134217728, %s1363_s16 }
  0x47   : > { %1783 = dma.general (%p2348_p4), %s133_s30, 1152, %s147_s5, %s124_s24, %s2034_s27, [#allocation9], %s1364_s26, 0  }
  0x48 PF: > { %p2349_p5 = scmp.ne.s32.totalorder %s2346_s23, 0 }
  0x49   : > { %s2170_s25 = sand.u32 (!%p2349_p5), 1, %s2016_s10   ;;  %p2350_p6 = scmp.ne.s32.totalorder (!%p2349_p5), %s2343_s20, 0 }
  0x4a   : > { %171 = sbr.rel (%p2349_p5) target bundleno = 480 (0x1e0), region = 28  ;;  %s174_s29 = scalar_lea.sflag (!%p2349_p5), [#allocation3], %s2170_s25 }
  0x4b   : > { %s1773_s28 = smul.u32 (!%p2349_p5), 72, %s2170_s25 }
  0x4d   : > { %s2174_s4 = scalar_lea.vmem (!%p2349_p5), [#allocation2], %s1773_s28 }
  0x51   : > { %1999 = dma.done.wait (%p2350_p6), %s174_s29, 1152  }
  0x52   : > { %2001 = vsyncadd (%p2350_p6), %s174_s29, 4294966144  ;;  %p2351_p11 = scmp.eq.s32.totalorder %s2076_s13, 0 }
  0x54   : > { %2003 = dma.done.wait (%p2351_p11), [#allocation6], 9216   ;;  %p2352_p12 = pmov %p2351_p11 }
  0x55   : > { %v2035_v0 = vmov 0.0   ;;  %vm2036_vm0 = vmmov 0   ;;  %v1845_v1 = vld [vmem:[#allocation5 + $0x40] sm:$0xff]   ;;  %v1847_v3 = vld [vmem:[#allocation5 + $0x48] sm:$0xff]   ;;  %v1849_v5 = vld [vmem:[#allocation5 + $0x50] sm:$0xff]   ;;  %s1367_s19 = sshll.u32 %s2170_s25, 3 }
  0x56   : > { %2005 = vsyncadd (%p2352_p12), [#allocation6], 4294958080  ;;  %1562 = vmatprep.subr.bf16.mxu1 %v2035_v0  ;;  %1642 = vmatprep.subr.bf16.mxu0 %v2035_v0  ;;  %v1846_v2 = vld [vmem:[#allocation5 + $0x100] sm:$0xff]   ;;  %v1848_v4 = vld [vmem:[#allocation5 + $0x108] sm:$0xff]   ;;  %s201_s20 = scalar_lea.vmem [#allocation7], %s1367_s19  ;;  %s1475_s17 = sshll.u32 %s2076_s13, 7 }
  0x57   : > { %1578 = vmatprep.mubr.msk.bf16.mxu1 %vm2036_vm0, %v2035_v0  ;;  %1658 = vmatprep.mubr.msk.bf16.mxu0 %vm2036_vm0, %v2035_v0  ;;  %v1850_v6 = vld [vmem:[#allocation5 + $0x110] sm:$0xff]   ;;  %v1851_v7 = vld [vmem:[#allocation5 + $0x58] sm:$0xff]   ;;  %v1853_v9 = vld [vmem:[#allocation5 + $0x60] sm:$0xff]   ;;  %s1274_s23 = sshll.u32 %s201_s20, 4  ;;  %s2290_s5 = scalar_lea.hbm %s2336_s2, %s1475_s17  ;;  %s2285_s23 = int_to_ptr.vmem [resolvable:$true] %s1274_s23 }
  0x58   : > { %1563 = vmatpush3.bf16.msra.mxu1 %v1845_v1  ;;  %1643 = vmatpush3.bf16.msra.mxu0 %v1846_v2  ;;  %v1852_v8 = vld [vmem:[#allocation5 + $0x118] sm:$0xff]   ;;  %v1854_v10 = vld [vmem:[#allocation5 + $0x120] sm:$0xff]   ;;  %v1855_v11 = vld [vmem:[#allocation5 + $0x68] sm:$0xff]   ;;  %s1261_s6 = scalar_lea.sflag [#allocation4], %s2170_s25  ;;  %s1954_s7 = scalar_lea.vmem %s2285_s23, 128 }
  0x59   : > { %1564 = vmatprep.subr.bf16.mxu1 %v2035_v0  ;;  %1644 = vmatprep.subr.bf16.mxu0 %v2035_v0  ;;  %v1856_v12 = vld [vmem:[#allocation5 + $0x128] sm:$0xff]   ;;  %v1857_v13 = vld [vmem:[#allocation5 + $0x70] sm:$0xff]   ;;  %v1859_v15 = vld [vmem:[#allocation5 + $0x78] sm:$0xff]   ;;  %p1955_p13 = scmp.ne.s32.totalorder %s2285_s23, %s1954_s7  ;;  %p2353_p2 = scmp.ne.s32.totalorder %s2344_s21, 0 }
  0x5a   : > { %v1858_v14 = vld [vmem:[#allocation5 + $0x130] sm:$0xff]   ;;  %v1860_v16 = vld [vmem:[#allocation5 + $0x138] sm:$0xff]   ;;  %v1862_v18 = vld [vmem:[#allocation5] sm:$0xff]   ;;  %s2037_s13 = smov [#allocation7]  }
  0x5b   : > { %v1861_v17 = vld [vmem:[%s2174_s4 + $0x8] sm:$0xff]   ;;  %v1863_v19 = vld [vmem:[%s2174_s4 + $0x20] sm:$0xff]   ;;  %v1865_v21 = vld [vmem:[#allocation5 + $0x8] sm:$0xff]   ;;  %p1956_p3 = pnand %p1955_p13, %p2353_p2  ;;  %s1958_s8 = sshll.u32 %s2037_s13, 4  ;;  %s1959_s8 = int_to_ptr.vmem [resolvable:$false] %s1958_s8 }
  0x5c   : > { %1565 = vmatpush3.bf16.msra.mxu1 %v1847_v3  ;;  %1645 = vmatpush3.bf16.msra.mxu0 %v1848_v4  ;;  %v1864_v20 = vld [vmem:[#allocation5 + $0x140] sm:$0xff]   ;;  %v1866_v22 = vld [vmem:[#allocation5 + $0x148] sm:$0xff]   ;;  %v1867_v23 = vld [vmem:[#allocation5 + $0x10] sm:$0xff]   ;;  %s1960_s14 = scalar_lea.vmem %s1959_s8, 256  ;;  %p1961_p8 = scmp.lt.s32.totalorder %s2285_s23, %s1959_s8 }
  0x5d   : > { %1566 = vmatprep.subr.bf16.mxu1 %v2035_v0  ;;  %1646 = vmatprep.subr.bf16.mxu0 %v2035_v0  ;;  %v1868_v24 = vld [vmem:[#allocation5 + $0x150] sm:$0xff]   ;;  %v1869_v25 = vld [vmem:[#allocation5 + $0x18] sm:$0xff]   ;;  %v1871_v27 = vld [vmem:[#allocation5 + $0x20] sm:$0xff]   ;;  %p1957_p7 = pneg %p1956_p3  ;;  %p1962_p9 = scmp.lt.s32.totalorder %s1960_s14, %s1954_s7 }
  0x5e   : > { %v1870_v26 = vld [vmem:[#allocation5 + $0x158] sm:$0xff]   ;;  %v1872_v28 = vld [vmem:[#allocation5 + $0x160] sm:$0xff]   ;;  %v1873_v29 = vld [vmem:[#allocation5 + $0x28] sm:$0xff]  }
  0x5f   : > { %v1874_v30 = vld [vmem:[#allocation5 + $0x168] sm:$0xff]   ;;  %v1875_v31 = vld [vmem:[#allocation5 + $0x30] sm:$0xff]   ;;  %v1877_v33 = vld [vmem:[#allocation5 + $0x38] sm:$0xff]   ;;  %p1963_p10 = por %p1962_p9, %p1961_p8 }
  0x60   : > { %1567 = vmatpush3.bf16.msra.mxu1 %v1849_v5  ;;  %1647 = vmatpush3.bf16.msra.mxu0 %v1850_v6  ;;  %v1876_v32 = vld [vmem:[#allocation5 + $0x170] sm:$0xff]   ;;  %v1878_v34 = vld [vmem:[#allocation5 + $0x178] sm:$0xff]   ;;  %v1880_v36 = vld [vmem:[#allocation5 + $0x80] sm:$0xff]  }
  0x61   : > { %1568 = vmatprep.subr.bf16.mxu1 %v2035_v0  ;;  %1648 = vmatprep.subr.bf16.mxu0 %v2035_v0  ;;  %v1879_v35 = vld [vmem:[%s2174_s4] sm:$0xff]   ;;  %v1881_v37 = vld [vmem:[%s2174_s4 + $0x28] sm:$0xff]   ;;  %v1883_v39 = vld [vmem:[#allocation5 + $0x88] sm:$0xff]   ;;  %p1964_p1 = pnand %p1963_p10, %p1957_p7 }
  0x62   : > { %v1882_v38 = vld [vmem:[#allocation5 + $0x180] sm:$0xff]   ;;  %v1884_v40 = vld [vmem:[#allocation5 + $0x188] sm:$0xff]   ;;  %v1885_v41 = vld [vmem:[#allocation5 + $0x90] sm:$0xff]  }
  0x63   : > { %v1886_v42 = vld [vmem:[#allocation5 + $0x190] sm:$0xff]   ;;  %v1887_v43 = vld [vmem:[#allocation5 + $0x98] sm:$0xff]   ;;  %v1889_v45 = vld [vmem:[#allocation5 + $0xa0] sm:$0xff]  }
  0x64   : > { %1569 = vmatpush3.bf16.msra.mxu1 %v1851_v7  ;;  %1649 = vmatpush3.bf16.msra.mxu0 %v1852_v8  ;;  %v1888_v44 = vld [vmem:[#allocation5 + $0x198] sm:$0xff]   ;;  %v1890_v46 = vld [vmem:[#allocation5 + $0x1a0] sm:$0xff]   ;;  %v1891_v47 = vld [vmem:[#allocation5 + $0xa8] sm:$0xff]  }
  0x65   : > { %1570 = vmatprep.subr.bf16.mxu1 %v2035_v0  ;;  %1650 = vmatprep.subr.bf16.mxu0 %v2035_v0  ;;  %v1892_v48 = vld [vmem:[#allocation5 + $0x1a8] sm:$0xff]   ;;  %v1893_v49 = vld [vmem:[#allocation5 + $0xb0] sm:$0xff]   ;;  %v1895_v51 = vld [vmem:[#allocation5 + $0xb8] sm:$0xff]  }
  0x66   : > { %v1894_v50 = vld [vmem:[#allocation5 + $0x1b0] sm:$0xff]   ;;  %v1896_v52 = vld [vmem:[#allocation5 + $0x1b8] sm:$0xff]   ;;  %v1897_v53 = vld [vmem:[%s2174_s4 + $0x10] sm:$0xff]  }
  0x67   : > { %v1898_v54 = vld [vmem:[#allocation5 + $0xc0] sm:$0xff]   ;;  %v1901_v57 = vld [vmem:[#allocation5 + $0xc8] sm:$0xff]   ;;  %v1903_v59 = vld [vmem:[#allocation5 + $0xd0] sm:$0xff]  }
  0x68   : > { %1571 = vmatpush3.bf16.msra.mxu1 %v1853_v9  ;;  %1651 = vmatpush3.bf16.msra.mxu0 %v1854_v10  ;;  %v1899_v55 = vld [vmem:[%s2174_s4 + $0x30] sm:$0xff]   ;;  %v1904_v60 = vld [vmem:[#allocation5 + $0x1d0] sm:$0xff]   ;;  %v1905_v61 = vld [vmem:[#allocation5 + $0xd8] sm:$0xff]  }
  0x69   : > { %1572 = vmatprep.subr.bf16.mxu1 %v2035_v0  ;;  %1652 = vmatprep.subr.bf16.mxu0 %v2035_v0  ;;  %v1900_v56 = vld [vmem:[#allocation5 + $0x1c0] sm:$0xff]   ;;  %v1902_v58 = vld [vmem:[#allocation5 + $0x1c8] sm:$0xff]   ;;  %v1906_v62 = vld [vmem:[#allocation5 + $0x1d8] sm:$0xff]  }
  0x6a   : > { %v1907_v63 = vld [vmem:[#allocation5 + $0xe0] sm:$0xff]   ;;  %v1909_v2 = vld [vmem:[#allocation5 + $0xe8] sm:$0xff]   ;;  %v1911_v4 = vld [vmem:[#allocation5 + $0xf0] sm:$0xff]  }
  0x6b   : > { %v1908_v1 = vld [vmem:[#allocation5 + $0x1e0] sm:$0xff]   ;;  %v1910_v3 = vld [vmem:[#allocation5 + $0x1e8] sm:$0xff]   ;;  %v1912_v5 = vld [vmem:[#allocation5 + $0x1f0] sm:$0xff]  }
  0x6c   : > { %1573 = vmatpush3.bf16.msra.mxu1 %v1855_v11  ;;  %1653 = vmatpush3.bf16.msra.mxu0 %v1856_v12  ;;  %v1913_v6 = vld [vmem:[#allocation5 + $0xf8] sm:$0xff]   ;;  %v1915_v8 = vld [vmem:[%s2174_s4 + $0x18] sm:$0xff]   ;;  %v1917_v10 = vld [vmem:[#allocation5 + $0x200] sm:$0xff]  }
  0x6d   : > { %1574 = vmatprep.subr.bf16.mxu1 %v2035_v0  ;;  %1654 = vmatprep.subr.bf16.mxu0 %v2035_v0  ;;  %v1914_v7 = vld [vmem:[#allocation5 + $0x1f8] sm:$0xff]   ;;  %v1916_v9 = vld [vmem:[%s2174_s4 + $0x38] sm:$0xff]  }
  0x6e   : > { %v1918_v11 = vld [vmem:[#allocation5 + $0x208] sm:$0xff]   ;;  %v1919_v12 = vld [vmem:[#allocation5 + $0x210] sm:$0xff]  }
  0x70   : > { %1575 = vmatpush3.bf16.msra.mxu1 %v1857_v13  ;;  %1655 = vmatpush3.bf16.msra.mxu0 %v1858_v14  ;;  %v1920_v13 = vld [vmem:[#allocation5 + $0x218] sm:$0xff]   ;;  %v1921_v14 = vld [vmem:[#allocation5 + $0x220] sm:$0xff]  }
  0x71   : > { %1576 = vmatprep.subr.bf16.mxu1 %v2035_v0  ;;  %1656 = vmatprep.subr.bf16.mxu0 %v2035_v0 }
  0x74   : > { %1577 = vmatpush3.bf16.msra.mxu1 %v1859_v15  ;;  %1657 = vmatpush3.bf16.msra.mxu0 %v1860_v16  ;;  %v1922_v15 = vld [vmem:[#allocation5 + $0x228] sm:$0xff]   ;;  %v1923_v16 = vld [vmem:[#allocation5 + $0x230] sm:$0xff]  }
  0x75   : > { %1582 = vmatprep.subr.bf16.mxu1 %v2035_v0  ;;  %1662 = vmatprep.subr.bf16.mxu0 %v2035_v0 }
  0x77   : > { %1579 = vmatmul.mubr.bf16.vlgmr.msra.gmra.mrb[0].mxu1 %v1861_v17  ;;  %1659 = vmatmul.mubr.bf16.vlgmr.msra.gmra.mrb[0].mxu0 %v1863_v19  ;;  %v1924_v17 = vld [vmem:[#allocation5 + $0x238] sm:$0xff]  }
  0x78   : > { %1583 = vmatpush3.bf16.msra.mxu1 %v1862_v18  ;;  %1663 = vmatpush3.bf16.msra.mxu0 %v1864_v20  ;;  %v1925_v18 = vld [vmem:[%s2174_s4 + $0x40] sm:$0xff]  }
  0x79   : > { %1584 = vmatprep.subr.bf16.mxu1 %v2035_v0  ;;  %1664 = vmatprep.subr.bf16.mxu0 %v2035_v0 }
  0x7a   : > { %1598 = vmatprep.mubr.msk.bf16.mxu1 %vm2036_vm0, %v2035_v0  ;;  %1678 = vmatprep.mubr.msk.bf16.mxu0 %vm2036_vm0, %v2035_v0 }
  0x7c   : > { %1585 = vmatpush3.bf16.msra.mxu1 %v1865_v21  ;;  %1665 = vmatpush3.bf16.msra.mxu0 %v1866_v22 }
  0x7d   : > { %1586 = vmatprep.subr.bf16.mxu1 %v2035_v0  ;;  %1666 = vmatprep.subr.bf16.mxu0 %v2035_v0 }
  0x80   : > { %1587 = vmatpush3.bf16.msra.mxu1 %v1867_v23  ;;  %1667 = vmatpush3.bf16.msra.mxu0 %v1868_v24 }
  0x81   : > { %1588 = vmatprep.subr.bf16.mxu1 %v2035_v0  ;;  %1668 = vmatprep.subr.bf16.mxu0 %v2035_v0 }
  0x84   : > { %1589 = vmatpush3.bf16.msra.mxu1 %v1869_v25  ;;  %1669 = vmatpush3.bf16.msra.mxu0 %v1870_v26 }
  0x85   : > { %1590 = vmatprep.subr.bf16.mxu1 %v2035_v0  ;;  %1670 = vmatprep.subr.bf16.mxu0 %v2035_v0 }
  0x88   : > { %1591 = vmatpush3.bf16.msra.mxu1 %v1871_v27  ;;  %1671 = vmatpush3.bf16.msra.mxu0 %v1872_v28 }
  0x89   : > { %1592 = vmatprep.subr.bf16.mxu1 %v2035_v0  ;;  %1672 = vmatprep.subr.bf16.mxu0 %v2035_v0 }
  0x8c   : > { %1593 = vmatpush3.bf16.msra.mxu1 %v1873_v29  ;;  %1673 = vmatpush3.bf16.msra.mxu0 %v1874_v30 }
  0x8d   : > { %1594 = vmatprep.subr.bf16.mxu1 %v2035_v0  ;;  %1674 = vmatprep.subr.bf16.mxu0 %v2035_v0 }
  0x90   : > { %1595 = vmatpush3.bf16.msra.mxu1 %v1875_v31  ;;  %1675 = vmatpush3.bf16.msra.mxu0 %v1876_v32 }
  0x91   : > { %1596 = vmatprep.subr.bf16.mxu1 %v2035_v0  ;;  %1676 = vmatprep.subr.bf16.mxu0 %v2035_v0 }
  0x94   : > { %1597 = vmatpush3.bf16.msra.mxu1 %v1877_v33  ;;  %1677 = vmatpush3.bf16.msra.mxu0 %v1878_v34 }
  0x95   : > { %1602 = vmatprep.subr.bf16.mxu1 %v2035_v0  ;;  %1682 = vmatprep.subr.bf16.mxu0 %v2035_v0 }
  0x97   : > { %1599 = vmatmul.mubr.bf16.vlgmr.msra.gmra.mrb[0].mxu1 %v1879_v35  ;;  %1679 = vmatmul.mubr.bf16.vlgmr.msra.gmra.mrb[0].mxu0 %v1881_v37 }
  0x98   : > { %1603 = vmatpush3.bf16.msra.mxu1 %v1880_v36  ;;  %1683 = vmatpush3.bf16.msra.mxu0 %v1882_v38 }
  0x99   : > { %1604 = vmatprep.subr.bf16.mxu1 %v2035_v0  ;;  %1684 = vmatprep.subr.bf16.mxu0 %v2035_v0 }
  0x9a   : > { %1618 = vmatprep.mubr.msk.bf16.mxu1 %vm2036_vm0, %v2035_v0  ;;  %1698 = vmatprep.mubr.msk.bf16.mxu0 %vm2036_vm0, %v2035_v0 }
  0x9c   : > { %1605 = vmatpush3.bf16.msra.mxu1 %v1883_v39  ;;  %1685 = vmatpush3.bf16.msra.mxu0 %v1884_v40 }
  0x9d   : > { %1606 = vmatprep.subr.bf16.mxu1 %v2035_v0  ;;  %1686 = vmatprep.subr.bf16.mxu0 %v2035_v0 }
  0xa0   : > { %1607 = vmatpush3.bf16.msra.mxu1 %v1885_v41  ;;  %1687 = vmatpush3.bf16.msra.mxu0 %v1886_v42 }
  0xa1   : > { %1608 = vmatprep.subr.bf16.mxu1 %v2035_v0  ;;  %1688 = vmatprep.subr.bf16.mxu0 %v2035_v0 }
  0xa4   : > { %1609 = vmatpush3.bf16.msra.mxu1 %v1887_v43  ;;  %1689 = vmatpush3.bf16.msra.mxu0 %v1888_v44 }
  0xa5   : > { %1610 = vmatprep.subr.bf16.mxu1 %v2035_v0  ;;  %1690 = vmatprep.subr.bf16.mxu0 %v2035_v0 }
  0xa8   : > { %1611 = vmatpush3.bf16.msra.mxu1 %v1889_v45  ;;  %1691 = vmatpush3.bf16.msra.mxu0 %v1890_v46 }
  0xa9   : > { %1612 = vmatprep.subr.bf16.mxu1 %v2035_v0  ;;  %1692 = vmatprep.subr.bf16.mxu0 %v2035_v0 }
  0xac   : > { %1613 = vmatpush3.bf16.msra.mxu1 %v1891_v47  ;;  %1693 = vmatpush3.bf16.msra.mxu0 %v1892_v48 }
  0xad   : > { %1614 = vmatprep.subr.bf16.mxu1 %v2035_v0  ;;  %1694 = vmatprep.subr.bf16.mxu0 %v2035_v0 }
  0xb0   : > { %1615 = vmatpush3.bf16.msra.mxu1 %v1893_v49  ;;  %1695 = vmatpush3.bf16.msra.mxu0 %v1894_v50 }
  0xb1   : > { %1616 = vmatprep.subr.bf16.mxu1 %v2035_v0  ;;  %1696 = vmatprep.subr.bf16.mxu0 %v2035_v0 }
  0xb4   : > { %1617 = vmatpush3.bf16.msra.mxu1 %v1895_v51  ;;  %1697 = vmatpush3.bf16.msra.mxu0 %v1896_v52 }
  0xb5   : > { %1622 = vmatprep.subr.bf16.mxu1 %v2035_v0  ;;  %1702 = vmatprep.subr.bf16.mxu0 %v2035_v0 }
  0xb7   : > { %1619 = vmatmul.mubr.bf16.vlgmr.msra.gmra.mrb[0].mxu1 %v1897_v53  ;;  %1699 = vmatmul.mubr.bf16.vlgmr.msra.gmra.mrb[0].mxu0 %v1899_v55 }
  0xb8   : > { %1623 = vmatpush3.bf16.msra.mxu1 %v1898_v54  ;;  %1703 = vmatpush3.bf16.msra.mxu0 %v1900_v56 }
  0xb9   : > { %1624 = vmatprep.subr.bf16.mxu1 %v2035_v0  ;;  %1704 = vmatprep.subr.bf16.mxu0 %v2035_v0 }
  0xba   : > { %1638 = vmatprep.mubr.msk.bf16.mxu1 %vm2036_vm0, %v2035_v0  ;;  %1718 = vmatprep.mubr.msk.bf16.mxu0 %vm2036_vm0, %v2035_v0 }
  0xbc   : > { %1625 = vmatpush3.bf16.msra.mxu1 %v1901_v57  ;;  %1705 = vmatpush3.bf16.msra.mxu0 %v1902_v58 }
  0xbd   : > { %1626 = vmatprep.subr.bf16.mxu1 %v2035_v0  ;;  %1706 = vmatprep.subr.bf16.mxu0 %v2035_v0 }
  0xc0   : > { %1627 = vmatpush3.bf16.msra.mxu1 %v1903_v59  ;;  %1707 = vmatpush3.bf16.msra.mxu0 %v1904_v60 }
  0xc1   : > { %1628 = vmatprep.subr.bf16.mxu1 %v2035_v0  ;;  %1708 = vmatprep.subr.bf16.mxu0 %v2035_v0 }
  0xc4   : > { %1629 = vmatpush3.bf16.msra.mxu1 %v1905_v61  ;;  %1709 = vmatpush3.bf16.msra.mxu0 %v1906_v62 }
  0xc5   : > { %1630 = vmatprep.subr.bf16.mxu1 %v2035_v0  ;;  %1710 = vmatprep.subr.bf16.mxu0 %v2035_v0 }
  0xc8   : > { %1631 = vmatpush3.bf16.msra.mxu1 %v1907_v63  ;;  %1711 = vmatpush3.bf16.msra.mxu0 %v1908_v1 }
  0xc9   : > { %1632 = vmatprep.subr.bf16.mxu1 %v2035_v0  ;;  %1712 = vmatprep.subr.bf16.mxu0 %v2035_v0 }
  0xcc   : > { %1633 = vmatpush3.bf16.msra.mxu1 %v1909_v2  ;;  %1713 = vmatpush3.bf16.msra.mxu0 %v1910_v3 }
  0xcd   : > { %1634 = vmatprep.subr.bf16.mxu1 %v2035_v0  ;;  %1714 = vmatprep.subr.bf16.mxu0 %v2035_v0 }
  0xd0   : > { %1635 = vmatpush3.bf16.msra.mxu1 %v1911_v4  ;;  %1715 = vmatpush3.bf16.msra.mxu0 %v1912_v5 }
  0xd1   : > { %1636 = vmatprep.subr.bf16.mxu1 %v2035_v0  ;;  %1716 = vmatprep.subr.bf16.mxu0 %v2035_v0 }
  0xd4   : > { %1637 = vmatpush3.bf16.msra.mxu1 %v1913_v6  ;;  %1717 = vmatpush3.bf16.msra.mxu0 %v1914_v7 }
  0xd5   : > { %1722 = vmatprep.subr.bf16.mxu0 %v2035_v0 }
  0xd7   : > { %1639 = vmatmul.mubr.bf16.vlgmr.msra.gmra.mrb[0].mxu1 %v1915_v8  ;;  %1719 = vmatmul.mubr.bf16.vlgmr.msra.gmra.mrb[0].mxu0 %v1916_v9 }
  0xd8   : > { %1723 = vmatpush3.bf16.msra.mxu0 %v1917_v10  ;;  %1738 = vmatprep.mubr.msk.bf16.mxu0 %vm2036_vm0, %v2035_v0 }
  0xd9   : > { %1724 = vmatprep.subr.bf16.mxu0 %v2035_v0 }
  0xdc   : > { %1725 = vmatpush3.bf16.msra.mxu0 %v1918_v11 }
  0xdd   : > { %1726 = vmatprep.subr.bf16.mxu0 %v2035_v0 }
  0xe0   : > { %1727 = vmatpush3.bf16.msra.mxu0 %v1919_v12 }
  0xe1   : > { %1728 = vmatprep.subr.bf16.mxu0 %v2035_v0 }
  0xe4   : > { %1729 = vmatpush3.bf16.msra.mxu0 %v1920_v13 }
  0xe5   : > { %1730 = vmatprep.subr.bf16.mxu0 %v2035_v0 }
  0xe8   : > { %1731 = vmatpush3.bf16.msra.mxu0 %v1921_v14 }
  0xe9   : > { %1732 = vmatprep.subr.bf16.mxu0 %v2035_v0 }
  0xec   : > { %1733 = vmatpush3.bf16.msra.mxu0 %v1922_v15 }
  0xed   : > { %1734 = vmatprep.subr.bf16.mxu0 %v2035_v0 }
  0xf0   : > { %1735 = vmatpush3.bf16.msra.mxu0 %v1923_v16 }
  0xf1   : > { %1736 = vmatprep.subr.bf16.mxu0 %v2035_v0 }
  0xf4   : > { %1737 = vmatpush3.bf16.msra.mxu0 %v1924_v17 }
  0xf7   : > { %1739 = vmatmul.mubr.bf16.vlgmr.msra.gmra.mrb[0].mxu0 %v1925_v18 }
 0x1aa   : > { %v656_v19 = vpop.f32.mrb[0].mxu1 }
 0x1ab   : > { %v1640_v20 = vpop.f32.mrb[1].mxu1 }
 0x1ac   : > { %v659_v21 = vpop.f32.mrb[2].mxu1 }
 0x1ad   : > { %v1641_v22 = vpop.f32.mrb[3].mxu1 }
 0x1ca   : > { %v1241_v23 = vpop.f32.mrb[0].mxu0 }
 0x1cb   : > { %v1742_v24 = vadd.f32 %v1241_v23, %v656_v19  ;;  %v1740_v25 = vpop.f32.mrb[1].mxu0 }
 0x1cc   : > { %v1244_v26 = vpop.f32.mrb[2].mxu0 }
 0x1cd   : > { %v1743_v27 = vadd.f32 %v1244_v26, %v659_v21  ;;  %v1741_v0 = vpop.f32.mrb[3].mxu0 }
 0x1cf   : > { %v1479_v28 = vpack.c.bf16 %v1743_v27, %v1742_v24 }
 0x1d1   : > { %1480 = vst [vmem:[%s201_s20] sm:$0xff] %v1479_v28  }
 0x1d2   : > { %1967 = shalt.err (!%p1964_p1)
}
 0x1d3   : > { %s1968_s16 = scalar_lea.hbm %s2290_s5, 128  ;;  %s1972_s27 = scalar_lea.hbm %s2336_s2, 256 }
 0x1d4   : > { %p1969_p4 = scmp.ne.s32.totalorder %s2290_s5, %s1968_s16  ;;  %p1973_p11 = scmp.lt.u32.totalorder %s2290_s5, %s2336_s2 }
 0x1d5   : > { %p1974_p12 = scmp.lt.u32.totalorder %s1972_s27, %s1968_s16  ;;  %p1976_p3 = scmp.lt.u32.totalorder %s1968_s16, %s2290_s5 }
 0x1d6   : > { %p1970_p5 = pnand %p1969_p4, %p2353_p2 }
 0x1d7   : > { %p1975_p13 = por %p1974_p12, %p1973_p11 }
 0x1d8   : > { %p1971_p6 = pneg %p1970_p5 }
 0x1d9   : > { %p1977_p7 = por %p1976_p3, %p1975_p13 }
 0x1db   : > { %p1978_p8 = pnand %p1977_p7, %p1971_p6 }
 0x1dd   : > { %1981 = shalt.err (!%p1978_p8)
}
 0x1de   : > { %s2038_s4 = smov 64   ;;  %s2039_s19 = smov 4  }
 0x1df   : > { %1787 = dma.vmem_to_hbm [thread:$0]  (%p2353_p2), %s2285_s23, 128, %s2290_s5, %s1261_s6, %s2038_s4, %s2038_s4, %s2039_s19  }
 0x1e0 PF: > { %s1289_s20 = sand.u32 1, %s2012_s9   ;;  %p2354_p9 = scmp.ne.s32.totalorder %s2345_s22, 0 }
 0x1e1   : > { %s1290_s17 = scalar_lea.sflag [#allocation4], %s1289_s20 }
 0x1e2   : > { %p1794_p10 = pnand %p1360_p0, %p2354_p9 }
 0x1e4   : > { %2007 = dma.done.wait (!%p1794_p10), %s1290_s17, 128  }
 0x1e5   : > { %2009 = vsyncadd (!%p1794_p10), %s1290_s17, 4294967168  ;;  %p16_p1 = scmp.ge.s32.totalorder %s2080_s15, 4   ;;  %s2355_s9 = smov %s2016_s10 }
 0x1e6   : > { %s2356_s10 = smov %s2020_s11  ;;  %s2357_s11 = smov %s2092_s18 }
 0x1e7   : > { %s2358_s12 = smov %s2080_s15  ;;  %18 = sbr.rel (!%p16_p1) target bundleno = 6 (0x6), region = 98 }
 0x1ee   :  { %1295 = vsyncpa [#allocation3], 1 }
 0x1ef   :  { %1297 = vsyncpa [#allocation3 + $0x1], 1 }
 0x1f0   :  { %1298 = vsyncpa [#allocation6], 1 }
 0x1f1   :  { %1299 = vsyncpa [#allocation4], 1 }
 0x1f2   :  { %1301 = vsyncpa [#allocation4 + $0x1], 1 }

// kernel: downsample_forward.46
= control target key start
LH: loop header
LB: loop body
LE: loop exit
PB: predicated region body
PF: predicated region fallthrough
CT: control target
= control target key end

     0   :  { %10 = vsyncpa [#allocation3], 0  ;;  %s2803_s0 = inlined_call_operand.hbm [shape: bf16[2,36,128], index: 0, kind: input, shape index: {}]   ;;  %s2804_s1 = inlined_call_operand.hbm [shape: bf16[9,128,128], index: 1, kind: input, shape index: {}]   ;;  %s2805_s2 = inlined_call_operand.hbm [shape: f32[22,1], index: 2, kind: input, shape index: {}]   ;;  %s2806_s3 = inlined_call_operand.hbm [shape: f32[2,22,128], index: 3, kind: output, shape index: {0}]   ;;  %s2807_s4 = inlined_call_operand.hbm [shape: f32[2,2,128], index: 4, kind: output, shape index: {1}]  }
   0x1   :  { %12 = vsyncpa [#allocation3 + $0x1], 0 }
   0x2   :  { %13 = vsyncpa [#allocation6], 0 }
   0x3   :  { %14 = vsyncpa [#allocation4], 0 }
   0x4   :  { %16 = vsyncpa [#allocation4 + $0x1], 0 }
   0x5   :  { %17 = vsyncpa [#allocation10], 0 }
   0x6   :  { %19 = vsyncpa [#allocation10 + $0x1], 0  ;;  %s2443_s15 = smov 0   ;;  %s2445_s16 = smov 0  }
   0x7   :  { %s2447_s17 = smov 0   ;;  %s2449_s18 = smov 0  }
   0x8 LB: > { %s2464_s19 = sadd.s32 4294967295, %s2404_s18   ;;  %s1644_s20 = sadd.s32 4294967294, %s2404_s18   ;;  %s2404_s18 = sphi %s2449_s18, %s2827_s18   ;;  %s2400_s17 = sphi %s2447_s17, %s2826_s17   ;;  %s2396_s16 = sphi %s2445_s16, %s2825_s16   ;;  %s2392_s15 = sphi %s2443_s15, %s2824_s15  }
   0x9   : > { %p45_p0 = scmp.ne.s32.totalorder %s2396_s16, %s2392_s15  ;;  %p2808_p1 = scmp.eq.s32.totalorder %s2464_s19, 0 }
   0xa   : > { %p117_p3 = scmp.eq.s32.totalorder %s1644_s20, 1  ;;  %p1645_p5 = scmp.ge.s32.totalorder %s2404_s18, 1 }
   0xb   : > { %p2473_p4 = por %p2808_p1, %p45_p0  ;;  %p150_p7 = scmp.lt.s32.totalorder %s2404_s18, 3 }
   0xc   : > { %p2478_p6 = por %p117_p3, %p45_p0  ;;  %s2406_s24 = smov [#allocation5]  }
   0xd   : > { %s2811_s21 = scalar_select %p2473_p4, 1, 0 }
   0xe   : > { %s2812_s22 = scalar_select %p2478_p6, 1, 0 }
   0xf   : > { %p2483_p8 = pnand %p1645_p5, %p150_p7  ;;  %s162_s25 = sshll.u32 %s2406_s24, 4  ;;  %s2487_s25 = int_to_ptr.vmem [resolvable:$true] %s162_s25 }
  0x10   : > { %s2407_s27 = smov [#allocation7]   ;;  %s2216_s5 = scalar_lea.hbm %s2804_s1, 9216 }
  0x11   : > { %p2064_p9 = pneg %p2483_p8  ;;  %s175_s28 = sshll.u32 %s2407_s27, 4  ;;  %s2498_s28 = int_to_ptr.vmem [resolvable:$true] %s175_s28 }
  0x12   : > { %p2217_p12 = scmp.ne.s32.totalorder %s2804_s1, %s2216_s5  ;;  %p2223_p5 = scmp.lt.u32.totalorder %s2216_s5, %s2804_s1 }
  0x13   : > { %p2494_p11 = pnand %p2064_p9, %p2808_p1 }
  0x15   : > { %p2218_p13 = pneg %p2494_p11 }
  0x17   : > { %p2219_p0 = pnand %p2218_p13, %p2217_p12 }
  0x19   : > { %p2220_p3 = pneg %p2219_p0 }
  0x1b   : > { %p2225_p7 = pnand %p2223_p5, %p2220_p3 }
  0x1d   : > { %2228 = shalt.err (!%p2225_p7)
}
  0x1e   : > { %s2229_s10 = scalar_lea.vmem %s2487_s25, 9216  ;;  %p2237_p2 = scmp.lt.s32.totalorder %s2487_s25, %s2487_s25 }
  0x1f   : > { %p2230_p9 = scmp.ne.s32.totalorder %s2487_s25, %s2229_s10  ;;  %p2238_p12 = scmp.lt.s32.totalorder %s2229_s10, %s2229_s10 }
  0x21   : > { %p2232_p10 = pnand %p2230_p9, %p2218_p13  ;;  %p2239_p0 = por %p2238_p12, %p2237_p2 }
  0x23   : > { %p2233_p1 = pneg %p2232_p10 }
  0x25   : > { %p2240_p6 = pnand %p2239_p0, %p2233_p1 }
  0x27   : > { %2243 = shalt.err (!%p2240_p6)
}
  0x28   : > { %s2408_s11 = smov 64   ;;  %s2409_s12 = smov 4  }
  0x29   : > { %2067 = dma.hbm_to_vmem [thread:$0]  (!%p2494_p11), %s2804_s1, 9216, %s2487_s25, [#allocation6], %s2408_s11, %s2408_s11, %s2409_s12  }
  0x2a   : > { %s2244_s27 = scalar_lea.hbm %s2805_s2, 384 }
  0x2b   : > { %p2245_p1 = scmp.ne.s32.totalorder %s2805_s2, %s2244_s27  ;;  %p2251_p10 = scmp.lt.u32.totalorder %s2244_s27, %s2805_s2 }
  0x2d   : > { %p2247_p2 = pnand %p2245_p1, %p2218_p13 }
  0x2f   : > { %p2248_p6 = pneg %p2247_p2 }
  0x31   : > { %p2253_p3 = pnand %p2251_p10, %p2248_p6 }
  0x33   : > { %2256 = shalt.err (!%p2253_p3)
}
  0x34   : > { %s2257_s25 = scalar_lea.vmem %s2498_s28, 384  ;;  %p2265_p12 = scmp.lt.s32.totalorder %s2498_s28, %s2498_s28 }
  0x35   : > { %p2258_p5 = scmp.ne.s32.totalorder %s2498_s28, %s2257_s25  ;;  %p2266_p0 = scmp.lt.s32.totalorder %s2257_s25, %s2257_s25 }
  0x37   : > { %p2260_p7 = pnand %p2258_p5, %p2218_p13  ;;  %p2267_p1 = por %p2266_p0, %p2265_p12 }
  0x39   : > { %p2261_p9 = pneg %p2260_p7 }
  0x3b   : > { %p2268_p2 = pnand %p2267_p1, %p2261_p9 }
  0x3d   : > { %2271 = shalt.err (!%p2268_p2)
}
  0x3e   : > { %s2410_s7 = smov 128   ;;  %s2411_s8 = smov 8  }
  0x3f   : > { %2070 = dma.hbm_to_vmem [thread:$0]  (!%p2494_p11), %s2805_s2, 384, %s2498_s28, [#allocation6], %s2410_s7, %s2410_s7, %s2411_s8  }
  0x40   : > { %s2556_s13 = sadd.s32 1, %s2404_s18   ;;  %s32_s20 = sadd.s32 1, %s2400_s17 }
  0x41   : > { %s29_s14 = ssub.s32 %s2404_s18, %s2556_s13  ;;  %p39_p6 = scmp.ne.s32.totalorder %s2400_s17, %s2396_s16 }
  0x42   : > { %p30_p13 = scmp.eq.s32.totalorder %s29_s14, 0  ;;  %p40_p10 = scmp.eq.s32.totalorder %s2404_s18, 0 }
  0x43   : > { %p2815_p5 = scmp.eq.s32.totalorder %s2464_s19, 1  ;;  %p2084_p9 = scmp.lt.s32.totalorder %s2404_s18, 2 }
  0x44   : > { %s2565_s24 = scalar_select %p30_p13, %s2400_s17, %s32_s20  }
  0x45   : > { %p41_p3 = por %p40_p10, %p39_p6  ;;  %p2569_p7 = por %p2815_p5, %p39_p6 }
  0x46   : > { %s189_s26 = sand.u32 1, %s2400_s17   ;;  %s2046_s28 = smul.u32 320, %s2404_s18 }
  0x47   : > { %s2816_s27 = scalar_select %p2569_p7, 1, 0 }
  0x48   : > { %s2045_s29 = smul.u32 20, %s189_s26  ;;  %p2576_p11 = pnand %p2084_p9, %p41_p3 }
  0x49   : > { %s2583_s25 = scalar_lea.hbm %s2803_s0, %s2046_s28  ;;  %s2587_s9 = scalar_lea.sflag [#allocation3], %s189_s26 }
  0x4a   : > { %s193_s7 = scalar_lea.vmem [#allocation2], %s2045_s29  ;;  %s2272_s10 = scalar_lea.hbm %s2583_s25, 320 }
  0x4b   : > { %s200_s8 = sshll.u32 %s193_s7, 4  ;;  %p2273_p12 = scmp.ne.s32.totalorder %s2583_s25, %s2272_s10  ;;  %s2585_s8 = int_to_ptr.vmem [resolvable:$true] %s200_s8 }
  0x4c   : > { %p2274_p0 = pneg %p2576_p11  ;;  %s2277_s28 = scalar_lea.hbm %s2803_s0, 640 }
  0x4d   : > { %p2278_p13 = scmp.lt.u32.totalorder %s2583_s25, %s2803_s0  ;;  %p2279_p6 = scmp.lt.u32.totalorder %s2277_s28, %s2272_s10 }
  0x4e   : > { %p2275_p1 = pnand %p2274_p0, %p2273_p12  ;;  %p2281_p3 = scmp.lt.u32.totalorder %s2272_s10, %s2583_s25 }
  0x4f   : > { %p2280_p10 = por %p2279_p6, %p2278_p13 }
  0x50   : > { %p2276_p2 = pneg %p2275_p1 }
  0x51   : > { %p2282_p5 = por %p2281_p3, %p2280_p10 }
  0x53   : > { %p2283_p9 = pnand %p2282_p5, %p2276_p2 }
  0x55   : > { %2286 = shalt.err (!%p2283_p9)
}
  0x56   : > { %s2287_s26 = scalar_lea.vmem %s2585_s8, 320  ;;  %s2412_s29 = smov [#allocation2]  }
  0x57   : > { %p2288_p12 = scmp.ne.s32.totalorder %s2585_s8, %s2287_s26  ;;  %s2292_s7 = sshll.u32 %s2412_s29, 4  ;;  %s2293_s7 = int_to_ptr.vmem [resolvable:$false] %s2292_s7 }
  0x58   : > { %s2294_s14 = scalar_lea.vmem %s2293_s7, 640  ;;  %p2295_p4 = scmp.lt.s32.totalorder %s2585_s8, %s2293_s7 }
  0x59   : > { %p2290_p1 = pnand %p2288_p12, %p2274_p0  ;;  %p2296_p13 = scmp.lt.s32.totalorder %s2294_s14, %s2287_s26 }
  0x5b   : > { %p2291_p7 = pneg %p2290_p1  ;;  %p2297_p6 = por %p2296_p13, %p2295_p4 }
  0x5d   : > { %p2298_p10 = pnand %p2297_p6, %p2291_p7 }
  0x5f   : > { %2301 = shalt.err (!%p2298_p10)
}
  0x60   : > { %2074 = dma.hbm_to_vmem [thread:$0]  (!%p2576_p11), %s2583_s25, 320, %s2585_s8, %s2587_s9, %s2408_s11, %s2408_s11, %s2409_s12  }
  0x61   : > { %212 = sbr.rel (%p2483_p8) target bundleno = 532 (0x214), region = 32  ;;  %s2621_s10 = sand.u32 (!%p2483_p8), 1, %s2396_s16  }
  0x62   : > { %s2047_s20 = smul.u32 (!%p2483_p8), 20, %s2621_s10  ;;  %s215_s28 = scalar_lea.sflag (!%p2483_p8), [#allocation3], %s2621_s10 }
  0x63   : > { %p2818_p4 = scmp.ne.s32.totalorder (!%p2483_p8), %s2811_s21, 0 }
  0x64   : > { %s2625_s5 = scalar_lea.vmem (!%p2483_p8), [#allocation2], %s2047_s20 }
  0x68   : > { %2375 = dma.done.wait (%p2818_p4), %s215_s28, 320  }
  0x69   : > { %2377 = vsyncadd (%p2818_p4), %s215_s28, 4294966976  ;;  %p2819_p7 = scmp.eq.s32.totalorder %s2464_s19, 0 }
  0x6b   : > { %2379 = dma.done.wait (%p2819_p7), [#allocation6], 9600   ;;  %p2820_p8 = pmov %p2819_p7 }
  0x6c   : > { %v2131_v0 = vld [vmem:[#allocation5 + $0x40] sm:$0xff]   ;;  %v2133_v2 = vld [vmem:[#allocation5 + $0x48] sm:$0xff]   ;;  %v2135_v4 = vld [vmem:[#allocation5 + $0x50] sm:$0xff]   ;;  %vm302_vm0 = vsmask.f32 7424  ;;  %v2413_v53 = vmov 0  }
  0x6d   : > { %2381 = vsyncadd (%p2820_p8), [#allocation6], 4294957696  ;;  %v2132_v1 = vld [vmem:[#allocation5 + $0x100] sm:$0xff]   ;;  %1834 = vmatprep.subr.bf16.mxu1 %v2131_v0  ;;  %v2134_v3 = vld [vmem:[#allocation5 + $0x108] sm:$0xff]   ;;  %vm800_vm1 = vsmask.f32 4352  ;;  %2129 = vset.pattern.permute.xlu0 %v2413_v53 }
  0x6e   : > { %1914 = vmatprep.subr.bf16.mxu0 %v2132_v1  ;;  %1835 = vmatpush3.bf16.msra.mxu1 %v2131_v0  ;;  %v2136_v5 = vld [vmem:[#allocation5 + $0x110] sm:$0xff]   ;;  %v2137_v6 = vld [vmem:[#allocation5 + $0x58] sm:$0xff]   ;;  %v2139_v8 = vld [vmem:[#allocation5 + $0x60] sm:$0xff]   ;;  %vm538_vm2 = vcmask 1046528   ;;  %vm1070_vm3 = vcmask 1045504   ;;  %vm674_vm4 = vcmask 1044480  }
  0x6f   : > { %1915 = vmatpush3.bf16.msra.mxu0 %v2132_v1  ;;  %1836 = vmatprep.subr.bf16.mxu1 %v2133_v2  ;;  %v2138_v7 = vld [vmem:[#allocation5 + $0x118] sm:$0xff]   ;;  %v2140_v9 = vld [vmem:[#allocation5 + $0x120] sm:$0xff]   ;;  %v2141_v10 = vld [vmem:[#allocation5 + $0x68] sm:$0xff]   ;;  %vm1196_vm5 = vsmask.f32 5376  ;;  %s2048_s21 = smul.u32 24, %s2621_s10 }
  0x70   : > { %1916 = vmatprep.subr.bf16.mxu0 %v2134_v3  ;;  %v2142_v11 = vld [vmem:[#allocation5 + $0x128] sm:$0xff]   ;;  %v2637_v13 = vld [vmem:[%s2625_s5 + $0x4] sm:$0xf]  ;;  %v2643_v15 = vld [vmem:[%s2625_s5 + $0x8] ss:$0 sps:$4 sm:$0xff]   ;;  %2130 = vset.pattern.permute.xlu1 %v2413_v53  ;;  %s2049_s12 = smul.u32 384, %s2464_s19 }
  0x71   : > { %v257_v12 = vld [vmem:[%s2625_s5] sm:$0xf]  ;;  %v644_v17 = vld [vmem:[%s2625_s5 + $0x4] sm:$0xf]  ;;  %v311_v21 = vshll.u32 %v2643_v15, 16  ;;  %v315_v42 = vshrl.u32 %v2643_v15, 16 }
  0x72   : > { %1837 = vmatpush3.bf16.msra.mxu1 %v2133_v2  ;;  %v2640_v14 = vcombine.low %v257_v12, %v2637_v13  ;;  %v643_v16 = vld [vmem:[%s2625_s5] sm:$0x8]  ;;  %v2143_v18 = vld [vmem:[#allocation5 + $0x70] sm:$0xff]   ;;  %v2656_v24 = vld [vmem:[%s2625_s5 + $0xc] sm:$0x7]  ;;  %v540_v12 = vrot.slane %v2643_v15, 1  ;;  %s2726_s8 = scalar_lea.hbm %s2806_s3, %s2049_s12 }
  0x73   : > { %1917 = vmatpush3.bf16.msra.mxu0 %v2134_v3  ;;  %1838 = vmatprep.subr.bf16.mxu1 %v2135_v4  ;;  %v2651_v22 = vld [vmem:[%s2625_s5 + $0x8] sm:$0xf]  ;;  %v2653_v23 = vcombine.low %v643_v16, %v644_v17  ;;  %v313_v27 = vrot.slane %v311_v21, 1  ;;  %v2145_v31 = vld [vmem:[#allocation5 + $0x78] sm:$0xff]   ;;  %v2153_v48 = vld [vmem:[#allocation5 + $0x8] sm:$0xff]   ;;  %s248_s23 = scalar_lea.vmem [#allocation8], %s2048_s21 }
  0x74   : > { %1918 = vmatprep.subr.bf16.mxu0 %v2136_v5  ;;  %v304_v19 = vshrl.u32 %v2640_v14, 16  ;;  %v306_v20 = vshll.u32 %v2640_v14, 16  ;;  %v2144_v25 = vld [vmem:[#allocation5 + $0x130] sm:$0xff]   ;;  %v1692_v28 = vcombine.low %v2651_v22, %v2656_v24  ;;  %v2146_v36 = vld [vmem:[#allocation5 + $0x138] sm:$0xff]   ;;  %v2149_v44 = vld [vmem:[#allocation5] sm:$0xff]   ;;  %v1701_v50 = vcombine.low %v644_v17, %v2651_v22  ;;  %s1507_s11 = sshll.u32 %s248_s23, 4  ;;  %s2721_s11 = int_to_ptr.vmem [resolvable:$true] %s1507_s11 }
  0x75   : > { %v802_v29 = vshrl.u32 %v2653_v23, 16  ;;  %v805_v30 = vshll.u32 %v2653_v23, 16  ;;  %v2152_v46 = vld [vmem:[#allocation5 + $0x140] sm:$0xff]   ;;  %v317_v47 = vor.u32 %v315_v42, %v313_v27  ;;  %v2154_v49 = vld [vmem:[#allocation5 + $0x148] sm:$0xff]   ;;  %v2155_v51 = vld [vmem:[#allocation5 + $0x10] sm:$0xff]   ;;  %s1489_s9 = scalar_lea.sflag [#allocation4], %s2621_s10 }
  0x76   : > { %1839 = vmatpush3.bf16.msra.mxu1 %v2135_v4  ;;  %v308_v26 = vrot.slane %v306_v20, 1  ;;  %v810_v34 = vshrl.u32 %v1692_v28, 16  ;;  %v813_v35 = vshll.u32 %v1692_v28, 16  ;;  %v2156_v52 = vld [vmem:[#allocation5 + $0x150] sm:$0xff]   ;;  %v2157_v54 = vld [vmem:[#allocation5 + $0x18] sm:$0xff]   ;;  %v2159_v56 = vld [vmem:[#allocation5 + $0x20] sm:$0xff]  }
  0x77   : > { %1919 = vmatpush3.bf16.msra.mxu0 %v2136_v5  ;;  %1840 = vmatprep.subr.bf16.mxu1 %v2137_v6  ;;  %v804_v33 = vrot.slane %v802_v29, 3  ;;  %v807_v37 = vrot.slane %v805_v30, 4  ;;  %v2158_v55 = vld [vmem:[#allocation5 + $0x158] sm:$0xff]   ;;  %v2160_v57 = vld [vmem:[#allocation5 + $0x160] sm:$0xff]   ;;  %v2161_v58 = vld [vmem:[#allocation5 + $0x28] sm:$0xff]   ;;  %v675_v28 = vrot.slane %v2653_v23, 3 }
  0x78   : > { %1920 = vmatprep.subr.bf16.mxu0 %v2138_v7  ;;  %v309_v32 = vor.u32 %v308_v26, %v304_v19  ;;  %v812_v39 = vrot.slane %v810_v34, 3  ;;  %v815_v40 = vrot.slane %v813_v35, 4  ;;  %v2162_v59 = vld [vmem:[#allocation5 + $0x168] sm:$0xff]   ;;  %v2163_v60 = vld [vmem:[#allocation5 + $0x30] sm:$0xff]   ;;  %v2165_v62 = vld [vmem:[#allocation5 + $0x38] sm:$0xff]   ;;  %s2302_s6 = scalar_lea.vmem %s2721_s11, 384 }
  0x79   : > { %v808_v41 = vor.u32 %v807_v37, %v804_v33  ;;  %v2164_v61 = vld [vmem:[#allocation5 + $0x170] sm:$0xff]   ;;  %v517_v63 = vld [vmem:[%s2625_s5] sm:$0xe]  ;;  %v2673_v2 = vld [vmem:[%s2625_s5 + $0xc] sm:$0xf]  ;;  %p2303_p11 = scmp.ne.s32.totalorder %s2721_s11, %s2302_s6  ;;  %p2821_p0 = scmp.ne.s32.totalorder %s2816_s27, 0 }
  0x7a   : > { %1841 = vmatpush3.bf16.msra.mxu1 %v2137_v6  ;;  %v314_v38 = vsel %vm302_vm0, %v309_v32, %v313_v27  ;;  %v816_v43 = vor.u32 %v815_v40, %v812_v39  ;;  %v1039_v0 = vld [vmem:[%s2625_s5 + $0x4] sm:$0xc]  ;;  %v2670_v1 = vld [vmem:[%s2625_s5 + $0x8] sm:$0xf]  ;;  %v1042_v3 = vld [vmem:[%s2625_s5 + $0x10] sm:$0x1]  ;;  %v1673_v5 = vcombine.low %v517_v63, %v2637_v13  ;;  %v1702_v13 = vcombine.low %v2656_v24, %v2656_v24 }
  0x7b   : > { %1921 = vmatpush3.bf16.msra.mxu0 %v2138_v7  ;;  %1842 = vmatprep.subr.bf16.mxu1 %v2139_v8  ;;  %v2166_v4 = vld [vmem:[#allocation5 + $0x178] sm:$0xff]   ;;  %v2678_v6 = vcombine.low %v1039_v0, %v2670_v1  ;;  %v1712_v7 = vcombine.low %v2673_v2, %v1042_v3  ;;  %v2172_v17 = vld [vmem:[#allocation5 + $0x88] sm:$0xff]   ;;  %v2174_v21 = vld [vmem:[#allocation5 + $0x90] sm:$0xff]   ;;  %p2304_p2 = pnand %p2303_p11, %p2821_p0  ;;  %s2414_s26 = smov [#allocation8]  }
  0x7c   : > { %1922 = vmatprep.subr.bf16.mxu0 %v2140_v9  ;;  %1850 = vmatprep.mubr.bf16.mxu1 %v314_v38  ;;  %v817_v45 = vsel %vm800_vm1, %v808_v41, %v816_v43  ;;  %v2175_v24 = vld [vmem:[#allocation5 + $0x190] sm:$0xff]   ;;  %v2176_v26 = vld [vmem:[#allocation5 + $0x98] sm:$0xff]   ;;  %v2179_v33 = vld [vmem:[#allocation5 + $0x1a0] sm:$0xff]   ;;  %s2306_s29 = sshll.u32 %s2414_s26, 4  ;;  %s2307_s29 = int_to_ptr.vmem [resolvable:$false] %s2306_s29 }
  0x7d   : > { %1930 = vmatprep.mubr.bf16.mxu0 %v817_v45  ;;  %v2686_v16 = vrot.slane %v1712_v7, 2  ;;  %v2177_v29 = vld [vmem:[#allocation5 + $0x198] sm:$0xff]   ;;  %v2180_v34 = vld [vmem:[#allocation5 + $0xa8] sm:$0xff]   ;;  %v1443_v23 = vld [vmem:[#allocation7] sm:$0xff]  ;;  %v1198_v41 = vshrl.u32 %v2678_v6, 16  ;;  %v1201_v42 = vshll.u32 %v2678_v6, 16  ;;  %p2305_p3 = pneg %p2304_p2  ;;  %p2309_p5 = scmp.lt.s32.totalorder %s2721_s11, %s2307_s29 }
  0x7e   : > { %1843 = vmatpush3.bf16.msra.mxu1 %v2139_v8  ;;  %v2167_v8 = vld [vmem:[#allocation5 + $0x80] sm:$0xff]   ;;  %v1445_v35 = vld [vmem:[#allocation7 + $0x10] sm:$0x3f]  ;;  %1448 = vperm.xlu0 %2129, %v1443_v23   ;;  %v1444_v37 = vld [vmem:[#allocation7 + $0x8] sm:$0xff]  ;;  %s2308_s7 = scalar_lea.vmem %s2307_s29, 768 }
  0x7f   : > { %1923 = vmatpush3.bf16.msra.mxu0 %v2140_v9  ;;  %1844 = vmatprep.subr.bf16.mxu1 %v2141_v10  ;;  %v2170_v9 = vld [vmem:[%s2625_s5 + $0x8] ss:$0 sps:$4 sm:$0x77]   ;;  %v2184_v45 = vld [vmem:[#allocation5 + $0xb8] sm:$0xff]   ;;  %v2200_v63 = vld [vmem:[#allocation5 + $0xe8] sm:$0xff]   ;;  %p2310_p9 = scmp.lt.s32.totalorder %s2308_s7, %s2302_s6 }
  0x80   : > { %1924 = vmatprep.subr.bf16.mxu0 %v2142_v11  ;;  %1458 = vperm.xlu1 %2130, %v1445_v35   ;;  %v2182_v39 = vld [vmem:[#allocation5 + $0xb0] sm:$0xff]   ;;  %v2198_v15 = vld [vmem:[#allocation5 + $0xe0] sm:$0xff]   ;;  %v2201_v0 = vld [vmem:[#allocation5 + $0x1e8] sm:$0xff]  }
  0x81   : > { %v2183_v40 = vld [vmem:[#allocation5 + $0x1b0] sm:$0xff]   ;;  %p2311_p12 = por %p2310_p9, %p2309_p5 }
  0x82   : > { %1845 = vmatpush3.bf16.msra.mxu1 %v2141_v10  ;;  %v2169_v10 = vld [vmem:[#allocation5 + $0x180] sm:$0xff]   ;;  %1453 = vperm.xlu0 %2129, %v1444_v37   ;;  %v2203_v3 = vld [vmem:[#allocation5 + $0x1f0] sm:$0xff]  }
  0x83   : > { %1925 = vmatpush3.bf16.msra.mxu0 %v2142_v11  ;;  %1846 = vmatprep.subr.bf16.mxu1 %v2143_v18  ;;  %v539_v11 = vrot.slane %v1673_v5, 1  ;;  %v2204_v5 = vld [vmem:[#allocation5 + $0xf8] sm:$0xff]   ;;  %p2312_p1 = pnand %p2311_p12, %p2305_p3 }
  0x84   : > { %1926 = vmatprep.subr.bf16.mxu0 %v2144_v25 }
  0x85   : > { %v541_v19 = vsel %vm538_vm2, %v539_v11, %v540_v12  ;;  %v2208_v11 = vld [vmem:[#allocation5 + $0x208] sm:$0xff]  }
  0x86   : > { %1847 = vmatpush3.bf16.msra.mxu1 %v2143_v18  ;;  %v2173_v18 = vld [vmem:[#allocation5 + $0x188] sm:$0xff]  }
  0x87   : > { %1927 = vmatpush3.bf16.msra.mxu0 %v2144_v25  ;;  %1848 = vmatprep.subr.bf16.mxu1 %v2145_v31  ;;  %v646_v25 = vld [vmem:[%s2625_s5 + $0xc] sm:$0x3] }
  0x88   : > { %1928 = vmatprep.subr.bf16.mxu0 %v2146_v36  ;;  %v1683_v27 = vcombine.low %v2651_v22, %v646_v25  ;;  %v1175_v22 = vld [vmem:[%s2625_s5 + $0x10] sm:$0x3] }
  0x89   : > { %v2701_v38 = vcombine.low %v2673_v2, %v1175_v22  ;;  %v2202_v2 = vld [vmem:[#allocation5 + $0xf0] sm:$0xff]  }
  0x8a   : > { %1849 = vmatpush3.bf16.msra.mxu1 %v2145_v31  ;;  %v2695_v30 = vrot.slane %v1683_v27, 3  ;;  %v2178_v31 = vld [vmem:[#allocation5 + $0xa0] sm:$0xff]  }
  0x8b   : > { %1929 = vmatpush3.bf16.msra.mxu0 %v2146_v36  ;;  %1854 = vmatprep.subr.bf16.mxu1 %v2149_v44  ;;  %v2181_v36 = vld [vmem:[#allocation5 + $0x1a8] sm:$0xff]  }
  0x8c   : > { %1934 = vmatprep.subr.bf16.mxu0 %v2152_v46  ;;  %v677_v32 = vsel %vm674_vm4, %v675_v28, %v2695_v30 }
  0x8d   : > { %1851 = vmatmul.mubr.bf16.vlgmr.msra.gmra.mrb[0].mxu1 %v317_v47  ;;  %v1200_v47 = vrot.slane %v1198_v41, 2 }
  0x8e   : > { %1855 = vmatpush3.bf16.msra.mxu1 %v2149_v44  ;;  %1931 = vmatmul.mubr.bf16.vlgmr.msra.gmra.mrb[0].mxu0 %v816_v43  ;;  %v1206_v43 = vshrl.u32 %v2701_v38, 16  ;;  %v1209_v44 = vshll.u32 %v2701_v38, 16 }
  0x8f   : > { %1935 = vmatpush3.bf16.msra.mxu0 %v2152_v46  ;;  %1856 = vmatprep.subr.bf16.mxu1 %v2153_v48  ;;  %v2185_v46 = vld [vmem:[#allocation5 + $0x1b8] sm:$0xff]  }
  0x90   : > { %1936 = vmatprep.subr.bf16.mxu0 %v2154_v49  ;;  %1870 = vmatprep.mubr.bf16.mxu1 %v2640_v14  ;;  %v1071_v14 = vrot.slane %v2678_v6, 2  ;;  %v2205_v6 = vld [vmem:[#allocation5 + $0x1f8] sm:$0xff]  }
  0x91   : > { %1950 = vmatprep.mubr.bf16.mxu0 %v1701_v50  ;;  %v1211_v50 = vrot.slane %v1209_v44, 3 }
  0x92   : > { %1857 = vmatpush3.bf16.msra.mxu1 %v2153_v48  ;;  %v1073_v20 = vsel %vm1070_vm3, %v1071_v14, %v2686_v16  ;;  %v1203_v48 = vrot.slane %v1201_v42, 3  ;;  %v2211_v14 = vld [vmem:[#allocation5 + $0x220] sm:$0xff]  }
  0x93   : > { %1937 = vmatpush3.bf16.msra.mxu0 %v2154_v49  ;;  %1858 = vmatprep.subr.bf16.mxu1 %v2155_v51  ;;  %v1208_v49 = vrot.slane %v1206_v43, 2 }
  0x94   : > { %1938 = vmatprep.subr.bf16.mxu0 %v2156_v52  ;;  %v1204_v53 = vor.u32 %v1203_v48, %v1200_v47 }
  0x96   : > { %1859 = vmatpush3.bf16.msra.mxu1 %v2155_v51  ;;  %v2187_v51 = vld [vmem:[#allocation5 + $0xc0] sm:$0xff]  }
  0x97   : > { %1939 = vmatpush3.bf16.msra.mxu0 %v2156_v52  ;;  %1860 = vmatprep.subr.bf16.mxu1 %v2157_v54  ;;  %v2191_v52 = vld [vmem:[#allocation5 + $0x1c0] sm:$0xff]  }
  0x98   : > { %1940 = vmatprep.subr.bf16.mxu0 %v2158_v55 }
  0x9a   : > { %1861 = vmatpush3.bf16.msra.mxu1 %v2157_v54  ;;  %v2707_v54 = vor.u32 %v1211_v50, %v1208_v49 }
  0x9b   : > { %1941 = vmatpush3.bf16.msra.mxu0 %v2158_v55  ;;  %1862 = vmatprep.subr.bf16.mxu1 %v2159_v56  ;;  %v2192_v55 = vld [vmem:[#allocation5 + $0xc8] sm:$0xff]  }
  0x9c   : > { %1942 = vmatprep.subr.bf16.mxu0 %v2160_v57 }
  0x9e   : > { %1863 = vmatpush3.bf16.msra.mxu1 %v2159_v56  ;;  %v2193_v56 = vld [vmem:[#allocation5 + $0x1c8] sm:$0xff]  }
  0x9f   : > { %1943 = vmatpush3.bf16.msra.mxu0 %v2160_v57  ;;  %1864 = vmatprep.subr.bf16.mxu1 %v2161_v58  ;;  %v1213_v57 = vsel %vm1196_vm5, %v1204_v53, %v2707_v54 }
  0xa0   : > { %1944 = vmatprep.subr.bf16.mxu0 %v2162_v59 }
  0xa2   : > { %1865 = vmatpush3.bf16.msra.mxu1 %v2161_v58  ;;  %v2194_v58 = vld [vmem:[#allocation5 + $0xd0] sm:$0xff]  }
  0xa3   : > { %1945 = vmatpush3.bf16.msra.mxu0 %v2162_v59  ;;  %1866 = vmatprep.subr.bf16.mxu1 %v2163_v60  ;;  %v2195_v59 = vld [vmem:[#allocation5 + $0x1d0] sm:$0xff]  }
  0xa4   : > { %1946 = vmatprep.subr.bf16.mxu0 %v2164_v61 }
  0xa6   : > { %1867 = vmatpush3.bf16.msra.mxu1 %v2163_v60  ;;  %v2196_v60 = vld [vmem:[#allocation5 + $0xd8] sm:$0xff]  }
  0xa7   : > { %1947 = vmatpush3.bf16.msra.mxu0 %v2164_v61  ;;  %1868 = vmatprep.subr.bf16.mxu1 %v2165_v62  ;;  %v2197_v61 = vld [vmem:[#allocation5 + $0x1d8] sm:$0xff]  }
  0xa8   : > { %1948 = vmatprep.subr.bf16.mxu0 %v2166_v4 }
  0xaa   : > { %1869 = vmatpush3.bf16.msra.mxu1 %v2165_v62  ;;  %v2199_v62 = vld [vmem:[#allocation5 + $0x1e0] sm:$0xff]  }
  0xab   : > { %1949 = vmatpush3.bf16.msra.mxu0 %v2166_v4  ;;  %1874 = vmatprep.subr.bf16.mxu1 %v2167_v8  ;;  %v1315_v4 = vld [vmem:[%s2625_s5 + $0x4] sm:$0x8] }
  0xac   : > { %1954 = vmatprep.subr.bf16.mxu0 %v2169_v10  ;;  %v1730_v7 = vcombine.low %v1315_v4, %v2670_v1  ;;  %v2209_v1 = vld [vmem:[#allocation5 + $0x210] sm:$0xff]  }
  0xad   : > { %1871 = vmatmul.mubr.bf16.vlgmr.msra.gmra.mrb[0].mxu1 %v2170_v9 }
  0xae   : > { %1875 = vmatpush3.bf16.msra.mxu1 %v2167_v8  ;;  %1951 = vmatmul.mubr.bf16.vlgmr.msra.gmra.mrb[0].mxu0 %v1702_v13  ;;  %v2207_v8 = vld [vmem:[#allocation5 + $0x200] sm:$0xff]   ;;  %v1336_v9 = vrot.slane %v1730_v7, 3  ;;  %v2210_v13 = vld [vmem:[#allocation5 + $0x218] sm:$0xff]  }
  0xaf   : > { %1955 = vmatpush3.bf16.msra.mxu0 %v2169_v10  ;;  %1876 = vmatprep.subr.bf16.mxu1 %v2172_v17  ;;  %v1337_v10 = vrot.slane %v2701_v38, 3 }
  0xb0   : > { %1956 = vmatprep.subr.bf16.mxu0 %v2173_v18  ;;  %1890 = vmatprep.mubr.bf16.mxu1 %v541_v19 }
  0xb1   : > { %1970 = vmatprep.mubr.bf16.mxu0 %v1073_v20 }
  0xb2   : > { %1877 = vmatpush3.bf16.msra.mxu1 %v2172_v17  ;;  %v2213_v17 = vld [vmem:[#allocation5 + $0x230] sm:$0xff]  }
  0xb3   : > { %1957 = vmatpush3.bf16.msra.mxu0 %v2173_v18  ;;  %1878 = vmatprep.subr.bf16.mxu1 %v2174_v21  ;;  %v2214_v18 = vld [vmem:[#allocation5 + $0x238] sm:$0xff]  }
  0xb4   : > { %1958 = vmatprep.subr.bf16.mxu0 %v2175_v24 }
  0xb6   : > { %1879 = vmatpush3.bf16.msra.mxu1 %v2174_v21 }
  0xb7   : > { %1959 = vmatpush3.bf16.msra.mxu0 %v2175_v24  ;;  %1880 = vmatprep.subr.bf16.mxu1 %v2176_v26 }
  0xb8   : > { %1960 = vmatprep.subr.bf16.mxu0 %v2177_v29 }
  0xba   : > { %1881 = vmatpush3.bf16.msra.mxu1 %v2176_v26 }
  0xbb   : > { %1961 = vmatpush3.bf16.msra.mxu0 %v2177_v29  ;;  %1882 = vmatprep.subr.bf16.mxu1 %v2178_v31 }
  0xbc   : > { %1962 = vmatprep.subr.bf16.mxu0 %v2179_v33 }
  0xbe   : > { %1883 = vmatpush3.bf16.msra.mxu1 %v2178_v31 }
  0xbf   : > { %1963 = vmatpush3.bf16.msra.mxu0 %v2179_v33  ;;  %1884 = vmatprep.subr.bf16.mxu1 %v2180_v34 }
  0xc0   : > { %1964 = vmatprep.subr.bf16.mxu0 %v2181_v36 }
  0xc2   : > { %1885 = vmatpush3.bf16.msra.mxu1 %v2180_v34 }
  0xc3   : > { %1965 = vmatpush3.bf16.msra.mxu0 %v2181_v36  ;;  %1886 = vmatprep.subr.bf16.mxu1 %v2182_v39 }
  0xc4   : > { %1966 = vmatprep.subr.bf16.mxu0 %v2183_v40 }
  0xc6   : > { %1887 = vmatpush3.bf16.msra.mxu1 %v2182_v39 }
  0xc7   : > { %1967 = vmatpush3.bf16.msra.mxu0 %v2183_v40  ;;  %1888 = vmatprep.subr.bf16.mxu1 %v2184_v45 }
  0xc8   : > { %1968 = vmatprep.subr.bf16.mxu0 %v2185_v46 }
  0xca   : > { %1889 = vmatpush3.bf16.msra.mxu1 %v2184_v45 }
  0xcb   : > { %1969 = vmatpush3.bf16.msra.mxu0 %v2185_v46  ;;  %1894 = vmatprep.subr.bf16.mxu1 %v2187_v51 }
  0xcc   : > { %1974 = vmatprep.subr.bf16.mxu0 %v2191_v52 }
  0xcd   : > { %1891 = vmatmul.mubr.bf16.vlgmr.msra.gmra.mrb[0].mxu1 %v540_v12  ;;  %v1338_v12 = vsel %vm674_vm4, %v1336_v9, %v1337_v10 }
  0xce   : > { %1895 = vmatpush3.bf16.msra.mxu1 %v2187_v51  ;;  %1971 = vmatmul.mubr.bf16.vlgmr.msra.gmra.mrb[0].mxu0 %v2686_v16  ;;  %v2212_v16 = vld [vmem:[#allocation5 + $0x228] sm:$0xff]  }
  0xcf   : > { %1975 = vmatpush3.bf16.msra.mxu0 %v2191_v52  ;;  %1896 = vmatprep.subr.bf16.mxu1 %v2192_v55 }
  0xd0   : > { %1976 = vmatprep.subr.bf16.mxu0 %v2193_v56  ;;  %1910 = vmatprep.mubr.bf16.mxu1 %v677_v32 }
  0xd1   : > { %1990 = vmatprep.mubr.bf16.mxu0 %v1213_v57 }
  0xd2   : > { %1897 = vmatpush3.bf16.msra.mxu1 %v2192_v55 }
  0xd3   : > { %1977 = vmatpush3.bf16.msra.mxu0 %v2193_v56  ;;  %1898 = vmatprep.subr.bf16.mxu1 %v2194_v58 }
  0xd4   : > { %1978 = vmatprep.subr.bf16.mxu0 %v2195_v59 }
  0xd6   : > { %1899 = vmatpush3.bf16.msra.mxu1 %v2194_v58 }
  0xd7   : > { %1979 = vmatpush3.bf16.msra.mxu0 %v2195_v59  ;;  %1900 = vmatprep.subr.bf16.mxu1 %v2196_v60 }
  0xd8   : > { %1980 = vmatprep.subr.bf16.mxu0 %v2197_v61 }
  0xda   : > { %1901 = vmatpush3.bf16.msra.mxu1 %v2196_v60 }
  0xdb   : > { %1981 = vmatpush3.bf16.msra.mxu0 %v2197_v61  ;;  %1902 = vmatprep.subr.bf16.mxu1 %v2198_v15 }
  0xdc   : > { %1982 = vmatprep.subr.bf16.mxu0 %v2199_v62 }
  0xde   : > { %1903 = vmatpush3.bf16.msra.mxu1 %v2198_v15 }
  0xdf   : > { %1983 = vmatpush3.bf16.msra.mxu0 %v2199_v62  ;;  %1904 = vmatprep.subr.bf16.mxu1 %v2200_v63 }
  0xe0   : > { %1984 = vmatprep.subr.bf16.mxu0 %v2201_v0 }
  0xe2   : > { %1905 = vmatpush3.bf16.msra.mxu1 %v2200_v63 }
  0xe3   : > { %1985 = vmatpush3.bf16.msra.mxu0 %v2201_v0  ;;  %1906 = vmatprep.subr.bf16.mxu1 %v2202_v2 }
  0xe4   : > { %1986 = vmatprep.subr.bf16.mxu0 %v2203_v3 }
  0xe6   : > { %1907 = vmatpush3.bf16.msra.mxu1 %v2202_v2 }
  0xe7   : > { %1987 = vmatpush3.bf16.msra.mxu0 %v2203_v3  ;;  %1908 = vmatprep.subr.bf16.mxu1 %v2204_v5 }
  0xe8   : > { %1988 = vmatprep.subr.bf16.mxu0 %v2205_v6 }
  0xea   : > { %1909 = vmatpush3.bf16.msra.mxu1 %v2204_v5 }
  0xeb   : > { %1989 = vmatpush3.bf16.msra.mxu0 %v2205_v6 }
  0xec   : > { %1994 = vmatprep.subr.bf16.mxu0 %v2207_v8 }
  0xed   : > { %1911 = vmatmul.mubr.bf16.vlgmr.msra.gmra.mrb[0].mxu1 %v2695_v30 }
  0xee   : > { %1991 = vmatmul.mubr.bf16.vlgmr.msra.gmra.mrb[0].mxu0 %v2707_v54 }
  0xef   : > { %1995 = vmatpush3.bf16.msra.mxu0 %v2207_v8  ;;  %2010 = vmatprep.mubr.bf16.mxu0 %v1338_v12 }
  0xf0   : > { %1996 = vmatprep.subr.bf16.mxu0 %v2208_v11 }
  0xf3   : > { %1997 = vmatpush3.bf16.msra.mxu0 %v2208_v11 }
  0xf4   : > { %1998 = vmatprep.subr.bf16.mxu0 %v2209_v1 }
  0xf7   : > { %1999 = vmatpush3.bf16.msra.mxu0 %v2209_v1 }
  0xf8   : > { %2000 = vmatprep.subr.bf16.mxu0 %v2210_v13 }
  0xfb   : > { %2001 = vmatpush3.bf16.msra.mxu0 %v2210_v13 }
  0xfc   : > { %2002 = vmatprep.subr.bf16.mxu0 %v2211_v14 }
  0xfd   : > { %v1449_v25 = vpop.permute.xlu0 %1448 }
  0xff   : > { %2003 = vmatpush3.bf16.msra.mxu0 %v2211_v14  ;;  %v1459_v27 = vpop.permute.xlu1 %1458 }
 0x100   : > { %2004 = vmatprep.subr.bf16.mxu0 %v2212_v16 }
 0x101   : > { %v1454_v23 = vpop.permute.xlu0 %1453 }
 0x103   : > { %2005 = vmatpush3.bf16.msra.mxu0 %v2212_v16 }
 0x104   : > { %2006 = vmatprep.subr.bf16.mxu0 %v2213_v17 }
 0x107   : > { %2007 = vmatpush3.bf16.msra.mxu0 %v2213_v17 }
 0x108   : > { %2008 = vmatprep.subr.bf16.mxu0 %v2214_v18 }
 0x10b   : > { %2009 = vmatpush3.bf16.msra.mxu0 %v2214_v18 }
 0x10e   : > { %2011 = vmatmul.mubr.bf16.vlgmr.msra.gmra.mrb[0].mxu0 %v1337_v10 }
 0x1c0   : > { %v1912_v19 = vpop.f32.mrb[0].mxu1 }
 0x1c1   : > { %v762_v20 = vpop.f32.mrb[1].mxu1 }
 0x1c2   : > { %v1913_v21 = vpop.f32.mrb[2].mxu1 }
 0x1c3   : > { %v765_v24 = vpop.f32.mrb[3].mxu1 }
 0x1e1   : > { %v2012_v26 = vpop.f32.mrb[0].mxu0 }
 0x1e2   : > { %v2014_v28 = vadd.f32 %v2012_v26, %v1912_v19  ;;  %v1423_v29 = vpop.f32.mrb[1].mxu0 }
 0x1e3   : > { %v2015_v30 = vadd.f32 %v1423_v29, %v762_v20  ;;  %v2013_v31 = vpop.f32.mrb[2].mxu0 }
 0x1e4   : > { %1442 = vst [vmem:[%s248_s23 + $0x10] sm:$0x3f] %v2014_v28  ;;  %v1463_v32 = vmul.f32 %v2014_v28, %v1459_v27  ;;  %v1426_v33 = vpop.f32.mrb[3].mxu0 }
 0x1e5   : > { %1440 = vst [vmem:[%s248_s23] sm:$0xff] %v2015_v30  ;;  %v1461_v34 = vmul.f32 %v2015_v30, %v1449_v25  ;;  %v2016_v22 = vadd.f32 %v1426_v33, %v765_v24 }
 0x1e6   : > { %v1477_v36 = vmul.f32 %v2014_v28, %v1463_v32 }
 0x1e7   : > { %1441 = vst [vmem:[%s248_s23 + $0x8] sm:$0xff] %v2016_v22  ;;  %v1462_v35 = vmul.f32 %v2016_v22, %v1454_v23 }
 0x1e8   : > { %2315 = shalt.err (!%p2312_p1)
}
 0x1e9   : > { %s2316_s14 = scalar_lea.hbm %s2726_s8, 384  ;;  %s2320_s5 = scalar_lea.hbm %s2806_s3, 768 }
 0x1ea   : > { %p2317_p13 = scmp.ne.s32.totalorder %s2726_s8, %s2316_s14  ;;  %p2321_p4 = scmp.lt.u32.totalorder %s2726_s8, %s2806_s3 }
 0x1eb   : > { %p2322_p7 = scmp.lt.u32.totalorder %s2320_s5, %s2316_s14  ;;  %p2324_p11 = scmp.lt.u32.totalorder %s2316_s14, %s2726_s8 }
 0x1ec   : > { %p2318_p6 = pnand %p2317_p13, %p2821_p0 }
 0x1ed   : > { %p2323_p8 = por %p2322_p7, %p2321_p4 }
 0x1ee   : > { %p2319_p10 = pneg %p2318_p6 }
 0x1ef   : > { %p2325_p2 = por %p2324_p11, %p2323_p8 }
 0x1f1   : > { %p2326_p3 = pnand %p2325_p2, %p2319_p10 }
 0x1f3   : > { %2329 = shalt.err (!%p2326_p3)
}
 0x1f4   : > { %s2415_s12 = smov 128   ;;  %s2416_s30 = smov 8   ;;  %v1475_v37 = vmul.f32 %v2015_v30, %v1461_v34  ;;  %v1464_v38 = vadd.f32 %v1462_v35, %v1461_v34  ;;  %v1476_v39 = vmul.f32 %v2016_v22, %v1462_v35  ;;  %v1466_v40 = vsel %vm1070_vm3, %v1463_v32, 0.0 }
 0x1f5   : > { %2060 = dma.vmem_to_hbm [thread:$0]  (%p2821_p0), %s2721_s11, 384, %s2726_s8, %s1489_s9, %s2415_s12, %s2415_s12, %s2416_s30   ;;  %v1479_v43 = vsel %vm1070_vm3, %v1477_v36, 0.0 }
 0x1f6   : > { %v1467_v41 = vadd.f32 %v1466_v40, %v1464_v38  ;;  %v1478_v42 = vadd.f32 %v1476_v39, %v1475_v37  ;;  %s1653_s25 = sshll.u32 %s2621_s10, 1  ;;  %s1741_s11 = sshll.u32 %s2464_s19, 5 }
 0x1f7   : > { %s255_s8 = scalar_lea.vmem [#allocation9], %s1653_s25  ;;  %s2759_s29 = scalar_lea.hbm %s2807_s4, %s1741_s11 }
 0x1f8   : > { %v1468_v44 = vrot.slane %v1467_v41, 4  ;;  %v1480_v45 = vadd.f32 %v1479_v43, %v1478_v42  ;;  %s1523_s9 = sshll.u32 %s255_s8, 4  ;;  %s1494_s7 = scalar_lea.sflag [#allocation10], %s2621_s10  ;;  %s2761_s9 = int_to_ptr.vmem [resolvable:$true] %s1523_s9 }
 0x1f9   : > { %s2330_s14 = scalar_lea.vmem %s2761_s9, 32  ;;  %s2417_s19 = smov [#allocation9]  }
 0x1fa   : > { %v1469_v46 = vadd.f32 %v1468_v44, %v1467_v41  ;;  %v1481_v47 = vrot.slane %v1480_v45, 4  ;;  %p2331_p5 = scmp.ne.s32.totalorder %s2761_s9, %s2330_s14  ;;  %s2334_s20 = sshll.u32 %s2417_s19, 4  ;;  %s2335_s20 = int_to_ptr.vmem [resolvable:$false] %s2334_s20 }
 0x1fb   : > { %s2336_s28 = scalar_lea.vmem %s2335_s20, 64  ;;  %p2337_p1 = scmp.lt.s32.totalorder %s2761_s9, %s2335_s20 }
 0x1fc   : > { %v1470_v48 = vrot.slane %v1469_v46, 2  ;;  %v1482_v49 = vadd.f32 %v1481_v47, %v1480_v45  ;;  %p2332_p9 = pnand %p2331_p5, %p2821_p0  ;;  %p2338_p13 = scmp.lt.s32.totalorder %s2336_s28, %s2330_s14 }
 0x1fe   : > { %v1471_v50 = vadd.f32 %v1470_v48, %v1469_v46  ;;  %v1483_v51 = vrot.slane %v1482_v49, 2  ;;  %p2333_p12 = pneg %p2332_p9  ;;  %p2339_p6 = por %p2338_p13, %p2337_p1 }
 0x200   : > { %v1484_v52 = vadd.f32 %v1483_v51, %v1482_v49  ;;  %v1472_v53 = vrot.slane %v1471_v50, 1  ;;  %p2340_p10 = pnand %p2339_p6, %p2333_p12 }
 0x202   : > { %v1473_v54 = vadd.f32 %v1472_v53, %v1471_v50  ;;  %v1485_v55 = vrot.slane %v1484_v52, 1 }
 0x204   : > { %1474 = vst [vmem:[%s255_s8] sm:$0x1] %v1473_v54  ;;  %v1486_v56 = vadd.f32 %v1485_v55, %v1484_v52 }
 0x206   : > { %1487 = vst [vmem:[%s255_s8 + $0x1] sm:$0x1] %v1486_v56 }
 0x207   : > { %2343 = shalt.err (!%p2340_p10)
}
 0x208   : > { %s2344_s10 = scalar_lea.hbm %s2759_s29, 32  ;;  %s2348_s23 = scalar_lea.hbm %s2807_s4, 64 }
 0x209   : > { %p2345_p4 = scmp.ne.s32.totalorder %s2759_s29, %s2344_s10  ;;  %p2349_p11 = scmp.lt.u32.totalorder %s2759_s29, %s2807_s4 }
 0x20a   : > { %p2350_p2 = scmp.lt.u32.totalorder %s2348_s23, %s2344_s10  ;;  %p2352_p5 = scmp.lt.u32.totalorder %s2344_s10, %s2759_s29 }
 0x20b   : > { %p2346_p7 = pnand %p2345_p4, %p2821_p0 }
 0x20c   : > { %p2351_p3 = por %p2350_p2, %p2349_p11 }
 0x20d   : > { %p2347_p8 = pneg %p2346_p7 }
 0x20e   : > { %p2353_p9 = por %p2352_p5, %p2351_p3 }
 0x210   : > { %p2354_p12 = pnand %p2353_p9, %p2347_p8 }
 0x212   : > { %2357 = shalt.err (!%p2354_p12)
}
 0x213   : > { %2061 = dma.vmem_to_hbm [thread:$0]  (%p2821_p0), %s2761_s9, 32, %s2759_s29, %s1494_s7  }
 0x214 PF: > { %s1535_s25 = sand.u32 1, %s2392_s15   ;;  %p2822_p1 = scmp.ne.s32.totalorder %s2812_s22, 0 }
 0x215   : > { %p2823_p13 = scmp.ge.s32.totalorder %s2404_s18, 2  ;;  %s1536_s11 = scalar_lea.sflag [#allocation4], %s1535_s25 }
 0x217   : > { %p2076_p6 = pnand %p2823_p13, %p2822_p1 }
 0x219   : > { %2383 = dma.done.wait (!%p2076_p6), %s1536_s11, 384  }
 0x21a   : > { %2385 = vsyncadd (!%p2076_p6), %s1536_s11, 4294966912  ;;  %s1545_s8 = scalar_lea.sflag [#allocation10], %s1535_s25 }
 0x21b   : > { %2387 = dma.done.wait (!%p2076_p6), %s1545_s8, 32  }
 0x21c   : > { %2389 = vsyncadd (!%p2076_p6), %s1545_s8, 4294967264  ;;  %p22_p0 = scmp.ge.s32.totalorder %s2556_s13, 4   ;;  %s2824_s15 = smov %s2396_s16 }
 0x21d   : > { %s2825_s16 = smov %s2400_s17  ;;  %s2826_s17 = smov %s2565_s24 }
 0x21e   : > { %s2827_s18 = smov %s2556_s13  ;;  %24 = sbr.rel (!%p22_p0) target bundleno = 8 (0x8), region = 110 }
 0x225   :  { %1550 = vsyncpa [#allocation3], 1 }
 0x226   :  { %1552 = vsyncpa [#allocation3 + $0x1], 1 }
 0x227   :  { %1553 = vsyncpa [#allocation6], 1 }
 0x228   :  { %1554 = vsyncpa [#allocation4], 1 }
 0x229   :  { %1556 = vsyncpa [#allocation4 + $0x1], 1 }
 0x22a   :  { %1557 = vsyncpa [#allocation10], 1 }
 0x22b   :  { %1559 = vsyncpa [#allocation10 + $0x1], 1 }

// kernel: downsample_forward.58
= control target key start
LH: loop header
LB: loop body
LE: loop exit
PB: predicated region body
PF: predicated region fallthrough
CT: control target
= control target key end

     0   :  { %6 = vsyncpa [#allocation3], 0  ;;  %s594_s0 = inlined_call_operand.hbm [shape: bf16[9,2,4,128], index: 0, kind: input, shape index: {}]   ;;  %s595_s1 = inlined_call_operand.hbm [shape: bf16[2,4,128], index: 1, kind: output, shape index: {}]  }
   0x1   :  { %8 = vsyncpa [#allocation3 + $0x1], 0 }
   0x2   :  { %9 = vsyncpa [#allocation4], 0 }
   0x3   :  { %11 = vsyncpa [#allocation4 + $0x1], 0  ;;  %s437_s6 = smov 0   ;;  %s439_s7 = smov 0  }
   0x4   :  { %s441_s8 = smov 0   ;;  %s443_s9 = smov 0  }
   0x5 LB: > { %s458_s10 = sadd.s32 4294967295, %s420_s9   ;;  %s255_s11 = sadd.s32 4294967294, %s420_s9   ;;  %s420_s9 = sphi %s443_s9, %s608_s9   ;;  %s416_s8 = sphi %s441_s8, %s607_s8   ;;  %s412_s7 = sphi %s439_s7, %s606_s7   ;;  %s408_s6 = sphi %s437_s6, %s605_s6  }
   0x6   : > { %s462_s12 = sadd.s32 1, %s420_s9   ;;  %s24_s13 = sadd.s32 1, %s416_s8 }
   0x7   : > { %s21_s14 = ssub.s32 %s420_s9, %s462_s12  ;;  %p31_p0 = scmp.ne.s32.totalorder %s416_s8, %s412_s7 }
   0x8   : > { %p22_p1 = scmp.eq.s32.totalorder %s21_s14, 0  ;;  %p32_p2 = scmp.eq.s32.totalorder %s420_s9, 0 }
   0x9   : > { %p37_p3 = scmp.ne.s32.totalorder %s412_s7, %s408_s6  ;;  %p38_p4 = scmp.eq.s32.totalorder %s458_s10, 0 }
   0xa   : > { %s474_s15 = scalar_select %p22_p1, %s416_s8, %s24_s13  }
   0xb   : > { %p33_p5 = por %p32_p2, %p31_p0  ;;  %p476_p6 = por %p38_p4, %p37_p3 }
   0xc   : > { %p61_p7 = scmp.eq.s32.totalorder %s458_s10, 1  ;;  %p67_p8 = scmp.eq.s32.totalorder %s255_s11, 1 }
   0xd   : > { %p287_p10 = scmp.lt.s32.totalorder %s420_s9, 2  ;;  %s87_s19 = sand.u32 1, %s416_s8  }
   0xe   : > { %p483_p11 = por %p61_p7, %p31_p0  ;;  %p487_p12 = por %p67_p8, %p37_p3 }
   0xf   : > { %s258_s20 = sshll.u32 %s420_s9, 5  ;;  %s273_s21 = smul.u32 18, %s87_s19 }
  0x10   : > { %s598_s17 = scalar_select %p483_p11, 1, 0 }
  0x11   : > { %s599_s18 = scalar_select %p487_p12, 1, 0 }
  0x12   : > { %s496_s24 = scalar_lea.hbm %s594_s0, %s258_s20  ;;  %p498_p13 = pnand %p287_p10, %p33_p5 }
  0x13   : > { %s91_s26 = scalar_lea.vmem [#allocation2], %s273_s21  ;;  %s505_s28 = scalar_lea.sflag [#allocation3], %s87_s19 }
  0x14   : > { %s97_s27 = sshll.u32 %s91_s26, 4  ;;  %s324_s29 = scalar_lea.hbm %s496_s24, 288  ;;  %s502_s27 = int_to_ptr.vmem [resolvable:$true] %s97_s27 }
  0x15   : > { %p325_p1 = scmp.ne.s32.totalorder %s496_s24, %s324_s29  ;;  %p326_p2 = pneg %p498_p13 }
  0x16   : > { %s329_s3 = scalar_lea.hbm %s594_s0, 576  ;;  %p330_p5 = scmp.lt.u32.totalorder %s496_s24, %s594_s0 }
  0x17   : > { %p327_p3 = pnand %p326_p2, %p325_p1  ;;  %p331_p7 = scmp.lt.u32.totalorder %s329_s3, %s324_s29 }
  0x18   : > { %p333_p10 = scmp.lt.u32.totalorder %s324_s29, %s496_s24 }
  0x19   : > { %p328_p4 = pneg %p327_p3  ;;  %p332_p8 = por %p331_p7, %p330_p5 }
  0x1b   : > { %p334_p9 = por %p333_p10, %p332_p8 }
  0x1d   : > { %p335_p0 = pnand %p334_p9, %p328_p4 }
  0x1f   : > { %338 = shalt.err (!%p335_p0)
}
  0x20   : > { %s339_s11 = scalar_lea.vmem %s502_s27, 288  ;;  %s422_s13 = smov [#allocation2]  }
  0x21   : > { %p340_p1 = scmp.ne.s32.totalorder %s502_s27, %s339_s11  ;;  %s344_s14 = sshll.u32 %s422_s13, 4  ;;  %s345_s14 = int_to_ptr.vmem [resolvable:$false] %s344_s14 }
  0x22   : > { %s346_s19 = scalar_lea.vmem %s345_s14, 576  ;;  %p347_p11 = scmp.lt.s32.totalorder %s502_s27, %s345_s14 }
  0x23   : > { %p342_p3 = pnand %p340_p1, %p326_p2  ;;  %p348_p5 = scmp.lt.s32.totalorder %s346_s19, %s339_s11 }
  0x25   : > { %p343_p12 = pneg %p342_p3  ;;  %p349_p7 = por %p348_p5, %p347_p11 }
  0x27   : > { %p350_p8 = pnand %p349_p7, %p343_p12 }
  0x29   : > { %353 = shalt.err (!%p350_p8)
}
  0x2a   : > { %s423_s20 = smov 64   ;;  %s424_s21 = smov 32  }
  0x2b   : > { %s425_s22 = smov 2   ;;  %p105_p9 = scmp.lt.s32.totalorder %s420_s9, 3 }
  0x2c   : > { %282 = dma.hbm_to_vmem [thread:$0]  (!%p498_p13), %s496_s24, 288, %s502_s27, %s505_s28, %s423_s20, %s424_s21, %s425_s22  }
  0x2d   : > { %p601_p0 = scmp.ge.s32.totalorder %s420_s9, 1 }
  0x2f   : > { %p106_p2 = pnand %p601_p0, %p105_p9 }
  0x30   : > { %s537_s23 = sand.u32 (!%p106_p2), 1, %s412_s7  }
  0x31   : > { %109 = sbr.rel (%p106_p2) target bundleno = 94 (0x5e), region = 24  ;;  %s112_s29 = scalar_lea.sflag (!%p106_p2), [#allocation3], %s537_s23 }
  0x32   : > { %s274_s26 = smul.u32 (!%p106_p2), 18, %s537_s23 }
  0x34   : > { %s115_s30 = scalar_lea.vmem (!%p106_p2), [#allocation2], %s274_s26 }
  0x38   : > { %399 = dma.done.wait (%p476_p6), %s112_s29, 288  }
  0x39   : > { %401 = vsyncadd (%p476_p6), %s112_s29, 4294967008  ;;  %v134_v0 = vld [vmem:[%s115_s30] sm:$0x3]  ;;  %v261_v1 = vld [vmem:[%s115_s30 + $0x2] sm:$0x3]  ;;  %s260_s16 = sshll.u32 %s537_s23, 1 }
  0x3a   : > { %v262_v2 = vld [vmem:[%s115_s30 + $0x4] sm:$0x3]  ;;  %v135_v3 = vunpack.c.l.bf16 %v134_v0  ;;  %v138_v4 = vunpack.c.l.bf16 %v261_v1  ;;  %v263_v6 = vld [vmem:[%s115_s30 + $0x6] sm:$0x3]  ;;  %v264_v7 = vld [vmem:[%s115_s30 + $0x8] sm:$0x3] }
  0x3b   : > { %v142_v5 = vunpack.c.l.bf16 %v262_v2  ;;  %v146_v9 = vunpack.c.l.bf16 %v263_v6  ;;  %v265_v10 = vld [vmem:[%s115_s30 + $0xa] sm:$0x3]  ;;  %v150_v12 = vunpack.c.l.bf16 %v264_v7  ;;  %v266_v13 = vld [vmem:[%s115_s30 + $0xc] sm:$0x3]  ;;  %v267_v16 = vld [vmem:[%s115_s30 + $0xe] sm:$0x3] }
  0x3c   : > { %v139_v8 = vadd.f32 %v138_v4, %v135_v3  ;;  %v154_v15 = vunpack.c.l.bf16 %v265_v10  ;;  %v158_v18 = vunpack.c.l.bf16 %v266_v13  ;;  %v268_v19 = vld [vmem:[%s115_s30 + $0x10] sm:$0x3]  ;;  %v162_v21 = vunpack.c.l.bf16 %v267_v16  ;;  %s133_s24 = scalar_lea.vmem [#allocation5], %s260_s16  ;;  %s270_s27 = sshll.u32 %s458_s10, 5 }
  0x3d   : > { %v166_v23 = vunpack.c.l.bf16 %v268_v19  ;;  %s185_s25 = sshll.u32 %s133_s24, 4  ;;  %s552_s3 = scalar_lea.hbm %s595_s1, %s270_s27  ;;  %s547_s25 = int_to_ptr.vmem [resolvable:$true] %s185_s25 }
  0x3e   : > { %v143_v11 = vadd.f32 %v142_v5, %v139_v8  ;;  %s172_s4 = scalar_lea.sflag [#allocation4], %s537_s23  ;;  %s354_s5 = scalar_lea.vmem %s547_s25, 32 }
  0x3f   : > { %p355_p6 = scmp.ne.s32.totalorder %s547_s25, %s354_s5  ;;  %p602_p11 = scmp.ne.s32.totalorder %s598_s17, 0 }
  0x40   : > { %v147_v14 = vadd.f32 %v146_v9, %v143_v11  ;;  %s426_s10 = smov [#allocation5]  }
  0x41   : > { %p356_p12 = pnand %p355_p6, %p602_p11  ;;  %s358_s11 = sshll.u32 %s426_s10, 4  ;;  %s359_s11 = int_to_ptr.vmem [resolvable:$false] %s358_s11 }
  0x42   : > { %v151_v17 = vadd.f32 %v150_v12, %v147_v14  ;;  %s360_s13 = scalar_lea.vmem %s359_s11, 64  ;;  %p361_p4 = scmp.lt.s32.totalorder %s547_s25, %s359_s11 }
  0x43   : > { %p357_p13 = pneg %p356_p12  ;;  %p362_p10 = scmp.lt.s32.totalorder %s360_s13, %s354_s5 }
  0x44   : > { %v155_v20 = vadd.f32 %v154_v15, %v151_v17 }
  0x45   : > { %p363_p1 = por %p362_p10, %p361_p4 }
  0x46   : > { %v159_v22 = vadd.f32 %v158_v18, %v155_v20 }
  0x47   : > { %p364_p3 = pnand %p363_p1, %p357_p13 }
  0x48   : > { %v163_v24 = vadd.f32 %v162_v21, %v159_v22 }
  0x4a   : > { %v167_v25 = vadd.f32 %v166_v23, %v163_v24 }
  0x4c   : > { %v168_v26 = vmul.f32 0.11111111, %v167_v25 }
  0x4e   : > { %v169_v27 = vpack.c.bf16 %v168_v26, %v168_v26 }
  0x50   : > { %170 = vst [vmem:[%s133_s24] sm:$0x3] %v169_v27 }
  0x51   : > { %367 = shalt.err (!%p364_p3)
}
  0x52   : > { %s368_s14 = scalar_lea.hbm %s552_s3, 32  ;;  %s372_s21 = scalar_lea.hbm %s595_s1, 64 }
  0x53   : > { %p369_p5 = scmp.ne.s32.totalorder %s552_s3, %s368_s14  ;;  %p373_p9 = scmp.lt.u32.totalorder %s552_s3, %s595_s1 }
  0x54   : > { %p374_p0 = scmp.lt.u32.totalorder %s372_s21, %s368_s14  ;;  %p376_p6 = scmp.lt.u32.totalorder %s368_s14, %s552_s3 }
  0x55   : > { %p370_p7 = pnand %p369_p5, %p602_p11 }
  0x56   : > { %p375_p2 = por %p374_p0, %p373_p9 }
  0x57   : > { %p371_p8 = pneg %p370_p7 }
  0x58   : > { %p377_p12 = por %p376_p6, %p375_p2 }
  0x5a   : > { %p378_p13 = pnand %p377_p12, %p371_p8 }
  0x5c   : > { %381 = shalt.err (!%p378_p13)
}
  0x5d   : > { %277 = dma.vmem_to_hbm [thread:$0]  (%p602_p11), %s547_s25, 32, %s552_s3, %s172_s4  }
  0x5e PF: > { %s197_s26 = sand.u32 1, %s408_s6   ;;  %p603_p4 = scmp.ne.s32.totalorder %s599_s18, 0 }
  0x5f   : > { %p604_p10 = scmp.ge.s32.totalorder %s420_s9, 2  ;;  %s198_s29 = scalar_lea.sflag [#allocation4], %s197_s26 }
  0x61   : > { %p284_p1 = pnand %p604_p10, %p603_p4 }
  0x63   : > { %403 = dma.done.wait (!%p284_p1), %s198_s29, 32  }
  0x64   : > { %405 = vsyncadd (!%p284_p1), %s198_s29, 4294967264  ;;  %p14_p3 = scmp.ge.s32.totalorder %s462_s12, 4   ;;  %s605_s6 = smov %s412_s7 }
  0x65   : > { %s606_s7 = smov %s416_s8  ;;  %s607_s8 = smov %s474_s15 }
  0x66   : > { %s608_s9 = smov %s462_s12  ;;  %16 = sbr.rel (!%p14_p3) target bundleno = 5 (0x5), region = 77 }
  0x6d   :  { %203 = vsyncpa [#allocation3], 1 }
  0x6e   :  { %205 = vsyncpa [#allocation3 + $0x1], 1 }
  0x6f   :  { %206 = vsyncpa [#allocation4], 1 }
  0x70   :  { %208 = vsyncpa [#allocation4 + $0x1], 1 }

// kernel: downsample_forward.60
= control target key start
LH: loop header
LB: loop body
LE: loop exit
PB: predicated region body
PF: predicated region fallthrough
CT: control target
= control target key end

     0   :  { %10 = vsyncpa [#allocation3], 0  ;;  %s1185_s0 = inlined_call_operand.hbm [shape: f32[2,6,128], index: 0, kind: input, shape index: {}]   ;;  %s1186_s1 = inlined_call_operand.hbm [shape: f32[2,2,128], index: 1, kind: input, shape index: {}]   ;;  %s1187_s2 = inlined_call_operand.hbm [shape: f32[1,128], index: 2, kind: input, shape index: {}]   ;;  %s1188_s3 = inlined_call_operand.hbm [shape: f32[1,128], index: 3, kind: input, shape index: {}]   ;;  %s1189_s4 = inlined_call_operand.hbm [shape: f32[6,1], index: 4, kind: input, shape index: {}]   ;;  %s1190_s5 = inlined_call_operand.hbm [shape: bf16[2,16,128], index: 5, kind: output, shape index: {}]  }
   0x1   :  { %12 = vsyncpa [#allocation3 + $0x1], 0 }
   0x2   :  { %13 = vsyncpa [#allocation6], 0 }
   0x3   :  { %14 = vsyncpa [#allocation9], 0 }
   0x4   :  { %15 = vsyncpa [#allocation4], 0 }
   0x5   :  { %17 = vsyncpa [#allocation4 + $0x1], 0  ;;  %s886_s18 = smov 0   ;;  %s888_s19 = smov 0  }
   0x6   :  { %s890_s20 = smov 0   ;;  %s892_s21 = smov 0  }
   0x7 LB: > { %s844_s22 = smov [#allocation5]   ;;  %s907_s24 = sadd.s32 4294967295, %s842_s21   ;;  %s842_s21 = sphi %s892_s21, %s1214_s21   ;;  %s838_s20 = sphi %s890_s20, %s1213_s20   ;;  %s834_s19 = sphi %s888_s19, %s1212_s19   ;;  %s830_s18 = sphi %s886_s18, %s1211_s18  }
   0x8   : > { %s176_s23 = sshll.u32 %s844_s22, 4  ;;  %p507_p0 = scmp.ge.s32.totalorder %s842_s21, 1  ;;  %s912_s23 = int_to_ptr.vmem [resolvable:$true] %s176_s23 }
   0x9   : > { %p1191_p1 = scmp.eq.s32.totalorder %s907_s24, 0  ;;  %p164_p2 = scmp.lt.s32.totalorder %s842_s21, 3 }
   0xa   : > { %s845_s26 = smov [#allocation8]   ;;  %s846_s29 = smov [#allocation7]  }
   0xb   : > { %p914_p3 = pnand %p507_p0, %p164_p2  ;;  %s201_s27 = sshll.u32 %s845_s26, 4  ;;  %s927_s27 = int_to_ptr.vmem [resolvable:$true] %s201_s27 }
   0xc   : > { %s190_s30 = sshll.u32 %s846_s29, 4  ;;  %s626_s8 = scalar_lea.hbm %s1186_s1, 64  ;;  %s929_s30 = int_to_ptr.vmem [resolvable:$true] %s190_s30 }
   0xd   : > { %s1194_s25 = scalar_select %p914_p3, 1, 0 }
   0xe   : > { %p550_p5 = pneg %p914_p3  ;;  %p627_p7 = scmp.ne.s32.totalorder %s1186_s1, %s626_s8 }
   0xf   : > { %p633_p11 = scmp.lt.u32.totalorder %s626_s8, %s1186_s1 }
  0x10   : > { %p923_p6 = pnand %p550_p5, %p1191_p1 }
  0x12   : > { %p939_p8 = pneg %p923_p6 }
  0x14   : > { %p629_p9 = pnand %p939_p8, %p627_p7 }
  0x16   : > { %p630_p10 = pneg %p629_p9 }
  0x18   : > { %p635_p12 = pnand %p633_p11, %p630_p10 }
  0x1a   : > { %638 = shalt.err (!%p635_p12)
}
  0x1b   : > { %s639_s14 = scalar_lea.vmem %s912_s23, 64  ;;  %p647_p5 = scmp.lt.s32.totalorder %s912_s23, %s912_s23 }
  0x1c   : > { %p640_p13 = scmp.ne.s32.totalorder %s912_s23, %s639_s14  ;;  %p648_p4 = scmp.lt.s32.totalorder %s639_s14, %s639_s14 }
  0x1e   : > { %p642_p0 = pnand %p640_p13, %p939_p8  ;;  %p649_p7 = por %p648_p4, %p647_p5 }
  0x20   : > { %p643_p2 = pneg %p642_p0 }
  0x22   : > { %p650_p9 = pnand %p649_p7, %p643_p2 }
  0x24   : > { %653 = shalt.err (!%p650_p9)
}
  0x25   : > { %s847_s15 = smov 32   ;;  %s848_s16 = smov 2  }
  0x26   : > { %553 = dma.hbm_to_vmem [thread:$0]  (!%p923_p6), %s1186_s1, 64, %s912_s23, [#allocation6], %s847_s15, %s847_s15, %s848_s16  }
  0x27   : > { %s654_s6 = scalar_lea.hbm %s1188_s3, 16 }
  0x28   : > { %p655_p4 = scmp.ne.s32.totalorder %s1188_s3, %s654_s6  ;;  %p661_p12 = scmp.lt.u32.totalorder %s654_s6, %s1188_s3 }
  0x2a   : > { %p657_p10 = pnand %p655_p4, %p939_p8 }
  0x2c   : > { %p658_p11 = pneg %p657_p10 }
  0x2e   : > { %p663_p13 = pnand %p661_p12, %p658_p11 }
  0x30   : > { %666 = shalt.err (!%p663_p13)
}
  0x31   : > { %s667_s23 = scalar_lea.vmem %s927_s27, 16  ;;  %s674_s12 = scalar_lea.vmem %s927_s27, 32 }
  0x32   : > { %p668_p0 = scmp.ne.s32.totalorder %s927_s27, %s667_s23  ;;  %p675_p7 = scmp.lt.s32.totalorder %s927_s27, %s927_s27 }
  0x33   : > { %p676_p9 = scmp.lt.s32.totalorder %s674_s12, %s667_s23 }
  0x34   : > { %p670_p2 = pnand %p668_p0, %p939_p8 }
  0x35   : > { %p677_p4 = por %p676_p9, %p675_p7 }
  0x36   : > { %p671_p5 = pneg %p670_p2 }
  0x38   : > { %p678_p10 = pnand %p677_p4, %p671_p5 }
  0x3a   : > { %681 = shalt.err (!%p678_p10)
}
  0x3b   : > { %559 = dma.hbm_to_vmem [thread:$0]  (!%p923_p6), %s1188_s3, 16, %s927_s27, [#allocation9]  }
  0x3c   : > { %s682_s17 = scalar_lea.hbm %s1187_s2, 16 }
  0x3d   : > { %p683_p11 = scmp.ne.s32.totalorder %s1187_s2, %s682_s17  ;;  %p689_p0 = scmp.lt.u32.totalorder %s682_s17, %s1187_s2 }
  0x3f   : > { %p685_p12 = pnand %p683_p11, %p939_p8 }
  0x41   : > { %p686_p13 = pneg %p685_p12 }
  0x43   : > { %p691_p2 = pnand %p689_p0, %p686_p13 }
  0x45   : > { %694 = shalt.err (!%p691_p2)
}
  0x46   : > { %s695_s27 = scalar_lea.vmem %s929_s30, 16  ;;  %s702_s7 = scalar_lea.vmem %s929_s30, 32 }
  0x47   : > { %p696_p5 = scmp.ne.s32.totalorder %s929_s30, %s695_s27  ;;  %p703_p4 = scmp.lt.s32.totalorder %s929_s30, %s929_s30 }
  0x48   : > { %p704_p10 = scmp.lt.s32.totalorder %s702_s7, %s695_s27 }
  0x49   : > { %p698_p7 = pnand %p696_p5, %p939_p8 }
  0x4a   : > { %p705_p11 = por %p704_p10, %p703_p4 }
  0x4b   : > { %p699_p9 = pneg %p698_p7 }
  0x4d   : > { %p706_p12 = pnand %p705_p11, %p699_p9 }
  0x4f   : > { %709 = shalt.err (!%p706_p12)
}
  0x50   : > { %556 = dma.hbm_to_vmem [thread:$0]  (!%p923_p6), %s1187_s2, 16, %s929_s30, [#allocation6]  }
  0x51   : > { %s849_s10 = smov [#allocation10]   ;;  %s710_s14 = scalar_lea.hbm %s1189_s4, 128 }
  0x52   : > { %s212_s23 = sshll.u32 %s849_s10, 4  ;;  %p711_p13 = scmp.ne.s32.totalorder %s1189_s4, %s710_s14  ;;  %s213_s23 = int_to_ptr.vmem [resolvable:$true] %s212_s23 }
  0x53   : > { %p717_p5 = scmp.lt.u32.totalorder %s710_s14, %s1189_s4 }
  0x54   : > { %p713_p0 = pnand %p711_p13, %p939_p8 }
  0x56   : > { %p714_p2 = pneg %p713_p0 }
  0x58   : > { %p719_p7 = pnand %p717_p5, %p714_p2 }
  0x5a   : > { %722 = shalt.err (!%p719_p7)
}
  0x5b   : > { %s723_s30 = scalar_lea.vmem %s213_s23, 128  ;;  %p731_p11 = scmp.lt.s32.totalorder %s213_s23, %s213_s23 }
  0x5c   : > { %p724_p9 = scmp.ne.s32.totalorder %s213_s23, %s723_s30  ;;  %p732_p12 = scmp.lt.s32.totalorder %s723_s30, %s723_s30 }
  0x5e   : > { %p726_p4 = pnand %p724_p9, %p939_p8  ;;  %p733_p1 = por %p732_p12, %p731_p11 }
  0x60   : > { %p727_p10 = pneg %p726_p4 }
  0x62   : > { %p734_p3 = pnand %p733_p1, %p727_p10 }
  0x64   : > { %737 = shalt.err (!%p734_p3)
}
  0x65   : > { %562 = dma.hbm_to_vmem [thread:$0]  (!%p923_p6), %s1189_s4, 128, %s213_s23, [#allocation9]  }
  0x66   : > { %s506_s11 = sadd.s32 4294967294, %s842_s21   ;;  %s1028_s28 = sadd.s32 1, %s842_s21  }
  0x67   : > { %s27_s6 = ssub.s32 %s842_s21, %s1028_s28  ;;  %s30_s27 = sadd.s32 1, %s838_s20 }
  0x68   : > { %p28_p1 = scmp.eq.s32.totalorder %s27_s6, 0  ;;  %p37_p3 = scmp.ne.s32.totalorder %s838_s20, %s834_s19 }
  0x69   : > { %p38_p8 = scmp.eq.s32.totalorder %s842_s21, 0  ;;  %p43_p13 = scmp.ne.s32.totalorder %s834_s19, %s830_s18 }
  0x6a   : > { %s1039_s7 = scalar_select %p28_p1, %s838_s20, %s30_s27  }
  0x6b   : > { %p1041_p0 = por %p38_p8, %p37_p3  ;;  %p1198_p2 = scmp.eq.s32.totalorder %s907_s24, 0 }
  0x6c   : > { %p151_p5 = scmp.eq.s32.totalorder %s907_s24, 1  ;;  %p157_p7 = scmp.eq.s32.totalorder %s506_s11, 1 }
  0x6d   : > { %p1047_p6 = por %p1198_p2, %p43_p13  ;;  %p575_p9 = scmp.lt.s32.totalorder %s842_s21, 2 }
  0x6e   : > { %s223_s10 = sand.u32 1, %s838_s20   ;;  %p1054_p4 = por %p151_p5, %p37_p3 }
  0x6f   : > { %p1058_p10 = por %p157_p7, %p43_p13  ;;  %s513_s13 = sshll.u32 %s223_s10, 3 }
  0x70   : > { %s1200_s23 = scalar_select %p1054_p4, 1, 0 }
  0x71   : > { %s1201_s12 = scalar_select %p1058_p10, 1, 0 }
  0x72   : > { %s514_s14 = sshll.u32 %s842_s21, 7  ;;  %s227_s22 = scalar_lea.vmem [#allocation2], %s513_s13 }
  0x73   : > { %s1066_s17 = scalar_lea.hbm %s1185_s0, %s514_s14  ;;  %s234_s30 = sshll.u32 %s227_s22, 4  ;;  %s1068_s30 = int_to_ptr.vmem [resolvable:$true] %s234_s30 }
  0x74   : > { %p1072_p11 = pnand %p575_p9, %p1041_p0  ;;  %s224_s29 = scalar_lea.sflag [#allocation3], %s223_s10 }
  0x75   : > { %s738_s11 = scalar_lea.hbm %s1066_s17, 128  ;;  %s743_s13 = scalar_lea.hbm %s1185_s0, 256 }
  0x76   : > { %p739_p12 = scmp.ne.s32.totalorder %s1066_s17, %s738_s11  ;;  %p740_p1 = pneg %p1072_p11 }
  0x77   : > { %p744_p13 = scmp.lt.u32.totalorder %s1066_s17, %s1185_s0  ;;  %p745_p0 = scmp.lt.u32.totalorder %s743_s13, %s738_s11 }
  0x78   : > { %p741_p3 = pnand %p740_p1, %p739_p12  ;;  %p747_p5 = scmp.lt.u32.totalorder %s738_s11, %s1066_s17 }
  0x79   : > { %p746_p2 = por %p745_p0, %p744_p13 }
  0x7a   : > { %p742_p8 = pneg %p741_p3 }
  0x7b   : > { %p748_p7 = por %p747_p5, %p746_p2 }
  0x7d   : > { %p749_p9 = pnand %p748_p7, %p742_p8 }
  0x7f   : > { %752 = shalt.err (!%p749_p9)
}
  0x80   : > { %s753_s10 = scalar_lea.vmem %s1068_s30, 128  ;;  %s850_s15 = smov [#allocation2]  }
  0x81   : > { %p754_p12 = scmp.ne.s32.totalorder %s1068_s30, %s753_s10  ;;  %s758_s16 = sshll.u32 %s850_s15, 4  ;;  %s759_s16 = int_to_ptr.vmem [resolvable:$false] %s758_s16 }
  0x82   : > { %s760_s22 = scalar_lea.vmem %s759_s16, 256  ;;  %p761_p4 = scmp.lt.s32.totalorder %s1068_s30, %s759_s16 }
  0x83   : > { %p756_p3 = pnand %p754_p12, %p740_p1  ;;  %p762_p13 = scmp.lt.s32.totalorder %s760_s22, %s753_s10 }
  0x85   : > { %p757_p10 = pneg %p756_p3  ;;  %p763_p0 = por %p762_p13, %p761_p4 }
  0x87   : > { %p764_p2 = pnand %p763_p0, %p757_p10 }
  0x89   : > { %767 = shalt.err (!%p764_p2)
}
  0x8a   : > { %566 = dma.hbm_to_vmem [thread:$0]  (!%p1072_p11), %s1066_s17, 128, %s1068_s30, %s224_s29  }
  0x8b   : > { %p1203_p8 = scmp.ne.s32.totalorder %s1194_s25, 0 }
  0x8c   : > { %s1104_s11 = sand.u32 (!%p1203_p8), 1, %s834_s19  }
  0x8d   : > { %243 = sbr.rel (%p1203_p8) target bundleno = 313 (0x139), region = 40  ;;  %s516_s6 = sshll.u32 (!%p1203_p8), %s1104_s11, 3 }
  0x8e   : > { %s246_s27 = scalar_lea.sflag (!%p1203_p8), [#allocation3], %s1104_s11  ;;  %s1108_s13 = scalar_lea.vmem (!%p1203_p8), [#allocation2], %s516_s6 }
  0x94   : > { %813 = dma.done.wait (%p1047_p6), %s246_s27, 128  }
  0x95   : > { %815 = vsyncadd (%p1047_p6), %s246_s27, 4294967168  ;;  %p1204_p4 = scmp.eq.s32.totalorder %s907_s24, 0 }
  0x97   : > { %817 = dma.done.wait (%p1204_p4), [#allocation6], 80   ;;  %p1205_p10 = pmov %p1204_p4 }
  0x98   : > { %p1206_p11 = pmov %p1204_p4 }
  0x99   : > { %819 = vsyncadd (%p1205_p10), [#allocation6], 4294967216 }
  0x9a   : > { %821 = dma.done.wait (%p1206_p11), [#allocation9], 144   ;;  %p1207_p1 = pmov %p1204_p4 }
  0x9b   : > { %v851_v0 = vmov 0   ;;  %s1122_s25 = scalar_lea.vmem [#allocation11], %s516_s6  ;;  %v345_v1 = vld [vmem:[#allocation10] sm:$0x3f]  ;;  %vm295_vm0 = vcmask 1041408   ;;  %v312_v14 = vlaneseq  ;;  %vm369_vm1 = vcmask 1043458  }
  0x9c   : > { %823 = vsyncadd (%p1207_p1), [#allocation9], 4294967152  ;;  %623 = vset.pattern.permute.xlu0 %v851_v0  ;;  %352 = vst [vmem:[%s1122_s25] sm:$0xf] %v851_v0  ;;  %v293_v2 = vld [vmem:[#allocation5] sm:$0x3]  ;;  %s529_s9 = sshll.u32 %s907_s24, 7 }
  0x9d   : > { %353 = vst [vmem:[%s1122_s25 + $0x4] sm:$0xf] %v851_v0  ;;  %348 = vperm.xlu0 %623, %v345_v1   ;;  %v294_v3 = vld [vmem:[#allocation5 + $0x2] sm:$0x3]  ;;  %v296_v4 = vsel %vm295_vm0, %v293_v2, 0.0  ;;  %v313_v16 = vshrl.u32 %v312_v14, 7  ;;  %s1137_s29 = scalar_lea.hbm %s1190_s5, %s529_s9 }
  0x9e   : > { %v297_v5 = vsel %vm295_vm0, %v294_v3, 0.0  ;;  %v852_v12 = vmov 1966171168   ;;  %v305_v22 = vld [vmem:[#allocation7] sm:$0x1]  ;;  %s395_s17 = sshll.u32 %s1122_s25, 4  ;;  %s1139_s17 = int_to_ptr.vmem [resolvable:$true] %s395_s17 }
  0x9f   : > { %v298_v6 = vadd.f32 %v297_v5, %v296_v4  ;;  %v310_v13 = vunpack.c.l.s4 %v852_v12  ;;  %v333_v24 = vsub.s32 0, %v313_v16  ;;  %v326_v26 = vld [vmem:[#allocation8] sm:$0x1]  ;;  %v329_v29 = vld [vmem:[%s1108_s13] sm:$0x3f]  ;;  %s382_s24 = scalar_lea.sflag [#allocation4], %s1104_s11 }
  0xa0   : > { %vm370_vm2 = vsmask.f32 7946  ;;  %vm376_vm3 = vsmask.f32 1280  ;;  %s768_s8 = scalar_lea.vmem %s1139_s17, 128  ;;  %p1208_p5 = scmp.ne.s32.totalorder %s1200_s23, 0 }
  0xa1   : > { %v299_v7 = vmul.f32 0.125, %v298_v6  ;;  %v311_v15 = vunpack.c.0.s8 %v310_v13  ;;  %vm371_vm4 = vmand %vm369_vm1, %vm370_vm2  ;;  %p769_p6 = scmp.ne.s32.totalorder %s1139_s17, %s768_s8  ;;  %s853_s14 = smov [#allocation11]  }
  0xa2   : > { %vm377_vm5 = vmand %vm295_vm0, %vm376_vm3  ;;  %s772_s10 = sshll.u32 %s853_s14, 4  ;;  %s773_s10 = int_to_ptr.vmem [resolvable:$false] %s772_s10 }
  0xa3   : > { %v300_v8 = vmul.f32 %v299_v7, %v299_v7  ;;  %v314_v17 = vsub.s32 %v311_v15, %v313_v16  ;;  %v372_v41 = vld [vmem:[%s1122_s25] sm:$0xc]  ;;  %p770_p7 = pnand %p769_p6, %p1208_p5  ;;  %s774_s15 = scalar_lea.vmem %s773_s10, 256 }
  0xa4   : > { %v378_v43 = vld [vmem:[%s1122_s25 + $0x4] sm:$0x3]  ;;  %p775_p12 = scmp.lt.s32.totalorder %s1139_s17, %s773_s10  ;;  %p776_p3 = scmp.lt.s32.totalorder %s774_s15, %s768_s8 }
  0xa5   : > { %v302_v9 = vrot.slane %v300_v8, 7  ;;  %p771_p9 = pneg %p770_p7 }
  0xa6   : > { %p777_p13 = por %p776_p3, %p775_p12 }
  0xa7   : > { %v304_v10 = vsub.f32 %v299_v7, %v302_v9 }
  0xa8   : > { %p778_p0 = pnand %p777_p13, %p771_p9 }
  0xa9   : > { %v306_v11 = vadd.f32 1e-05, %v304_v10 }
  0xab   : > { %624 = vrsqrt.f32 %v306_v11 }
  0xb5   : > { %v625_v18 = vpop.eup %624 }
  0xb6   : > { %v315_v19 = vrot.slane %v625_v18, %v314_v17 }
  0xb8   : > { %v316_v20 = vcombine.high %v315_v19, %v315_v19 }
  0xba   : > { %v323_v21 = vrot.slane %v316_v20, %v314_v17 }
  0xbc   : > { %v325_v23 = vmul.f32 %v323_v21, %v305_v22 }
  0xbe   : > { %v327_v25 = vmul.f32 %v325_v23, %v299_v7  ;;  %v334_v28 = vrot.slane %v325_v23, %v333_v24 }
  0xc0   : > { %v328_v27 = vsub.f32 %v326_v26, %v327_v25  ;;  %v336_v30 = vmul.f32 %v334_v28, %v329_v29 }
  0xc2   : > { %v341_v31 = vrot.slane %v328_v27, %v333_v24 }
  0xc4   : > { %v343_v32 = vadd.f32 %v341_v31, %v336_v30 }
  0xc6   : > { %v344_v33 = vmax.f32 %v343_v32, 0.0 }
 0x11c   : > { %v349_v34 = vpop.permute.xlu0 %348 }
 0x11d   : > { %v351_v35 = vmul.f32 %v349_v34, %v344_v33 }
 0x11f   : > { %v528_v36 = vpack.c.bf16 %v351_v35, %v351_v35 }
 0x121   : > { %v359_v37 = vshrl.u32 %v528_v36, 16  ;;  %v362_v38 = vshll.u32 %v528_v36, 16 }
 0x123   : > { %v361_v39 = vrot.slane %v359_v37, 5  ;;  %v364_v40 = vrot.slane %v362_v38, 6 }
 0x125   : > { %v365_v42 = vor.u32 %v364_v40, %v361_v39 }
 0x127   : > { %v366_v44 = vrot.slane %v365_v42, 4  ;;  %v373_v45 = vsel %vm371_vm4, %v365_v42, %v372_v41 }
 0x128   : > { %374 = vst [vmem:[%s1122_s25] sm:$0xc] %v373_v45 }
 0x129   : > { %v379_v46 = vsel %vm377_vm5, %v366_v44, %v378_v43 }
 0x12a   : > { %380 = vst [vmem:[%s1122_s25 + $0x4] sm:$0x3] %v379_v46 }
 0x12b   : > { %781 = shalt.err (!%p778_p0)
}
 0x12c   : > { %s782_s16 = scalar_lea.hbm %s1137_s29, 128  ;;  %s786_s27 = scalar_lea.hbm %s1190_s5, 256 }
 0x12d   : > { %p783_p2 = scmp.ne.s32.totalorder %s1137_s29, %s782_s16  ;;  %p787_p10 = scmp.lt.u32.totalorder %s1137_s29, %s1190_s5 }
 0x12e   : > { %p788_p11 = scmp.lt.u32.totalorder %s786_s27, %s782_s16  ;;  %p790_p6 = scmp.lt.u32.totalorder %s782_s16, %s1137_s29 }
 0x12f   : > { %p784_p8 = pnand %p783_p2, %p1208_p5 }
 0x130   : > { %p789_p1 = por %p788_p11, %p787_p10 }
 0x131   : > { %p785_p4 = pneg %p784_p8 }
 0x132   : > { %p791_p7 = por %p790_p6, %p789_p1 }
 0x134   : > { %p792_p9 = pnand %p791_p7, %p785_p4 }
 0x136   : > { %795 = shalt.err (!%p792_p9)
}
 0x137   : > { %s854_s9 = smov 64   ;;  %s855_s30 = smov 4  }
 0x138   : > { %548 = dma.vmem_to_hbm [thread:$0]  (%p1208_p5), %s1139_s17, 128, %s1137_s29, %s382_s24, %s854_s9, %s854_s9, %s855_s30  }
 0x139 PF: > { %s410_s26 = sand.u32 1, %s830_s18   ;;  %p1209_p12 = scmp.ne.s32.totalorder %s1201_s12, 0 }
 0x13a   : > { %p1210_p3 = scmp.ge.s32.totalorder %s842_s21, 2  ;;  %s411_s8 = scalar_lea.sflag [#allocation4], %s410_s26 }
 0x13c   : > { %p568_p13 = pnand %p1210_p3, %p1209_p12 }
 0x13e   : > { %825 = dma.done.wait (!%p568_p13), %s411_s8, 128  }
 0x13f   : > { %827 = vsyncadd (!%p568_p13), %s411_s8, 4294967168  ;;  %p20_p0 = scmp.ge.s32.totalorder %s1028_s28, 4   ;;  %s1211_s18 = smov %s834_s19 }
 0x140   : > { %s1212_s19 = smov %s838_s20  ;;  %s1213_s20 = smov %s1039_s7 }
 0x141   : > { %s1214_s21 = smov %s1028_s28  ;;  %22 = sbr.rel (!%p20_p0) target bundleno = 7 (0x7), region = 101 }
 0x148   :  { %416 = vsyncpa [#allocation3], 1 }
 0x149   :  { %418 = vsyncpa [#allocation3 + $0x1], 1 }
 0x14a   :  { %419 = vsyncpa [#allocation6], 1 }
 0x14b   :  { %420 = vsyncpa [#allocation9], 1 }
 0x14c   :  { %421 = vsyncpa [#allocation4], 1 }
 0x14d   :  { %423 = vsyncpa [#allocation4 + $0x1], 1 }

// kernel: downsample_forward.62
= control target key start
LH: loop header
LB: loop body
LE: loop exit
PB: predicated region body
PF: predicated region fallthrough
CT: control target
= control target key end

     0   :  { %s1395_s0 = inlined_call_operand.hbm [shape: f32[2,6,128], index: 0, kind: input, shape index: {}]   ;;  %s1396_s1 = inlined_call_operand.hbm [shape: f32[2,2,128], index: 1, kind: input, shape index: {}]   ;;  %s1397_s2 = inlined_call_operand.hbm [shape: f32[1,128], index: 2, kind: input, shape index: {}]   ;;  %s1398_s3 = inlined_call_operand.hbm [shape: f32[1,128], index: 3, kind: input, shape index: {}]   ;;  %s1399_s4 = inlined_call_operand.hbm [shape: f32[6,1], index: 4, kind: input, shape index: {}]   ;;  %s1400_s5 = inlined_call_operand.hbm [shape: bf16[2,16,128], index: 5, kind: input, shape index: {}]   ;;  %s1401_s6 = inlined_call_operand.hbm [shape: bf16[2,16,128], index: 6, kind: output, shape index: {}]  }
   0x1   :  { %1406 = sst [smem:[#allocation19_spill]] %s1395_s0 }
   0x2   :  { %1407 = sst [smem:[#allocation20_spill]] %s1396_s1 }
   0x3   :  { %1408 = sst [smem:[#allocation21_spill]] %s1397_s2 }
   0x4   :  { %11 = vsyncpa [#allocation3], 0 }
   0x5   :  { %13 = vsyncpa [#allocation3 + $0x1], 0 }
   0x6   :  { %14 = vsyncpa [#allocation6], 0 }
   0x7   :  { %15 = vsyncpa [#allocation9], 0 }
   0x8   :  { %16 = vsyncpa [#allocation12], 0 }
   0x9   :  { %18 = vsyncpa [#allocation12 + $0x1], 0 }
   0xa   :  { %19 = vsyncpa [#allocation4], 0 }
   0xb   :  { %21 = vsyncpa [#allocation4 + $0x1], 0  ;;  %s1042_s21 = smov 0   ;;  %s1044_s22 = smov 0  }
   0xc   :  { %s1046_s23 = smov 0   ;;  %s1048_s24 = smov 0  }
   0xd LB: > { %s992_s25 = smov [#allocation5]   ;;  %s1063_s27 = sadd.s32 4294967295, %s990_s24   ;;  %s990_s24 = sphi %s1048_s24, %s1433_s24   ;;  %s986_s23 = sphi %s1046_s23, %s1432_s23   ;;  %s982_s22 = sphi %s1044_s22, %s1431_s22   ;;  %s978_s21 = sphi %s1042_s21, %s1430_s21  }
   0xe   : > { %s206_s26 = sshll.u32 %s992_s25, 4  ;;  %p609_p0 = scmp.ge.s32.totalorder %s990_s24, 1  ;;  %s1068_s26 = int_to_ptr.vmem [resolvable:$true] %s206_s26 }
   0xf   : > { %p1402_p1 = scmp.eq.s32.totalorder %s1063_s27, 0  ;;  %p194_p2 = scmp.lt.s32.totalorder %s990_s24, 3 }
  0x10   : > { %s993_s29 = smov [#allocation8]   ;;  %s994_s8 = smov [#allocation7]  }
  0x11   : > { %p1070_p3 = pnand %p609_p0, %p194_p2  ;;  %s231_s30 = sshll.u32 %s993_s29, 4  ;;  %s1083_s30 = int_to_ptr.vmem [resolvable:$true] %s231_s30 }
  0x12   : > { %s220_s9 = sshll.u32 %s994_s8, 4  ;;  %s1411_s1 = sld [smem:[#allocation20_spill]]  ;;  %s1085_s9 = int_to_ptr.vmem [resolvable:$true] %s220_s9 }
  0x13   : > { %s1409_s28 = scalar_select %p1070_p3, 1, 0 }
  0x14   : > { %p659_p5 = pneg %p1070_p3 }
  0x16   : > { %p1079_p6 = pnand %p659_p5, %p1402_p1 }
  0x18   : > { %s740_s12 = scalar_lea.hbm %s1411_s1, 64  ;;  %p1095_p8 = pneg %p1079_p6 }
  0x19   : > { %p741_p7 = scmp.ne.s32.totalorder %s1411_s1, %s740_s12  ;;  %p747_p11 = scmp.lt.u32.totalorder %s740_s12, %s1411_s1 }
  0x1b   : > { %p743_p9 = pnand %p1095_p8, %p741_p7 }
  0x1d   : > { %p744_p10 = pneg %p743_p9 }
  0x1f   : > { %p749_p12 = pnand %p747_p11, %p744_p10 }
  0x21   : > { %752 = shalt.err (!%p749_p12)
}
  0x22   : > { %s753_s18 = scalar_lea.vmem %s1068_s26, 64  ;;  %p761_p5 = scmp.lt.s32.totalorder %s1068_s26, %s1068_s26 }
  0x23   : > { %p754_p13 = scmp.ne.s32.totalorder %s1068_s26, %s753_s18  ;;  %p762_p4 = scmp.lt.s32.totalorder %s753_s18, %s753_s18 }
  0x25   : > { %p756_p0 = pnand %p754_p13, %p1095_p8  ;;  %p763_p7 = por %p762_p4, %p761_p5 }
  0x27   : > { %p757_p2 = pneg %p756_p0 }
  0x29   : > { %p764_p9 = pnand %p763_p7, %p757_p2 }
  0x2b   : > { %767 = shalt.err (!%p764_p9)
}
  0x2c   : > { %s995_s19 = smov 32   ;;  %s996_s20 = smov 2  }
  0x2d   : > { %662 = dma.hbm_to_vmem [thread:$0]  (!%p1079_p6), %s1411_s1, 64, %s1068_s26, [#allocation6], %s995_s19, %s995_s19, %s996_s20  }
  0x2e   : > { %s768_s11 = scalar_lea.hbm %s1398_s3, 16 }
  0x2f   : > { %p769_p4 = scmp.ne.s32.totalorder %s1398_s3, %s768_s11  ;;  %p775_p12 = scmp.lt.u32.totalorder %s768_s11, %s1398_s3 }
  0x31   : > { %p771_p10 = pnand %p769_p4, %p1095_p8 }
  0x33   : > { %p772_p11 = pneg %p771_p10 }
  0x35   : > { %p777_p13 = pnand %p775_p12, %p772_p11 }
  0x37   : > { %780 = shalt.err (!%p777_p13)
}
  0x38   : > { %s781_s26 = scalar_lea.vmem %s1083_s30, 16  ;;  %s788_s17 = scalar_lea.vmem %s1083_s30, 32 }
  0x39   : > { %p782_p0 = scmp.ne.s32.totalorder %s1083_s30, %s781_s26  ;;  %p789_p7 = scmp.lt.s32.totalorder %s1083_s30, %s1083_s30 }
  0x3a   : > { %p790_p9 = scmp.lt.s32.totalorder %s788_s17, %s781_s26 }
  0x3b   : > { %p784_p2 = pnand %p782_p0, %p1095_p8 }
  0x3c   : > { %p791_p4 = por %p790_p9, %p789_p7 }
  0x3d   : > { %p785_p5 = pneg %p784_p2 }
  0x3f   : > { %p792_p10 = pnand %p791_p4, %p785_p5 }
  0x41   : > { %795 = shalt.err (!%p792_p10)
}
  0x42   : > { %668 = dma.hbm_to_vmem [thread:$0]  (!%p1079_p6), %s1398_s3, 16, %s1083_s30, [#allocation9]  }
  0x43   : > { %s1413_s2 = sld [smem:[#allocation21_spill]] }
  0x49   : > { %s796_s29 = scalar_lea.hbm %s1413_s2, 16 }
  0x4a   : > { %p797_p11 = scmp.ne.s32.totalorder %s1413_s2, %s796_s29  ;;  %p803_p0 = scmp.lt.u32.totalorder %s796_s29, %s1413_s2 }
  0x4c   : > { %p799_p12 = pnand %p797_p11, %p1095_p8 }
  0x4e   : > { %p800_p13 = pneg %p799_p12 }
  0x50   : > { %p805_p2 = pnand %p803_p0, %p800_p13 }
  0x52   : > { %808 = shalt.err (!%p805_p2)
}
  0x53   : > { %s809_s30 = scalar_lea.vmem %s1085_s9, 16  ;;  %s816_s13 = scalar_lea.vmem %s1085_s9, 32 }
  0x54   : > { %p810_p5 = scmp.ne.s32.totalorder %s1085_s9, %s809_s30  ;;  %p817_p4 = scmp.lt.s32.totalorder %s1085_s9, %s1085_s9 }
  0x55   : > { %p818_p10 = scmp.lt.s32.totalorder %s816_s13, %s809_s30 }
  0x56   : > { %p812_p7 = pnand %p810_p5, %p1095_p8 }
  0x57   : > { %p819_p11 = por %p818_p10, %p817_p4 }
  0x58   : > { %p813_p9 = pneg %p812_p7 }
  0x5a   : > { %p820_p12 = pnand %p819_p11, %p813_p9 }
  0x5c   : > { %823 = shalt.err (!%p820_p12)
}
  0x5d   : > { %665 = dma.hbm_to_vmem [thread:$0]  (!%p1079_p6), %s1413_s2, 16, %s1085_s9, [#allocation6]  }
  0x5e   : > { %s997_s26 = smov [#allocation10]   ;;  %s824_s20 = scalar_lea.hbm %s1399_s4, 128 }
  0x5f   : > { %s242_s17 = sshll.u32 %s997_s26, 4  ;;  %p825_p13 = scmp.ne.s32.totalorder %s1399_s4, %s824_s20  ;;  %s243_s17 = int_to_ptr.vmem [resolvable:$true] %s242_s17 }
  0x60   : > { %p831_p5 = scmp.lt.u32.totalorder %s824_s20, %s1399_s4 }
  0x61   : > { %p827_p0 = pnand %p825_p13, %p1095_p8 }
  0x63   : > { %p828_p2 = pneg %p827_p0 }
  0x65   : > { %p833_p7 = pnand %p831_p5, %p828_p2 }
  0x67   : > { %836 = shalt.err (!%p833_p7)
}
  0x68   : > { %s837_s9 = scalar_lea.vmem %s243_s17, 128  ;;  %p845_p11 = scmp.lt.s32.totalorder %s243_s17, %s243_s17 }
  0x69   : > { %p838_p9 = scmp.ne.s32.totalorder %s243_s17, %s837_s9  ;;  %p846_p12 = scmp.lt.s32.totalorder %s837_s9, %s837_s9 }
  0x6b   : > { %p840_p4 = pnand %p838_p9, %p1095_p8  ;;  %p847_p1 = por %p846_p12, %p845_p11 }
  0x6d   : > { %p841_p10 = pneg %p840_p4 }
  0x6f   : > { %p848_p3 = pnand %p847_p1, %p841_p10 }
  0x71   : > { %851 = shalt.err (!%p848_p3)
}
  0x72   : > { %671 = dma.hbm_to_vmem [thread:$0]  (!%p1079_p6), %s1399_s4, 128, %s243_s17, [#allocation9]  }
  0x73   : > { %s608_s15 = sadd.s32 4294967294, %s990_s24   ;;  %s1184_s7 = sadd.s32 1, %s990_s24  }
  0x74   : > { %s31_s30 = ssub.s32 %s990_s24, %s1184_s7  ;;  %s34_s13 = sadd.s32 1, %s986_s23 }
  0x75   : > { %p32_p1 = scmp.eq.s32.totalorder %s31_s30, 0  ;;  %p41_p3 = scmp.ne.s32.totalorder %s986_s23, %s982_s22 }
  0x76   : > { %p42_p8 = scmp.eq.s32.totalorder %s990_s24, 0  ;;  %p47_p13 = scmp.ne.s32.totalorder %s982_s22, %s978_s21 }
  0x77   : > { %s1195_s14 = scalar_select %p32_p1, %s986_s23, %s34_s13  }
  0x78   : > { %p1197_p0 = por %p42_p8, %p41_p3  ;;  %p1415_p2 = scmp.eq.s32.totalorder %s1063_s27, 0 }
  0x79   : > { %p181_p5 = scmp.eq.s32.totalorder %s1063_s27, 1  ;;  %p187_p7 = scmp.eq.s32.totalorder %s608_s15, 1 }
  0x7a   : > { %p1203_p6 = por %p1415_p2, %p47_p13  ;;  %p687_p9 = scmp.lt.s32.totalorder %s990_s24, 2 }
  0x7b   : > { %s1210_s17 = sand.u32 1, %s986_s23   ;;  %p1212_p4 = por %p181_p5, %p41_p3 }
  0x7c   : > { %p1216_p10 = por %p187_p7, %p47_p13  ;;  %s1404_s20 = sshll.u32 %s1210_s17, 3 }
  0x7d   : > { %s1417_s18 = scalar_select %p1212_p4, 1, 0 }
  0x7e   : > { %s1418_s19 = scalar_select %p1216_p10, 1, 0 }
  0x7f   : > { %s616_s25 = sshll.u32 %s990_s24, 7  ;;  %s1419_s0 = sld [smem:[#allocation19_spill]] }
  0x80   : > { %s257_s9 = scalar_lea.vmem [#allocation2], %s1404_s20  ;;  %p1233_p11 = pnand %p687_p9, %p1197_p0 }
  0x81   : > { %s264_s11 = sshll.u32 %s257_s9, 4  ;;  %s1240_s13 = scalar_lea.hbm %s1400_s5, %s616_s25  ;;  %s1229_s11 = int_to_ptr.vmem [resolvable:$true] %s264_s11 }
  0x82   : > { %s254_s29 = scalar_lea.sflag [#allocation3], %s1210_s17  ;;  %p854_p1 = pneg %p1233_p11 }
  0x85   : > { %s1225_s10 = scalar_lea.hbm %s1419_s0, %s616_s25  ;;  %s857_s20 = scalar_lea.hbm %s1419_s0, 256 }
  0x86   : > { %s852_s8 = scalar_lea.hbm %s1225_s10, 128  ;;  %p858_p13 = scmp.lt.u32.totalorder %s1225_s10, %s1419_s0 }
  0x87   : > { %p853_p12 = scmp.ne.s32.totalorder %s1225_s10, %s852_s8  ;;  %p859_p0 = scmp.lt.u32.totalorder %s857_s20, %s852_s8 }
  0x88   : > { %p861_p5 = scmp.lt.u32.totalorder %s852_s8, %s1225_s10 }
  0x89   : > { %p855_p3 = pnand %p854_p1, %p853_p12  ;;  %p860_p2 = por %p859_p0, %p858_p13 }
  0x8b   : > { %p856_p8 = pneg %p855_p3  ;;  %p862_p7 = por %p861_p5, %p860_p2 }
  0x8d   : > { %p863_p9 = pnand %p862_p7, %p856_p8 }
  0x8f   : > { %866 = shalt.err (!%p863_p9)
}
  0x90   : > { %s867_s25 = scalar_lea.vmem %s1229_s11, 128  ;;  %s998_s15 = smov [#allocation2]  }
  0x91   : > { %p868_p12 = scmp.ne.s32.totalorder %s1229_s11, %s867_s25  ;;  %s872_s30 = sshll.u32 %s998_s15, 4  ;;  %s873_s30 = int_to_ptr.vmem [resolvable:$false] %s872_s30 }
  0x92   : > { %s874_s1 = scalar_lea.vmem %s873_s30, 256  ;;  %p875_p4 = scmp.lt.s32.totalorder %s1229_s11, %s873_s30 }
  0x93   : > { %p870_p3 = pnand %p868_p12, %p854_p1  ;;  %p876_p13 = scmp.lt.s32.totalorder %s874_s1, %s867_s25 }
  0x95   : > { %p871_p10 = pneg %p870_p3  ;;  %p877_p0 = por %p876_p13, %p875_p4 }
  0x97   : > { %p878_p2 = pnand %p877_p0, %p871_p10 }
  0x99   : > { %881 = shalt.err (!%p878_p2)
}
  0x9a   : > { %675 = dma.hbm_to_vmem [thread:$0]  (!%p1233_p11), %s1225_s10, 128, %s1229_s11, %s254_s29  }
  0x9b   : > { %s1421_s2 = sshll.u32 %s1210_s17, 3  ;;  %s272_s16 = scalar_lea.sflag [#allocation12], %s1210_s17 }
  0x9c   : > { %s275_s20 = scalar_lea.vmem [#allocation11], %s1421_s2  ;;  %s882_s9 = scalar_lea.hbm %s1240_s13, 128 }
  0x9d   : > { %s282_s8 = sshll.u32 %s275_s20, 4  ;;  %p883_p4 = scmp.ne.s32.totalorder %s1240_s13, %s882_s9  ;;  %s1270_s8 = int_to_ptr.vmem [resolvable:$true] %s282_s8 }
  0x9e   : > { %s887_s30 = scalar_lea.hbm %s1400_s5, 256  ;;  %p888_p5 = scmp.lt.u32.totalorder %s1240_s13, %s1400_s5 }
  0x9f   : > { %p885_p10 = pnand %p883_p4, %p854_p1  ;;  %p889_p7 = scmp.lt.u32.totalorder %s887_s30, %s882_s9 }
  0xa0   : > { %p891_p12 = scmp.lt.u32.totalorder %s882_s9, %s1240_s13 }
  0xa1   : > { %p886_p8 = pneg %p885_p10  ;;  %p890_p9 = por %p889_p7, %p888_p5 }
  0xa3   : > { %p892_p3 = por %p891_p12, %p890_p9 }
  0xa5   : > { %p893_p13 = pnand %p892_p3, %p886_p8 }
  0xa7   : > { %896 = shalt.err (!%p893_p13)
}
  0xa8   : > { %s897_s10 = scalar_lea.vmem %s1270_s8, 128  ;;  %s999_s11 = smov [#allocation11]  }
  0xa9   : > { %p898_p0 = scmp.ne.s32.totalorder %s1270_s8, %s897_s10  ;;  %s902_s29 = sshll.u32 %s999_s11, 4  ;;  %s903_s29 = int_to_ptr.vmem [resolvable:$false] %s902_s29 }
  0xaa   : > { %s904_s0 = scalar_lea.vmem %s903_s29, 256  ;;  %p905_p10 = scmp.lt.s32.totalorder %s1270_s8, %s903_s29 }
  0xab   : > { %p900_p2 = pnand %p898_p0, %p854_p1  ;;  %p906_p5 = scmp.lt.s32.totalorder %s904_s0, %s897_s10 }
  0xad   : > { %p901_p4 = pneg %p900_p2  ;;  %p907_p7 = por %p906_p5, %p905_p10 }
  0xaf   : > { %p908_p9 = pnand %p907_p7, %p901_p4 }
  0xb1   : > { %911 = shalt.err (!%p908_p9)
}
  0xb2   : > { %s1000_s2 = smov 64   ;;  %s1001_s20 = smov 4  }
  0xb3   : > { %678 = dma.hbm_to_vmem [thread:$0]  (!%p1233_p11), %s1240_s13, 128, %s1270_s8, %s272_s16, %s1000_s2, %s1000_s2, %s1001_s20  }
  0xb4   : > { %p1422_p1 = scmp.ne.s32.totalorder %s1409_s28, 0 }
  0xb5   : > { %s1301_s9 = sand.u32 (!%p1422_p1), 1, %s982_s22  }
  0xb6   : > { %294 = sbr.rel (%p1422_p1) target bundleno = 357 (0x165), region = 44  ;;  %s1304_s25 = sshll.u32 (!%p1422_p1), %s1301_s9, 3 }
  0xb7   : > { %s297_s15 = scalar_lea.sflag (!%p1422_p1), [#allocation3], %s1301_s9  ;;  %s300_s30 = scalar_lea.vmem (!%p1422_p1), [#allocation2], %s1304_s25 }
  0xbd   : > { %957 = dma.done.wait (%p1203_p6), %s297_s15, 128  }
  0xbe   : > { %959 = vsyncadd (%p1203_p6), %s297_s15, 4294967168  ;;  %p1423_p11 = scmp.eq.s32.totalorder %s1063_s27, 0 }
  0xc0   : > { %961 = dma.done.wait (%p1423_p11), [#allocation6], 80   ;;  %p1424_p8 = pmov %p1423_p11 }
  0xc2   : > { %963 = vsyncadd (%p1424_p8), [#allocation6], 4294967216  ;;  %p1425_p12 = pmov %p1424_p8 }
  0xc3   : > { %p1426_p3 = pmov %p1424_p8 }
  0xc4   : > { %965 = dma.done.wait (%p1425_p12), [#allocation9], 144  }
  0xc5   : > { %967 = vsyncadd (%p1426_p3), [#allocation9], 4294967152  ;;  %s322_s28 = scalar_lea.sflag [#allocation12], %s1301_s9  ;;  %s325_s17 = scalar_lea.vmem [#allocation11], %s1304_s25 }
  0xc6   : > { %969 = dma.done.wait (%p1203_p6), %s322_s28, 128  }
  0xc7   : > { %971 = vsyncadd (%p1203_p6), %s322_s28, 4294967168  ;;  %v1002_v0 = vmov 0   ;;  %s1327_s12 = scalar_lea.vmem [#allocation13], %s1304_s25  ;;  %v424_v1 = vld [vmem:[#allocation10] sm:$0x3f]  ;;  %vm362_vm0 = vcmask 1041408   ;;  %v379_v14 = vlaneseq }
  0xc8   : > { %737 = vset.pattern.permute.xlu0 %v1002_v0  ;;  %431 = vst [vmem:[%s1327_s12] sm:$0xf] %v1002_v0  ;;  %432 = vst [vmem:[%s1327_s12 + $0x4] sm:$0xf] %v1002_v0  ;;  %v360_v2 = vld [vmem:[#allocation5] sm:$0x3]  ;;  %vm417_vm1 = vcmask 1042432  }
  0xc9   : > { %427 = vperm.xlu0 %737, %v424_v1   ;;  %v361_v3 = vld [vmem:[#allocation5 + $0x2] sm:$0x3]  ;;  %v363_v4 = vsel %vm362_vm0, %v360_v2, 0.0  ;;  %v1003_v12 = vmov 1966171168   ;;  %v380_v16 = vshrl.u32 %v379_v14, 7 }
  0xca   : > { %v364_v5 = vsel %vm362_vm0, %v361_v3, 0.0  ;;  %v377_v13 = vunpack.c.l.s4 %v1003_v12  ;;  %v372_v22 = vld [vmem:[#allocation7] sm:$0x1]  ;;  %v393_v26 = vld [vmem:[#allocation8] sm:$0x1]  ;;  %vm448_vm2 = vcmask 1043458  }
  0xcb   : > { %v365_v6 = vadd.f32 %v364_v5, %v363_v4  ;;  %v400_v24 = vsub.s32 0, %v380_v16  ;;  %v411_v27 = vld [vmem:[%s325_s17] sm:$0xc]  ;;  %v412_v28 = vld [vmem:[%s325_s17 + $0x4] sm:$0x3]  ;;  %s636_s26 = sshll.u32 %s1063_s27, 7 }
  0xcc   : > { %v378_v15 = vunpack.c.0.s8 %v377_v13  ;;  %v396_v31 = vld [vmem:[%s300_s30] sm:$0x3f]  ;;  %v413_v32 = vunpack.c.l.bf16 %v411_v27  ;;  %v414_v33 = vunpack.c.l.bf16 %v412_v28  ;;  %vm449_vm3 = vsmask.f32 7946  ;;  %s474_s13 = sshll.u32 %s1327_s12, 4  ;;  %s1347_s1 = scalar_lea.hbm %s1401_s6, %s636_s26  ;;  %s1349_s13 = int_to_ptr.vmem [resolvable:$true] %s474_s13 }
  0xcd   : > { %v366_v7 = vmul.f32 0.125, %v365_v6  ;;  %vm455_vm4 = vsmask.f32 1280  ;;  %vm450_vm5 = vmand %vm448_vm2, %vm449_vm3  ;;  %s461_s27 = scalar_lea.sflag [#allocation4], %s1301_s9  ;;  %s912_s10 = scalar_lea.vmem %s1349_s13, 128 }
  0xce   : > { %v381_v17 = vsub.s32 %v378_v15, %v380_v16  ;;  %v418_v36 = vrot.slane %v413_v32, 5  ;;  %v419_v37 = vrot.slane %v414_v33, 5  ;;  %vm456_vm6 = vmand %vm362_vm0, %vm455_vm4  ;;  %p913_p6 = scmp.ne.s32.totalorder %s1349_s13, %s912_s10  ;;  %p1427_p13 = scmp.ne.s32.totalorder %s1417_s18, 0 }
  0xcf   : > { %v367_v8 = vmul.f32 %v366_v7, %v366_v7  ;;  %v451_v49 = vld [vmem:[%s1327_s12] sm:$0xc]  ;;  %v457_v51 = vld [vmem:[%s1327_s12 + $0x4] sm:$0x3]  ;;  %s1004_s11 = smov [#allocation13]  }
  0xd0   : > { %v420_v39 = vsel %vm417_vm1, %v418_v36, %v419_v37  ;;  %p914_p0 = pnand %p913_p6, %p1427_p13  ;;  %s916_s29 = sshll.u32 %s1004_s11, 4  ;;  %s917_s29 = int_to_ptr.vmem [resolvable:$false] %s916_s29 }
  0xd1   : > { %v369_v9 = vrot.slane %v367_v8, 7  ;;  %s918_s0 = scalar_lea.vmem %s917_s29, 256  ;;  %p919_p4 = scmp.lt.s32.totalorder %s1349_s13, %s917_s29 }
  0xd2   : > { %p915_p2 = pneg %p914_p0  ;;  %p920_p10 = scmp.lt.s32.totalorder %s918_s0, %s912_s10 }
  0xd3   : > { %v371_v10 = vsub.f32 %v366_v7, %v369_v9 }
  0xd4   : > { %p921_p5 = por %p920_p10, %p919_p4 }
  0xd5   : > { %v373_v11 = vadd.f32 1e-05, %v371_v10 }
  0xd6   : > { %p922_p7 = pnand %p921_p5, %p915_p2 }
  0xd7   : > { %738 = vrsqrt.f32 %v373_v11 }
  0xe1   : > { %v739_v18 = vpop.eup %738 }
  0xe2   : > { %v382_v19 = vrot.slane %v739_v18, %v381_v17 }
  0xe4   : > { %v383_v20 = vcombine.high %v382_v19, %v382_v19 }
  0xe6   : > { %v390_v21 = vrot.slane %v383_v20, %v381_v17 }
  0xe8   : > { %v392_v23 = vmul.f32 %v390_v21, %v372_v22 }
  0xea   : > { %v394_v25 = vmul.f32 %v392_v23, %v366_v7  ;;  %v401_v30 = vrot.slane %v392_v23, %v400_v24 }
  0xec   : > { %v395_v29 = vsub.f32 %v393_v26, %v394_v25  ;;  %v403_v34 = vmul.f32 %v401_v30, %v396_v31 }
  0xee   : > { %v408_v35 = vrot.slane %v395_v29, %v400_v24 }
  0xf0   : > { %v410_v38 = vadd.f32 %v408_v35, %v403_v34 }
  0xf2   : > { %v422_v40 = vadd.f32 %v420_v39, %v410_v38 }
  0xf4   : > { %v423_v41 = vmax.f32 %v422_v40, 0.0 }
 0x148   : > { %v428_v42 = vpop.permute.xlu0 %427 }
 0x149   : > { %v430_v43 = vmul.f32 %v428_v42, %v423_v41 }
 0x14b   : > { %v635_v44 = vpack.c.bf16 %v430_v43, %v430_v43 }
 0x14d   : > { %v438_v45 = vshrl.u32 %v635_v44, 16  ;;  %v441_v46 = vshll.u32 %v635_v44, 16 }
 0x14f   : > { %v440_v47 = vrot.slane %v438_v45, 5  ;;  %v443_v48 = vrot.slane %v441_v46, 6 }
 0x151   : > { %v444_v50 = vor.u32 %v443_v48, %v440_v47 }
 0x153   : > { %v445_v52 = vrot.slane %v444_v50, 4  ;;  %v452_v53 = vsel %vm450_vm5, %v444_v50, %v451_v49 }
 0x154   : > { %453 = vst [vmem:[%s1327_s12] sm:$0xc] %v452_v53 }
 0x155   : > { %v458_v54 = vsel %vm456_vm6, %v445_v52, %v457_v51 }
 0x156   : > { %459 = vst [vmem:[%s1327_s12 + $0x4] sm:$0x3] %v458_v54 }
 0x157   : > { %925 = shalt.err (!%p922_p7)
}
 0x158   : > { %s926_s2 = scalar_lea.hbm %s1347_s1, 128  ;;  %s930_s15 = scalar_lea.hbm %s1401_s6, 256 }
 0x159   : > { %p927_p9 = scmp.ne.s32.totalorder %s1347_s1, %s926_s2  ;;  %p931_p8 = scmp.lt.u32.totalorder %s1347_s1, %s1401_s6 }
 0x15a   : > { %p932_p12 = scmp.lt.u32.totalorder %s930_s15, %s926_s2  ;;  %p934_p6 = scmp.lt.u32.totalorder %s926_s2, %s1347_s1 }
 0x15b   : > { %p928_p1 = pnand %p927_p9, %p1427_p13 }
 0x15c   : > { %p933_p3 = por %p932_p12, %p931_p8 }
 0x15d   : > { %p929_p11 = pneg %p928_p1 }
 0x15e   : > { %p935_p0 = por %p934_p6, %p933_p3 }
 0x160   : > { %p936_p2 = pnand %p935_p0, %p929_p11 }
 0x162   : > { %939 = shalt.err (!%p936_p2)
}
 0x163   : > { %s1005_s17 = smov 64   ;;  %s1006_s12 = smov 4  }
 0x164   : > { %657 = dma.vmem_to_hbm [thread:$0]  (%p1427_p13), %s1349_s13, 128, %s1347_s1, %s461_s27, %s1005_s17, %s1005_s17, %s1006_s12  }
 0x165 PF: > { %s489_s26 = sand.u32 1, %s978_s21   ;;  %p1428_p4 = scmp.ne.s32.totalorder %s1418_s19, 0 }
 0x166   : > { %p1429_p10 = scmp.ge.s32.totalorder %s990_s24, 2  ;;  %s490_s8 = scalar_lea.sflag [#allocation4], %s489_s26 }
 0x168   : > { %p680_p5 = pnand %p1429_p10, %p1428_p4 }
 0x16a   : > { %973 = dma.done.wait (!%p680_p5), %s490_s8, 128  }
 0x16b   : > { %975 = vsyncadd (!%p680_p5), %s490_s8, 4294967168  ;;  %p24_p7 = scmp.ge.s32.totalorder %s1184_s7, 4   ;;  %s1430_s21 = smov %s982_s22 }
 0x16c   : > { %s1431_s22 = smov %s986_s23  ;;  %s1432_s23 = smov %s1195_s14 }
 0x16d   : > { %s1433_s24 = smov %s1184_s7  ;;  %26 = sbr.rel (!%p24_p7) target bundleno = 13 (0xd), region = 118 }
 0x174   :  { %495 = vsyncpa [#allocation3], 1 }
 0x175   :  { %497 = vsyncpa [#allocation3 + $0x1], 1 }
 0x176   :  { %498 = vsyncpa [#allocation6], 1 }
 0x177   :  { %499 = vsyncpa [#allocation9], 1 }
 0x178   :  { %500 = vsyncpa [#allocation12], 1 }
 0x179   :  { %502 = vsyncpa [#allocation12 + $0x1], 1 }
 0x17a   :  { %503 = vsyncpa [#allocation4], 1 }
 0x17b   :  { %505 = vsyncpa [#allocation4 + $0x1], 1 }

// kernel: downsample_forward.59
= control target key start
LH: loop header
LB: loop body
LE: loop exit
PB: predicated region body
PF: predicated region fallthrough
CT: control target
= control target key end

     0   :  { %10 = vsyncpa [#allocation3], 0  ;;  %s2608_s0 = inlined_call_operand.hbm [shape: bf16[2,16,128], index: 0, kind: input, shape index: {}]   ;;  %s2609_s1 = inlined_call_operand.hbm [shape: bf16[9,128,128], index: 1, kind: input, shape index: {}]   ;;  %s2610_s2 = inlined_call_operand.hbm [shape: f32[6,1], index: 2, kind: input, shape index: {}]   ;;  %s2611_s3 = inlined_call_operand.hbm [shape: f32[2,6,128], index: 3, kind: output, shape index: {0}]   ;;  %s2612_s4 = inlined_call_operand.hbm [shape: f32[2,2,128], index: 4, kind: output, shape index: {1}]  }
   0x1   :  { %12 = vsyncpa [#allocation3 + $0x1], 0 }
   0x2   :  { %13 = vsyncpa [#allocation6], 0 }
   0x3   :  { %14 = vsyncpa [#allocation4], 0 }
   0x4   :  { %16 = vsyncpa [#allocation4 + $0x1], 0 }
   0x5   :  { %17 = vsyncpa [#allocation10], 0 }
   0x6   :  { %19 = vsyncpa [#allocation10 + $0x1], 0  ;;  %s2223_s15 = smov 0   ;;  %s2225_s16 = smov 0  }
   0x7   :  { %s2227_s17 = smov 0   ;;  %s2229_s18 = smov 0  }
   0x8 LB: > { %s2244_s19 = sadd.s32 4294967295, %s2186_s18   ;;  %s1451_s20 = sadd.s32 4294967294, %s2186_s18   ;;  %s2186_s18 = sphi %s2229_s18, %s2632_s18   ;;  %s2182_s17 = sphi %s2227_s17, %s2631_s17   ;;  %s2178_s16 = sphi %s2225_s16, %s2630_s16   ;;  %s2174_s15 = sphi %s2223_s15, %s2629_s15  }
   0x9   : > { %p45_p0 = scmp.ne.s32.totalorder %s2178_s16, %s2174_s15  ;;  %p2613_p1 = scmp.eq.s32.totalorder %s2244_s19, 0 }
   0xa   : > { %p117_p3 = scmp.eq.s32.totalorder %s1451_s20, 1  ;;  %p1452_p5 = scmp.ge.s32.totalorder %s2186_s18, 1 }
   0xb   : > { %p2253_p4 = por %p2613_p1, %p45_p0  ;;  %p150_p7 = scmp.lt.s32.totalorder %s2186_s18, 3 }
   0xc   : > { %p2258_p6 = por %p117_p3, %p45_p0  ;;  %s2188_s24 = smov [#allocation5]  }
   0xd   : > { %s2616_s21 = scalar_select %p2253_p4, 1, 0 }
   0xe   : > { %s2617_s22 = scalar_select %p2258_p6, 1, 0 }
   0xf   : > { %p2263_p8 = pnand %p1452_p5, %p150_p7  ;;  %s162_s25 = sshll.u32 %s2188_s24, 4  ;;  %s2267_s25 = int_to_ptr.vmem [resolvable:$true] %s162_s25 }
  0x10   : > { %s2189_s27 = smov [#allocation7]   ;;  %s1998_s5 = scalar_lea.hbm %s2609_s1, 9216 }
  0x11   : > { %p1855_p9 = pneg %p2263_p8  ;;  %s176_s28 = sshll.u32 %s2189_s27, 4  ;;  %s2278_s28 = int_to_ptr.vmem [resolvable:$true] %s176_s28 }
  0x12   : > { %p1999_p12 = scmp.ne.s32.totalorder %s2609_s1, %s1998_s5  ;;  %p2005_p5 = scmp.lt.u32.totalorder %s1998_s5, %s2609_s1 }
  0x13   : > { %p2274_p11 = pnand %p1855_p9, %p2613_p1 }
  0x15   : > { %p2000_p13 = pneg %p2274_p11 }
  0x17   : > { %p2001_p0 = pnand %p2000_p13, %p1999_p12 }
  0x19   : > { %p2002_p3 = pneg %p2001_p0 }
  0x1b   : > { %p2007_p7 = pnand %p2005_p5, %p2002_p3 }
  0x1d   : > { %2010 = shalt.err (!%p2007_p7)
}
  0x1e   : > { %s2011_s10 = scalar_lea.vmem %s2267_s25, 9216  ;;  %p2019_p2 = scmp.lt.s32.totalorder %s2267_s25, %s2267_s25 }
  0x1f   : > { %p2012_p9 = scmp.ne.s32.totalorder %s2267_s25, %s2011_s10  ;;  %p2020_p12 = scmp.lt.s32.totalorder %s2011_s10, %s2011_s10 }
  0x21   : > { %p2014_p10 = pnand %p2012_p9, %p2000_p13  ;;  %p2021_p0 = por %p2020_p12, %p2019_p2 }
  0x23   : > { %p2015_p1 = pneg %p2014_p10 }
  0x25   : > { %p2022_p6 = pnand %p2021_p0, %p2015_p1 }
  0x27   : > { %2025 = shalt.err (!%p2022_p6)
}
  0x28   : > { %s2190_s11 = smov 64   ;;  %s2191_s12 = smov 4  }
  0x29   : > { %1858 = dma.hbm_to_vmem [thread:$0]  (!%p2274_p11), %s2609_s1, 9216, %s2267_s25, [#allocation6], %s2190_s11, %s2190_s11, %s2191_s12  }
  0x2a   : > { %s2026_s27 = scalar_lea.hbm %s2610_s2, 128 }
  0x2b   : > { %p2027_p1 = scmp.ne.s32.totalorder %s2610_s2, %s2026_s27  ;;  %p2033_p10 = scmp.lt.u32.totalorder %s2026_s27, %s2610_s2 }
  0x2d   : > { %p2029_p2 = pnand %p2027_p1, %p2000_p13 }
  0x2f   : > { %p2030_p6 = pneg %p2029_p2 }
  0x31   : > { %p2035_p3 = pnand %p2033_p10, %p2030_p6 }
  0x33   : > { %2038 = shalt.err (!%p2035_p3)
}
  0x34   : > { %s2039_s25 = scalar_lea.vmem %s2278_s28, 128  ;;  %p2047_p12 = scmp.lt.s32.totalorder %s2278_s28, %s2278_s28 }
  0x35   : > { %p2040_p5 = scmp.ne.s32.totalorder %s2278_s28, %s2039_s25  ;;  %p2048_p0 = scmp.lt.s32.totalorder %s2039_s25, %s2039_s25 }
  0x37   : > { %p2042_p7 = pnand %p2040_p5, %p2000_p13  ;;  %p2049_p1 = por %p2048_p0, %p2047_p12 }
  0x39   : > { %p2043_p9 = pneg %p2042_p7 }
  0x3b   : > { %p2050_p2 = pnand %p2049_p1, %p2043_p9 }
  0x3d   : > { %2053 = shalt.err (!%p2050_p2)
}
  0x3e   : > { %1861 = dma.hbm_to_vmem [thread:$0]  (!%p2274_p11), %s2610_s2, 128, %s2278_s28, [#allocation6]  }
  0x3f   : > { %s2336_s9 = sadd.s32 1, %s2186_s18   ;;  %s32_s26 = sadd.s32 1, %s2182_s17 }
  0x40   : > { %s29_s10 = ssub.s32 %s2186_s18, %s2336_s9  ;;  %p39_p13 = scmp.ne.s32.totalorder %s2182_s17, %s2178_s16 }
  0x41   : > { %p30_p6 = scmp.eq.s32.totalorder %s29_s10, 0  ;;  %p40_p10 = scmp.eq.s32.totalorder %s2186_s18, 0 }
  0x42   : > { %p2620_p3 = scmp.eq.s32.totalorder %s2244_s19, 1  ;;  %p1875_p7 = scmp.lt.s32.totalorder %s2186_s18, 2 }
  0x43   : > { %s2352_s14 = scalar_select %p30_p6, %s2182_s17, %s32_s26  }
  0x44   : > { %p2346_p5 = por %p2620_p3, %p39_p13  ;;  %p41_p9 = por %p40_p10, %p39_p13 }
  0x45   : > { %s187_s20 = sand.u32 1, %s2182_s17   ;;  %s1550_s28 = sshll.u32 %s2186_s18, 7 }
  0x46   : > { %s2621_s13 = scalar_select %p2346_p5, 1, 0 }
  0x47   : > { %s1456_s24 = sshll.u32 %s187_s20, 3  ;;  %s2359_s30 = scalar_lea.hbm %s2608_s0, %s1550_s28 }
  0x48   : > { %s191_s5 = scalar_lea.vmem [#allocation2], %s1456_s24  ;;  %p2363_p11 = pnand %p1875_p7, %p41_p9 }
  0x49   : > { %s198_s6 = sshll.u32 %s191_s5, 4  ;;  %s2367_s7 = scalar_lea.sflag [#allocation3], %s187_s20  ;;  %s2361_s6 = int_to_ptr.vmem [resolvable:$true] %s198_s6 }
  0x4a   : > { %s2054_s8 = scalar_lea.hbm %s2359_s30, 128  ;;  %p2056_p0 = pneg %p2363_p11 }
  0x4b   : > { %p2055_p12 = scmp.ne.s32.totalorder %s2359_s30, %s2054_s8  ;;  %s2059_s24 = scalar_lea.hbm %s2608_s0, 256 }
  0x4c   : > { %p2060_p13 = scmp.lt.u32.totalorder %s2359_s30, %s2608_s0  ;;  %p2061_p6 = scmp.lt.u32.totalorder %s2059_s24, %s2054_s8 }
  0x4d   : > { %p2057_p1 = pnand %p2056_p0, %p2055_p12  ;;  %p2063_p3 = scmp.lt.u32.totalorder %s2054_s8, %s2359_s30 }
  0x4e   : > { %p2062_p10 = por %p2061_p6, %p2060_p13 }
  0x4f   : > { %p2058_p2 = pneg %p2057_p1 }
  0x50   : > { %p2064_p7 = por %p2063_p3, %p2062_p10 }
  0x52   : > { %p2065_p9 = pnand %p2064_p7, %p2058_p2 }
  0x54   : > { %2068 = shalt.err (!%p2065_p9)
}
  0x55   : > { %s2069_s20 = scalar_lea.vmem %s2361_s6, 128  ;;  %s2192_s29 = smov [#allocation2]  }
  0x56   : > { %p2070_p12 = scmp.ne.s32.totalorder %s2361_s6, %s2069_s20  ;;  %s2074_s5 = sshll.u32 %s2192_s29, 4  ;;  %s2075_s5 = int_to_ptr.vmem [resolvable:$false] %s2074_s5 }
  0x57   : > { %s2076_s26 = scalar_lea.vmem %s2075_s5, 256  ;;  %p2077_p4 = scmp.lt.s32.totalorder %s2361_s6, %s2075_s5 }
  0x58   : > { %p2072_p1 = pnand %p2070_p12, %p2056_p0  ;;  %p2078_p13 = scmp.lt.s32.totalorder %s2076_s26, %s2069_s20 }
  0x5a   : > { %p2073_p5 = pneg %p2072_p1  ;;  %p2079_p6 = por %p2078_p13, %p2077_p4 }
  0x5c   : > { %p2080_p10 = pnand %p2079_p6, %p2073_p5 }
  0x5e   : > { %2083 = shalt.err (!%p2080_p10)
}
  0x5f   : > { %1865 = dma.hbm_to_vmem [thread:$0]  (!%p2363_p11), %s2359_s30, 128, %s2361_s6, %s2367_s7, %s2190_s11, %s2190_s11, %s2191_s12  }
  0x60   : > { %210 = sbr.rel (%p2263_p8) target bundleno = 525 (0x20d), region = 32  ;;  %s2401_s8 = sand.u32 (!%p2263_p8), 1, %s2178_s16  }
  0x61   : > { %s1460_s10 = sshll.u32 (!%p2263_p8), %s2401_s8, 3  ;;  %s213_s24 = scalar_lea.sflag (!%p2263_p8), [#allocation3], %s2401_s8 }
  0x62   : > { %s2407_s25 = scalar_lea.vmem (!%p2263_p8), [#allocation2], %s1460_s10  ;;  %p2623_p4 = scmp.ne.s32.totalorder (!%p2263_p8), %s2616_s21, 0 }
  0x67   : > { %2157 = dma.done.wait (%p2623_p4), %s213_s24, 128  }
  0x68   : > { %2159 = vsyncadd (%p2623_p4), %s213_s24, 4294967168  ;;  %p2624_p5 = scmp.eq.s32.totalorder %s2244_s19, 0 }
  0x6a   : > { %2161 = dma.done.wait (%p2624_p5), [#allocation6], 9344   ;;  %p2625_p8 = pmov %p2624_p5 }
  0x6b   : > { %v2193_v0 = vmov 0.0   ;;  %vm2194_vm0 = vmmov 0   ;;  %v1919_v1 = vld [vmem:[#allocation5 + $0x40] sm:$0xff]   ;;  %v1921_v3 = vld [vmem:[#allocation5 + $0x48] sm:$0xff]   ;;  %v1923_v5 = vld [vmem:[#allocation5 + $0x50] sm:$0xff]   ;;  %v2195_v34 = vmov 0  }
  0x6c   : > { %2163 = vsyncadd (%p2625_p8), [#allocation6], 4294957952  ;;  %1632 = vmatprep.subr.bf16.mxu1 %v2193_v0  ;;  %1712 = vmatprep.subr.bf16.mxu0 %v2193_v0  ;;  %v1920_v2 = vld [vmem:[#allocation5 + $0x100] sm:$0xff]   ;;  %v1922_v4 = vld [vmem:[#allocation5 + $0x108] sm:$0xff]   ;;  %s1546_s21 = sshll.u32 %s2244_s19, 7  ;;  %s246_s23 = scalar_lea.vmem [#allocation8], %s1460_s10 }
  0x6d   : > { %1648 = vmatprep.mubr.msk.bf16.mxu1 %vm2194_vm0, %v2193_v0  ;;  %1728 = vmatprep.mubr.msk.bf16.mxu0 %vm2194_vm0, %v2193_v0  ;;  %v1924_v6 = vld [vmem:[#allocation5 + $0x110] sm:$0xff]   ;;  %v1925_v7 = vld [vmem:[#allocation5 + $0x58] sm:$0xff]   ;;  %v1927_v9 = vld [vmem:[#allocation5 + $0x60] sm:$0xff]   ;;  %s1317_s11 = sshll.u32 %s246_s23, 4  ;;  %s2531_s6 = scalar_lea.hbm %s2611_s3, %s1546_s21  ;;  %vm1280_vm1 = vcmask 1045504   ;;  %s2533_s11 = int_to_ptr.vmem [resolvable:$true] %s1317_s11 }
  0x6e   : > { %1633 = vmatpush3.bf16.msra.mxu1 %v1919_v1  ;;  %1713 = vmatpush3.bf16.msra.mxu0 %v1920_v2  ;;  %v1926_v8 = vld [vmem:[#allocation5 + $0x118] sm:$0xff]   ;;  %v1928_v10 = vld [vmem:[#allocation5 + $0x120] sm:$0xff]   ;;  %v1929_v13 = vld [vmem:[#allocation5 + $0x68] sm:$0xff]   ;;  %s1299_s7 = scalar_lea.sflag [#allocation4], %s2401_s8  ;;  %s2084_s28 = scalar_lea.vmem %s2533_s11, 128 }
  0x6f   : > { %1634 = vmatprep.subr.bf16.mxu1 %v2193_v0  ;;  %1714 = vmatprep.subr.bf16.mxu0 %v2193_v0  ;;  %v1935_v11 = vld [vmem:[%s2407_s25] ss:$0 sps:$4 sm:$0xff]   ;;  %v2433_v12 = vld [vmem:[%s2407_s25] sm:$0xc]  ;;  %v2436_v14 = vld [vmem:[%s2407_s25 + $0x4] sm:$0x3]  ;;  %p2085_p11 = scmp.ne.s32.totalorder %s2533_s11, %s2084_s28 }
  0x70   : > { %v1930_v15 = vld [vmem:[#allocation5 + $0x128] sm:$0xff]   ;;  %v1500_v16 = vcombine.low %v2433_v12, %v2436_v14  ;;  %v1931_v17 = vld [vmem:[#allocation5 + $0x70] sm:$0xff]   ;;  %v296_v18 = vshll.u32 %v1935_v11, 16  ;;  %v1933_v22 = vld [vmem:[#allocation5 + $0x78] sm:$0xff]   ;;  %v294_v23 = vshrl.u32 %v1935_v11, 16  ;;  %1918 = vset.pattern.permute.xlu0 %v2195_v34  ;;  %p2626_p0 = scmp.ne.s32.totalorder %s2621_s13, 0 }
  0x71   : > { %v1932_v21 = vld [vmem:[#allocation5 + $0x130] sm:$0xff]   ;;  %v1934_v27 = vld [vmem:[#allocation5 + $0x138] sm:$0xff]   ;;  %v1936_v29 = vld [vmem:[#allocation5] sm:$0xff]   ;;  %s2196_s27 = smov [#allocation8]  }
  0x72   : > { %1635 = vmatpush3.bf16.msra.mxu1 %v1921_v3  ;;  %1715 = vmatpush3.bf16.msra.mxu0 %v1922_v4  ;;  %v726_v19 = vshrl.u32 %v1500_v16, 16  ;;  %v729_v20 = vshll.u32 %v1500_v16, 16  ;;  %v298_v24 = vrot.slane %v296_v18, 1  ;;  %v1938_v31 = vld [vmem:[#allocation5 + $0x140] sm:$0xff]   ;;  %v1939_v32 = vld [vmem:[#allocation5 + $0x8] sm:$0xff]   ;;  %v1941_v35 = vld [vmem:[#allocation5 + $0x10] sm:$0xff]   ;;  %p2086_p2 = pnand %p2085_p11, %p2626_p0 }
  0x73   : > { %1636 = vmatprep.subr.bf16.mxu1 %v2193_v0  ;;  %1716 = vmatprep.subr.bf16.mxu0 %v2193_v0  ;;  %v1940_v33 = vld [vmem:[#allocation5 + $0x148] sm:$0xff]   ;;  %v1942_v36 = vld [vmem:[#allocation5 + $0x150] sm:$0xff]   ;;  %v1943_v37 = vld [vmem:[#allocation5 + $0x18] sm:$0xff]   ;;  %s2088_s20 = sshll.u32 %s2196_s27, 4  ;;  %s2089_s20 = int_to_ptr.vmem [resolvable:$false] %s2088_s20 }
  0x74   : > { %v728_v25 = vrot.slane %v726_v19, 2  ;;  %v731_v26 = vrot.slane %v729_v20, 3  ;;  %v299_v28 = vor.u32 %v298_v24, %v294_v23  ;;  %v1944_v38 = vld [vmem:[#allocation5 + $0x158] sm:$0xff]   ;;  %v1945_v39 = vld [vmem:[#allocation5 + $0x20] sm:$0xff]   ;;  %v1947_v41 = vld [vmem:[#allocation5 + $0x28] sm:$0xff]   ;;  %p2087_p3 = pneg %p2086_p2  ;;  %s2090_s29 = scalar_lea.vmem %s2089_s20, 256 }
  0x75   : > { %v1946_v40 = vld [vmem:[#allocation5 + $0x160] sm:$0xff]   ;;  %v1948_v42 = vld [vmem:[#allocation5 + $0x168] sm:$0xff]   ;;  %v1949_v43 = vld [vmem:[#allocation5 + $0x30] sm:$0xff]   ;;  %p2091_p7 = scmp.lt.s32.totalorder %s2533_s11, %s2089_s20  ;;  %p2092_p9 = scmp.lt.s32.totalorder %s2090_s29, %s2084_s28 }
  0x76   : > { %1637 = vmatpush3.bf16.msra.mxu1 %v1923_v5  ;;  %1717 = vmatpush3.bf16.msra.mxu0 %v1924_v6  ;;  %v732_v30 = vor.u32 %v731_v26, %v728_v25  ;;  %v1950_v44 = vld [vmem:[#allocation5 + $0x170] sm:$0xff]   ;;  %v1951_v46 = vld [vmem:[#allocation5 + $0x38] sm:$0xff]   ;;  %v1953_v50 = vld [vmem:[#allocation5 + $0x80] sm:$0xff]  }
  0x77   : > { %1638 = vmatprep.subr.bf16.mxu1 %v2193_v0  ;;  %1718 = vmatprep.subr.bf16.mxu0 %v2193_v0  ;;  %v823_v45 = vld [vmem:[%s2407_s25] sm:$0x8]  ;;  %v255_v49 = vld [vmem:[%s2407_s25] sm:$0x7]  ;;  %v1955_v52 = vld [vmem:[#allocation5 + $0x180] sm:$0xff]   ;;  %p2093_p12 = por %p2092_p9, %p2091_p7 }
  0x78   : > { %v1509_v47 = vcombine.low %v823_v45, %v2436_v14  ;;  %v1952_v48 = vld [vmem:[#allocation5 + $0x178] sm:$0xff]   ;;  %v1956_v53 = vld [vmem:[#allocation5 + $0x88] sm:$0xff]   ;;  %v1958_v55 = vld [vmem:[#allocation5 + $0x90] sm:$0xff]  }
  0x79   : > { %v1957_v54 = vld [vmem:[#allocation5 + $0x188] sm:$0xff]   ;;  %v1959_v56 = vld [vmem:[#allocation5 + $0x190] sm:$0xff]   ;;  %v1960_v57 = vld [vmem:[#allocation5 + $0x98] sm:$0xff]   ;;  %p2094_p1 = pnand %p2093_p12, %p2087_p3 }
  0x7a   : > { %1639 = vmatpush3.bf16.msra.mxu1 %v1925_v7  ;;  %1719 = vmatpush3.bf16.msra.mxu0 %v1926_v8  ;;  %v844_v51 = vrot.slane %v1509_v47, 3  ;;  %v1961_v58 = vld [vmem:[#allocation5 + $0x198] sm:$0xff]   ;;  %v1273_v59 = vld [vmem:[#allocation7] sm:$0x3f]  ;;  %v1964_v62 = vld [vmem:[#allocation5 + $0xa8] sm:$0xff]  }
  0x7b   : > { %1640 = vmatprep.subr.bf16.mxu1 %v2193_v0  ;;  %1720 = vmatprep.subr.bf16.mxu0 %v2193_v0  ;;  %v1962_v60 = vld [vmem:[#allocation5 + $0xa0] sm:$0xff]   ;;  %v1965_v63 = vld [vmem:[#allocation5 + $0x1a8] sm:$0xff]   ;;  %v1966_v1 = vld [vmem:[#allocation5 + $0xb0] sm:$0xff]  }
  0x7c   : > { %1276 = vperm.xlu0 %1918, %v1273_v59   ;;  %v1963_v61 = vld [vmem:[#allocation5 + $0x1a0] sm:$0xff]   ;;  %v1967_v2 = vld [vmem:[#allocation5 + $0x1b0] sm:$0xff]   ;;  %v1968_v4 = vld [vmem:[#allocation5 + $0xb8] sm:$0xff]  }
  0x7d   : > { %v1970_v3 = vld [vmem:[%s2407_s25] ss:$0 sps:$4 sm:$0xee]   ;;  %v1971_v7 = vld [vmem:[#allocation5 + $0xc0] sm:$0xff]   ;;  %v935_v8 = vld [vmem:[%s2407_s25 + $0x4] sm:$0x7] }
  0x7e   : > { %1641 = vmatpush3.bf16.msra.mxu1 %v1927_v9  ;;  %1721 = vmatpush3.bf16.msra.mxu0 %v1928_v10  ;;  %v1969_v5 = vld [vmem:[#allocation5 + $0x1b8] sm:$0xff]   ;;  %v498_v6 = vrot.slane %v1970_v3, 1  ;;  %v1972_v9 = vld [vmem:[#allocation5 + $0x1c0] sm:$0xff]   ;;  %v1973_v10 = vld [vmem:[#allocation5 + $0xc8] sm:$0xff]  }
  0x7f   : > { %1642 = vmatprep.subr.bf16.mxu1 %v2193_v0  ;;  %1722 = vmatprep.subr.bf16.mxu0 %v2193_v0  ;;  %v1974_v11 = vld [vmem:[#allocation5 + $0x1c8] sm:$0xff]   ;;  %v1976_v14 = vld [vmem:[#allocation5 + $0x1d0] sm:$0xff]   ;;  %v1978_v16 = vld [vmem:[#allocation5 + $0x1d8] sm:$0xff]  }
  0x80   : > { %v1980_v18 = vld [vmem:[#allocation5 + $0x1e0] sm:$0xff]   ;;  %v1981_v19 = vld [vmem:[#allocation5 + $0xe8] sm:$0xff]   ;;  %v1988_v20 = vld [vmem:[%s2407_s25 + $0x4] ss:$0 sps:$4 sm:$0xff]  }
  0x81   : > { %v590_v23 = vld [vmem:[%s2407_s25 + $0x4] sm:$0x1]  ;;  %v1066_v24 = vshll.u32 %v1988_v20, 16 }
  0x82   : > { %1643 = vmatpush3.bf16.msra.mxu1 %v1929_v13  ;;  %1723 = vmatpush3.bf16.msra.mxu0 %v1930_v15  ;;  %v1975_v13 = vld [vmem:[#allocation5 + $0xd0] sm:$0xff]   ;;  %v1977_v15 = vld [vmem:[#allocation5 + $0xd8] sm:$0xff]   ;;  %v1491_v26 = vcombine.low %v2433_v12, %v590_v23  ;;  %v1990_v12 = vld [vmem:[#allocation5 + $0x208] sm:$0xff]  }
  0x83   : > { %1644 = vmatprep.subr.bf16.mxu1 %v2193_v0  ;;  %1724 = vmatprep.subr.bf16.mxu0 %v2193_v0  ;;  %v1984_v25 = vld [vmem:[#allocation5 + $0x1f0] sm:$0xff]  }
  0x84   : > { %v1991_v34 = vld [vmem:[#allocation5 + $0x210] sm:$0xff]  }
  0x86   : > { %1645 = vmatpush3.bf16.msra.mxu1 %v1931_v17  ;;  %1725 = vmatpush3.bf16.msra.mxu0 %v1932_v21  ;;  %v1979_v17 = vld [vmem:[#allocation5 + $0xe0] sm:$0xff]   ;;  %v1982_v21 = vld [vmem:[#allocation5 + $0x1e8] sm:$0xff]  }
  0x87   : > { %1646 = vmatprep.subr.bf16.mxu1 %v2193_v0  ;;  %1726 = vmatprep.subr.bf16.mxu0 %v2193_v0 }
  0x8a   : > { %1647 = vmatpush3.bf16.msra.mxu1 %v1933_v22  ;;  %1727 = vmatpush3.bf16.msra.mxu0 %v1934_v27  ;;  %v1983_v22 = vld [vmem:[#allocation5 + $0xf0] sm:$0xff]   ;;  %v1985_v27 = vld [vmem:[#allocation5 + $0xf8] sm:$0xff]  }
  0x8b   : > { %1652 = vmatprep.subr.bf16.mxu1 %v2193_v0  ;;  %1732 = vmatprep.subr.bf16.mxu0 %v2193_v0 }
  0x8d   : > { %1649 = vmatmul.mubr.bf16.vlgmr.msra.gmra.mrb[0].mxu1 %v299_v28  ;;  %1729 = vmatmul.mubr.bf16.vlgmr.msra.gmra.mrb[0].mxu0 %v732_v30  ;;  %v1064_v28 = vshrl.u32 %v1988_v20, 16  ;;  %v1986_v30 = vld [vmem:[#allocation5 + $0x1f8] sm:$0xff]  }
  0x8e   : > { %1653 = vmatpush3.bf16.msra.mxu1 %v1936_v29  ;;  %1733 = vmatpush3.bf16.msra.mxu0 %v1938_v31  ;;  %v1068_v29 = vrot.slane %v1066_v24, 1  ;;  %v613_v31 = vrot.slane %v1491_v26, 2 }
  0x8f   : > { %1654 = vmatprep.subr.bf16.mxu1 %v2193_v0  ;;  %1734 = vmatprep.subr.bf16.mxu0 %v2193_v0 }
  0x90   : > { %1668 = vmatprep.mubr.msk.bf16.mxu1 %vm2194_vm0, %v2193_v0  ;;  %1748 = vmatprep.mubr.msk.bf16.mxu0 %vm2194_vm0, %v2193_v0 }
  0x92   : > { %1655 = vmatpush3.bf16.msra.mxu1 %v1939_v32  ;;  %1735 = vmatpush3.bf16.msra.mxu0 %v1940_v33  ;;  %v1069_v32 = vor.u32 %v1068_v29, %v1064_v28  ;;  %v1989_v33 = vld [vmem:[#allocation5 + $0x200] sm:$0xff]  }
  0x93   : > { %1656 = vmatprep.subr.bf16.mxu1 %v2193_v0  ;;  %1736 = vmatprep.subr.bf16.mxu0 %v2193_v0 }
  0x96   : > { %1657 = vmatpush3.bf16.msra.mxu1 %v1941_v35  ;;  %1737 = vmatpush3.bf16.msra.mxu0 %v1942_v36  ;;  %v1992_v35 = vld [vmem:[#allocation5 + $0x218] sm:$0xff]   ;;  %v1993_v36 = vld [vmem:[#allocation5 + $0x220] sm:$0xff]  }
  0x97   : > { %1658 = vmatprep.subr.bf16.mxu1 %v2193_v0  ;;  %1738 = vmatprep.subr.bf16.mxu0 %v2193_v0 }
  0x9a   : > { %1659 = vmatpush3.bf16.msra.mxu1 %v1943_v37  ;;  %1739 = vmatpush3.bf16.msra.mxu0 %v1944_v38  ;;  %v1994_v37 = vld [vmem:[#allocation5 + $0x228] sm:$0xff]   ;;  %v1995_v38 = vld [vmem:[#allocation5 + $0x230] sm:$0xff]  }
  0x9b   : > { %1660 = vmatprep.subr.bf16.mxu1 %v2193_v0  ;;  %1740 = vmatprep.subr.bf16.mxu0 %v2193_v0 }
  0x9e   : > { %1661 = vmatpush3.bf16.msra.mxu1 %v1945_v39  ;;  %1741 = vmatpush3.bf16.msra.mxu0 %v1946_v40  ;;  %v1997_v39 = vld [vmem:[%s2407_s25 + $0x4] ss:$0 sps:$4 sm:$0xee]  }
  0x9f   : > { %1662 = vmatprep.subr.bf16.mxu1 %v2193_v0  ;;  %1742 = vmatprep.subr.bf16.mxu0 %v2193_v0  ;;  %v1996_v40 = vld [vmem:[#allocation5 + $0x238] sm:$0xff]  }
  0xa2   : > { %1663 = vmatpush3.bf16.msra.mxu1 %v1947_v41  ;;  %1743 = vmatpush3.bf16.msra.mxu0 %v1948_v42  ;;  %v1181_v41 = vrot.slane %v1997_v39, 1 }
  0xa3   : > { %1664 = vmatprep.subr.bf16.mxu1 %v2193_v0  ;;  %1744 = vmatprep.subr.bf16.mxu0 %v2193_v0 }
  0xa6   : > { %1665 = vmatpush3.bf16.msra.mxu1 %v1949_v43  ;;  %1745 = vmatpush3.bf16.msra.mxu0 %v1950_v44 }
  0xa7   : > { %1666 = vmatprep.subr.bf16.mxu1 %v2193_v0  ;;  %1746 = vmatprep.subr.bf16.mxu0 %v2193_v0 }
  0xaa   : > { %1667 = vmatpush3.bf16.msra.mxu1 %v1951_v46  ;;  %1747 = vmatpush3.bf16.msra.mxu0 %v1952_v48 }
  0xab   : > { %1672 = vmatprep.subr.bf16.mxu1 %v2193_v0  ;;  %1752 = vmatprep.subr.bf16.mxu0 %v2193_v0 }
  0xad   : > { %1669 = vmatmul.mubr.bf16.vlgmr.msra.gmra.mrb[0].mxu1 %v255_v49  ;;  %1749 = vmatmul.mubr.bf16.vlgmr.msra.gmra.mrb[0].mxu0 %v844_v51 }
  0xae   : > { %1673 = vmatpush3.bf16.msra.mxu1 %v1953_v50  ;;  %1753 = vmatpush3.bf16.msra.mxu0 %v1955_v52 }
  0xaf   : > { %1674 = vmatprep.subr.bf16.mxu1 %v2193_v0  ;;  %1754 = vmatprep.subr.bf16.mxu0 %v2193_v0 }
  0xb0   : > { %1688 = vmatprep.mubr.msk.bf16.mxu1 %vm2194_vm0, %v2193_v0  ;;  %1768 = vmatprep.mubr.msk.bf16.mxu0 %vm2194_vm0, %v2193_v0 }
  0xb2   : > { %1675 = vmatpush3.bf16.msra.mxu1 %v1956_v53  ;;  %1755 = vmatpush3.bf16.msra.mxu0 %v1957_v54 }
  0xb3   : > { %1676 = vmatprep.subr.bf16.mxu1 %v2193_v0  ;;  %1756 = vmatprep.subr.bf16.mxu0 %v2193_v0 }
  0xb6   : > { %1677 = vmatpush3.bf16.msra.mxu1 %v1958_v55  ;;  %1757 = vmatpush3.bf16.msra.mxu0 %v1959_v56 }
  0xb7   : > { %1678 = vmatprep.subr.bf16.mxu1 %v2193_v0  ;;  %1758 = vmatprep.subr.bf16.mxu0 %v2193_v0 }
  0xba   : > { %1679 = vmatpush3.bf16.msra.mxu1 %v1960_v57  ;;  %1759 = vmatpush3.bf16.msra.mxu0 %v1961_v58 }
  0xbb   : > { %1680 = vmatprep.subr.bf16.mxu1 %v2193_v0  ;;  %1760 = vmatprep.subr.bf16.mxu0 %v2193_v0 }
  0xbe   : > { %1681 = vmatpush3.bf16.msra.mxu1 %v1962_v60  ;;  %1761 = vmatpush3.bf16.msra.mxu0 %v1963_v61 }
  0xbf   : > { %1682 = vmatprep.subr.bf16.mxu1 %v2193_v0  ;;  %1762 = vmatprep.subr.bf16.mxu0 %v2193_v0 }
  0xc2   : > { %1683 = vmatpush3.bf16.msra.mxu1 %v1964_v62  ;;  %1763 = vmatpush3.bf16.msra.mxu0 %v1965_v63 }
  0xc3   : > { %1684 = vmatprep.subr.bf16.mxu1 %v2193_v0  ;;  %1764 = vmatprep.subr.bf16.mxu0 %v2193_v0 }
  0xc6   : > { %1685 = vmatpush3.bf16.msra.mxu1 %v1966_v1  ;;  %1765 = vmatpush3.bf16.msra.mxu0 %v1967_v2 }
  0xc7   : > { %1686 = vmatprep.subr.bf16.mxu1 %v2193_v0  ;;  %1766 = vmatprep.subr.bf16.mxu0 %v2193_v0 }
  0xca   : > { %1687 = vmatpush3.bf16.msra.mxu1 %v1968_v4  ;;  %1767 = vmatpush3.bf16.msra.mxu0 %v1969_v5 }
  0xcb   : > { %1692 = vmatprep.subr.bf16.mxu1 %v2193_v0  ;;  %1772 = vmatprep.subr.bf16.mxu0 %v2193_v0 }
  0xcd   : > { %1689 = vmatmul.mubr.bf16.vlgmr.msra.gmra.mrb[0].mxu1 %v498_v6  ;;  %1769 = vmatmul.mubr.bf16.vlgmr.msra.gmra.mrb[0].mxu0 %v935_v8 }
  0xce   : > { %1693 = vmatpush3.bf16.msra.mxu1 %v1971_v7  ;;  %1773 = vmatpush3.bf16.msra.mxu0 %v1972_v9 }
  0xcf   : > { %1694 = vmatprep.subr.bf16.mxu1 %v2193_v0  ;;  %1774 = vmatprep.subr.bf16.mxu0 %v2193_v0 }
  0xd0   : > { %1708 = vmatprep.mubr.msk.bf16.mxu1 %vm2194_vm0, %v2193_v0  ;;  %1788 = vmatprep.mubr.msk.bf16.mxu0 %vm2194_vm0, %v2193_v0 }
  0xd2   : > { %1695 = vmatpush3.bf16.msra.mxu1 %v1973_v10  ;;  %1775 = vmatpush3.bf16.msra.mxu0 %v1974_v11 }
  0xd3   : > { %1696 = vmatprep.subr.bf16.mxu1 %v2193_v0  ;;  %1776 = vmatprep.subr.bf16.mxu0 %v2193_v0 }
  0xd6   : > { %1697 = vmatpush3.bf16.msra.mxu1 %v1975_v13  ;;  %1777 = vmatpush3.bf16.msra.mxu0 %v1976_v14 }
  0xd7   : > { %1698 = vmatprep.subr.bf16.mxu1 %v2193_v0  ;;  %1778 = vmatprep.subr.bf16.mxu0 %v2193_v0 }
  0xda   : > { %1699 = vmatpush3.bf16.msra.mxu1 %v1977_v15  ;;  %1779 = vmatpush3.bf16.msra.mxu0 %v1978_v16 }
  0xdb   : > { %1700 = vmatprep.subr.bf16.mxu1 %v2193_v0  ;;  %1780 = vmatprep.subr.bf16.mxu0 %v2193_v0 }
  0xde   : > { %1701 = vmatpush3.bf16.msra.mxu1 %v1979_v17  ;;  %1781 = vmatpush3.bf16.msra.mxu0 %v1980_v18 }
  0xdf   : > { %1702 = vmatprep.subr.bf16.mxu1 %v2193_v0  ;;  %1782 = vmatprep.subr.bf16.mxu0 %v2193_v0 }
  0xe2   : > { %1703 = vmatpush3.bf16.msra.mxu1 %v1981_v19  ;;  %1783 = vmatpush3.bf16.msra.mxu0 %v1982_v21 }
  0xe3   : > { %1704 = vmatprep.subr.bf16.mxu1 %v2193_v0  ;;  %1784 = vmatprep.subr.bf16.mxu0 %v2193_v0 }
  0xe6   : > { %1705 = vmatpush3.bf16.msra.mxu1 %v1983_v22  ;;  %1785 = vmatpush3.bf16.msra.mxu0 %v1984_v25 }
  0xe7   : > { %1706 = vmatprep.subr.bf16.mxu1 %v2193_v0  ;;  %1786 = vmatprep.subr.bf16.mxu0 %v2193_v0 }
  0xea   : > { %1707 = vmatpush3.bf16.msra.mxu1 %v1985_v27  ;;  %1787 = vmatpush3.bf16.msra.mxu0 %v1986_v30 }
  0xeb   : > { %1792 = vmatprep.subr.bf16.mxu0 %v2193_v0 }
  0xed   : > { %1709 = vmatmul.mubr.bf16.vlgmr.msra.gmra.mrb[0].mxu1 %v613_v31  ;;  %1789 = vmatmul.mubr.bf16.vlgmr.msra.gmra.mrb[0].mxu0 %v1069_v32 }
  0xee   : > { %1793 = vmatpush3.bf16.msra.mxu0 %v1989_v33  ;;  %1808 = vmatprep.mubr.msk.bf16.mxu0 %vm2194_vm0, %v2193_v0 }
  0xef   : > { %1794 = vmatprep.subr.bf16.mxu0 %v2193_v0 }
  0xf2   : > { %1795 = vmatpush3.bf16.msra.mxu0 %v1990_v12 }
  0xf3   : > { %1796 = vmatprep.subr.bf16.mxu0 %v2193_v0 }
  0xf6   : > { %1797 = vmatpush3.bf16.msra.mxu0 %v1991_v34 }
  0xf7   : > { %1798 = vmatprep.subr.bf16.mxu0 %v2193_v0 }
  0xfa   : > { %1799 = vmatpush3.bf16.msra.mxu0 %v1992_v35 }
  0xfb   : > { %1800 = vmatprep.subr.bf16.mxu0 %v2193_v0  ;;  %v1277_v47 = vpop.permute.xlu0 %1276 }
  0xfe   : > { %1801 = vmatpush3.bf16.msra.mxu0 %v1993_v36 }
  0xff   : > { %1802 = vmatprep.subr.bf16.mxu0 %v2193_v0 }
 0x102   : > { %1803 = vmatpush3.bf16.msra.mxu0 %v1994_v37 }
 0x103   : > { %1804 = vmatprep.subr.bf16.mxu0 %v2193_v0 }
 0x106   : > { %1805 = vmatpush3.bf16.msra.mxu0 %v1995_v38 }
 0x107   : > { %1806 = vmatprep.subr.bf16.mxu0 %v2193_v0 }
 0x10a   : > { %1807 = vmatpush3.bf16.msra.mxu0 %v1996_v40 }
 0x10d   : > { %1809 = vmatmul.mubr.bf16.vlgmr.msra.gmra.mrb[0].mxu0 %v1181_v41 }
 0x1c0   : > { %v697_v42 = vpop.f32.mrb[0].mxu1 }
 0x1c1   : > { %v1710_v43 = vpop.f32.mrb[1].mxu1 }
 0x1c2   : > { %v700_v44 = vpop.f32.mrb[2].mxu1 }
 0x1c3   : > { %v1711_v45 = vpop.f32.mrb[3].mxu1 }
 0x1e0   : > { %v1265_v46 = vpop.f32.mrb[0].mxu0 }
 0x1e1   : > { %v1812_v48 = vadd.f32 %v1265_v46, %v697_v42  ;;  %v1810_v49 = vpop.f32.mrb[1].mxu0 }
 0x1e2   : > { %v1268_v0 = vpop.f32.mrb[2].mxu0 }
 0x1e3   : > { %1272 = vst [vmem:[%s246_s23] sm:$0x3f] %v1812_v48  ;;  %v1279_v50 = vmul.f32 %v1812_v48, %v1277_v47  ;;  %v1811_v51 = vpop.f32.mrb[3].mxu0 }
 0x1e4   : > { %2097 = shalt.err (!%p2094_p1)
}
 0x1e5   : > { %s2098_s5 = scalar_lea.hbm %s2531_s6, 128  ;;  %s2102_s24 = scalar_lea.hbm %s2611_s3, 256 }
 0x1e6   : > { %p2099_p13 = scmp.ne.s32.totalorder %s2531_s6, %s2098_s5  ;;  %p2103_p4 = scmp.lt.u32.totalorder %s2531_s6, %s2611_s3 }
 0x1e7   : > { %p2104_p5 = scmp.lt.u32.totalorder %s2102_s24, %s2098_s5  ;;  %p2106_p11 = scmp.lt.u32.totalorder %s2098_s5, %s2531_s6 }
 0x1e8   : > { %p2100_p6 = pnand %p2099_p13, %p2626_p0 }
 0x1e9   : > { %p2105_p8 = por %p2104_p5, %p2103_p4 }
 0x1ea   : > { %p2101_p10 = pneg %p2100_p6 }
 0x1eb   : > { %p2107_p2 = por %p2106_p11, %p2105_p8 }
 0x1ed   : > { %p2108_p3 = pnand %p2107_p2, %p2101_p10 }
 0x1ef   : > { %2111 = shalt.err (!%p2108_p3)
}
 0x1f0   : > { %1851 = dma.vmem_to_hbm [thread:$0]  (%p2626_p0), %s2533_s11, 128, %s2531_s6, %s1299_s7   ;;  %v1281_v52 = vsel %vm1280_vm1, %v1279_v50, 0.0  ;;  %v1289_v53 = vmul.f32 %v1812_v48, %v1279_v50 }
 0x1f1   : > { %v1282_v54 = vrot.slane %v1281_v52, 4  ;;  %s1464_s23 = sshll.u32 %s2401_s8, 1  ;;  %s1547_s12 = sshll.u32 %s2244_s19, 5 }
 0x1f2   : > { %v1290_v55 = vsel %vm1280_vm1, %v1289_v53, 0.0  ;;  %s253_s30 = scalar_lea.vmem [#allocation9], %s1464_s23  ;;  %s2564_s28 = scalar_lea.hbm %s2612_s4, %s1547_s12 }
 0x1f3   : > { %v1283_v56 = vadd.f32 %v1282_v54, %v1281_v52  ;;  %v1291_v57 = vrot.slane %v1290_v55, 4  ;;  %s1330_s11 = sshll.u32 %s253_s30, 4  ;;  %s1304_s27 = scalar_lea.sflag [#allocation10], %s2401_s8  ;;  %s2566_s11 = int_to_ptr.vmem [resolvable:$true] %s1330_s11 }
 0x1f4   : > { %s2112_s20 = scalar_lea.vmem %s2566_s11, 32  ;;  %s2197_s19 = smov [#allocation9]  }
 0x1f5   : > { %v1284_v58 = vrot.slane %v1283_v56, 2  ;;  %v1292_v59 = vadd.f32 %v1291_v57, %v1290_v55  ;;  %p2113_p7 = scmp.ne.s32.totalorder %s2566_s11, %s2112_s20  ;;  %s2116_s29 = sshll.u32 %s2197_s19, 4  ;;  %s2117_s29 = int_to_ptr.vmem [resolvable:$false] %s2116_s29 }
 0x1f6   : > { %s2118_s5 = scalar_lea.vmem %s2117_s29, 64  ;;  %p2119_p1 = scmp.lt.s32.totalorder %s2566_s11, %s2117_s29 }
 0x1f7   : > { %v1285_v60 = vadd.f32 %v1284_v58, %v1283_v56  ;;  %v1293_v61 = vrot.slane %v1292_v59, 2  ;;  %p2114_p9 = pnand %p2113_p7, %p2626_p0  ;;  %p2120_p13 = scmp.lt.s32.totalorder %s2118_s5, %s2112_s20 }
 0x1f9   : > { %v1286_v62 = vrot.slane %v1285_v60, 1  ;;  %v1294_v63 = vadd.f32 %v1293_v61, %v1292_v59  ;;  %p2115_p12 = pneg %p2114_p9  ;;  %p2121_p6 = por %p2120_p13, %p2119_p1 }
 0x1fb   : > { %v1287_v1 = vadd.f32 %v1286_v62, %v1285_v60  ;;  %v1295_v2 = vrot.slane %v1294_v63, 1  ;;  %p2122_p10 = pnand %p2121_p6, %p2115_p12 }
 0x1fd   : > { %v1296_v3 = vadd.f32 %v1295_v2, %v1294_v63  ;;  %1288 = vst [vmem:[%s253_s30] sm:$0x1] %v1287_v1 }
 0x1ff   : > { %1297 = vst [vmem:[%s253_s30 + $0x1] sm:$0x1] %v1296_v3 }
 0x200   : > { %2125 = shalt.err (!%p2122_p10)
}
 0x201   : > { %s2126_s8 = scalar_lea.hbm %s2564_s28, 32  ;;  %s2130_s24 = scalar_lea.hbm %s2612_s4, 64 }
 0x202   : > { %p2127_p4 = scmp.ne.s32.totalorder %s2564_s28, %s2126_s8  ;;  %p2131_p11 = scmp.lt.u32.totalorder %s2564_s28, %s2612_s4 }
 0x203   : > { %p2132_p2 = scmp.lt.u32.totalorder %s2130_s24, %s2126_s8  ;;  %p2134_p7 = scmp.lt.u32.totalorder %s2126_s8, %s2564_s28 }
 0x204   : > { %p2128_p5 = pnand %p2127_p4, %p2626_p0 }
 0x205   : > { %p2133_p3 = por %p2132_p2, %p2131_p11 }
 0x206   : > { %p2129_p8 = pneg %p2128_p5 }
 0x207   : > { %p2135_p9 = por %p2134_p7, %p2133_p3 }
 0x209   : > { %p2136_p12 = pnand %p2135_p9, %p2129_p8 }
 0x20b   : > { %2139 = shalt.err (!%p2136_p12)
}
 0x20c   : > { %1852 = dma.vmem_to_hbm [thread:$0]  (%p2626_p0), %s2566_s11, 32, %s2564_s28, %s1304_s27  }
 0x20d PF: > { %s1342_s23 = sand.u32 1, %s2174_s15   ;;  %p2627_p1 = scmp.ne.s32.totalorder %s2617_s22, 0 }
 0x20e   : > { %p2628_p13 = scmp.ge.s32.totalorder %s2186_s18, 2  ;;  %s1343_s12 = scalar_lea.sflag [#allocation4], %s1342_s23 }
 0x210   : > { %p1867_p6 = pnand %p2628_p13, %p2627_p1 }
 0x212   : > { %2165 = dma.done.wait (!%p1867_p6), %s1343_s12, 128  }
 0x213   : > { %2167 = vsyncadd (!%p1867_p6), %s1343_s12, 4294967168  ;;  %s1352_s30 = scalar_lea.sflag [#allocation10], %s1342_s23 }
 0x214   : > { %2169 = dma.done.wait (!%p1867_p6), %s1352_s30, 32  }
 0x215   : > { %2171 = vsyncadd (!%p1867_p6), %s1352_s30, 4294967264  ;;  %p22_p0 = scmp.ge.s32.totalorder %s2336_s9, 4   ;;  %s2629_s15 = smov %s2178_s16 }
 0x216   : > { %s2630_s16 = smov %s2182_s17  ;;  %s2631_s17 = smov %s2352_s14 }
 0x217   : > { %s2632_s18 = smov %s2336_s9  ;;  %24 = sbr.rel (!%p22_p0) target bundleno = 8 (0x8), region = 110 }
 0x21e   :  { %1357 = vsyncpa [#allocation3], 1 }
 0x21f   :  { %1359 = vsyncpa [#allocation3 + $0x1], 1 }
 0x220   :  { %1360 = vsyncpa [#allocation6], 1 }
 0x221   :  { %1361 = vsyncpa [#allocation4], 1 }
 0x222   :  { %1363 = vsyncpa [#allocation4 + $0x1], 1 }
 0x223   :  { %1364 = vsyncpa [#allocation10], 1 }
 0x224   :  { %1366 = vsyncpa [#allocation10 + $0x1], 1 }

// kernel: downsample_forward.71
= control target key start
LH: loop header
LB: loop body
LE: loop exit
PB: predicated region body
PF: predicated region fallthrough
CT: control target
= control target key end

     0   :  { %6 = vsyncpa [#allocation3], 0  ;;  %s591_s0 = inlined_call_operand.hbm [shape: bf16[9,2,1,128], index: 0, kind: input, shape index: {}]   ;;  %s592_s1 = inlined_call_operand.hbm [shape: bf16[2,1,128], index: 1, kind: output, shape index: {}]  }
   0x1   :  { %8 = vsyncpa [#allocation3 + $0x1], 0 }
   0x2   :  { %9 = vsyncpa [#allocation4], 0 }
   0x3   :  { %11 = vsyncpa [#allocation4 + $0x1], 0  ;;  %s434_s6 = smov 0   ;;  %s436_s7 = smov 0  }
   0x4   :  { %s438_s8 = smov 0   ;;  %s440_s9 = smov 0  }
   0x5 LB: > { %s455_s10 = sadd.s32 4294967295, %s417_s9   ;;  %s254_s11 = sadd.s32 4294967294, %s417_s9   ;;  %s417_s9 = sphi %s440_s9, %s605_s9   ;;  %s413_s8 = sphi %s438_s8, %s604_s8   ;;  %s409_s7 = sphi %s436_s7, %s603_s7   ;;  %s405_s6 = sphi %s434_s6, %s602_s6  }
   0x6   : > { %s459_s12 = sadd.s32 1, %s417_s9   ;;  %s24_s13 = sadd.s32 1, %s413_s8 }
   0x7   : > { %s21_s14 = ssub.s32 %s417_s9, %s459_s12  ;;  %p31_p0 = scmp.ne.s32.totalorder %s413_s8, %s409_s7 }
   0x8   : > { %p22_p1 = scmp.eq.s32.totalorder %s21_s14, 0  ;;  %p32_p2 = scmp.eq.s32.totalorder %s417_s9, 0 }
   0x9   : > { %p37_p3 = scmp.ne.s32.totalorder %s409_s7, %s405_s6  ;;  %p38_p4 = scmp.eq.s32.totalorder %s455_s10, 0 }
   0xa   : > { %s471_s15 = scalar_select %p22_p1, %s413_s8, %s24_s13  }
   0xb   : > { %p33_p5 = por %p32_p2, %p31_p0  ;;  %p473_p6 = por %p38_p4, %p37_p3 }
   0xc   : > { %p61_p7 = scmp.eq.s32.totalorder %s455_s10, 1  ;;  %p67_p8 = scmp.eq.s32.totalorder %s254_s11, 1 }
   0xd   : > { %p284_p10 = scmp.lt.s32.totalorder %s417_s9, 2  ;;  %s87_s19 = sand.u32 1, %s413_s8  }
   0xe   : > { %p480_p11 = por %p61_p7, %p31_p0  ;;  %p484_p12 = por %p67_p8, %p37_p3 }
   0xf   : > { %s257_s20 = sshll.u32 %s417_s9, 4  ;;  %s270_s21 = smul.u32 9, %s87_s19 }
  0x10   : > { %s595_s17 = scalar_select %p480_p11, 1, 0 }
  0x11   : > { %s596_s18 = scalar_select %p484_p12, 1, 0 }
  0x12   : > { %s493_s24 = scalar_lea.hbm %s591_s0, %s257_s20  ;;  %p495_p13 = pnand %p284_p10, %p33_p5 }
  0x13   : > { %s91_s26 = scalar_lea.vmem [#allocation2], %s270_s21  ;;  %s502_s28 = scalar_lea.sflag [#allocation3], %s87_s19 }
  0x14   : > { %s97_s27 = sshll.u32 %s91_s26, 4  ;;  %s321_s29 = scalar_lea.hbm %s493_s24, 144  ;;  %s499_s27 = int_to_ptr.vmem [resolvable:$true] %s97_s27 }
  0x15   : > { %p322_p1 = scmp.ne.s32.totalorder %s493_s24, %s321_s29  ;;  %p323_p2 = pneg %p495_p13 }
  0x16   : > { %s326_s3 = scalar_lea.hbm %s591_s0, 288  ;;  %p327_p5 = scmp.lt.u32.totalorder %s493_s24, %s591_s0 }
  0x17   : > { %p324_p3 = pnand %p323_p2, %p322_p1  ;;  %p328_p7 = scmp.lt.u32.totalorder %s326_s3, %s321_s29 }
  0x18   : > { %p330_p10 = scmp.lt.u32.totalorder %s321_s29, %s493_s24 }
  0x19   : > { %p325_p4 = pneg %p324_p3  ;;  %p329_p8 = por %p328_p7, %p327_p5 }
  0x1b   : > { %p331_p9 = por %p330_p10, %p329_p8 }
  0x1d   : > { %p332_p0 = pnand %p331_p9, %p325_p4 }
  0x1f   : > { %335 = shalt.err (!%p332_p0)
}
  0x20   : > { %s336_s11 = scalar_lea.vmem %s499_s27, 144  ;;  %s419_s13 = smov [#allocation2]  }
  0x21   : > { %p337_p1 = scmp.ne.s32.totalorder %s499_s27, %s336_s11  ;;  %s341_s14 = sshll.u32 %s419_s13, 4  ;;  %s342_s14 = int_to_ptr.vmem [resolvable:$false] %s341_s14 }
  0x22   : > { %s343_s19 = scalar_lea.vmem %s342_s14, 288  ;;  %p344_p11 = scmp.lt.s32.totalorder %s499_s27, %s342_s14 }
  0x23   : > { %p339_p3 = pnand %p337_p1, %p323_p2  ;;  %p345_p5 = scmp.lt.s32.totalorder %s343_s19, %s336_s11 }
  0x25   : > { %p340_p12 = pneg %p339_p3  ;;  %p346_p7 = por %p345_p5, %p344_p11 }
  0x27   : > { %p347_p8 = pnand %p346_p7, %p340_p12 }
  0x29   : > { %350 = shalt.err (!%p347_p8)
}
  0x2a   : > { %s420_s20 = smov 32   ;;  %s421_s21 = smov 16  }
  0x2b   : > { %s422_s22 = smov 1   ;;  %p105_p9 = scmp.lt.s32.totalorder %s417_s9, 3 }
  0x2c   : > { %279 = dma.hbm_to_vmem [thread:$0]  (!%p495_p13), %s493_s24, 144, %s499_s27, %s502_s28, %s420_s20, %s421_s21, %s422_s22  }
  0x2d   : > { %p598_p0 = scmp.ge.s32.totalorder %s417_s9, 1 }
  0x2f   : > { %p106_p2 = pnand %p598_p0, %p105_p9 }
  0x30   : > { %s534_s23 = sand.u32 (!%p106_p2), 1, %s409_s7  }
  0x31   : > { %109 = sbr.rel (%p106_p2) target bundleno = 95 (0x5f), region = 24  ;;  %s112_s29 = scalar_lea.sflag (!%p106_p2), [#allocation3], %s534_s23 }
  0x32   : > { %s271_s26 = smul.u32 (!%p106_p2), 9, %s534_s23 }
  0x34   : > { %s115_s30 = scalar_lea.vmem (!%p106_p2), [#allocation2], %s271_s26 }
  0x38   : > { %396 = dma.done.wait (%p473_p6), %s112_s29, 144  }
  0x39   : > { %398 = vsyncadd (%p473_p6), %s112_s29, 4294967152  ;;  %v133_v0 = vld [vmem:[%s115_s30] sm:$0x1]  ;;  %v259_v1 = vld [vmem:[%s115_s30 + $0x1] sm:$0x1]  ;;  %vm169_vm0 = vcmask 1040384  }
  0x3a   : > { %v260_v2 = vld [vmem:[%s115_s30 + $0x2] sm:$0x1]  ;;  %v134_v3 = vunpack.c.l.bf16 %v133_v0  ;;  %v137_v4 = vunpack.c.l.bf16 %v259_v1  ;;  %v261_v6 = vld [vmem:[%s115_s30 + $0x3] sm:$0x1]  ;;  %v262_v7 = vld [vmem:[%s115_s30 + $0x4] sm:$0x1] }
  0x3b   : > { %v141_v5 = vunpack.c.l.bf16 %v260_v2  ;;  %v145_v9 = vunpack.c.l.bf16 %v261_v6  ;;  %v263_v10 = vld [vmem:[%s115_s30 + $0x5] sm:$0x1]  ;;  %v149_v12 = vunpack.c.l.bf16 %v262_v7  ;;  %v264_v13 = vld [vmem:[%s115_s30 + $0x6] sm:$0x1]  ;;  %v265_v16 = vld [vmem:[%s115_s30 + $0x7] sm:$0x1] }
  0x3c   : > { %v138_v8 = vadd.f32 %v137_v4, %v134_v3  ;;  %v153_v15 = vunpack.c.l.bf16 %v263_v10  ;;  %v157_v18 = vunpack.c.l.bf16 %v264_v13  ;;  %v266_v19 = vld [vmem:[%s115_s30 + $0x8] sm:$0x1]  ;;  %v161_v21 = vunpack.c.l.bf16 %v265_v16  ;;  %s132_s16 = scalar_lea.vmem [#allocation5], %s534_s23  ;;  %s267_s25 = sshll.u32 %s455_s10, 4 }
  0x3d   : > { %v165_v23 = vunpack.c.l.bf16 %v266_v19  ;;  %vm170_vm1 = vsmask.f32 256  ;;  %s188_s24 = sshll.u32 %s132_s16, 4  ;;  %v172_v27 = vld [vmem:[%s132_s16] sm:$0x1]  ;;  %s547_s2 = scalar_lea.hbm %s592_s1, %s267_s25  ;;  %s549_s24 = int_to_ptr.vmem [resolvable:$true] %s188_s24 }
  0x3e   : > { %v142_v11 = vadd.f32 %v141_v5, %v138_v8  ;;  %vm171_vm2 = vmand %vm169_vm0, %vm170_vm1  ;;  %s176_s3 = scalar_lea.sflag [#allocation4], %s534_s23  ;;  %s351_s4 = scalar_lea.vmem %s549_s24, 16 }
  0x3f   : > { %p352_p6 = scmp.ne.s32.totalorder %s549_s24, %s351_s4  ;;  %p599_p11 = scmp.ne.s32.totalorder %s595_s17, 0 }
  0x40   : > { %v146_v14 = vadd.f32 %v145_v9, %v142_v11  ;;  %s423_s10 = smov [#allocation5]  }
  0x41   : > { %p353_p12 = pnand %p352_p6, %p599_p11  ;;  %s355_s5 = sshll.u32 %s423_s10, 4  ;;  %s356_s5 = int_to_ptr.vmem [resolvable:$false] %s355_s5 }
  0x42   : > { %v150_v17 = vadd.f32 %v149_v12, %v146_v14  ;;  %s357_s11 = scalar_lea.vmem %s356_s5, 32  ;;  %p358_p4 = scmp.lt.s32.totalorder %s549_s24, %s356_s5 }
  0x43   : > { %p354_p13 = pneg %p353_p12  ;;  %p359_p10 = scmp.lt.s32.totalorder %s357_s11, %s351_s4 }
  0x44   : > { %v154_v20 = vadd.f32 %v153_v15, %v150_v17 }
  0x45   : > { %p360_p1 = por %p359_p10, %p358_p4 }
  0x46   : > { %v158_v22 = vadd.f32 %v157_v18, %v154_v20 }
  0x47   : > { %p361_p3 = pnand %p360_p1, %p354_p13 }
  0x48   : > { %v162_v24 = vadd.f32 %v161_v21, %v158_v22 }
  0x4a   : > { %v166_v25 = vadd.f32 %v165_v23, %v162_v24 }
  0x4c   : > { %v167_v26 = vmul.f32 0.11111111, %v166_v25 }
  0x4e   : > { %v168_v28 = vpack.c.bf16 %v167_v26, %v167_v26 }
  0x50   : > { %v173_v29 = vsel %vm171_vm2, %v168_v28, %v172_v27 }
  0x51   : > { %174 = vst [vmem:[%s132_s16] sm:$0x1] %v173_v29 }
  0x52   : > { %364 = shalt.err (!%p361_p3)
}
  0x53   : > { %s365_s13 = scalar_lea.hbm %s547_s2, 16  ;;  %s369_s20 = scalar_lea.hbm %s592_s1, 32 }
  0x54   : > { %p366_p5 = scmp.ne.s32.totalorder %s547_s2, %s365_s13  ;;  %p370_p9 = scmp.lt.u32.totalorder %s547_s2, %s592_s1 }
  0x55   : > { %p371_p0 = scmp.lt.u32.totalorder %s369_s20, %s365_s13  ;;  %p373_p6 = scmp.lt.u32.totalorder %s365_s13, %s547_s2 }
  0x56   : > { %p367_p7 = pnand %p366_p5, %p599_p11 }
  0x57   : > { %p372_p2 = por %p371_p0, %p370_p9 }
  0x58   : > { %p368_p8 = pneg %p367_p7 }
  0x59   : > { %p374_p12 = por %p373_p6, %p372_p2 }
  0x5b   : > { %p375_p13 = pnand %p374_p12, %p368_p8 }
  0x5d   : > { %378 = shalt.err (!%p375_p13)
}
  0x5e   : > { %274 = dma.vmem_to_hbm [thread:$0]  (%p599_p11), %s549_s24, 16, %s547_s2, %s176_s3  }
  0x5f PF: > { %s200_s23 = sand.u32 1, %s405_s6   ;;  %p600_p4 = scmp.ne.s32.totalorder %s596_s18, 0 }
  0x60   : > { %p601_p10 = scmp.ge.s32.totalorder %s417_s9, 2  ;;  %s201_s26 = scalar_lea.sflag [#allocation4], %s200_s23 }
  0x62   : > { %p281_p1 = pnand %p601_p10, %p600_p4 }
  0x64   : > { %400 = dma.done.wait (!%p281_p1), %s201_s26, 16  }
  0x65   : > { %402 = vsyncadd (!%p281_p1), %s201_s26, 4294967280  ;;  %p14_p3 = scmp.ge.s32.totalorder %s459_s12, 4   ;;  %s602_s6 = smov %s409_s7 }
  0x66   : > { %s603_s7 = smov %s413_s8  ;;  %s604_s8 = smov %s471_s15 }
  0x67   : > { %s605_s9 = smov %s459_s12  ;;  %16 = sbr.rel (!%p14_p3) target bundleno = 5 (0x5), region = 77 }
  0x6e   :  { %205 = vsyncpa [#allocation3], 1 }
  0x6f   :  { %207 = vsyncpa [#allocation3 + $0x1], 1 }
  0x70   :  { %208 = vsyncpa [#allocation4], 1 }
  0x71   :  { %210 = vsyncpa [#allocation4 + $0x1], 1 }

</bundles_post_ra>
